<compile_context>
chip_gen: v7x
topology: tpu7x:2x2x1
jax: 0.10.0
libtpu: 0.0.40
codegen_flags: <defaults>
</compile_context>

<pallas_src>
import functools

import numpy as np
import jax
import jax.numpy as jnp
from jax.experimental import pallas as pl
from jax.experimental.pallas import tpu as pltpu

_VMEM_LIMIT = 32 * 1024 * 1024      # <= default scoped limit on v6e/v7x, safe on v5e
_ROW_BUDGET = 8 * 1024 * 1024       # per-buffer VMEM budget for norm/pool row blocks


def _cparams(n_grid_dims):
    return pltpu.CompilerParams(
        dimension_semantics=("parallel",) * n_grid_dims,
        vmem_limit_bytes=_VMEM_LIMIT)


def _pick_rows(r, bytes_per_row, budget=_ROW_BUDGET):
    """Row-block size from a VMEM budget (multiple of 8 unless it covers all rows)."""
    br = budget // max(bytes_per_row, 1)
    if br >= r:
        return r
    br = max(8, (br // 8) * 8)
    return min(br, r)


# ----------------------------- Pallas kernels -----------------------------

def _mdconv3x3_kernel(x_ref, w_ref, mask_ref, o_ref, win_ref, *,
                      wp, lout, c2, couth, cnt, fuse_norm):
    # x_ref   : (2*Cin, Lpad)  zero-padded flattened image, image rows then kspace rows
    # w_ref   : (2*Couth, 9*2*Cin) bf16 block-diagonal, tap-major folded weights
    # mask_ref: (1, Lout) f32 valid-column mask (1 where lane%Wp < W)
    # o_ref   : (2*Couth, Lout) ; win_ref scratch: (9*2*Cin, Lout) f32
    for t in range(9):
        kh, kw = divmod(t, 3)
        win_ref[pl.ds(t * c2, c2), :] = x_ref[:, pl.ds(kh * wp + kw, lout)]
    y = jnp.dot(w_ref[...],
                win_ref[...].astype(jnp.bfloat16),
                preferred_element_type=jnp.float32)          # (2*Couth, Lout)
    if fuse_norm:
        # InstanceNorm2d (biased var, eps=1e-5) + LeakyReLU(0.2) for the image-domain rows.
        m = mask_ref[...]
        mean = jnp.sum(y * m, axis=-1, keepdims=True) / cnt
        xc = (y - mean) * m
        var = jnp.sum(xc * xc, axis=-1, keepdims=True) / cnt
        yn = (y - mean) * jax.lax.rsqrt(var + 1e-5)
        yn = jnp.where(yn >= 0, yn, 0.2 * yn)
        row = jax.lax.broadcasted_iota(jnp.int32, (2 * couth, 1), 0)
        o_ref[...] = jnp.where(row < couth, yn, y)           # kspace rows stay raw (IFFT next)
    else:
        o_ref[...] = y


def _mdgemm_kernel(x_ref, w_ref, o_ref):
    # Lane-dense GEMM for the merged two-domain ConvTranspose2d(k=2, s=2).
    o_ref[...] = jnp.dot(w_ref[...], x_ref[...].astype(jnp.bfloat16),
                         preferred_element_type=jnp.float32)


def _gemm_bias_kernel(x_ref, w_ref, b_ref, o_ref):
    # Final 1x1 conv with bias: (Cout, Cin) @ (Cin, L) + b(Cout, 1).
    o_ref[...] = (jnp.dot(w_ref[...], x_ref[...].astype(jnp.bfloat16),
                          preferred_element_type=jnp.float32) + b_ref[...])


def _inorm_lrelu_kernel(x_ref, o_ref, *, inv_l):
    # rows = (n, c) instances, lanes = spatial. InstanceNorm2d + LeakyReLU(0.2).
    x = x_ref[...]
    mean = jnp.sum(x, axis=-1, keepdims=True) * inv_l
    xc = x - mean
    var = jnp.sum(xc * xc, axis=-1, keepdims=True) * inv_l
    y = xc * jax.lax.rsqrt(var + 1e-5)
    o_ref[...] = jnp.where(y >= 0, y, 0.2 * y)


def _inorm_lrelu_pool_kernel(x_ref, pw_ref, ph_ref, y_ref, p_ref, *, inv_hw):
    # Fused InstanceNorm + LeakyReLU + 2x2 avg-pool.
    # Pool is factored into two small bf16 batched matmuls: (H,W)@(W,W/2) then (H/2,H)@(H,W/2),
    # so memory is O(H*W) instead of the dense (H*W, H*W/4) pool matrix.
    x = x_ref[...]                                            # (br, H, W)
    s = jnp.sum(x, axis=2, keepdims=True)                     # (br, H, 1)
    mean = jnp.sum(s, axis=1, keepdims=True) * inv_hw         # (br, 1, 1)
    xc = x - mean
    v = jnp.sum(xc * xc, axis=2, keepdims=True)
    var = jnp.sum(v, axis=1, keepdims=True) * inv_hw
    y = xc * jax.lax.rsqrt(var + 1e-5)
    y = jnp.where(y >= 0, y, 0.2 * y)
    y_ref[...] = y

    br, hh, ww = y.shape
    wo = pw_ref.shape[1]
    ho = ph_ref.shape[0]
    yb = y.astype(jnp.bfloat16)
    pwb = jnp.broadcast_to(pw_ref[...], (br, ww, wo))         # (br, W, W/2) bf16
    col = jnp.einsum('rhw,rwv->rhv', yb, pwb,
                     preferred_element_type=jnp.float32)      # (br, H, W/2)
    phb = jnp.broadcast_to(ph_ref[...], (br, ho, hh))         # (br, H/2, H) bf16
    p_ref[...] = jnp.einsum('rkh,rhv->rkv', phb, col.astype(jnp.bfloat16),
                            preferred_element_type=jnp.float32)


# ------------------------------ conv wrappers ------------------------------

def _prep_x(x):
    # (N, C, H, W) -> (N, C, (H+2)*(W+2)+2) zero-padded, flattened (+2 so all taps in-bounds)
    n, c, h, w = x.shape
    xp = jnp.pad(x, ((0, 0), (0, 0), (1, 1), (1, 1)))
    return jnp.pad(xp.reshape(n, c, (h + 2) * (w + 2)), ((0, 0), (0, 0), (0, 2)))


def _fold_w3x3(w_img, w_ksp):
    # (Couth, Cin, 3, 3) x2 -> (2*Couth, 9*2*Cin) bf16, tap-major K, block-diagonal in domains.
    couth, cin = w_img.shape[0], w_img.shape[1]
    wi = jnp.transpose(w_img, (2, 3, 0, 1)).reshape(9, couth, cin)
    wk = jnp.transpose(w_ksp, (2, 3, 0, 1)).reshape(9, couth, cin)
    w9 = jnp.zeros((9, 2 * couth, 2 * cin), jnp.float32)
    w9 = w9.at[:, :couth, :cin].set(wi)
    w9 = w9.at[:, couth:, cin:].set(wk)
    return jnp.transpose(w9, (1, 0, 2)).reshape(2 * couth, 9 * 2 * cin).astype(jnp.bfloat16)


def md_conv3x3(x_img, x_ksp, w_img, w_ksp, fuse_norm):
    """Fused two-domain 3x3 conv (padding=1, no bias), single K=9*2*Cin GEMM per batch step.

    If fuse_norm, InstanceNorm+LeakyReLU is applied to the image-domain half in the epilogue.
    Returns (img_half, ksp_half), each (N, Couth, H, W).
    """
    n, cin, h, w = x_img.shape
    couth = w_img.shape[0]
    wp = w + 2
    lpad = (h + 2) * wp + 2
    lout = h * wp
    c2 = 2 * cin

    xs = jnp.concatenate([_prep_x(x_img), _prep_x(x_ksp)], axis=1)     # (N, 2Cin, Lpad)
    wmat = _fold_w3x3(w_img, w_ksp)                                    # (2Couth, 9*2Cin) bf16
    maskf = jnp.asarray(
        (np.arange(lout) % wp < w).astype(np.float32)).reshape(1, lout)

    kernel = functools.partial(_mdconv3x3_kernel, wp=wp, lout=lout, c2=c2,
                               couth=couth, cnt=float(h * w), fuse_norm=fuse_norm)
    y = pl.pallas_call(
        kernel,
        out_shape=jax.ShapeDtypeStruct((n, 2 * couth, lout), jnp.float32),
        grid=(n,),
        in_specs=[
            pl.BlockSpec((None, c2, lpad), lambda i: (i, 0, 0)),
            pl.BlockSpec((2 * couth, 9 * c2), lambda i: (0, 0)),
            pl.BlockSpec((1, lout), lambda i: (0, 0)),
        ],
        out_specs=pl.BlockSpec((None, 2 * couth, lout), lambda i: (i, 0, 0)),
        scratch_shapes=[pltpu.VMEM((9 * c2, lout), jnp.float32)],
        compiler_params=_cparams(1),
    )(xs, wmat, maskf)
    y = y.reshape(n, 2 * couth, h, wp)[..., :w]                        # crop padded columns
    return y[:, :couth], y[:, couth:]


def md_conv_transpose2x2(x_img, x_ksp, w_img, w_ksp):
    """Fused two-domain ConvTranspose2d(kernel=2, stride=2, no bias) as a single merged GEMM."""
    n, cin, h, w = x_img.shape
    couth = w_img.shape[1]
    l = h * w
    c2 = 2 * cin

    def prep(wt):                # (Cin, Couth, 2, 2) -> (4*Couth, Cin), rows ordered (dh, dw, co)
        return jnp.transpose(wt, (2, 3, 1, 0)).reshape(4 * couth, cin)

    xs = jnp.concatenate([x_img.reshape(n, cin, l), x_ksp.reshape(n, cin, l)], axis=1)
    wmat = jnp.zeros((8 * couth, c2), jnp.float32)
    wmat = wmat.at[:4 * couth, :cin].set(prep(w_img))
    wmat = wmat.at[4 * couth:, cin:].set(prep(w_ksp)).astype(jnp.bfloat16)

    y = pl.pallas_call(
        _mdgemm_kernel,
        out_shape=jax.ShapeDtypeStruct((n, 8 * couth, l), jnp.float32),
        grid=(n,),
        in_specs=[
            pl.BlockSpec((None, c2, l), lambda i: (i, 0, 0)),
            pl.BlockSpec((8 * couth, c2), lambda i: (0, 0)),
        ],
        out_specs=pl.BlockSpec((None, 8 * couth, l), lambda i: (i, 0, 0)),
        compiler_params=_cparams(1),
    )(xs, wmat)
    # TODO(synk): sub-pixel interleave kept in XLA (one transpose per up level).
    y = y.reshape(n, 2, 2, 2, couth, h, w)                      # (n, dom, dh, dw, co, h, w)
    y = jnp.transpose(y, (0, 1, 4, 5, 2, 6, 3)).reshape(n, 2, couth, 2 * h, 2 * w)
    return y[:, 0], y[:, 1]


def conv1x1_bias(x, w, b):
    """Final 1x1 conv with bias. x: (N, Cin, H, W), w: (Cout, Cin, 1, 1), b: (Cout,)."""
    n, cin, h, wd = x.shape
    cout = w.shape[0]
    l = h * wd
    xf = x.reshape(n, cin, l)
    wmat = w.reshape(cout, cin).astype(jnp.bfloat16)
    bcol = b.reshape(cout, 1)
    y = pl.pallas_call(
        _gemm_bias_kernel,
        out_shape=jax.ShapeDtypeStruct((n, cout, l), jnp.float32),
        grid=(n,),
        in_specs=[
            pl.BlockSpec((None, cin, l), lambda i: (i, 0, 0)),
            pl.BlockSpec((cout, cin), lambda i: (0, 0)),
            pl.BlockSpec((cout, 1), lambda i: (0, 0)),
        ],
        out_specs=pl.BlockSpec((None, cout, l), lambda i: (i, 0, 0)),
        compiler_params=_cparams(1),
    )(xf, wmat, bcol)
    return y.reshape(n, cout, h, wd)


# --------------------------- norm / pool wrappers ---------------------------

def instance_norm_lrelu(x):
    n, c, h, w = x.shape
    r, l = n * c, h * w
    x2 = x.reshape(r, l)
    br = _pick_rows(r, l * 4 * 4)                    # in + out, double buffered
    y = pl.pallas_call(
        functools.partial(_inorm_lrelu_kernel, inv_l=1.0 / l),
        out_shape=jax.ShapeDtypeStruct((r, l), jnp.float32),
        grid=(pl.cdiv(r, br),),
        in_specs=[pl.BlockSpec((br, l), lambda i: (i, 0))],
        out_specs=pl.BlockSpec((br, l), lambda i: (i, 0)),
        compiler_params=_cparams(1),
    )(x2)
    return y.reshape(n, c, h, w)


def _pool_factors(h, w):
    ho, wo = h // 2, w // 2
    pw = np.zeros((w, wo), np.float32)
    pw[np.arange(w), np.arange(w) // 2] = 0.5
    ph = np.zeros((ho, h), np.float32)
    ph[np.arange(h) // 2, np.arange(h)] = 0.5
    return jnp.asarray(pw, jnp.bfloat16), jnp.asarray(ph, jnp.bfloat16)   # 0.5 exact in bf16


def instance_norm_lrelu_pool(x):
    """Fused InstanceNorm + LeakyReLU + avg_pool2d(k=2, s=2). Returns (normed, pooled)."""
    n, c, h, w = x.shape
    r = n * c
    ho, wo = h // 2, w // 2
    x3 = x.reshape(r, h, w)
    pw, ph = _pool_factors(h, w)
    br = _pick_rows(r, (2 * h * w + ho * wo) * 4 * 2)
    y, p = pl.pallas_call(
        functools.partial(_inorm_lrelu_pool_kernel, inv_hw=1.0 / (h * w)),
        out_shape=(jax.ShapeDtypeStruct((r, h, w), jnp.float32),
                   jax.ShapeDtypeStruct((r, ho, wo), jnp.float32)),
        grid=(pl.cdiv(r, br),),
        in_specs=[pl.BlockSpec((br, h, w), lambda i: (i, 0, 0)),
                  pl.BlockSpec((w, wo), lambda i: (0, 0)),
                  pl.BlockSpec((ho, h), lambda i: (0, 0))],
        out_specs=(pl.BlockSpec((br, h, w), lambda i: (i, 0, 0)),
                   pl.BlockSpec((br, ho, wo), lambda i: (i, 0, 0))),
        compiler_params=_cparams(1),
    )(x3, pw, ph)
    return y.reshape(n, c, h, w), p.reshape(n, c, ho, wo)


# ------------------------ multi-domain operators (FFT) ------------------------

# TODO(synk): 2-D ortho FFT/IFFT has no Pallas TPU primitive; batched over all channel pairs
# in one XLA fftn/ifftn call.
def fft2c_pairs(x):
    n, c, h, w = x.shape
    xr = x.reshape(n, c // 2, 2, h, w)
    z = jax.lax.complex(xr[:, :, 0], xr[:, :, 1])
    z = jnp.fft.fftn(z, axes=(-2, -1), norm="ortho")
    return jnp.stack([jnp.real(z), jnp.imag(z)], axis=2).reshape(n, c, h, w)


def ifft2c_pairs(x):
    n, c, h, w = x.shape
    xr = x.reshape(n, c // 2, 2, h, w)
    z = jax.lax.complex(xr[:, :, 0], xr[:, :, 1])
    z = jnp.fft.ifftn(z, axes=(-2, -1), norm="ortho")
    return jnp.stack([jnp.real(z), jnp.imag(z)], axis=2).reshape(n, c, h, w)


def _md_conv_unit(p, x, fuse_norm):
    # MultiDomainConv2d: image conv on x, kspace conv on FFT(x); IFFT of the kspace half.
    ksp_in = fft2c_pairs(x)
    img, ksp = md_conv3x3(x, ksp_in, p["image_w"], p["kspace_w"], fuse_norm)
    backward = ifft2c_pairs(ksp)
    return img, backward


# --------------------------------- blocks ---------------------------------

def md_conv_in_lrelu(p, x):
    # MDConv -> InstanceNorm -> LeakyReLU (-> Dropout identity).
    # Image half is normalized inside the conv epilogue; backward half after the IFFT.
    img_n, backward = _md_conv_unit(p, x, fuse_norm=True)
    bwd_n = instance_norm_lrelu(backward)
    return jnp.concatenate([img_n, bwd_n], axis=1)


def md_conv_block(p, x, pool=False):
    # MultiDomainConvBlock: (MDConv -> IN -> LReLU -> Dropout[id]) x 2, optional fused avg-pool.
    x = md_conv_in_lrelu(p["conv1"], x)
    if pool:
        img, backward = _md_conv_unit(p["conv2"], x, fuse_norm=False)
        y = jnp.concatenate([img, backward], axis=1)
        return instance_norm_lrelu_pool(y)            # (skip, pooled)
    return md_conv_in_lrelu(p["conv2"], x)


def transpose_md_block(p, x):
    # TransposeMultiDomainConvBlock: MDConvTranspose -> InstanceNorm -> LeakyReLU.
    ksp_in = fft2c_pairs(x)
    img, ksp = md_conv_transpose2x2(x, ksp_in, p["image_w"], p["kspace_w"])
    backward = ifft2c_pairs(ksp)
    return instance_norm_lrelu(jnp.concatenate([img, backward], axis=1))


# ------------------------------- U-Net forward -------------------------------

def unet_forward(params, x):
    stack = []
    output = x
    for p in params["down"]:
        skip, output = md_conv_block(p, output, pool=True)    # norm + pool fused
        stack.append(skip)
    output = md_conv_block(params["mid"], output)
    n_up = len(params["up_t"])
    for i in range(n_up):
        down = stack.pop()
        output = transpose_md_block(params["up_t"][i], output)
        pad_w = 1 if output.shape[-1] != down.shape[-1] else 0
        pad_h = 1 if output.shape[-2] != down.shape[-2] else 0
        if pad_w or pad_h:
            output = jnp.pad(output, ((0, 0), (0, 0), (0, pad_h), (0, pad_w)),
                             mode="reflect")
        output = jnp.concatenate([output, down], axis=1)
        if i < n_up - 1:
            output = md_conv_block(params["up_c"][i], output)
        else:
            last = params["up_c"][i]
            output = md_conv_block(last["block"], output)
            output = conv1x1_bias(output, last["final_w"], last["final_b"])
    return output


# ------------------------------- parameter init -------------------------------

def init_params(key, in_ch, out_ch, num_filters, num_pool_layers):
    keys = iter(jax.random.split(key, 128))

    def conv3_w(cin, cout):
        return jax.random.normal(next(keys), (cout, cin, 3, 3), jnp.float32) / jnp.sqrt(9.0 * cin)

    def convT_w(cin, cout):
        return jax.random.normal(next(keys), (cin, cout, 2, 2), jnp.float32) / jnp.sqrt(4.0 * cin)

    def md_conv(cin, cout):
        return {"image_w": conv3_w(cin, cout // 2), "kspace_w": conv3_w(cin, cout // 2)}

    def md_block(cin, cout):
        return {"conv1": md_conv(cin, cout), "conv2": md_conv(cout, cout)}

    def md_tconv(cin, cout):
        return {"image_w": convT_w(cin, cout // 2), "kspace_w": convT_w(cin, cout // 2)}

    down = [md_block(in_ch, num_filters)]
    ch = num_filters
    for _ in range(num_pool_layers - 1):
        down.append(md_block(ch, ch * 2))
        ch *= 2
    mid = md_block(ch, ch * 2)
    up_t, up_c = [], []
    for _ in range(num_pool_layers - 1):
        up_t.append(md_tconv(ch * 2, ch))
        up_c.append(md_block(ch * 2, ch))
        ch //= 2
    up_t.append(md_tconv(ch * 2, ch))
    up_c.append({
        "block": md_block(ch * 2, ch),
        "final_w": jax.random.normal(next(keys), (out_ch, ch, 1, 1), jnp.float32) / jnp.sqrt(float(ch)),
        "final_b": jax.random.normal(next(keys), (out_ch,), jnp.float32) * 0.01,
    })
    return {"down": down, "mid": mid, "up_t": up_t, "up_c": up_c}


# ----------------------------------- main -----------------------------------

if __name__ == "__main__":
    key = jax.random.PRNGKey(0)
    pkey, xkey = jax.random.split(key)

    # MultiDomainUnet2d(in_channels=2, out_channels=2, num_filters=4,
    #                   num_pool_layers=2, dropout_probability=0.0)
    in_channels, out_channels, num_filters, num_pool_layers = 2, 2, 4, 2
    params = init_params(pkey, in_channels, out_channels, num_filters, num_pool_layers)

    x = jax.random.normal(xkey, (2, in_channels, 16, 16), jnp.float32)

    fwd = jax.jit(functools.partial(unet_forward, params))
    y = fwd(x)
    jax.block_until_ready(y)

    assert y.shape == (2, out_channels, 16, 16), y.shape
    assert jnp.all(jnp.isfinite(y))
    print("KERNEL_OK")
</pallas_src>

<mosaic_0001>
module attributes {stable_mosaic.version = 11 : i64} {
  func.func @_mdconv3x3_kernel(%arg0: i32, %arg1: memref<1x4x326xf32, #tpu.memory_space<vmem>>, %arg2: memref<4x36xbf16, #tpu.memory_space<vmem>>, %arg3: memref<1x288xf32, #tpu.memory_space<vmem>>, %arg4: memref<1x4x288xf32, #tpu.memory_space<vmem>>, %arg5: memref<36x288xf32, #tpu.memory_space<vmem>>) attributes {dimension_semantics = [#tpu.dimension_semantics<parallel>], iteration_bounds = array<i64: 2>, scalar_prefetch = 0 : i64, scratch_operands = 1 : i64, tpu.core_type = #tpu.core_type<tc>, window_params = [{transform_indices = @transform_0, window_bounds = array<i64: 1, 4, 326>}, {pipeline_mode = #tpu.pipeline_mode<synchronous>, transform_indices = @transform_1, window_bounds = array<i64: 4, 36>}, {pipeline_mode = #tpu.pipeline_mode<synchronous>, transform_indices = @transform_2, window_bounds = array<i64: 1, 288>}, {transform_indices = @transform_3, window_bounds = array<i64: 1, 4, 288>}]} {
    %c0 = arith.constant 0 : index
    %c0_0 = arith.constant 0 : index
    %c0_1 = arith.constant 0 : index
    %0 = vector.load %arg1[%c0, %c0_0, %c0_1] : memref<1x4x326xf32, #tpu.memory_space<vmem>>, vector<1x4x288xf32>
    %1 = vector.shape_cast %0 : vector<1x4x288xf32> to vector<4x288xf32>
    %c0_2 = arith.constant 0 : index
    %c0_3 = arith.constant 0 : index
    %2 = vector.load %arg5[%c0_2, %c0_3] : memref<36x288xf32, #tpu.memory_space<vmem>>, vector<4x288xf32>
    tpu.vector_store %arg5[%c0_2, %c0_3], %1 {strides = array<i32>} : memref<36x288xf32, #tpu.memory_space<vmem>>, vector<4x288xf32>,
    %c0_4 = arith.constant 0 : index
    %c0_5 = arith.constant 0 : index
    %c1 = arith.constant 1 : index
    %3 = vector.load %arg1[%c0_4, %c0_5, %c1] : memref<1x4x326xf32, #tpu.memory_space<vmem>>, vector<1x4x288xf32>
    %4 = vector.shape_cast %3 : vector<1x4x288xf32> to vector<4x288xf32>
    %c4 = arith.constant 4 : index
    %c0_6 = arith.constant 0 : index
    %5 = vector.load %arg5[%c4, %c0_6] : memref<36x288xf32, #tpu.memory_space<vmem>>, vector<4x288xf32>
    tpu.vector_store %arg5[%c4, %c0_6], %4 {strides = array<i32>} : memref<36x288xf32, #tpu.memory_space<vmem>>, vector<4x288xf32>,
    %c0_7 = arith.constant 0 : index
    %c0_8 = arith.constant 0 : index
    %c2 = arith.constant 2 : index
    %6 = vector.load %arg1[%c0_7, %c0_8, %c2] : memref<1x4x326xf32, #tpu.memory_space<vmem>>, vector<1x4x288xf32>
    %7 = vector.shape_cast %6 : vector<1x4x288xf32> to vector<4x288xf32>
    %c8 = arith.constant 8 : index
    %c0_9 = arith.constant 0 : index
    %8 = vector.load %arg5[%c8, %c0_9] : memref<36x288xf32, #tpu.memory_space<vmem>>, vector<4x288xf32>
    tpu.vector_store %arg5[%c8, %c0_9], %7 {strides = array<i32>} : memref<36x288xf32, #tpu.memory_space<vmem>>, vector<4x288xf32>,
    %c0_10 = arith.constant 0 : index
    %c0_11 = arith.constant 0 : index
    %c18 = arith.constant 18 : index
    %9 = vector.load %arg1[%c0_10, %c0_11, %c18] : memref<1x4x326xf32, #tpu.memory_space<vmem>>, vector<1x4x288xf32>
    %10 = vector.shape_cast %9 : vector<1x4x288xf32> to vector<4x288xf32>
    %c12 = arith.constant 12 : index
    %c0_12 = arith.constant 0 : index
    %11 = vector.load %arg5[%c12, %c0_12] : memref<36x288xf32, #tpu.memory_space<vmem>>, vector<4x288xf32>
    tpu.vector_store %arg5[%c12, %c0_12], %10 {strides = array<i32>} : memref<36x288xf32, #tpu.memory_space<vmem>>, vector<4x288xf32>,
    %c0_13 = arith.constant 0 : index
    %c0_14 = arith.constant 0 : index
    %c19 = arith.constant 19 : index
    %12 = vector.load %arg1[%c0_13, %c0_14, %c19] : memref<1x4x326xf32, #tpu.memory_space<vmem>>, vector<1x4x288xf32>
    %13 = vector.shape_cast %12 : vector<1x4x288xf32> to vector<4x288xf32>
    %c16 = arith.constant 16 : index
    %c0_15 = arith.constant 0 : index
    %14 = vector.load %arg5[%c16, %c0_15] : memref<36x288xf32, #tpu.memory_space<vmem>>, vector<4x288xf32>
    tpu.vector_store %arg5[%c16, %c0_15], %13 {strides = array<i32>} : memref<36x288xf32, #tpu.memory_space<vmem>>, vector<4x288xf32>,
    %c0_16 = arith.constant 0 : index
    %c0_17 = arith.constant 0 : index
    %c20 = arith.constant 20 : index
    %15 = vector.load %arg1[%c0_16, %c0_17, %c20] : memref<1x4x326xf32, #tpu.memory_space<vmem>>, vector<1x4x288xf32>
    %16 = vector.shape_cast %15 : vector<1x4x288xf32> to vector<4x288xf32>
    %c20_18 = arith.constant 20 : index
    %c0_19 = arith.constant 0 : index
    %17 = vector.load %arg5[%c20_18, %c0_19] : memref<36x288xf32, #tpu.memory_space<vmem>>, vector<4x288xf32>
    tpu.vector_store %arg5[%c20_18, %c0_19], %16 {strides = array<i32>} : memref<36x288xf32, #tpu.memory_space<vmem>>, vector<4x288xf32>,
    %c0_20 = arith.constant 0 : index
    %c0_21 = arith.constant 0 : index
    %c36 = arith.constant 36 : index
    %18 = vector.load %arg1[%c0_20, %c0_21, %c36] : memref<1x4x326xf32, #tpu.memory_space<vmem>>, vector<1x4x288xf32>
    %19 = vector.shape_cast %18 : vector<1x4x288xf32> to vector<4x288xf32>
    %c24 = arith.constant 24 : index
    %c0_22 = arith.constant 0 : index
    %20 = vector.load %arg5[%c24, %c0_22] : memref<36x288xf32, #tpu.memory_space<vmem>>, vector<4x288xf32>
    tpu.vector_store %arg5[%c24, %c0_22], %19 {strides = array<i32>} : memref<36x288xf32, #tpu.memory_space<vmem>>, vector<4x288xf32>,
    %c0_23 = arith.constant 0 : index
    %c0_24 = arith.constant 0 : index
    %c37 = arith.constant 37 : index
    %21 = vector.load %arg1[%c0_23, %c0_24, %c37] : memref<1x4x326xf32, #tpu.memory_space<vmem>>, vector<1x4x288xf32>
    %22 = vector.shape_cast %21 : vector<1x4x288xf32> to vector<4x288xf32>
    %c28 = arith.constant 28 : index
    %c0_25 = arith.constant 0 : index
    %23 = vector.load %arg5[%c28, %c0_25] : memref<36x288xf32, #tpu.memory_space<vmem>>, vector<4x288xf32>
    tpu.vector_store %arg5[%c28, %c0_25], %22 {strides = array<i32>} : memref<36x288xf32, #tpu.memory_space<vmem>>, vector<4x288xf32>,
    %c0_26 = arith.constant 0 : index
    %c0_27 = arith.constant 0 : index
    %c38 = arith.constant 38 : index
    %24 = vector.load %arg1[%c0_26, %c0_27, %c38] : memref<1x4x326xf32, #tpu.memory_space<vmem>>, vector<1x4x288xf32>
    %25 = vector.shape_cast %24 : vector<1x4x288xf32> to vector<4x288xf32>
    %c32 = arith.constant 32 : index
    %c0_28 = arith.constant 0 : index
    %26 = vector.load %arg5[%c32, %c0_28] : memref<36x288xf32, #tpu.memory_space<vmem>>, vector<4x288xf32>
    tpu.vector_store %arg5[%c32, %c0_28], %25 {strides = array<i32>} : memref<36x288xf32, #tpu.memory_space<vmem>>, vector<4x288xf32>,
    %c0_29 = arith.constant 0 : index
    %c0_30 = arith.constant 0 : index
    %27 = vector.load %arg2[%c0_29, %c0_30] : memref<4x36xbf16, #tpu.memory_space<vmem>>, vector<4x36xbf16>
    %c0_31 = arith.constant 0 : index
    %c0_32 = arith.constant 0 : index
    %28 = vector.load %arg5[%c0_31, %c0_32] : memref<36x288xf32, #tpu.memory_space<vmem>>, vector<36x288xf32>
    %29 = arith.truncf %28 : vector<36x288xf32> to vector<36x288xbf16>
    %cst = arith.constant dense<0.000000e+00> : vector<4x288xf32>
    %30 = tpu.matmul %27, %29, %cst {dimension_numbers = #tpu.dot_dimension_numbers<[1], [0], [0], [1], [0, 0, 1, 1], [], []>} : vector<4x36xbf16>, vector<36x288xbf16>, vector<4x288xf32> -> vector<4x288xf32>
    %c0_33 = arith.constant 0 : index
    %c0_34 = arith.constant 0 : index
    %31 = vector.load %arg3[%c0_33, %c0_34] : memref<1x288xf32, #tpu.memory_space<vmem>>, vector<1x288xf32>
    %32 = vector.broadcast %31 : vector<1x288xf32> to vector<4x288xf32>
    %33 = arith.mulf %30, %32 : vector<4x288xf32>
    %cst_35 = arith.constant dense<0.000000e+00> : vector<4xf32>
    %34 = vector.multi_reduction <add>, %33, %cst_35 [1] : vector<4x288xf32> to vector<4xf32>
    %35 = vector.shape_cast %34 : vector<4xf32> to vector<4x1xf32>
    %cst_36 = arith.constant 2.560000e+02 : f32
    %36 = vector.broadcast %cst_36 : f32 to vector<4x1xf32>
    %37 = arith.divf %35, %36 : vector<4x1xf32>
    %38 = vector.broadcast %37 : vector<4x1xf32> to vector<4x288xf32>
    %39 = arith.subf %30, %38 : vector<4x288xf32>
    %40 = vector.broadcast %31 : vector<1x288xf32> to vector<4x288xf32>
    %41 = arith.mulf %39, %40 : vector<4x288xf32>
    %42 = arith.mulf %41, %41 : vector<4x288xf32>
    %cst_37 = arith.constant dense<0.000000e+00> : vector<4xf32>
    %43 = vector.multi_reduction <add>, %42, %cst_37 [1] : vector<4x288xf32> to vector<4xf32>
    %44 = vector.shape_cast %43 : vector<4xf32> to vector<4x1xf32>
    %cst_38 = arith.constant 2.560000e+02 : f32
    %45 = vector.broadcast %cst_38 : f32 to vector<4x1xf32>
    %46 = arith.divf %44, %45 : vector<4x1xf32>
    %47 = vector.broadcast %37 : vector<4x1xf32> to vector<4x288xf32>
    %48 = arith.subf %30, %47 : vector<4x288xf32>
    %cst_39 = arith.constant 9.99999974E-6 : f32
    %49 = vector.broadcast %cst_39 : f32 to vector<4x1xf32>
    %50 = arith.addf %46, %49 : vector<4x1xf32>
    %51 = math.rsqrt %50 : vector<4x1xf32>
    %52 = vector.broadcast %51 : vector<4x1xf32> to vector<4x288xf32>
    %53 = arith.mulf %48, %52 : vector<4x288xf32>
    %cst_40 = arith.constant 0.000000e+00 : f32
    %54 = vector.broadcast %cst_40 : f32 to vector<4x288xf32>
    %55 = arith.cmpf oge, %53, %54 : vector<4x288xf32>
    %cst_41 = arith.constant 2.000000e-01 : f32
    %56 = vector.broadcast %cst_41 : f32 to vector<4x288xf32>
    %57 = arith.mulf %56, %53 : vector<4x288xf32>
    %58 = arith.select %55, %53, %57 : vector<4x288xi1>, vector<4x288xf32>
    %59 = tpu.iota {dimensions = array<i32: 0>} : vector<4x1xi32>
    %c2_i32 = arith.constant 2 : i32
    %60 = vector.broadcast %c2_i32 : i32 to vector<4x1xi32>
    %61 = arith.cmpi slt, %59, %60 : vector<4x1xi32>
    %62 = vector.shape_cast %61 : vector<4x1xi1> to vector<4x1xi1>
    %63 = vector.broadcast %62 : vector<4x1xi1> to vector<4x288xi1>
    %64 = arith.select %63, %58, %30 : vector<4x288xi1>, vector<4x288xf32>
    %c0_42 = arith.constant 0 : index
    %c0_43 = arith.constant 0 : index
    %c0_44 = arith.constant 0 : index
    %65 = vector.load %arg4[%c0_42, %c0_43, %c0_44] : memref<1x4x288xf32, #tpu.memory_space<vmem>>, vector<1x4x288xf32>
    %66 = vector.shape_cast %65 : vector<1x4x288xf32> to vector<4x288xf32>
    %67 = vector.shape_cast %64 : vector<4x288xf32> to vector<1x4x288xf32>
    tpu.vector_store %arg4[%c0_42, %c0_43, %c0_44], %67 {strides = array<i32>} : memref<1x4x288xf32, #tpu.memory_space<vmem>>, vector<1x4x288xf32>,
    return
  }
  func.func @transform_0(%arg0: i32) -> (i32, i32, i32) {
    %c0_i32 = arith.constant 0 : i32
    %c0_i32_0 = arith.constant 0 : i32
    %c0_i32_1 = arith.constant 0 : i32
    return %arg0, %c0_i32, %c0_i32_0 : i32, i32, i32
  }
  func.func @transform_1(%arg0: i32) -> (i32, i32) {
    %c0_i32 = arith.constant 0 : i32
    %c0_i32_0 = arith.constant 0 : i32
    %c0_i32_1 = arith.constant 0 : i32
    return %c0_i32, %c0_i32_0 : i32, i32
  }
  func.func @transform_2(%arg0: i32) -> (i32, i32) {
    %c0_i32 = arith.constant 0 : i32
    %c0_i32_0 = arith.constant 0 : i32
    %c0_i32_1 = arith.constant 0 : i32
    return %c0_i32, %c0_i32_0 : i32, i32
  }
  func.func @transform_3(%arg0: i32) -> (i32, i32, i32) {
    %c0_i32 = arith.constant 0 : i32
    %c0_i32_0 = arith.constant 0 : i32
    %c0_i32_1 = arith.constant 0 : i32
    return %arg0, %c0_i32, %c0_i32_0 : i32, i32, i32
  }
}

module attributes {stable_mosaic.version = 11 : i64} {
  func.func @_inorm_lrelu_kernel(%arg0: i32, %arg1: memref<4x256xf32, #tpu.memory_space<vmem>>, %arg2: memref<4x256xf32, #tpu.memory_space<vmem>>) attributes {dimension_semantics = [#tpu.dimension_semantics<parallel>], iteration_bounds = array<i64: 1>, scalar_prefetch = 0 : i64, scratch_operands = 0 : i64, tpu.core_type = #tpu.core_type<tc>, window_params = [{transform_indices = @transform_0, window_bounds = array<i64: 4, 256>}, {transform_indices = @transform_1, window_bounds = array<i64: 4, 256>}]} {
    %c0 = arith.constant 0 : index
    %c0_0 = arith.constant 0 : index
    %0 = vector.load %arg1[%c0, %c0_0] : memref<4x256xf32, #tpu.memory_space<vmem>>, vector<4x256xf32>
    %cst = arith.constant dense<0.000000e+00> : vector<4xf32>
    %1 = vector.multi_reduction <add>, %0, %cst [1] : vector<4x256xf32> to vector<4xf32>
    %2 = vector.shape_cast %1 : vector<4xf32> to vector<4x1xf32>
    %cst_1 = arith.constant 3.906250e-03 : f32
    %3 = vector.broadcast %cst_1 : f32 to vector<4x1xf32>
    %4 = arith.mulf %2, %3 : vector<4x1xf32>
    %5 = vector.broadcast %4 : vector<4x1xf32> to vector<4x256xf32>
    %6 = arith.subf %0, %5 : vector<4x256xf32>
    %7 = arith.mulf %6, %6 : vector<4x256xf32>
    %cst_2 = arith.constant dense<0.000000e+00> : vector<4xf32>
    %8 = vector.multi_reduction <add>, %7, %cst_2 [1] : vector<4x256xf32> to vector<4xf32>
    %9 = vector.shape_cast %8 : vector<4xf32> to vector<4x1xf32>
    %cst_3 = arith.constant 3.906250e-03 : f32
    %10 = vector.broadcast %cst_3 : f32 to vector<4x1xf32>
    %11 = arith.mulf %9, %10 : vector<4x1xf32>
    %cst_4 = arith.constant 9.99999974E-6 : f32
    %12 = vector.broadcast %cst_4 : f32 to vector<4x1xf32>
    %13 = arith.addf %11, %12 : vector<4x1xf32>
    %14 = math.rsqrt %13 : vector<4x1xf32>
    %15 = vector.broadcast %14 : vector<4x1xf32> to vector<4x256xf32>
    %16 = arith.mulf %6, %15 : vector<4x256xf32>
    %cst_5 = arith.constant 0.000000e+00 : f32
    %17 = vector.broadcast %cst_5 : f32 to vector<4x256xf32>
    %18 = arith.cmpf oge, %16, %17 : vector<4x256xf32>
    %cst_6 = arith.constant 2.000000e-01 : f32
    %19 = vector.broadcast %cst_6 : f32 to vector<4x256xf32>
    %20 = arith.mulf %19, %16 : vector<4x256xf32>
    %21 = arith.select %18, %16, %20 : vector<4x256xi1>, vector<4x256xf32>
    %c0_7 = arith.constant 0 : index
    %c0_8 = arith.constant 0 : index
    %22 = vector.load %arg2[%c0_7, %c0_8] : memref<4x256xf32, #tpu.memory_space<vmem>>, vector<4x256xf32>
    tpu.vector_store %arg2[%c0_7, %c0_8], %21 {strides = array<i32>} : memref<4x256xf32, #tpu.memory_space<vmem>>, vector<4x256xf32>,
    return
  }
  func.func @transform_0(%arg0: i32) -> (i32, i32) {
    %c0_i32 = arith.constant 0 : i32
    %c0_i32_0 = arith.constant 0 : i32
    return %arg0, %c0_i32 : i32, i32
  }
  func.func @transform_1(%arg0: i32) -> (i32, i32) {
    %c0_i32 = arith.constant 0 : i32
    %c0_i32_0 = arith.constant 0 : i32
    return %arg0, %c0_i32 : i32, i32
  }
}

module attributes {stable_mosaic.version = 11 : i64} {
  func.func @_mdconv3x3_kernel(%arg0: i32, %arg1: memref<1x8x326xf32, #tpu.memory_space<vmem>>, %arg2: memref<4x72xbf16, #tpu.memory_space<vmem>>, %arg3: memref<1x288xf32, #tpu.memory_space<vmem>>, %arg4: memref<1x4x288xf32, #tpu.memory_space<vmem>>, %arg5: memref<72x288xf32, #tpu.memory_space<vmem>>) attributes {dimension_semantics = [#tpu.dimension_semantics<parallel>], iteration_bounds = array<i64: 2>, scalar_prefetch = 0 : i64, scratch_operands = 1 : i64, tpu.core_type = #tpu.core_type<tc>, window_params = [{transform_indices = @transform_0, window_bounds = array<i64: 1, 8, 326>}, {pipeline_mode = #tpu.pipeline_mode<synchronous>, transform_indices = @transform_1, window_bounds = array<i64: 4, 72>}, {pipeline_mode = #tpu.pipeline_mode<synchronous>, transform_indices = @transform_2, window_bounds = array<i64: 1, 288>}, {transform_indices = @transform_3, window_bounds = array<i64: 1, 4, 288>}]} {
    %c0 = arith.constant 0 : index
    %c0_0 = arith.constant 0 : index
    %c0_1 = arith.constant 0 : index
    %0 = vector.load %arg1[%c0, %c0_0, %c0_1] : memref<1x8x326xf32, #tpu.memory_space<vmem>>, vector<1x8x288xf32>
    %1 = vector.shape_cast %0 : vector<1x8x288xf32> to vector<8x288xf32>
    %c0_2 = arith.constant 0 : index
    %c0_3 = arith.constant 0 : index
    %2 = vector.load %arg5[%c0_2, %c0_3] : memref<72x288xf32, #tpu.memory_space<vmem>>, vector<8x288xf32>
    tpu.vector_store %arg5[%c0_2, %c0_3], %1 {strides = array<i32>} : memref<72x288xf32, #tpu.memory_space<vmem>>, vector<8x288xf32>,
    %c0_4 = arith.constant 0 : index
    %c0_5 = arith.constant 0 : index
    %c1 = arith.constant 1 : index
    %3 = vector.load %arg1[%c0_4, %c0_5, %c1] : memref<1x8x326xf32, #tpu.memory_space<vmem>>, vector<1x8x288xf32>
    %4 = vector.shape_cast %3 : vector<1x8x288xf32> to vector<8x288xf32>
    %c8 = arith.constant 8 : index
    %c0_6 = arith.constant 0 : index
    %5 = vector.load %arg5[%c8, %c0_6] : memref<72x288xf32, #tpu.memory_space<vmem>>, vector<8x288xf32>
    tpu.vector_store %arg5[%c8, %c0_6], %4 {strides = array<i32>} : memref<72x288xf32, #tpu.memory_space<vmem>>, vector<8x288xf32>,
    %c0_7 = arith.constant 0 : index
    %c0_8 = arith.constant 0 : index
    %c2 = arith.constant 2 : index
    %6 = vector.load %arg1[%c0_7, %c0_8, %c2] : memref<1x8x326xf32, #tpu.memory_space<vmem>>, vector<1x8x288xf32>
    %7 = vector.shape_cast %6 : vector<1x8x288xf32> to vector<8x288xf32>
    %c16 = arith.constant 16 : index
    %c0_9 = arith.constant 0 : index
    %8 = vector.load %arg5[%c16, %c0_9] : memref<72x288xf32, #tpu.memory_space<vmem>>, vector<8x288xf32>
    tpu.vector_store %arg5[%c16, %c0_9], %7 {strides = array<i32>} : memref<72x288xf32, #tpu.memory_space<vmem>>, vector<8x288xf32>,
    %c0_10 = arith.constant 0 : index
    %c0_11 = arith.constant 0 : index
    %c18 = arith.constant 18 : index
    %9 = vector.load %arg1[%c0_10, %c0_11, %c18] : memref<1x8x326xf32, #tpu.memory_space<vmem>>, vector<1x8x288xf32>
    %10 = vector.shape_cast %9 : vector<1x8x288xf32> to vector<8x288xf32>
    %c24 = arith.constant 24 : index
    %c0_12 = arith.constant 0 : index
    %11 = vector.load %arg5[%c24, %c0_12] : memref<72x288xf32, #tpu.memory_space<vmem>>, vector<8x288xf32>
    tpu.vector_store %arg5[%c24, %c0_12], %10 {strides = array<i32>} : memref<72x288xf32, #tpu.memory_space<vmem>>, vector<8x288xf32>,
    %c0_13 = arith.constant 0 : index
    %c0_14 = arith.constant 0 : index
    %c19 = arith.constant 19 : index
    %12 = vector.load %arg1[%c0_13, %c0_14, %c19] : memref<1x8x326xf32, #tpu.memory_space<vmem>>, vector<1x8x288xf32>
    %13 = vector.shape_cast %12 : vector<1x8x288xf32> to vector<8x288xf32>
    %c32 = arith.constant 32 : index
    %c0_15 = arith.constant 0 : index
    %14 = vector.load %arg5[%c32, %c0_15] : memref<72x288xf32, #tpu.memory_space<vmem>>, vector<8x288xf32>
    tpu.vector_store %arg5[%c32, %c0_15], %13 {strides = array<i32>} : memref<72x288xf32, #tpu.memory_space<vmem>>, vector<8x288xf32>,
    %c0_16 = arith.constant 0 : index
    %c0_17 = arith.constant 0 : index
    %c20 = arith.constant 20 : index
    %15 = vector.load %arg1[%c0_16, %c0_17, %c20] : memref<1x8x326xf32, #tpu.memory_space<vmem>>, vector<1x8x288xf32>
    %16 = vector.shape_cast %15 : vector<1x8x288xf32> to vector<8x288xf32>
    %c40 = arith.constant 40 : index
    %c0_18 = arith.constant 0 : index
    %17 = vector.load %arg5[%c40, %c0_18] : memref<72x288xf32, #tpu.memory_space<vmem>>, vector<8x288xf32>
    tpu.vector_store %arg5[%c40, %c0_18], %16 {strides = array<i32>} : memref<72x288xf32, #tpu.memory_space<vmem>>, vector<8x288xf32>,
    %c0_19 = arith.constant 0 : index
    %c0_20 = arith.constant 0 : index
    %c36 = arith.constant 36 : index
    %18 = vector.load %arg1[%c0_19, %c0_20, %c36] : memref<1x8x326xf32, #tpu.memory_space<vmem>>, vector<1x8x288xf32>
    %19 = vector.shape_cast %18 : vector<1x8x288xf32> to vector<8x288xf32>
    %c48 = arith.constant 48 : index
    %c0_21 = arith.constant 0 : index
    %20 = vector.load %arg5[%c48, %c0_21] : memref<72x288xf32, #tpu.memory_space<vmem>>, vector<8x288xf32>
    tpu.vector_store %arg5[%c48, %c0_21], %19 {strides = array<i32>} : memref<72x288xf32, #tpu.memory_space<vmem>>, vector<8x288xf32>,
    %c0_22 = arith.constant 0 : index
    %c0_23 = arith.constant 0 : index
    %c37 = arith.constant 37 : index
    %21 = vector.load %arg1[%c0_22, %c0_23, %c37] : memref<1x8x326xf32, #tpu.memory_space<vmem>>, vector<1x8x288xf32>
    %22 = vector.shape_cast %21 : vector<1x8x288xf32> to vector<8x288xf32>
    %c56 = arith.constant 56 : index
    %c0_24 = arith.constant 0 : index
    %23 = vector.load %arg5[%c56, %c0_24] : memref<72x288xf32, #tpu.memory_space<vmem>>, vector<8x288xf32>
    tpu.vector_store %arg5[%c56, %c0_24], %22 {strides = array<i32>} : memref<72x288xf32, #tpu.memory_space<vmem>>, vector<8x288xf32>,
    %c0_25 = arith.constant 0 : index
    %c0_26 = arith.constant 0 : index
    %c38 = arith.constant 38 : index
    %24 = vector.load %arg1[%c0_25, %c0_26, %c38] : memref<1x8x326xf32, #tpu.memory_space<vmem>>, vector<1x8x288xf32>
    %25 = vector.shape_cast %24 : vector<1x8x288xf32> to vector<8x288xf32>
    %c64 = arith.constant 64 : index
    %c0_27 = arith.constant 0 : index
    %26 = vector.load %arg5[%c64, %c0_27] : memref<72x288xf32, #tpu.memory_space<vmem>>, vector<8x288xf32>
    tpu.vector_store %arg5[%c64, %c0_27], %25 {strides = array<i32>} : memref<72x288xf32, #tpu.memory_space<vmem>>, vector<8x288xf32>,
    %c0_28 = arith.constant 0 : index
    %c0_29 = arith.constant 0 : index
    %27 = vector.load %arg2[%c0_28, %c0_29] : memref<4x72xbf16, #tpu.memory_space<vmem>>, vector<4x72xbf16>
    %c0_30 = arith.constant 0 : index
    %c0_31 = arith.constant 0 : index
    %28 = vector.load %arg5[%c0_30, %c0_31] : memref<72x288xf32, #tpu.memory_space<vmem>>, vector<72x288xf32>
    %29 = arith.truncf %28 : vector<72x288xf32> to vector<72x288xbf16>
    %cst = arith.constant dense<0.000000e+00> : vector<4x288xf32>
    %30 = tpu.matmul %27, %29, %cst {dimension_numbers = #tpu.dot_dimension_numbers<[1], [0], [0], [1], [0, 0, 1, 1], [], []>} : vector<4x72xbf16>, vector<72x288xbf16>, vector<4x288xf32> -> vector<4x288xf32>
    %c0_32 = arith.constant 0 : index
    %c0_33 = arith.constant 0 : index
    %c0_34 = arith.constant 0 : index
    %31 = vector.load %arg4[%c0_32, %c0_33, %c0_34] : memref<1x4x288xf32, #tpu.memory_space<vmem>>, vector<1x4x288xf32>
    %32 = vector.shape_cast %31 : vector<1x4x288xf32> to vector<4x288xf32>
    %33 = vector.shape_cast %30 : vector<4x288xf32> to vector<1x4x288xf32>
    tpu.vector_store %arg4[%c0_32, %c0_33, %c0_34], %33 {strides = array<i32>} : memref<1x4x288xf32, #tpu.memory_space<vmem>>, vector<1x4x288xf32>,
    return
  }
  func.func @transform_0(%arg0: i32) -> (i32, i32, i32) {
    %c0_i32 = arith.constant 0 : i32
    %c0_i32_0 = arith.constant 0 : i32
    %c0_i32_1 = arith.constant 0 : i32
    return %arg0, %c0_i32, %c0_i32_0 : i32, i32, i32
  }
  func.func @transform_1(%arg0: i32) -> (i32, i32) {
    %c0_i32 = arith.constant 0 : i32
    %c0_i32_0 = arith.constant 0 : i32
    %c0_i32_1 = arith.constant 0 : i32
    return %c0_i32, %c0_i32_0 : i32, i32
  }
  func.func @transform_2(%arg0: i32) -> (i32, i32) {
    %c0_i32 = arith.constant 0 : i32
    %c0_i32_0 = arith.constant 0 : i32
    %c0_i32_1 = arith.constant 0 : i32
    return %c0_i32, %c0_i32_0 : i32, i32
  }
  func.func @transform_3(%arg0: i32) -> (i32, i32, i32) {
    %c0_i32 = arith.constant 0 : i32
    %c0_i32_0 = arith.constant 0 : i32
    %c0_i32_1 = arith.constant 0 : i32
    return %arg0, %c0_i32, %c0_i32_0 : i32, i32, i32
  }
}

module attributes {stable_mosaic.version = 11 : i64} {
  func.func @_inorm_lrelu_pool_kernel(%arg0: i32, %arg1: memref<8x16x16xf32, #tpu.memory_space<vmem>>, %arg2: memref<16x8xbf16, #tpu.memory_space<vmem>>, %arg3: memref<8x16xbf16, #tpu.memory_space<vmem>>, %arg4: memref<8x16x16xf32, #tpu.memory_space<vmem>>, %arg5: memref<8x8x8xf32, #tpu.memory_space<vmem>>) attributes {dimension_semantics = [#tpu.dimension_semantics<parallel>], iteration_bounds = array<i64: 1>, scalar_prefetch = 0 : i64, scratch_operands = 0 : i64, tpu.core_type = #tpu.core_type<tc>, window_params = [{transform_indices = @transform_0, window_bounds = array<i64: 8, 16, 16>}, {pipeline_mode = #tpu.pipeline_mode<synchronous>, transform_indices = @transform_1, window_bounds = array<i64: 16, 8>}, {pipeline_mode = #tpu.pipeline_mode<synchronous>, transform_indices = @transform_2, window_bounds = array<i64: 8, 16>}, {transform_indices = @transform_3, window_bounds = array<i64: 8, 16, 16>}, {transform_indices = @transform_4, window_bounds = array<i64: 8, 8, 8>}]} {
    %c0 = arith.constant 0 : index
    %c0_0 = arith.constant 0 : index
    %c0_1 = arith.constant 0 : index
    %0 = vector.load %arg1[%c0, %c0_0, %c0_1] : memref<8x16x16xf32, #tpu.memory_space<vmem>>, vector<8x16x16xf32>
    %cst = arith.constant dense<0.000000e+00> : vector<8x16xf32>
    %1 = vector.multi_reduction <add>, %0, %cst [2] : vector<8x16x16xf32> to vector<8x16xf32>
    %2 = vector.shape_cast %1 : vector<8x16xf32> to vector<8x16x1xf32>
    %cst_2 = arith.constant dense<0.000000e+00> : vector<8x1xf32>
    %3 = vector.multi_reduction <add>, %2, %cst_2 [1] : vector<8x16x1xf32> to vector<8x1xf32>
    %4 = vector.shape_cast %3 : vector<8x1xf32> to vector<8x1x1xf32>
    %cst_3 = arith.constant 3.906250e-03 : f32
    %5 = vector.broadcast %cst_3 : f32 to vector<8x1x1xf32>
    %6 = arith.mulf %4, %5 : vector<8x1x1xf32>
    %7 = vector.broadcast %6 : vector<8x1x1xf32> to vector<8x16x16xf32>
    %8 = arith.subf %0, %7 : vector<8x16x16xf32>
    %9 = arith.mulf %8, %8 : vector<8x16x16xf32>
    %cst_4 = arith.constant dense<0.000000e+00> : vector<8x16xf32>
    %10 = vector.multi_reduction <add>, %9, %cst_4 [2] : vector<8x16x16xf32> to vector<8x16xf32>
    %11 = vector.shape_cast %10 : vector<8x16xf32> to vector<8x16x1xf32>
    %cst_5 = arith.constant dense<0.000000e+00> : vector<8x1xf32>
    %12 = vector.multi_reduction <add>, %11, %cst_5 [1] : vector<8x16x1xf32> to vector<8x1xf32>
    %13 = vector.shape_cast %12 : vector<8x1xf32> to vector<8x1x1xf32>
    %cst_6 = arith.constant 3.906250e-03 : f32
    %14 = vector.broadcast %cst_6 : f32 to vector<8x1x1xf32>
    %15 = arith.mulf %13, %14 : vector<8x1x1xf32>
    %cst_7 = arith.constant 9.99999974E-6 : f32
    %16 = vector.broadcast %cst_7 : f32 to vector<8x1x1xf32>
    %17 = arith.addf %15, %16 : vector<8x1x1xf32>
    %18 = math.rsqrt %17 : vector<8x1x1xf32>
    %19 = vector.broadcast %18 : vector<8x1x1xf32> to vector<8x16x16xf32>
    %20 = arith.mulf %8, %19 : vector<8x16x16xf32>
    %cst_8 = arith.constant 0.000000e+00 : f32
    %21 = vector.broadcast %cst_8 : f32 to vector<8x16x16xf32>
    %22 = arith.cmpf oge, %20, %21 : vector<8x16x16xf32>
    %cst_9 = arith.constant 2.000000e-01 : f32
    %23 = vector.broadcast %cst_9 : f32 to vector<8x16x16xf32>
    %24 = arith.mulf %23, %20 : vector<8x16x16xf32>
    %25 = arith.select %22, %20, %24 : vector<8x16x16xi1>, vector<8x16x16xf32>
    %c0_10 = arith.constant 0 : index
    %c0_11 = arith.constant 0 : index
    %c0_12 = arith.constant 0 : index
    %26 = vector.load %arg4[%c0_10, %c0_11, %c0_12] : memref<8x16x16xf32, #tpu.memory_space<vmem>>, vector<8x16x16xf32>
    tpu.vector_store %arg4[%c0_10, %c0_11, %c0_12], %25 {strides = array<i32>} : memref<8x16x16xf32, #tpu.memory_space<vmem>>, vector<8x16x16xf32>,
    %27 = arith.truncf %25 : vector<8x16x16xf32> to vector<8x16x16xbf16>
    %c0_13 = arith.constant 0 : index
    %c0_14 = arith.constant 0 : index
    %28 = vector.load %arg2[%c0_13, %c0_14] : memref<16x8xbf16, #tpu.memory_space<vmem>>, vector<16x8xbf16>
    %29 = vector.shape_cast %28 : vector<16x8xbf16> to vector<1x16x8xbf16>
    %30 = vector.broadcast %29 : vector<1x16x8xbf16> to vector<8x16x8xbf16>
    "tpu.trace_start"() <{level = 10 : i32, message = "rhw,rwv->rhv"}> : () -> ()
    %cst_15 = arith.constant dense<0.000000e+00> : vector<8x16x8xf32>
    %31 = tpu.matmul %27, %30, %cst_15 {dimension_numbers = #tpu.dot_dimension_numbers<[2], [1], [1], [2], [0, 0, 0, 1, 1, 2], [0], [0]>} : vector<8x16x16xbf16>, vector<8x16x8xbf16>, vector<8x16x8xf32> -> vector<8x16x8xf32>
    "tpu.trace_stop"() : () -> ()
    %c0_16 = arith.constant 0 : index
    %c0_17 = arith.constant 0 : index
    %32 = vector.load %arg3[%c0_16, %c0_17] : memref<8x16xbf16, #tpu.memory_space<vmem>>, vector<8x16xbf16>
    %33 = vector.shape_cast %32 : vector<8x16xbf16> to vector<1x8x16xbf16>
    %34 = vector.broadcast %33 : vector<1x8x16xbf16> to vector<8x8x16xbf16>
    %35 = arith.truncf %31 : vector<8x16x8xf32> to vector<8x16x8xbf16>
    "tpu.trace_start"() <{level = 10 : i32, message = "rkh,rhv->rkv"}> : () -> ()
    %cst_18 = arith.constant dense<0.000000e+00> : vector<8x8x8xf32>
    %36 = tpu.matmul %34, %35, %cst_18 {dimension_numbers = #tpu.dot_dimension_numbers<[2], [1], [1], [2], [0, 0, 0, 1, 1, 2], [0], [0]>} : vector<8x8x16xbf16>, vector<8x16x8xbf16>, vector<8x8x8xf32> -> vector<8x8x8xf32>
    "tpu.trace_stop"() : () -> ()
    %c0_19 = arith.constant 0 : index
    %c0_20 = arith.constant 0 : index
    %c0_21 = arith.constant 0 : index
    %37 = vector.load %arg5[%c0_19, %c0_20, %c0_21] : memref<8x8x8xf32, #tpu.memory_space<vmem>>, vector<8x8x8xf32>
    tpu.vector_store %arg5[%c0_19, %c0_20, %c0_21], %36 {strides = array<i32>} : memref<8x8x8xf32, #tpu.memory_space<vmem>>, vector<8x8x8xf32>,
    return
  }
  func.func @transform_0(%arg0: i32) -> (i32, i32, i32) {
    %c0_i32 = arith.constant 0 : i32
    %c0_i32_0 = arith.constant 0 : i32
    %c0_i32_1 = arith.constant 0 : i32
    return %arg0, %c0_i32, %c0_i32_0 : i32, i32, i32
  }
  func.func @transform_1(%arg0: i32) -> (i32, i32) {
    %c0_i32 = arith.constant 0 : i32
    %c0_i32_0 = arith.constant 0 : i32
    %c0_i32_1 = arith.constant 0 : i32
    return %c0_i32, %c0_i32_0 : i32, i32
  }
  func.func @transform_2(%arg0: i32) -> (i32, i32) {
    %c0_i32 = arith.constant 0 : i32
    %c0_i32_0 = arith.constant 0 : i32
    %c0_i32_1 = arith.constant 0 : i32
    return %c0_i32, %c0_i32_0 : i32, i32
  }
  func.func @transform_3(%arg0: i32) -> (i32, i32, i32) {
    %c0_i32 = arith.constant 0 : i32
    %c0_i32_0 = arith.constant 0 : i32
    %c0_i32_1 = arith.constant 0 : i32
    return %arg0, %c0_i32, %c0_i32_0 : i32, i32, i32
  }
  func.func @transform_4(%arg0: i32) -> (i32, i32, i32) {
    %c0_i32 = arith.constant 0 : i32
    %c0_i32_0 = arith.constant 0 : i32
    %c0_i32_1 = arith.constant 0 : i32
    return %arg0, %c0_i32, %c0_i32_0 : i32, i32, i32
  }
}

module attributes {stable_mosaic.version = 11 : i64} {
  func.func @_mdconv3x3_kernel(%arg0: i32, %arg1: memref<1x8x102xf32, #tpu.memory_space<vmem>>, %arg2: memref<8x72xbf16, #tpu.memory_space<vmem>>, %arg3: memref<1x80xf32, #tpu.memory_space<vmem>>, %arg4: memref<1x8x80xf32, #tpu.memory_space<vmem>>, %arg5: memref<72x80xf32, #tpu.memory_space<vmem>>) attributes {dimension_semantics = [#tpu.dimension_semantics<parallel>], iteration_bounds = array<i64: 2>, scalar_prefetch = 0 : i64, scratch_operands = 1 : i64, tpu.core_type = #tpu.core_type<tc>, window_params = [{transform_indices = @transform_0, window_bounds = array<i64: 1, 8, 102>}, {pipeline_mode = #tpu.pipeline_mode<synchronous>, transform_indices = @transform_1, window_bounds = array<i64: 8, 72>}, {pipeline_mode = #tpu.pipeline_mode<synchronous>, transform_indices = @transform_2, window_bounds = array<i64: 1, 80>}, {transform_indices = @transform_3, window_bounds = array<i64: 1, 8, 80>}]} {
    %c0 = arith.constant 0 : index
    %c0_0 = arith.constant 0 : index
    %c0_1 = arith.constant 0 : index
    %0 = vector.load %arg1[%c0, %c0_0, %c0_1] : memref<1x8x102xf32, #tpu.memory_space<vmem>>, vector<1x8x80xf32>
    %1 = vector.shape_cast %0 : vector<1x8x80xf32> to vector<8x80xf32>
    %c0_2 = arith.constant 0 : index
    %c0_3 = arith.constant 0 : index
    %2 = vector.load %arg5[%c0_2, %c0_3] : memref<72x80xf32, #tpu.memory_space<vmem>>, vector<8x80xf32>
    tpu.vector_store %arg5[%c0_2, %c0_3], %1 {strides = array<i32>} : memref<72x80xf32, #tpu.memory_space<vmem>>, vector<8x80xf32>,
    %c0_4 = arith.constant 0 : index
    %c0_5 = arith.constant 0 : index
    %c1 = arith.constant 1 : index
    %3 = vector.load %arg1[%c0_4, %c0_5, %c1] : memref<1x8x102xf32, #tpu.memory_space<vmem>>, vector<1x8x80xf32>
    %4 = vector.shape_cast %3 : vector<1x8x80xf32> to vector<8x80xf32>
    %c8 = arith.constant 8 : index
    %c0_6 = arith.constant 0 : index
    %5 = vector.load %arg5[%c8, %c0_6] : memref<72x80xf32, #tpu.memory_space<vmem>>, vector<8x80xf32>
    tpu.vector_store %arg5[%c8, %c0_6], %4 {strides = array<i32>} : memref<72x80xf32, #tpu.memory_space<vmem>>, vector<8x80xf32>,
    %c0_7 = arith.constant 0 : index
    %c0_8 = arith.constant 0 : index
    %c2 = arith.constant 2 : index
    %6 = vector.load %arg1[%c0_7, %c0_8, %c2] : memref<1x8x102xf32, #tpu.memory_space<vmem>>, vector<1x8x80xf32>
    %7 = vector.shape_cast %6 : vector<1x8x80xf32> to vector<8x80xf32>
    %c16 = arith.constant 16 : index
    %c0_9 = arith.constant 0 : index
    %8 = vector.load %arg5[%c16, %c0_9] : memref<72x80xf32, #tpu.memory_space<vmem>>, vector<8x80xf32>
    tpu.vector_store %arg5[%c16, %c0_9], %7 {strides = array<i32>} : memref<72x80xf32, #tpu.memory_space<vmem>>, vector<8x80xf32>,
    %c0_10 = arith.constant 0 : index
    %c0_11 = arith.constant 0 : index
    %c10 = arith.constant 10 : index
    %9 = vector.load %arg1[%c0_10, %c0_11, %c10] : memref<1x8x102xf32, #tpu.memory_space<vmem>>, vector<1x8x80xf32>
    %10 = vector.shape_cast %9 : vector<1x8x80xf32> to vector<8x80xf32>
    %c24 = arith.constant 24 : index
    %c0_12 = arith.constant 0 : index
    %11 = vector.load %arg5[%c24, %c0_12] : memref<72x80xf32, #tpu.memory_space<vmem>>, vector<8x80xf32>
    tpu.vector_store %arg5[%c24, %c0_12], %10 {strides = array<i32>} : memref<72x80xf32, #tpu.memory_space<vmem>>, vector<8x80xf32>,
    %c0_13 = arith.constant 0 : index
    %c0_14 = arith.constant 0 : index
    %c11 = arith.constant 11 : index
    %12 = vector.load %arg1[%c0_13, %c0_14, %c11] : memref<1x8x102xf32, #tpu.memory_space<vmem>>, vector<1x8x80xf32>
    %13 = vector.shape_cast %12 : vector<1x8x80xf32> to vector<8x80xf32>
    %c32 = arith.constant 32 : index
    %c0_15 = arith.constant 0 : index
    %14 = vector.load %arg5[%c32, %c0_15] : memref<72x80xf32, #tpu.memory_space<vmem>>, vector<8x80xf32>
    tpu.vector_store %arg5[%c32, %c0_15], %13 {strides = array<i32>} : memref<72x80xf32, #tpu.memory_space<vmem>>, vector<8x80xf32>,
    %c0_16 = arith.constant 0 : index
    %c0_17 = arith.constant 0 : index
    %c12 = arith.constant 12 : index
    %15 = vector.load %arg1[%c0_16, %c0_17, %c12] : memref<1x8x102xf32, #tpu.memory_space<vmem>>, vector<1x8x80xf32>
    %16 = vector.shape_cast %15 : vector<1x8x80xf32> to vector<8x80xf32>
    %c40 = arith.constant 40 : index
    %c0_18 = arith.constant 0 : index
    %17 = vector.load %arg5[%c40, %c0_18] : memref<72x80xf32, #tpu.memory_space<vmem>>, vector<8x80xf32>
    tpu.vector_store %arg5[%c40, %c0_18], %16 {strides = array<i32>} : memref<72x80xf32, #tpu.memory_space<vmem>>, vector<8x80xf32>,
    %c0_19 = arith.constant 0 : index
    %c0_20 = arith.constant 0 : index
    %c20 = arith.constant 20 : index
    %18 = vector.load %arg1[%c0_19, %c0_20, %c20] : memref<1x8x102xf32, #tpu.memory_space<vmem>>, vector<1x8x80xf32>
    %19 = vector.shape_cast %18 : vector<1x8x80xf32> to vector<8x80xf32>
    %c48 = arith.constant 48 : index
    %c0_21 = arith.constant 0 : index
    %20 = vector.load %arg5[%c48, %c0_21] : memref<72x80xf32, #tpu.memory_space<vmem>>, vector<8x80xf32>
    tpu.vector_store %arg5[%c48, %c0_21], %19 {strides = array<i32>} : memref<72x80xf32, #tpu.memory_space<vmem>>, vector<8x80xf32>,
    %c0_22 = arith.constant 0 : index
    %c0_23 = arith.constant 0 : index
    %c21 = arith.constant 21 : index
    %21 = vector.load %arg1[%c0_22, %c0_23, %c21] : memref<1x8x102xf32, #tpu.memory_space<vmem>>, vector<1x8x80xf32>
    %22 = vector.shape_cast %21 : vector<1x8x80xf32> to vector<8x80xf32>
    %c56 = arith.constant 56 : index
    %c0_24 = arith.constant 0 : index
    %23 = vector.load %arg5[%c56, %c0_24] : memref<72x80xf32, #tpu.memory_space<vmem>>, vector<8x80xf32>
    tpu.vector_store %arg5[%c56, %c0_24], %22 {strides = array<i32>} : memref<72x80xf32, #tpu.memory_space<vmem>>, vector<8x80xf32>,
    %c0_25 = arith.constant 0 : index
    %c0_26 = arith.constant 0 : index
    %c22 = arith.constant 22 : index
    %24 = vector.load %arg1[%c0_25, %c0_26, %c22] : memref<1x8x102xf32, #tpu.memory_space<vmem>>, vector<1x8x80xf32>
    %25 = vector.shape_cast %24 : vector<1x8x80xf32> to vector<8x80xf32>
    %c64 = arith.constant 64 : index
    %c0_27 = arith.constant 0 : index
    %26 = vector.load %arg5[%c64, %c0_27] : memref<72x80xf32, #tpu.memory_space<vmem>>, vector<8x80xf32>
    tpu.vector_store %arg5[%c64, %c0_27], %25 {strides = array<i32>} : memref<72x80xf32, #tpu.memory_space<vmem>>, vector<8x80xf32>,
    %c0_28 = arith.constant 0 : index
    %c0_29 = arith.constant 0 : index
    %27 = vector.load %arg2[%c0_28, %c0_29] : memref<8x72xbf16, #tpu.memory_space<vmem>>, vector<8x72xbf16>
    %c0_30 = arith.constant 0 : index
    %c0_31 = arith.constant 0 : index
    %28 = vector.load %arg5[%c0_30, %c0_31] : memref<72x80xf32, #tpu.memory_space<vmem>>, vector<72x80xf32>
    %29 = arith.truncf %28 : vector<72x80xf32> to vector<72x80xbf16>
    %cst = arith.constant dense<0.000000e+00> : vector<8x80xf32>
    %30 = tpu.matmul %27, %29, %cst {dimension_numbers = #tpu.dot_dimension_numbers<[1], [0], [0], [1], [0, 0, 1, 1], [], []>} : vector<8x72xbf16>, vector<72x80xbf16>, vector<8x80xf32> -> vector<8x80xf32>
    %c0_32 = arith.constant 0 : index
    %c0_33 = arith.constant 0 : index
    %31 = vector.load %arg3[%c0_32, %c0_33] : memref<1x80xf32, #tpu.memory_space<vmem>>, vector<1x80xf32>
    %32 = vector.broadcast %31 : vector<1x80xf32> to vector<8x80xf32>
    %33 = arith.mulf %30, %32 : vector<8x80xf32>
    %cst_34 = arith.constant dense<0.000000e+00> : vector<8xf32>
    %34 = vector.multi_reduction <add>, %33, %cst_34 [1] : vector<8x80xf32> to vector<8xf32>
    %35 = vector.shape_cast %34 : vector<8xf32> to vector<8x1xf32>
    %cst_35 = arith.constant 6.400000e+01 : f32
    %36 = vector.broadcast %cst_35 : f32 to vector<8x1xf32>
    %37 = arith.divf %35, %36 : vector<8x1xf32>
    %38 = vector.broadcast %37 : vector<8x1xf32> to vector<8x80xf32>
    %39 = arith.subf %30, %38 : vector<8x80xf32>
    %40 = vector.broadcast %31 : vector<1x80xf32> to vector<8x80xf32>
    %41 = arith.mulf %39, %40 : vector<8x80xf32>
    %42 = arith.mulf %41, %41 : vector<8x80xf32>
    %cst_36 = arith.constant dense<0.000000e+00> : vector<8xf32>
    %43 = vector.multi_reduction <add>, %42, %cst_36 [1] : vector<8x80xf32> to vector<8xf32>
    %44 = vector.shape_cast %43 : vector<8xf32> to vector<8x1xf32>
    %cst_37 = arith.constant 6.400000e+01 : f32
    %45 = vector.broadcast %cst_37 : f32 to vector<8x1xf32>
    %46 = arith.divf %44, %45 : vector<8x1xf32>
    %47 = vector.broadcast %37 : vector<8x1xf32> to vector<8x80xf32>
    %48 = arith.subf %30, %47 : vector<8x80xf32>
    %cst_38 = arith.constant 9.99999974E-6 : f32
    %49 = vector.broadcast %cst_38 : f32 to vector<8x1xf32>
    %50 = arith.addf %46, %49 : vector<8x1xf32>
    %51 = math.rsqrt %50 : vector<8x1xf32>
    %52 = vector.broadcast %51 : vector<8x1xf32> to vector<8x80xf32>
    %53 = arith.mulf %48, %52 : vector<8x80xf32>
    %cst_39 = arith.constant 0.000000e+00 : f32
    %54 = vector.broadcast %cst_39 : f32 to vector<8x80xf32>
    %55 = arith.cmpf oge, %53, %54 : vector<8x80xf32>
    %cst_40 = arith.constant 2.000000e-01 : f32
    %56 = vector.broadcast %cst_40 : f32 to vector<8x80xf32>
    %57 = arith.mulf %56, %53 : vector<8x80xf32>
    %58 = arith.select %55, %53, %57 : vector<8x80xi1>, vector<8x80xf32>
    %59 = tpu.iota {dimensions = array<i32: 0>} : vector<8x1xi32>
    %c4_i32 = arith.constant 4 : i32
    %60 = vector.broadcast %c4_i32 : i32 to vector<8x1xi32>
    %61 = arith.cmpi slt, %59, %60 : vector<8x1xi32>
    %62 = vector.shape_cast %61 : vector<8x1xi1> to vector<8x1xi1>
    %63 = vector.broadcast %62 : vector<8x1xi1> to vector<8x80xi1>
    %64 = arith.select %63, %58, %30 : vector<8x80xi1>, vector<8x80xf32>
    %c0_41 = arith.constant 0 : index
    %c0_42 = arith.constant 0 : index
    %c0_43 = arith.constant 0 : index
    %65 = vector.load %arg4[%c0_41, %c0_42, %c0_43] : memref<1x8x80xf32, #tpu.memory_space<vmem>>, vector<1x8x80xf32>
    %66 = vector.shape_cast %65 : vector<1x8x80xf32> to vector<8x80xf32>
    %67 = vector.shape_cast %64 : vector<8x80xf32> to vector<1x8x80xf32>
    tpu.vector_store %arg4[%c0_41, %c0_42, %c0_43], %67 {strides = array<i32>} : memref<1x8x80xf32, #tpu.memory_space<vmem>>, vector<1x8x80xf32>,
    return
  }
  func.func @transform_0(%arg0: i32) -> (i32, i32, i32) {
    %c0_i32 = arith.constant 0 : i32
    %c0_i32_0 = arith.constant 0 : i32
    %c0_i32_1 = arith.constant 0 : i32
    return %arg0, %c0_i32, %c0_i32_0 : i32, i32, i32
  }
  func.func @transform_1(%arg0: i32) -> (i32, i32) {
    %c0_i32 = arith.constant 0 : i32
    %c0_i32_0 = arith.constant 0 : i32
    %c0_i32_1 = arith.constant 0 : i32
    return %c0_i32, %c0_i32_0 : i32, i32
  }
  func.func @transform_2(%arg0: i32) -> (i32, i32) {
    %c0_i32 = arith.constant 0 : i32
    %c0_i32_0 = arith.constant 0 : i32
    %c0_i32_1 = arith.constant 0 : i32
    return %c0_i32, %c0_i32_0 : i32, i32
  }
  func.func @transform_3(%arg0: i32) -> (i32, i32, i32) {
    %c0_i32 = arith.constant 0 : i32
    %c0_i32_0 = arith.constant 0 : i32
    %c0_i32_1 = arith.constant 0 : i32
    return %arg0, %c0_i32, %c0_i32_0 : i32, i32, i32
  }
}

module attributes {stable_mosaic.version = 11 : i64} {
  func.func @_inorm_lrelu_kernel(%arg0: i32, %arg1: memref<8x64xf32, #tpu.memory_space<vmem>>, %arg2: memref<8x64xf32, #tpu.memory_space<vmem>>) attributes {dimension_semantics = [#tpu.dimension_semantics<parallel>], iteration_bounds = array<i64: 1>, scalar_prefetch = 0 : i64, scratch_operands = 0 : i64, tpu.core_type = #tpu.core_type<tc>, window_params = [{transform_indices = @transform_0, window_bounds = array<i64: 8, 64>}, {transform_indices = @transform_1, window_bounds = array<i64: 8, 64>}]} {
    %c0 = arith.constant 0 : index
    %c0_0 = arith.constant 0 : index
    %0 = vector.load %arg1[%c0, %c0_0] : memref<8x64xf32, #tpu.memory_space<vmem>>, vector<8x64xf32>
    %cst = arith.constant dense<0.000000e+00> : vector<8xf32>
    %1 = vector.multi_reduction <add>, %0, %cst [1] : vector<8x64xf32> to vector<8xf32>
    %2 = vector.shape_cast %1 : vector<8xf32> to vector<8x1xf32>
    %cst_1 = arith.constant 1.562500e-02 : f32
    %3 = vector.broadcast %cst_1 : f32 to vector<8x1xf32>
    %4 = arith.mulf %2, %3 : vector<8x1xf32>
    %5 = vector.broadcast %4 : vector<8x1xf32> to vector<8x64xf32>
    %6 = arith.subf %0, %5 : vector<8x64xf32>
    %7 = arith.mulf %6, %6 : vector<8x64xf32>
    %cst_2 = arith.constant dense<0.000000e+00> : vector<8xf32>
    %8 = vector.multi_reduction <add>, %7, %cst_2 [1] : vector<8x64xf32> to vector<8xf32>
    %9 = vector.shape_cast %8 : vector<8xf32> to vector<8x1xf32>
    %cst_3 = arith.constant 1.562500e-02 : f32
    %10 = vector.broadcast %cst_3 : f32 to vector<8x1xf32>
    %11 = arith.mulf %9, %10 : vector<8x1xf32>
    %cst_4 = arith.constant 9.99999974E-6 : f32
    %12 = vector.broadcast %cst_4 : f32 to vector<8x1xf32>
    %13 = arith.addf %11, %12 : vector<8x1xf32>
    %14 = math.rsqrt %13 : vector<8x1xf32>
    %15 = vector.broadcast %14 : vector<8x1xf32> to vector<8x64xf32>
    %16 = arith.mulf %6, %15 : vector<8x64xf32>
    %cst_5 = arith.constant 0.000000e+00 : f32
    %17 = vector.broadcast %cst_5 : f32 to vector<8x64xf32>
    %18 = arith.cmpf oge, %16, %17 : vector<8x64xf32>
    %cst_6 = arith.constant 2.000000e-01 : f32
    %19 = vector.broadcast %cst_6 : f32 to vector<8x64xf32>
    %20 = arith.mulf %19, %16 : vector<8x64xf32>
    %21 = arith.select %18, %16, %20 : vector<8x64xi1>, vector<8x64xf32>
    %c0_7 = arith.constant 0 : index
    %c0_8 = arith.constant 0 : index
    %22 = vector.load %arg2[%c0_7, %c0_8] : memref<8x64xf32, #tpu.memory_space<vmem>>, vector<8x64xf32>
    tpu.vector_store %arg2[%c0_7, %c0_8], %21 {strides = array<i32>} : memref<8x64xf32, #tpu.memory_space<vmem>>, vector<8x64xf32>,
    return
  }
  func.func @transform_0(%arg0: i32) -> (i32, i32) {
    %c0_i32 = arith.constant 0 : i32
    %c0_i32_0 = arith.constant 0 : i32
    return %arg0, %c0_i32 : i32, i32
  }
  func.func @transform_1(%arg0: i32) -> (i32, i32) {
    %c0_i32 = arith.constant 0 : i32
    %c0_i32_0 = arith.constant 0 : i32
    return %arg0, %c0_i32 : i32, i32
  }
}

module attributes {stable_mosaic.version = 11 : i64} {
  func.func @_mdconv3x3_kernel(%arg0: i32, %arg1: memref<1x16x102xf32, #tpu.memory_space<vmem>>, %arg2: memref<8x144xbf16, #tpu.memory_space<vmem>>, %arg3: memref<1x80xf32, #tpu.memory_space<vmem>>, %arg4: memref<1x8x80xf32, #tpu.memory_space<vmem>>, %arg5: memref<144x80xf32, #tpu.memory_space<vmem>>) attributes {dimension_semantics = [#tpu.dimension_semantics<parallel>], iteration_bounds = array<i64: 2>, scalar_prefetch = 0 : i64, scratch_operands = 1 : i64, tpu.core_type = #tpu.core_type<tc>, window_params = [{transform_indices = @transform_0, window_bounds = array<i64: 1, 16, 102>}, {pipeline_mode = #tpu.pipeline_mode<synchronous>, transform_indices = @transform_1, window_bounds = array<i64: 8, 144>}, {pipeline_mode = #tpu.pipeline_mode<synchronous>, transform_indices = @transform_2, window_bounds = array<i64: 1, 80>}, {transform_indices = @transform_3, window_bounds = array<i64: 1, 8, 80>}]} {
    %c0 = arith.constant 0 : index
    %c0_0 = arith.constant 0 : index
    %c0_1 = arith.constant 0 : index
    %0 = vector.load %arg1[%c0, %c0_0, %c0_1] : memref<1x16x102xf32, #tpu.memory_space<vmem>>, vector<1x16x80xf32>
    %1 = vector.shape_cast %0 : vector<1x16x80xf32> to vector<16x80xf32>
    %c0_2 = arith.constant 0 : index
    %c0_3 = arith.constant 0 : index
    %2 = vector.load %arg5[%c0_2, %c0_3] : memref<144x80xf32, #tpu.memory_space<vmem>>, vector<16x80xf32>
    tpu.vector_store %arg5[%c0_2, %c0_3], %1 {strides = array<i32>} : memref<144x80xf32, #tpu.memory_space<vmem>>, vector<16x80xf32>,
    %c0_4 = arith.constant 0 : index
    %c0_5 = arith.constant 0 : index
    %c1 = arith.constant 1 : index
    %3 = vector.load %arg1[%c0_4, %c0_5, %c1] : memref<1x16x102xf32, #tpu.memory_space<vmem>>, vector<1x16x80xf32>
    %4 = vector.shape_cast %3 : vector<1x16x80xf32> to vector<16x80xf32>
    %c16 = arith.constant 16 : index
    %c0_6 = arith.constant 0 : index
    %5 = vector.load %arg5[%c16, %c0_6] : memref<144x80xf32, #tpu.memory_space<vmem>>, vector<16x80xf32>
    tpu.vector_store %arg5[%c16, %c0_6], %4 {strides = array<i32>} : memref<144x80xf32, #tpu.memory_space<vmem>>, vector<16x80xf32>,
    %c0_7 = arith.constant 0 : index
    %c0_8 = arith.constant 0 : index
    %c2 = arith.constant 2 : index
    %6 = vector.load %arg1[%c0_7, %c0_8, %c2] : memref<1x16x102xf32, #tpu.memory_space<vmem>>, vector<1x16x80xf32>
    %7 = vector.shape_cast %6 : vector<1x16x80xf32> to vector<16x80xf32>
    %c32 = arith.constant 32 : index
    %c0_9 = arith.constant 0 : index
    %8 = vector.load %arg5[%c32, %c0_9] : memref<144x80xf32, #tpu.memory_space<vmem>>, vector<16x80xf32>
    tpu.vector_store %arg5[%c32, %c0_9], %7 {strides = array<i32>} : memref<144x80xf32, #tpu.memory_space<vmem>>, vector<16x80xf32>,
    %c0_10 = arith.constant 0 : index
    %c0_11 = arith.constant 0 : index
    %c10 = arith.constant 10 : index
    %9 = vector.load %arg1[%c0_10, %c0_11, %c10] : memref<1x16x102xf32, #tpu.memory_space<vmem>>, vector<1x16x80xf32>
    %10 = vector.shape_cast %9 : vector<1x16x80xf32> to vector<16x80xf32>
    %c48 = arith.constant 48 : index
    %c0_12 = arith.constant 0 : index
    %11 = vector.load %arg5[%c48, %c0_12] : memref<144x80xf32, #tpu.memory_space<vmem>>, vector<16x80xf32>
    tpu.vector_store %arg5[%c48, %c0_12], %10 {strides = array<i32>} : memref<144x80xf32, #tpu.memory_space<vmem>>, vector<16x80xf32>,
    %c0_13 = arith.constant 0 : index
    %c0_14 = arith.constant 0 : index
    %c11 = arith.constant 11 : index
    %12 = vector.load %arg1[%c0_13, %c0_14, %c11] : memref<1x16x102xf32, #tpu.memory_space<vmem>>, vector<1x16x80xf32>
    %13 = vector.shape_cast %12 : vector<1x16x80xf32> to vector<16x80xf32>
    %c64 = arith.constant 64 : index
    %c0_15 = arith.constant 0 : index
    %14 = vector.load %arg5[%c64, %c0_15] : memref<144x80xf32, #tpu.memory_space<vmem>>, vector<16x80xf32>
    tpu.vector_store %arg5[%c64, %c0_15], %13 {strides = array<i32>} : memref<144x80xf32, #tpu.memory_space<vmem>>, vector<16x80xf32>,
    %c0_16 = arith.constant 0 : index
    %c0_17 = arith.constant 0 : index
    %c12 = arith.constant 12 : index
    %15 = vector.load %arg1[%c0_16, %c0_17, %c12] : memref<1x16x102xf32, #tpu.memory_space<vmem>>, vector<1x16x80xf32>
    %16 = vector.shape_cast %15 : vector<1x16x80xf32> to vector<16x80xf32>
    %c80 = arith.constant 80 : index
    %c0_18 = arith.constant 0 : index
    %17 = vector.load %arg5[%c80, %c0_18] : memref<144x80xf32, #tpu.memory_space<vmem>>, vector<16x80xf32>
    tpu.vector_store %arg5[%c80, %c0_18], %16 {strides = array<i32>} : memref<144x80xf32, #tpu.memory_space<vmem>>, vector<16x80xf32>,
    %c0_19 = arith.constant 0 : index
    %c0_20 = arith.constant 0 : index
    %c20 = arith.constant 20 : index
    %18 = vector.load %arg1[%c0_19, %c0_20, %c20] : memref<1x16x102xf32, #tpu.memory_space<vmem>>, vector<1x16x80xf32>
    %19 = vector.shape_cast %18 : vector<1x16x80xf32> to vector<16x80xf32>
    %c96 = arith.constant 96 : index
    %c0_21 = arith.constant 0 : index
    %20 = vector.load %arg5[%c96, %c0_21] : memref<144x80xf32, #tpu.memory_space<vmem>>, vector<16x80xf32>
    tpu.vector_store %arg5[%c96, %c0_21], %19 {strides = array<i32>} : memref<144x80xf32, #tpu.memory_space<vmem>>, vector<16x80xf32>,
    %c0_22 = arith.constant 0 : index
    %c0_23 = arith.constant 0 : index
    %c21 = arith.constant 21 : index
    %21 = vector.load %arg1[%c0_22, %c0_23, %c21] : memref<1x16x102xf32, #tpu.memory_space<vmem>>, vector<1x16x80xf32>
    %22 = vector.shape_cast %21 : vector<1x16x80xf32> to vector<16x80xf32>
    %c112 = arith.constant 112 : index
    %c0_24 = arith.constant 0 : index
    %23 = vector.load %arg5[%c112, %c0_24] : memref<144x80xf32, #tpu.memory_space<vmem>>, vector<16x80xf32>
    tpu.vector_store %arg5[%c112, %c0_24], %22 {strides = array<i32>} : memref<144x80xf32, #tpu.memory_space<vmem>>, vector<16x80xf32>,
    %c0_25 = arith.constant 0 : index
    %c0_26 = arith.constant 0 : index
    %c22 = arith.constant 22 : index
    %24 = vector.load %arg1[%c0_25, %c0_26, %c22] : memref<1x16x102xf32, #tpu.memory_space<vmem>>, vector<1x16x80xf32>
    %25 = vector.shape_cast %24 : vector<1x16x80xf32> to vector<16x80xf32>
    %c128 = arith.constant 128 : index
    %c0_27 = arith.constant 0 : index
    %26 = vector.load %arg5[%c128, %c0_27] : memref<144x80xf32, #tpu.memory_space<vmem>>, vector<16x80xf32>
    tpu.vector_store %arg5[%c128, %c0_27], %25 {strides = array<i32>} : memref<144x80xf32, #tpu.memory_space<vmem>>, vector<16x80xf32>,
    %c0_28 = arith.constant 0 : index
    %c0_29 = arith.constant 0 : index
    %27 = vector.load %arg2[%c0_28, %c0_29] : memref<8x144xbf16, #tpu.memory_space<vmem>>, vector<8x144xbf16>
    %c0_30 = arith.constant 0 : index
    %c0_31 = arith.constant 0 : index
    %28 = vector.load %arg5[%c0_30, %c0_31] : memref<144x80xf32, #tpu.memory_space<vmem>>, vector<144x80xf32>
    %29 = arith.truncf %28 : vector<144x80xf32> to vector<144x80xbf16>
    %cst = arith.constant dense<0.000000e+00> : vector<8x80xf32>
    %30 = tpu.matmul %27, %29, %cst {dimension_numbers = #tpu.dot_dimension_numbers<[1], [0], [0], [1], [0, 0, 1, 1], [], []>} : vector<8x144xbf16>, vector<144x80xbf16>, vector<8x80xf32> -> vector<8x80xf32>
    %c0_32 = arith.constant 0 : index
    %c0_33 = arith.constant 0 : index
    %c0_34 = arith.constant 0 : index
    %31 = vector.load %arg4[%c0_32, %c0_33, %c0_34] : memref<1x8x80xf32, #tpu.memory_space<vmem>>, vector<1x8x80xf32>
    %32 = vector.shape_cast %31 : vector<1x8x80xf32> to vector<8x80xf32>
    %33 = vector.shape_cast %30 : vector<8x80xf32> to vector<1x8x80xf32>
    tpu.vector_store %arg4[%c0_32, %c0_33, %c0_34], %33 {strides = array<i32>} : memref<1x8x80xf32, #tpu.memory_space<vmem>>, vector<1x8x80xf32>,
    return
  }
  func.func @transform_0(%arg0: i32) -> (i32, i32, i32) {
    %c0_i32 = arith.constant 0 : i32
    %c0_i32_0 = arith.constant 0 : i32
    %c0_i32_1 = arith.constant 0 : i32
    return %arg0, %c0_i32, %c0_i32_0 : i32, i32, i32
  }
  func.func @transform_1(%arg0: i32) -> (i32, i32) {
    %c0_i32 = arith.constant 0 : i32
    %c0_i32_0 = arith.constant 0 : i32
    %c0_i32_1 = arith.constant 0 : i32
    return %c0_i32, %c0_i32_0 : i32, i32
  }
  func.func @transform_2(%arg0: i32) -> (i32, i32) {
    %c0_i32 = arith.constant 0 : i32
    %c0_i32_0 = arith.constant 0 : i32
    %c0_i32_1 = arith.constant 0 : i32
    return %c0_i32, %c0_i32_0 : i32, i32
  }
  func.func @transform_3(%arg0: i32) -> (i32, i32, i32) {
    %c0_i32 = arith.constant 0 : i32
    %c0_i32_0 = arith.constant 0 : i32
    %c0_i32_1 = arith.constant 0 : i32
    return %arg0, %c0_i32, %c0_i32_0 : i32, i32, i32
  }
}

module attributes {stable_mosaic.version = 11 : i64} {
  func.func @_inorm_lrelu_pool_kernel(%arg0: i32, %arg1: memref<16x8x8xf32, #tpu.memory_space<vmem>>, %arg2: memref<8x4xbf16, #tpu.memory_space<vmem>>, %arg3: memref<4x8xbf16, #tpu.memory_space<vmem>>, %arg4: memref<16x8x8xf32, #tpu.memory_space<vmem>>, %arg5: memref<16x4x4xf32, #tpu.memory_space<vmem>>) attributes {dimension_semantics = [#tpu.dimension_semantics<parallel>], iteration_bounds = array<i64: 1>, scalar_prefetch = 0 : i64, scratch_operands = 0 : i64, tpu.core_type = #tpu.core_type<tc>, window_params = [{transform_indices = @transform_0, window_bounds = array<i64: 16, 8, 8>}, {pipeline_mode = #tpu.pipeline_mode<synchronous>, transform_indices = @transform_1, window_bounds = array<i64: 8, 4>}, {pipeline_mode = #tpu.pipeline_mode<synchronous>, transform_indices = @transform_2, window_bounds = array<i64: 4, 8>}, {transform_indices = @transform_3, window_bounds = array<i64: 16, 8, 8>}, {transform_indices = @transform_4, window_bounds = array<i64: 16, 4, 4>}]} {
    %c0 = arith.constant 0 : index
    %c0_0 = arith.constant 0 : index
    %c0_1 = arith.constant 0 : index
    %0 = vector.load %arg1[%c0, %c0_0, %c0_1] : memref<16x8x8xf32, #tpu.memory_space<vmem>>, vector<16x8x8xf32>
    %cst = arith.constant dense<0.000000e+00> : vector<16x8xf32>
    %1 = vector.multi_reduction <add>, %0, %cst [2] : vector<16x8x8xf32> to vector<16x8xf32>
    %2 = vector.shape_cast %1 : vector<16x8xf32> to vector<16x8x1xf32>
    %cst_2 = arith.constant dense<0.000000e+00> : vector<16x1xf32>
    %3 = vector.multi_reduction <add>, %2, %cst_2 [1] : vector<16x8x1xf32> to vector<16x1xf32>
    %4 = vector.shape_cast %3 : vector<16x1xf32> to vector<16x1x1xf32>
    %cst_3 = arith.constant 1.562500e-02 : f32
    %5 = vector.broadcast %cst_3 : f32 to vector<16x1x1xf32>
    %6 = arith.mulf %4, %5 : vector<16x1x1xf32>
    %7 = vector.broadcast %6 : vector<16x1x1xf32> to vector<16x8x8xf32>
    %8 = arith.subf %0, %7 : vector<16x8x8xf32>
    %9 = arith.mulf %8, %8 : vector<16x8x8xf32>
    %cst_4 = arith.constant dense<0.000000e+00> : vector<16x8xf32>
    %10 = vector.multi_reduction <add>, %9, %cst_4 [2] : vector<16x8x8xf32> to vector<16x8xf32>
    %11 = vector.shape_cast %10 : vector<16x8xf32> to vector<16x8x1xf32>
    %cst_5 = arith.constant dense<0.000000e+00> : vector<16x1xf32>
    %12 = vector.multi_reduction <add>, %11, %cst_5 [1] : vector<16x8x1xf32> to vector<16x1xf32>
    %13 = vector.shape_cast %12 : vector<16x1xf32> to vector<16x1x1xf32>
    %cst_6 = arith.constant 1.562500e-02 : f32
    %14 = vector.broadcast %cst_6 : f32 to vector<16x1x1xf32>
    %15 = arith.mulf %13, %14 : vector<16x1x1xf32>
    %cst_7 = arith.constant 9.99999974E-6 : f32
    %16 = vector.broadcast %cst_7 : f32 to vector<16x1x1xf32>
    %17 = arith.addf %15, %16 : vector<16x1x1xf32>
    %18 = math.rsqrt %17 : vector<16x1x1xf32>
    %19 = vector.broadcast %18 : vector<16x1x1xf32> to vector<16x8x8xf32>
    %20 = arith.mulf %8, %19 : vector<16x8x8xf32>
    %cst_8 = arith.constant 0.000000e+00 : f32
    %21 = vector.broadcast %cst_8 : f32 to vector<16x8x8xf32>
    %22 = arith.cmpf oge, %20, %21 : vector<16x8x8xf32>
    %cst_9 = arith.constant 2.000000e-01 : f32
    %23 = vector.broadcast %cst_9 : f32 to vector<16x8x8xf32>
    %24 = arith.mulf %23, %20 : vector<16x8x8xf32>
    %25 = arith.select %22, %20, %24 : vector<16x8x8xi1>, vector<16x8x8xf32>
    %c0_10 = arith.constant 0 : index
    %c0_11 = arith.constant 0 : index
    %c0_12 = arith.constant 0 : index
    %26 = vector.load %arg4[%c0_10, %c0_11, %c0_12] : memref<16x8x8xf32, #tpu.memory_space<vmem>>, vector<16x8x8xf32>
    tpu.vector_store %arg4[%c0_10, %c0_11, %c0_12], %25 {strides = array<i32>} : memref<16x8x8xf32, #tpu.memory_space<vmem>>, vector<16x8x8xf32>,
    %27 = arith.truncf %25 : vector<16x8x8xf32> to vector<16x8x8xbf16>
    %c0_13 = arith.constant 0 : index
    %c0_14 = arith.constant 0 : index
    %28 = vector.load %arg2[%c0_13, %c0_14] : memref<8x4xbf16, #tpu.memory_space<vmem>>, vector<8x4xbf16>
    %29 = vector.shape_cast %28 : vector<8x4xbf16> to vector<1x8x4xbf16>
    %30 = vector.broadcast %29 : vector<1x8x4xbf16> to vector<16x8x4xbf16>
    "tpu.trace_start"() <{level = 10 : i32, message = "rhw,rwv->rhv"}> : () -> ()
    %cst_15 = arith.constant dense<0.000000e+00> : vector<16x8x4xf32>
    %31 = tpu.matmul %27, %30, %cst_15 {dimension_numbers = #tpu.dot_dimension_numbers<[2], [1], [1], [2], [0, 0, 0, 1, 1, 2], [0], [0]>} : vector<16x8x8xbf16>, vector<16x8x4xbf16>, vector<16x8x4xf32> -> vector<16x8x4xf32>
    "tpu.trace_stop"() : () -> ()
    %c0_16 = arith.constant 0 : index
    %c0_17 = arith.constant 0 : index
    %32 = vector.load %arg3[%c0_16, %c0_17] : memref<4x8xbf16, #tpu.memory_space<vmem>>, vector<4x8xbf16>
    %33 = vector.shape_cast %32 : vector<4x8xbf16> to vector<1x4x8xbf16>
    %34 = vector.broadcast %33 : vector<1x4x8xbf16> to vector<16x4x8xbf16>
    %35 = arith.truncf %31 : vector<16x8x4xf32> to vector<16x8x4xbf16>
    "tpu.trace_start"() <{level = 10 : i32, message = "rkh,rhv->rkv"}> : () -> ()
    %cst_18 = arith.constant dense<0.000000e+00> : vector<16x4x4xf32>
    %36 = tpu.matmul %34, %35, %cst_18 {dimension_numbers = #tpu.dot_dimension_numbers<[2], [1], [1], [2], [0, 0, 0, 1, 1, 2], [0], [0]>} : vector<16x4x8xbf16>, vector<16x8x4xbf16>, vector<16x4x4xf32> -> vector<16x4x4xf32>
    "tpu.trace_stop"() : () -> ()
    %c0_19 = arith.constant 0 : index
    %c0_20 = arith.constant 0 : index
    %c0_21 = arith.constant 0 : index
    %37 = vector.load %arg5[%c0_19, %c0_20, %c0_21] : memref<16x4x4xf32, #tpu.memory_space<vmem>>, vector<16x4x4xf32>
    tpu.vector_store %arg5[%c0_19, %c0_20, %c0_21], %36 {strides = array<i32>} : memref<16x4x4xf32, #tpu.memory_space<vmem>>, vector<16x4x4xf32>,
    return
  }
  func.func @transform_0(%arg0: i32) -> (i32, i32, i32) {
    %c0_i32 = arith.constant 0 : i32
    %c0_i32_0 = arith.constant 0 : i32
    %c0_i32_1 = arith.constant 0 : i32
    return %arg0, %c0_i32, %c0_i32_0 : i32, i32, i32
  }
  func.func @transform_1(%arg0: i32) -> (i32, i32) {
    %c0_i32 = arith.constant 0 : i32
    %c0_i32_0 = arith.constant 0 : i32
    %c0_i32_1 = arith.constant 0 : i32
    return %c0_i32, %c0_i32_0 : i32, i32
  }
  func.func @transform_2(%arg0: i32) -> (i32, i32) {
    %c0_i32 = arith.constant 0 : i32
    %c0_i32_0 = arith.constant 0 : i32
    %c0_i32_1 = arith.constant 0 : i32
    return %c0_i32, %c0_i32_0 : i32, i32
  }
  func.func @transform_3(%arg0: i32) -> (i32, i32, i32) {
    %c0_i32 = arith.constant 0 : i32
    %c0_i32_0 = arith.constant 0 : i32
    %c0_i32_1 = arith.constant 0 : i32
    return %arg0, %c0_i32, %c0_i32_0 : i32, i32, i32
  }
  func.func @transform_4(%arg0: i32) -> (i32, i32, i32) {
    %c0_i32 = arith.constant 0 : i32
    %c0_i32_0 = arith.constant 0 : i32
    %c0_i32_1 = arith.constant 0 : i32
    return %arg0, %c0_i32, %c0_i32_0 : i32, i32, i32
  }
}

module attributes {stable_mosaic.version = 11 : i64} {
  func.func @_mdconv3x3_kernel(%arg0: i32, %arg1: memref<1x16x38xf32, #tpu.memory_space<vmem>>, %arg2: memref<16x144xbf16, #tpu.memory_space<vmem>>, %arg3: memref<1x24xf32, #tpu.memory_space<vmem>>, %arg4: memref<1x16x24xf32, #tpu.memory_space<vmem>>, %arg5: memref<144x24xf32, #tpu.memory_space<vmem>>) attributes {dimension_semantics = [#tpu.dimension_semantics<parallel>], iteration_bounds = array<i64: 2>, scalar_prefetch = 0 : i64, scratch_operands = 1 : i64, tpu.core_type = #tpu.core_type<tc>, window_params = [{transform_indices = @transform_0, window_bounds = array<i64: 1, 16, 38>}, {pipeline_mode = #tpu.pipeline_mode<synchronous>, transform_indices = @transform_1, window_bounds = array<i64: 16, 144>}, {pipeline_mode = #tpu.pipeline_mode<synchronous>, transform_indices = @transform_2, window_bounds = array<i64: 1, 24>}, {transform_indices = @transform_3, window_bounds = array<i64: 1, 16, 24>}]} {
    %c0 = arith.constant 0 : index
    %c0_0 = arith.constant 0 : index
    %c0_1 = arith.constant 0 : index
    %0 = vector.load %arg1[%c0, %c0_0, %c0_1] : memref<1x16x38xf32, #tpu.memory_space<vmem>>, vector<1x16x24xf32>
    %1 = vector.shape_cast %0 : vector<1x16x24xf32> to vector<16x24xf32>
    %c0_2 = arith.constant 0 : index
    %c0_3 = arith.constant 0 : index
    %2 = vector.load %arg5[%c0_2, %c0_3] : memref<144x24xf32, #tpu.memory_space<vmem>>, vector<16x24xf32>
    tpu.vector_store %arg5[%c0_2, %c0_3], %1 {strides = array<i32>} : memref<144x24xf32, #tpu.memory_space<vmem>>, vector<16x24xf32>,
    %c0_4 = arith.constant 0 : index
    %c0_5 = arith.constant 0 : index
    %c1 = arith.constant 1 : index
    %3 = vector.load %arg1[%c0_4, %c0_5, %c1] : memref<1x16x38xf32, #tpu.memory_space<vmem>>, vector<1x16x24xf32>
    %4 = vector.shape_cast %3 : vector<1x16x24xf32> to vector<16x24xf32>
    %c16 = arith.constant 16 : index
    %c0_6 = arith.constant 0 : index
    %5 = vector.load %arg5[%c16, %c0_6] : memref<144x24xf32, #tpu.memory_space<vmem>>, vector<16x24xf32>
    tpu.vector_store %arg5[%c16, %c0_6], %4 {strides = array<i32>} : memref<144x24xf32, #tpu.memory_space<vmem>>, vector<16x24xf32>,
    %c0_7 = arith.constant 0 : index
    %c0_8 = arith.constant 0 : index
    %c2 = arith.constant 2 : index
    %6 = vector.load %arg1[%c0_7, %c0_8, %c2] : memref<1x16x38xf32, #tpu.memory_space<vmem>>, vector<1x16x24xf32>
    %7 = vector.shape_cast %6 : vector<1x16x24xf32> to vector<16x24xf32>
    %c32 = arith.constant 32 : index
    %c0_9 = arith.constant 0 : index
    %8 = vector.load %arg5[%c32, %c0_9] : memref<144x24xf32, #tpu.memory_space<vmem>>, vector<16x24xf32>
    tpu.vector_store %arg5[%c32, %c0_9], %7 {strides = array<i32>} : memref<144x24xf32, #tpu.memory_space<vmem>>, vector<16x24xf32>,
    %c0_10 = arith.constant 0 : index
    %c0_11 = arith.constant 0 : index
    %c6 = arith.constant 6 : index
    %9 = vector.load %arg1[%c0_10, %c0_11, %c6] : memref<1x16x38xf32, #tpu.memory_space<vmem>>, vector<1x16x24xf32>
    %10 = vector.shape_cast %9 : vector<1x16x24xf32> to vector<16x24xf32>
    %c48 = arith.constant 48 : index
    %c0_12 = arith.constant 0 : index
    %11 = vector.load %arg5[%c48, %c0_12] : memref<144x24xf32, #tpu.memory_space<vmem>>, vector<16x24xf32>
    tpu.vector_store %arg5[%c48, %c0_12], %10 {strides = array<i32>} : memref<144x24xf32, #tpu.memory_space<vmem>>, vector<16x24xf32>,
    %c0_13 = arith.constant 0 : index
    %c0_14 = arith.constant 0 : index
    %c7 = arith.constant 7 : index
    %12 = vector.load %arg1[%c0_13, %c0_14, %c7] : memref<1x16x38xf32, #tpu.memory_space<vmem>>, vector<1x16x24xf32>
    %13 = vector.shape_cast %12 : vector<1x16x24xf32> to vector<16x24xf32>
    %c64 = arith.constant 64 : index
    %c0_15 = arith.constant 0 : index
    %14 = vector.load %arg5[%c64, %c0_15] : memref<144x24xf32, #tpu.memory_space<vmem>>, vector<16x24xf32>
    tpu.vector_store %arg5[%c64, %c0_15], %13 {strides = array<i32>} : memref<144x24xf32, #tpu.memory_space<vmem>>, vector<16x24xf32>,
    %c0_16 = arith.constant 0 : index
    %c0_17 = arith.constant 0 : index
    %c8 = arith.constant 8 : index
    %15 = vector.load %arg1[%c0_16, %c0_17, %c8] : memref<1x16x38xf32, #tpu.memory_space<vmem>>, vector<1x16x24xf32>
    %16 = vector.shape_cast %15 : vector<1x16x24xf32> to vector<16x24xf32>
    %c80 = arith.constant 80 : index
    %c0_18 = arith.constant 0 : index
    %17 = vector.load %arg5[%c80, %c0_18] : memref<144x24xf32, #tpu.memory_space<vmem>>, vector<16x24xf32>
    tpu.vector_store %arg5[%c80, %c0_18], %16 {strides = array<i32>} : memref<144x24xf32, #tpu.memory_space<vmem>>, vector<16x24xf32>,
    %c0_19 = arith.constant 0 : index
    %c0_20 = arith.constant 0 : index
    %c12 = arith.constant 12 : index
    %18 = vector.load %arg1[%c0_19, %c0_20, %c12] : memref<1x16x38xf32, #tpu.memory_space<vmem>>, vector<1x16x24xf32>
    %19 = vector.shape_cast %18 : vector<1x16x24xf32> to vector<16x24xf32>
    %c96 = arith.constant 96 : index
    %c0_21 = arith.constant 0 : index
    %20 = vector.load %arg5[%c96, %c0_21] : memref<144x24xf32, #tpu.memory_space<vmem>>, vector<16x24xf32>
    tpu.vector_store %arg5[%c96, %c0_21], %19 {strides = array<i32>} : memref<144x24xf32, #tpu.memory_space<vmem>>, vector<16x24xf32>,
    %c0_22 = arith.constant 0 : index
    %c0_23 = arith.constant 0 : index
    %c13 = arith.constant 13 : index
    %21 = vector.load %arg1[%c0_22, %c0_23, %c13] : memref<1x16x38xf32, #tpu.memory_space<vmem>>, vector<1x16x24xf32>
    %22 = vector.shape_cast %21 : vector<1x16x24xf32> to vector<16x24xf32>
    %c112 = arith.constant 112 : index
    %c0_24 = arith.constant 0 : index
    %23 = vector.load %arg5[%c112, %c0_24] : memref<144x24xf32, #tpu.memory_space<vmem>>, vector<16x24xf32>
    tpu.vector_store %arg5[%c112, %c0_24], %22 {strides = array<i32>} : memref<144x24xf32, #tpu.memory_space<vmem>>, vector<16x24xf32>,
    %c0_25 = arith.constant 0 : index
    %c0_26 = arith.constant 0 : index
    %c14 = arith.constant 14 : index
    %24 = vector.load %arg1[%c0_25, %c0_26, %c14] : memref<1x16x38xf32, #tpu.memory_space<vmem>>, vector<1x16x24xf32>
    %25 = vector.shape_cast %24 : vector<1x16x24xf32> to vector<16x24xf32>
    %c128 = arith.constant 128 : index
    %c0_27 = arith.constant 0 : index
    %26 = vector.load %arg5[%c128, %c0_27] : memref<144x24xf32, #tpu.memory_space<vmem>>, vector<16x24xf32>
    tpu.vector_store %arg5[%c128, %c0_27], %25 {strides = array<i32>} : memref<144x24xf32, #tpu.memory_space<vmem>>, vector<16x24xf32>,
    %c0_28 = arith.constant 0 : index
    %c0_29 = arith.constant 0 : index
    %27 = vector.load %arg2[%c0_28, %c0_29] : memref<16x144xbf16, #tpu.memory_space<vmem>>, vector<16x144xbf16>
    %c0_30 = arith.constant 0 : index
    %c0_31 = arith.constant 0 : index
    %28 = vector.load %arg5[%c0_30, %c0_31] : memref<144x24xf32, #tpu.memory_space<vmem>>, vector<144x24xf32>
    %29 = arith.truncf %28 : vector<144x24xf32> to vector<144x24xbf16>
    %cst = arith.constant dense<0.000000e+00> : vector<16x24xf32>
    %30 = tpu.matmul %27, %29, %cst {dimension_numbers = #tpu.dot_dimension_numbers<[1], [0], [0], [1], [0, 0, 1, 1], [], []>} : vector<16x144xbf16>, vector<144x24xbf16>, vector<16x24xf32> -> vector<16x24xf32>
    %c0_32 = arith.constant 0 : index
    %c0_33 = arith.constant 0 : index
    %31 = vector.load %arg3[%c0_32, %c0_33] : memref<1x24xf32, #tpu.memory_space<vmem>>, vector<1x24xf32>
    %32 = vector.broadcast %31 : vector<1x24xf32> to vector<16x24xf32>
    %33 = arith.mulf %30, %32 : vector<16x24xf32>
    %cst_34 = arith.constant dense<0.000000e+00> : vector<16xf32>
    %34 = vector.multi_reduction <add>, %33, %cst_34 [1] : vector<16x24xf32> to vector<16xf32>
    %35 = vector.shape_cast %34 : vector<16xf32> to vector<16x1xf32>
    %cst_35 = arith.constant 1.600000e+01 : f32
    %36 = vector.broadcast %cst_35 : f32 to vector<16x1xf32>
    %37 = arith.divf %35, %36 : vector<16x1xf32>
    %38 = vector.broadcast %37 : vector<16x1xf32> to vector<16x24xf32>
    %39 = arith.subf %30, %38 : vector<16x24xf32>
    %40 = vector.broadcast %31 : vector<1x24xf32> to vector<16x24xf32>
    %41 = arith.mulf %39, %40 : vector<16x24xf32>
    %42 = arith.mulf %41, %41 : vector<16x24xf32>
    %cst_36 = arith.constant dense<0.000000e+00> : vector<16xf32>
    %43 = vector.multi_reduction <add>, %42, %cst_36 [1] : vector<16x24xf32> to vector<16xf32>
    %44 = vector.shape_cast %43 : vector<16xf32> to vector<16x1xf32>
    %cst_37 = arith.constant 1.600000e+01 : f32
    %45 = vector.broadcast %cst_37 : f32 to vector<16x1xf32>
    %46 = arith.divf %44, %45 : vector<16x1xf32>
    %47 = vector.broadcast %37 : vector<16x1xf32> to vector<16x24xf32>
    %48 = arith.subf %30, %47 : vector<16x24xf32>
    %cst_38 = arith.constant 9.99999974E-6 : f32
    %49 = vector.broadcast %cst_38 : f32 to vector<16x1xf32>
    %50 = arith.addf %46, %49 : vector<16x1xf32>
    %51 = math.rsqrt %50 : vector<16x1xf32>
    %52 = vector.broadcast %51 : vector<16x1xf32> to vector<16x24xf32>
    %53 = arith.mulf %48, %52 : vector<16x24xf32>
    %cst_39 = arith.constant 0.000000e+00 : f32
    %54 = vector.broadcast %cst_39 : f32 to vector<16x24xf32>
    %55 = arith.cmpf oge, %53, %54 : vector<16x24xf32>
    %cst_40 = arith.constant 2.000000e-01 : f32
    %56 = vector.broadcast %cst_40 : f32 to vector<16x24xf32>
    %57 = arith.mulf %56, %53 : vector<16x24xf32>
    %58 = arith.select %55, %53, %57 : vector<16x24xi1>, vector<16x24xf32>
    %59 = tpu.iota {dimensions = array<i32: 0>} : vector<16x1xi32>
    %c8_i32 = arith.constant 8 : i32
    %60 = vector.broadcast %c8_i32 : i32 to vector<16x1xi32>
    %61 = arith.cmpi slt, %59, %60 : vector<16x1xi32>
    %62 = vector.shape_cast %61 : vector<16x1xi1> to vector<16x1xi1>
    %63 = vector.broadcast %62 : vector<16x1xi1> to vector<16x24xi1>
    %64 = arith.select %63, %58, %30 : vector<16x24xi1>, vector<16x24xf32>
    %c0_41 = arith.constant 0 : index
    %c0_42 = arith.constant 0 : index
    %c0_43 = arith.constant 0 : index
    %65 = vector.load %arg4[%c0_41, %c0_42, %c0_43] : memref<1x16x24xf32, #tpu.memory_space<vmem>>, vector<1x16x24xf32>
    %66 = vector.shape_cast %65 : vector<1x16x24xf32> to vector<16x24xf32>
    %67 = vector.shape_cast %64 : vector<16x24xf32> to vector<1x16x24xf32>
    tpu.vector_store %arg4[%c0_41, %c0_42, %c0_43], %67 {strides = array<i32>} : memref<1x16x24xf32, #tpu.memory_space<vmem>>, vector<1x16x24xf32>,
    return
  }
  func.func @transform_0(%arg0: i32) -> (i32, i32, i32) {
    %c0_i32 = arith.constant 0 : i32
    %c0_i32_0 = arith.constant 0 : i32
    %c0_i32_1 = arith.constant 0 : i32
    return %arg0, %c0_i32, %c0_i32_0 : i32, i32, i32
  }
  func.func @transform_1(%arg0: i32) -> (i32, i32) {
    %c0_i32 = arith.constant 0 : i32
    %c0_i32_0 = arith.constant 0 : i32
    %c0_i32_1 = arith.constant 0 : i32
    return %c0_i32, %c0_i32_0 : i32, i32
  }
  func.func @transform_2(%arg0: i32) -> (i32, i32) {
    %c0_i32 = arith.constant 0 : i32
    %c0_i32_0 = arith.constant 0 : i32
    %c0_i32_1 = arith.constant 0 : i32
    return %c0_i32, %c0_i32_0 : i32, i32
  }
  func.func @transform_3(%arg0: i32) -> (i32, i32, i32) {
    %c0_i32 = arith.constant 0 : i32
    %c0_i32_0 = arith.constant 0 : i32
    %c0_i32_1 = arith.constant 0 : i32
    return %arg0, %c0_i32, %c0_i32_0 : i32, i32, i32
  }
}

module attributes {stable_mosaic.version = 11 : i64} {
  func.func @_inorm_lrelu_kernel(%arg0: i32, %arg1: memref<16x16xf32, #tpu.memory_space<vmem>>, %arg2: memref<16x16xf32, #tpu.memory_space<vmem>>) attributes {dimension_semantics = [#tpu.dimension_semantics<parallel>], iteration_bounds = array<i64: 1>, scalar_prefetch = 0 : i64, scratch_operands = 0 : i64, tpu.core_type = #tpu.core_type<tc>, window_params = [{transform_indices = @transform_0, window_bounds = array<i64: 16, 16>}, {transform_indices = @transform_1, window_bounds = array<i64: 16, 16>}]} {
    %c0 = arith.constant 0 : index
    %c0_0 = arith.constant 0 : index
    %0 = vector.load %arg1[%c0, %c0_0] : memref<16x16xf32, #tpu.memory_space<vmem>>, vector<16x16xf32>
    %cst = arith.constant dense<0.000000e+00> : vector<16xf32>
    %1 = vector.multi_reduction <add>, %0, %cst [1] : vector<16x16xf32> to vector<16xf32>
    %2 = vector.shape_cast %1 : vector<16xf32> to vector<16x1xf32>
    %cst_1 = arith.constant 6.250000e-02 : f32
    %3 = vector.broadcast %cst_1 : f32 to vector<16x1xf32>
    %4 = arith.mulf %2, %3 : vector<16x1xf32>
    %5 = vector.broadcast %4 : vector<16x1xf32> to vector<16x16xf32>
    %6 = arith.subf %0, %5 : vector<16x16xf32>
    %7 = arith.mulf %6, %6 : vector<16x16xf32>
    %cst_2 = arith.constant dense<0.000000e+00> : vector<16xf32>
    %8 = vector.multi_reduction <add>, %7, %cst_2 [1] : vector<16x16xf32> to vector<16xf32>
    %9 = vector.shape_cast %8 : vector<16xf32> to vector<16x1xf32>
    %cst_3 = arith.constant 6.250000e-02 : f32
    %10 = vector.broadcast %cst_3 : f32 to vector<16x1xf32>
    %11 = arith.mulf %9, %10 : vector<16x1xf32>
    %cst_4 = arith.constant 9.99999974E-6 : f32
    %12 = vector.broadcast %cst_4 : f32 to vector<16x1xf32>
    %13 = arith.addf %11, %12 : vector<16x1xf32>
    %14 = math.rsqrt %13 : vector<16x1xf32>
    %15 = vector.broadcast %14 : vector<16x1xf32> to vector<16x16xf32>
    %16 = arith.mulf %6, %15 : vector<16x16xf32>
    %cst_5 = arith.constant 0.000000e+00 : f32
    %17 = vector.broadcast %cst_5 : f32 to vector<16x16xf32>
    %18 = arith.cmpf oge, %16, %17 : vector<16x16xf32>
    %cst_6 = arith.constant 2.000000e-01 : f32
    %19 = vector.broadcast %cst_6 : f32 to vector<16x16xf32>
    %20 = arith.mulf %19, %16 : vector<16x16xf32>
    %21 = arith.select %18, %16, %20 : vector<16x16xi1>, vector<16x16xf32>
    %c0_7 = arith.constant 0 : index
    %c0_8 = arith.constant 0 : index
    %22 = vector.load %arg2[%c0_7, %c0_8] : memref<16x16xf32, #tpu.memory_space<vmem>>, vector<16x16xf32>
    tpu.vector_store %arg2[%c0_7, %c0_8], %21 {strides = array<i32>} : memref<16x16xf32, #tpu.memory_space<vmem>>, vector<16x16xf32>,
    return
  }
  func.func @transform_0(%arg0: i32) -> (i32, i32) {
    %c0_i32 = arith.constant 0 : i32
    %c0_i32_0 = arith.constant 0 : i32
    return %arg0, %c0_i32 : i32, i32
  }
  func.func @transform_1(%arg0: i32) -> (i32, i32) {
    %c0_i32 = arith.constant 0 : i32
    %c0_i32_0 = arith.constant 0 : i32
    return %arg0, %c0_i32 : i32, i32
  }
}

module attributes {stable_mosaic.version = 11 : i64} {
  func.func @_mdgemm_kernel(%arg0: i32, %arg1: memref<1x32x16xf32, #tpu.memory_space<vmem>>, %arg2: memref<32x32xbf16, #tpu.memory_space<vmem>>, %arg3: memref<1x32x16xf32, #tpu.memory_space<vmem>>) attributes {dimension_semantics = [#tpu.dimension_semantics<parallel>], iteration_bounds = array<i64: 2>, scalar_prefetch = 0 : i64, scratch_operands = 0 : i64, tpu.core_type = #tpu.core_type<tc>, window_params = [{transform_indices = @transform_0, window_bounds = array<i64: 1, 32, 16>}, {pipeline_mode = #tpu.pipeline_mode<synchronous>, transform_indices = @transform_1, window_bounds = array<i64: 32, 32>}, {transform_indices = @transform_2, window_bounds = array<i64: 1, 32, 16>}]} {
    %c0 = arith.constant 0 : index
    %c0_0 = arith.constant 0 : index
    %0 = vector.load %arg2[%c0, %c0_0] : memref<32x32xbf16, #tpu.memory_space<vmem>>, vector<32x32xbf16>
    %c0_1 = arith.constant 0 : index
    %c0_2 = arith.constant 0 : index
    %c0_3 = arith.constant 0 : index
    %1 = vector.load %arg1[%c0_1, %c0_2, %c0_3] : memref<1x32x16xf32, #tpu.memory_space<vmem>>, vector<1x32x16xf32>
    %2 = vector.shape_cast %1 : vector<1x32x16xf32> to vector<32x16xf32>
    %3 = arith.truncf %2 : vector<32x16xf32> to vector<32x16xbf16>
    %cst = arith.constant dense<0.000000e+00> : vector<32x16xf32>
    %4 = tpu.matmul %0, %3, %cst {dimension_numbers = #tpu.dot_dimension_numbers<[1], [0], [0], [1], [0, 0, 1, 1], [], []>} : vector<32x32xbf16>, vector<32x16xbf16>, vector<32x16xf32> -> vector<32x16xf32>
    %c0_4 = arith.constant 0 : index
    %c0_5 = arith.constant 0 : index
    %c0_6 = arith.constant 0 : index
    %5 = vector.load %arg3[%c0_4, %c0_5, %c0_6] : memref<1x32x16xf32, #tpu.memory_space<vmem>>, vector<1x32x16xf32>
    %6 = vector.shape_cast %5 : vector<1x32x16xf32> to vector<32x16xf32>
    %7 = vector.shape_cast %4 : vector<32x16xf32> to vector<1x32x16xf32>
    tpu.vector_store %arg3[%c0_4, %c0_5, %c0_6], %7 {strides = array<i32>} : memref<1x32x16xf32, #tpu.memory_space<vmem>>, vector<1x32x16xf32>,
    return
  }
  func.func @transform_0(%arg0: i32) -> (i32, i32, i32) {
    %c0_i32 = arith.constant 0 : i32
    %c0_i32_0 = arith.constant 0 : i32
    %c0_i32_1 = arith.constant 0 : i32
    return %arg0, %c0_i32, %c0_i32_0 : i32, i32, i32
  }
  func.func @transform_1(%arg0: i32) -> (i32, i32) {
    %c0_i32 = arith.constant 0 : i32
    %c0_i32_0 = arith.constant 0 : i32
    %c0_i32_1 = arith.constant 0 : i32
    return %c0_i32, %c0_i32_0 : i32, i32
  }
  func.func @transform_2(%arg0: i32) -> (i32, i32, i32) {
    %c0_i32 = arith.constant 0 : i32
    %c0_i32_0 = arith.constant 0 : i32
    %c0_i32_1 = arith.constant 0 : i32
    return %arg0, %c0_i32, %c0_i32_0 : i32, i32, i32
  }
}

module attributes {stable_mosaic.version = 11 : i64} {
  func.func @_mdconv3x3_kernel(%arg0: i32, %arg1: memref<1x32x38xf32, #tpu.memory_space<vmem>>, %arg2: memref<16x288xbf16, #tpu.memory_space<vmem>>, %arg3: memref<1x24xf32, #tpu.memory_space<vmem>>, %arg4: memref<1x16x24xf32, #tpu.memory_space<vmem>>, %arg5: memref<288x24xf32, #tpu.memory_space<vmem>>) attributes {dimension_semantics = [#tpu.dimension_semantics<parallel>], iteration_bounds = array<i64: 2>, scalar_prefetch = 0 : i64, scratch_operands = 1 : i64, tpu.core_type = #tpu.core_type<tc>, window_params = [{transform_indices = @transform_0, window_bounds = array<i64: 1, 32, 38>}, {pipeline_mode = #tpu.pipeline_mode<synchronous>, transform_indices = @transform_1, window_bounds = array<i64: 16, 288>}, {pipeline_mode = #tpu.pipeline_mode<synchronous>, transform_indices = @transform_2, window_bounds = array<i64: 1, 24>}, {transform_indices = @transform_3, window_bounds = array<i64: 1, 16, 24>}]} {
    %c0 = arith.constant 0 : index
    %c0_0 = arith.constant 0 : index
    %c0_1 = arith.constant 0 : index
    %0 = vector.load %arg1[%c0, %c0_0, %c0_1] : memref<1x32x38xf32, #tpu.memory_space<vmem>>, vector<1x32x24xf32>
    %1 = vector.shape_cast %0 : vector<1x32x24xf32> to vector<32x24xf32>
    %c0_2 = arith.constant 0 : index
    %c0_3 = arith.constant 0 : index
    %2 = vector.load %arg5[%c0_2, %c0_3] : memref<288x24xf32, #tpu.memory_space<vmem>>, vector<32x24xf32>
    tpu.vector_store %arg5[%c0_2, %c0_3], %1 {strides = array<i32>} : memref<288x24xf32, #tpu.memory_space<vmem>>, vector<32x24xf32>,
    %c0_4 = arith.constant 0 : index
    %c0_5 = arith.constant 0 : index
    %c1 = arith.constant 1 : index
    %3 = vector.load %arg1[%c0_4, %c0_5, %c1] : memref<1x32x38xf32, #tpu.memory_space<vmem>>, vector<1x32x24xf32>
    %4 = vector.shape_cast %3 : vector<1x32x24xf32> to vector<32x24xf32>
    %c32 = arith.constant 32 : index
    %c0_6 = arith.constant 0 : index
    %5 = vector.load %arg5[%c32, %c0_6] : memref<288x24xf32, #tpu.memory_space<vmem>>, vector<32x24xf32>
    tpu.vector_store %arg5[%c32, %c0_6], %4 {strides = array<i32>} : memref<288x24xf32, #tpu.memory_space<vmem>>, vector<32x24xf32>,
    %c0_7 = arith.constant 0 : index
    %c0_8 = arith.constant 0 : index
    %c2 = arith.constant 2 : index
    %6 = vector.load %arg1[%c0_7, %c0_8, %c2] : memref<1x32x38xf32, #tpu.memory_space<vmem>>, vector<1x32x24xf32>
    %7 = vector.shape_cast %6 : vector<1x32x24xf32> to vector<32x24xf32>
    %c64 = arith.constant 64 : index
    %c0_9 = arith.constant 0 : index
    %8 = vector.load %arg5[%c64, %c0_9] : memref<288x24xf32, #tpu.memory_space<vmem>>, vector<32x24xf32>
    tpu.vector_store %arg5[%c64, %c0_9], %7 {strides = array<i32>} : memref<288x24xf32, #tpu.memory_space<vmem>>, vector<32x24xf32>,
    %c0_10 = arith.constant 0 : index
    %c0_11 = arith.constant 0 : index
    %c6 = arith.constant 6 : index
    %9 = vector.load %arg1[%c0_10, %c0_11, %c6] : memref<1x32x38xf32, #tpu.memory_space<vmem>>, vector<1x32x24xf32>
    %10 = vector.shape_cast %9 : vector<1x32x24xf32> to vector<32x24xf32>
    %c96 = arith.constant 96 : index
    %c0_12 = arith.constant 0 : index
    %11 = vector.load %arg5[%c96, %c0_12] : memref<288x24xf32, #tpu.memory_space<vmem>>, vector<32x24xf32>
    tpu.vector_store %arg5[%c96, %c0_12], %10 {strides = array<i32>} : memref<288x24xf32, #tpu.memory_space<vmem>>, vector<32x24xf32>,
    %c0_13 = arith.constant 0 : index
    %c0_14 = arith.constant 0 : index
    %c7 = arith.constant 7 : index
    %12 = vector.load %arg1[%c0_13, %c0_14, %c7] : memref<1x32x38xf32, #tpu.memory_space<vmem>>, vector<1x32x24xf32>
    %13 = vector.shape_cast %12 : vector<1x32x24xf32> to vector<32x24xf32>
    %c128 = arith.constant 128 : index
    %c0_15 = arith.constant 0 : index
    %14 = vector.load %arg5[%c128, %c0_15] : memref<288x24xf32, #tpu.memory_space<vmem>>, vector<32x24xf32>
    tpu.vector_store %arg5[%c128, %c0_15], %13 {strides = array<i32>} : memref<288x24xf32, #tpu.memory_space<vmem>>, vector<32x24xf32>,
    %c0_16 = arith.constant 0 : index
    %c0_17 = arith.constant 0 : index
    %c8 = arith.constant 8 : index
    %15 = vector.load %arg1[%c0_16, %c0_17, %c8] : memref<1x32x38xf32, #tpu.memory_space<vmem>>, vector<1x32x24xf32>
    %16 = vector.shape_cast %15 : vector<1x32x24xf32> to vector<32x24xf32>
    %c160 = arith.constant 160 : index
    %c0_18 = arith.constant 0 : index
    %17 = vector.load %arg5[%c160, %c0_18] : memref<288x24xf32, #tpu.memory_space<vmem>>, vector<32x24xf32>
    tpu.vector_store %arg5[%c160, %c0_18], %16 {strides = array<i32>} : memref<288x24xf32, #tpu.memory_space<vmem>>, vector<32x24xf32>,
    %c0_19 = arith.constant 0 : index
    %c0_20 = arith.constant 0 : index
    %c12 = arith.constant 12 : index
    %18 = vector.load %arg1[%c0_19, %c0_20, %c12] : memref<1x32x38xf32, #tpu.memory_space<vmem>>, vector<1x32x24xf32>
    %19 = vector.shape_cast %18 : vector<1x32x24xf32> to vector<32x24xf32>
    %c192 = arith.constant 192 : index
    %c0_21 = arith.constant 0 : index
    %20 = vector.load %arg5[%c192, %c0_21] : memref<288x24xf32, #tpu.memory_space<vmem>>, vector<32x24xf32>
    tpu.vector_store %arg5[%c192, %c0_21], %19 {strides = array<i32>} : memref<288x24xf32, #tpu.memory_space<vmem>>, vector<32x24xf32>,
    %c0_22 = arith.constant 0 : index
    %c0_23 = arith.constant 0 : index
    %c13 = arith.constant 13 : index
    %21 = vector.load %arg1[%c0_22, %c0_23, %c13] : memref<1x32x38xf32, #tpu.memory_space<vmem>>, vector<1x32x24xf32>
    %22 = vector.shape_cast %21 : vector<1x32x24xf32> to vector<32x24xf32>
    %c224 = arith.constant 224 : index
    %c0_24 = arith.constant 0 : index
    %23 = vector.load %arg5[%c224, %c0_24] : memref<288x24xf32, #tpu.memory_space<vmem>>, vector<32x24xf32>
    tpu.vector_store %arg5[%c224, %c0_24], %22 {strides = array<i32>} : memref<288x24xf32, #tpu.memory_space<vmem>>, vector<32x24xf32>,
    %c0_25 = arith.constant 0 : index
    %c0_26 = arith.constant 0 : index
    %c14 = arith.constant 14 : index
    %24 = vector.load %arg1[%c0_25, %c0_26, %c14] : memref<1x32x38xf32, #tpu.memory_space<vmem>>, vector<1x32x24xf32>
    %25 = vector.shape_cast %24 : vector<1x32x24xf32> to vector<32x24xf32>
    %c256 = arith.constant 256 : index
    %c0_27 = arith.constant 0 : index
    %26 = vector.load %arg5[%c256, %c0_27] : memref<288x24xf32, #tpu.memory_space<vmem>>, vector<32x24xf32>
    tpu.vector_store %arg5[%c256, %c0_27], %25 {strides = array<i32>} : memref<288x24xf32, #tpu.memory_space<vmem>>, vector<32x24xf32>,
    %c0_28 = arith.constant 0 : index
    %c0_29 = arith.constant 0 : index
    %27 = vector.load %arg2[%c0_28, %c0_29] : memref<16x288xbf16, #tpu.memory_space<vmem>>, vector<16x288xbf16>
    %c0_30 = arith.constant 0 : index
    %c0_31 = arith.constant 0 : index
    %28 = vector.load %arg5[%c0_30, %c0_31] : memref<288x24xf32, #tpu.memory_space<vmem>>, vector<288x24xf32>
    %29 = arith.truncf %28 : vector<288x24xf32> to vector<288x24xbf16>
    %cst = arith.constant dense<0.000000e+00> : vector<16x24xf32>
    %30 = tpu.matmul %27, %29, %cst {dimension_numbers = #tpu.dot_dimension_numbers<[1], [0], [0], [1], [0, 0, 1, 1], [], []>} : vector<16x288xbf16>, vector<288x24xbf16>, vector<16x24xf32> -> vector<16x24xf32>
    %c0_32 = arith.constant 0 : index
    %c0_33 = arith.constant 0 : index
    %31 = vector.load %arg3[%c0_32, %c0_33] : memref<1x24xf32, #tpu.memory_space<vmem>>, vector<1x24xf32>
    %32 = vector.broadcast %31 : vector<1x24xf32> to vector<16x24xf32>
    %33 = arith.mulf %30, %32 : vector<16x24xf32>
    %cst_34 = arith.constant dense<0.000000e+00> : vector<16xf32>
    %34 = vector.multi_reduction <add>, %33, %cst_34 [1] : vector<16x24xf32> to vector<16xf32>
    %35 = vector.shape_cast %34 : vector<16xf32> to vector<16x1xf32>
    %cst_35 = arith.constant 1.600000e+01 : f32
    %36 = vector.broadcast %cst_35 : f32 to vector<16x1xf32>
    %37 = arith.divf %35, %36 : vector<16x1xf32>
    %38 = vector.broadcast %37 : vector<16x1xf32> to vector<16x24xf32>
    %39 = arith.subf %30, %38 : vector<16x24xf32>
    %40 = vector.broadcast %31 : vector<1x24xf32> to vector<16x24xf32>
    %41 = arith.mulf %39, %40 : vector<16x24xf32>
    %42 = arith.mulf %41, %41 : vector<16x24xf32>
    %cst_36 = arith.constant dense<0.000000e+00> : vector<16xf32>
    %43 = vector.multi_reduction <add>, %42, %cst_36 [1] : vector<16x24xf32> to vector<16xf32>
    %44 = vector.shape_cast %43 : vector<16xf32> to vector<16x1xf32>
    %cst_37 = arith.constant 1.600000e+01 : f32
    %45 = vector.broadcast %cst_37 : f32 to vector<16x1xf32>
    %46 = arith.divf %44, %45 : vector<16x1xf32>
    %47 = vector.broadcast %37 : vector<16x1xf32> to vector<16x24xf32>
    %48 = arith.subf %30, %47 : vector<16x24xf32>
    %cst_38 = arith.constant 9.99999974E-6 : f32
    %49 = vector.broadcast %cst_38 : f32 to vector<16x1xf32>
    %50 = arith.addf %46, %49 : vector<16x1xf32>
    %51 = math.rsqrt %50 : vector<16x1xf32>
    %52 = vector.broadcast %51 : vector<16x1xf32> to vector<16x24xf32>
    %53 = arith.mulf %48, %52 : vector<16x24xf32>
    %cst_39 = arith.constant 0.000000e+00 : f32
    %54 = vector.broadcast %cst_39 : f32 to vector<16x24xf32>
    %55 = arith.cmpf oge, %53, %54 : vector<16x24xf32>
    %cst_40 = arith.constant 2.000000e-01 : f32
    %56 = vector.broadcast %cst_40 : f32 to vector<16x24xf32>
    %57 = arith.mulf %56, %53 : vector<16x24xf32>
    %58 = arith.select %55, %53, %57 : vector<16x24xi1>, vector<16x24xf32>
    %59 = tpu.iota {dimensions = array<i32: 0>} : vector<16x1xi32>
    %c8_i32 = arith.constant 8 : i32
    %60 = vector.broadcast %c8_i32 : i32 to vector<16x1xi32>
    %61 = arith.cmpi slt, %59, %60 : vector<16x1xi32>
    %62 = vector.shape_cast %61 : vector<16x1xi1> to vector<16x1xi1>
    %63 = vector.broadcast %62 : vector<16x1xi1> to vector<16x24xi1>
    %64 = arith.select %63, %58, %30 : vector<16x24xi1>, vector<16x24xf32>
    %c0_41 = arith.constant 0 : index
    %c0_42 = arith.constant 0 : index
    %c0_43 = arith.constant 0 : index
    %65 = vector.load %arg4[%c0_41, %c0_42, %c0_43] : memref<1x16x24xf32, #tpu.memory_space<vmem>>, vector<1x16x24xf32>
    %66 = vector.shape_cast %65 : vector<1x16x24xf32> to vector<16x24xf32>
    %67 = vector.shape_cast %64 : vector<16x24xf32> to vector<1x16x24xf32>
    tpu.vector_store %arg4[%c0_41, %c0_42, %c0_43], %67 {strides = array<i32>} : memref<1x16x24xf32, #tpu.memory_space<vmem>>, vector<1x16x24xf32>,
    return
  }
  func.func @transform_0(%arg0: i32) -> (i32, i32, i32) {
    %c0_i32 = arith.constant 0 : i32
    %c0_i32_0 = arith.constant 0 : i32
    %c0_i32_1 = arith.constant 0 : i32
    return %arg0, %c0_i32, %c0_i32_0 : i32, i32, i32
  }
  func.func @transform_1(%arg0: i32) -> (i32, i32) {
    %c0_i32 = arith.constant 0 : i32
    %c0_i32_0 = arith.constant 0 : i32
    %c0_i32_1 = arith.constant 0 : i32
    return %c0_i32, %c0_i32_0 : i32, i32
  }
  func.func @transform_2(%arg0: i32) -> (i32, i32) {
    %c0_i32 = arith.constant 0 : i32
    %c0_i32_0 = arith.constant 0 : i32
    %c0_i32_1 = arith.constant 0 : i32
    return %c0_i32, %c0_i32_0 : i32, i32
  }
  func.func @transform_3(%arg0: i32) -> (i32, i32, i32) {
    %c0_i32 = arith.constant 0 : i32
    %c0_i32_0 = arith.constant 0 : i32
    %c0_i32_1 = arith.constant 0 : i32
    return %arg0, %c0_i32, %c0_i32_0 : i32, i32, i32
  }
}

module attributes {stable_mosaic.version = 11 : i64} {
  func.func @_inorm_lrelu_kernel(%arg0: i32, %arg1: memref<16x64xf32, #tpu.memory_space<vmem>>, %arg2: memref<16x64xf32, #tpu.memory_space<vmem>>) attributes {dimension_semantics = [#tpu.dimension_semantics<parallel>], iteration_bounds = array<i64: 1>, scalar_prefetch = 0 : i64, scratch_operands = 0 : i64, tpu.core_type = #tpu.core_type<tc>, window_params = [{transform_indices = @transform_0, window_bounds = array<i64: 16, 64>}, {transform_indices = @transform_1, window_bounds = array<i64: 16, 64>}]} {
    %c0 = arith.constant 0 : index
    %c0_0 = arith.constant 0 : index
    %0 = vector.load %arg1[%c0, %c0_0] : memref<16x64xf32, #tpu.memory_space<vmem>>, vector<16x64xf32>
    %cst = arith.constant dense<0.000000e+00> : vector<16xf32>
    %1 = vector.multi_reduction <add>, %0, %cst [1] : vector<16x64xf32> to vector<16xf32>
    %2 = vector.shape_cast %1 : vector<16xf32> to vector<16x1xf32>
    %cst_1 = arith.constant 1.562500e-02 : f32
    %3 = vector.broadcast %cst_1 : f32 to vector<16x1xf32>
    %4 = arith.mulf %2, %3 : vector<16x1xf32>
    %5 = vector.broadcast %4 : vector<16x1xf32> to vector<16x64xf32>
    %6 = arith.subf %0, %5 : vector<16x64xf32>
    %7 = arith.mulf %6, %6 : vector<16x64xf32>
    %cst_2 = arith.constant dense<0.000000e+00> : vector<16xf32>
    %8 = vector.multi_reduction <add>, %7, %cst_2 [1] : vector<16x64xf32> to vector<16xf32>
    %9 = vector.shape_cast %8 : vector<16xf32> to vector<16x1xf32>
    %cst_3 = arith.constant 1.562500e-02 : f32
    %10 = vector.broadcast %cst_3 : f32 to vector<16x1xf32>
    %11 = arith.mulf %9, %10 : vector<16x1xf32>
    %cst_4 = arith.constant 9.99999974E-6 : f32
    %12 = vector.broadcast %cst_4 : f32 to vector<16x1xf32>
    %13 = arith.addf %11, %12 : vector<16x1xf32>
    %14 = math.rsqrt %13 : vector<16x1xf32>
    %15 = vector.broadcast %14 : vector<16x1xf32> to vector<16x64xf32>
    %16 = arith.mulf %6, %15 : vector<16x64xf32>
    %cst_5 = arith.constant 0.000000e+00 : f32
    %17 = vector.broadcast %cst_5 : f32 to vector<16x64xf32>
    %18 = arith.cmpf oge, %16, %17 : vector<16x64xf32>
    %cst_6 = arith.constant 2.000000e-01 : f32
    %19 = vector.broadcast %cst_6 : f32 to vector<16x64xf32>
    %20 = arith.mulf %19, %16 : vector<16x64xf32>
    %21 = arith.select %18, %16, %20 : vector<16x64xi1>, vector<16x64xf32>
    %c0_7 = arith.constant 0 : index
    %c0_8 = arith.constant 0 : index
    %22 = vector.load %arg2[%c0_7, %c0_8] : memref<16x64xf32, #tpu.memory_space<vmem>>, vector<16x64xf32>
    tpu.vector_store %arg2[%c0_7, %c0_8], %21 {strides = array<i32>} : memref<16x64xf32, #tpu.memory_space<vmem>>, vector<16x64xf32>,
    return
  }
  func.func @transform_0(%arg0: i32) -> (i32, i32) {
    %c0_i32 = arith.constant 0 : i32
    %c0_i32_0 = arith.constant 0 : i32
    return %arg0, %c0_i32 : i32, i32
  }
  func.func @transform_1(%arg0: i32) -> (i32, i32) {
    %c0_i32 = arith.constant 0 : i32
    %c0_i32_0 = arith.constant 0 : i32
    return %arg0, %c0_i32 : i32, i32
  }
}

module attributes {stable_mosaic.version = 11 : i64} {
  func.func @_mdconv3x3_kernel(%arg0: i32, %arg1: memref<1x16x102xf32, #tpu.memory_space<vmem>>, %arg2: memref<8x144xbf16, #tpu.memory_space<vmem>>, %arg3: memref<1x80xf32, #tpu.memory_space<vmem>>, %arg4: memref<1x8x80xf32, #tpu.memory_space<vmem>>, %arg5: memref<144x80xf32, #tpu.memory_space<vmem>>) attributes {dimension_semantics = [#tpu.dimension_semantics<parallel>], iteration_bounds = array<i64: 2>, scalar_prefetch = 0 : i64, scratch_operands = 1 : i64, tpu.core_type = #tpu.core_type<tc>, window_params = [{transform_indices = @transform_0, window_bounds = array<i64: 1, 16, 102>}, {pipeline_mode = #tpu.pipeline_mode<synchronous>, transform_indices = @transform_1, window_bounds = array<i64: 8, 144>}, {pipeline_mode = #tpu.pipeline_mode<synchronous>, transform_indices = @transform_2, window_bounds = array<i64: 1, 80>}, {transform_indices = @transform_3, window_bounds = array<i64: 1, 8, 80>}]} {
    %c0 = arith.constant 0 : index
    %c0_0 = arith.constant 0 : index
    %c0_1 = arith.constant 0 : index
    %0 = vector.load %arg1[%c0, %c0_0, %c0_1] : memref<1x16x102xf32, #tpu.memory_space<vmem>>, vector<1x16x80xf32>
    %1 = vector.shape_cast %0 : vector<1x16x80xf32> to vector<16x80xf32>
    %c0_2 = arith.constant 0 : index
    %c0_3 = arith.constant 0 : index
    %2 = vector.load %arg5[%c0_2, %c0_3] : memref<144x80xf32, #tpu.memory_space<vmem>>, vector<16x80xf32>
    tpu.vector_store %arg5[%c0_2, %c0_3], %1 {strides = array<i32>} : memref<144x80xf32, #tpu.memory_space<vmem>>, vector<16x80xf32>,
    %c0_4 = arith.constant 0 : index
    %c0_5 = arith.constant 0 : index
    %c1 = arith.constant 1 : index
    %3 = vector.load %arg1[%c0_4, %c0_5, %c1] : memref<1x16x102xf32, #tpu.memory_space<vmem>>, vector<1x16x80xf32>
    %4 = vector.shape_cast %3 : vector<1x16x80xf32> to vector<16x80xf32>
    %c16 = arith.constant 16 : index
    %c0_6 = arith.constant 0 : index
    %5 = vector.load %arg5[%c16, %c0_6] : memref<144x80xf32, #tpu.memory_space<vmem>>, vector<16x80xf32>
    tpu.vector_store %arg5[%c16, %c0_6], %4 {strides = array<i32>} : memref<144x80xf32, #tpu.memory_space<vmem>>, vector<16x80xf32>,
    %c0_7 = arith.constant 0 : index
    %c0_8 = arith.constant 0 : index
    %c2 = arith.constant 2 : index
    %6 = vector.load %arg1[%c0_7, %c0_8, %c2] : memref<1x16x102xf32, #tpu.memory_space<vmem>>, vector<1x16x80xf32>
    %7 = vector.shape_cast %6 : vector<1x16x80xf32> to vector<16x80xf32>
    %c32 = arith.constant 32 : index
    %c0_9 = arith.constant 0 : index
    %8 = vector.load %arg5[%c32, %c0_9] : memref<144x80xf32, #tpu.memory_space<vmem>>, vector<16x80xf32>
    tpu.vector_store %arg5[%c32, %c0_9], %7 {strides = array<i32>} : memref<144x80xf32, #tpu.memory_space<vmem>>, vector<16x80xf32>,
    %c0_10 = arith.constant 0 : index
    %c0_11 = arith.constant 0 : index
    %c10 = arith.constant 10 : index
    %9 = vector.load %arg1[%c0_10, %c0_11, %c10] : memref<1x16x102xf32, #tpu.memory_space<vmem>>, vector<1x16x80xf32>
    %10 = vector.shape_cast %9 : vector<1x16x80xf32> to vector<16x80xf32>
    %c48 = arith.constant 48 : index
    %c0_12 = arith.constant 0 : index
    %11 = vector.load %arg5[%c48, %c0_12] : memref<144x80xf32, #tpu.memory_space<vmem>>, vector<16x80xf32>
    tpu.vector_store %arg5[%c48, %c0_12], %10 {strides = array<i32>} : memref<144x80xf32, #tpu.memory_space<vmem>>, vector<16x80xf32>,
    %c0_13 = arith.constant 0 : index
    %c0_14 = arith.constant 0 : index
    %c11 = arith.constant 11 : index
    %12 = vector.load %arg1[%c0_13, %c0_14, %c11] : memref<1x16x102xf32, #tpu.memory_space<vmem>>, vector<1x16x80xf32>
    %13 = vector.shape_cast %12 : vector<1x16x80xf32> to vector<16x80xf32>
    %c64 = arith.constant 64 : index
    %c0_15 = arith.constant 0 : index
    %14 = vector.load %arg5[%c64, %c0_15] : memref<144x80xf32, #tpu.memory_space<vmem>>, vector<16x80xf32>
    tpu.vector_store %arg5[%c64, %c0_15], %13 {strides = array<i32>} : memref<144x80xf32, #tpu.memory_space<vmem>>, vector<16x80xf32>,
    %c0_16 = arith.constant 0 : index
    %c0_17 = arith.constant 0 : index
    %c12 = arith.constant 12 : index
    %15 = vector.load %arg1[%c0_16, %c0_17, %c12] : memref<1x16x102xf32, #tpu.memory_space<vmem>>, vector<1x16x80xf32>
    %16 = vector.shape_cast %15 : vector<1x16x80xf32> to vector<16x80xf32>
    %c80 = arith.constant 80 : index
    %c0_18 = arith.constant 0 : index
    %17 = vector.load %arg5[%c80, %c0_18] : memref<144x80xf32, #tpu.memory_space<vmem>>, vector<16x80xf32>
    tpu.vector_store %arg5[%c80, %c0_18], %16 {strides = array<i32>} : memref<144x80xf32, #tpu.memory_space<vmem>>, vector<16x80xf32>,
    %c0_19 = arith.constant 0 : index
    %c0_20 = arith.constant 0 : index
    %c20 = arith.constant 20 : index
    %18 = vector.load %arg1[%c0_19, %c0_20, %c20] : memref<1x16x102xf32, #tpu.memory_space<vmem>>, vector<1x16x80xf32>
    %19 = vector.shape_cast %18 : vector<1x16x80xf32> to vector<16x80xf32>
    %c96 = arith.constant 96 : index
    %c0_21 = arith.constant 0 : index
    %20 = vector.load %arg5[%c96, %c0_21] : memref<144x80xf32, #tpu.memory_space<vmem>>, vector<16x80xf32>
    tpu.vector_store %arg5[%c96, %c0_21], %19 {strides = array<i32>} : memref<144x80xf32, #tpu.memory_space<vmem>>, vector<16x80xf32>,
    %c0_22 = arith.constant 0 : index
    %c0_23 = arith.constant 0 : index
    %c21 = arith.constant 21 : index
    %21 = vector.load %arg1[%c0_22, %c0_23, %c21] : memref<1x16x102xf32, #tpu.memory_space<vmem>>, vector<1x16x80xf32>
    %22 = vector.shape_cast %21 : vector<1x16x80xf32> to vector<16x80xf32>
    %c112 = arith.constant 112 : index
    %c0_24 = arith.constant 0 : index
    %23 = vector.load %arg5[%c112, %c0_24] : memref<144x80xf32, #tpu.memory_space<vmem>>, vector<16x80xf32>
    tpu.vector_store %arg5[%c112, %c0_24], %22 {strides = array<i32>} : memref<144x80xf32, #tpu.memory_space<vmem>>, vector<16x80xf32>,
    %c0_25 = arith.constant 0 : index
    %c0_26 = arith.constant 0 : index
    %c22 = arith.constant 22 : index
    %24 = vector.load %arg1[%c0_25, %c0_26, %c22] : memref<1x16x102xf32, #tpu.memory_space<vmem>>, vector<1x16x80xf32>
    %25 = vector.shape_cast %24 : vector<1x16x80xf32> to vector<16x80xf32>
    %c128 = arith.constant 128 : index
    %c0_27 = arith.constant 0 : index
    %26 = vector.load %arg5[%c128, %c0_27] : memref<144x80xf32, #tpu.memory_space<vmem>>, vector<16x80xf32>
    tpu.vector_store %arg5[%c128, %c0_27], %25 {strides = array<i32>} : memref<144x80xf32, #tpu.memory_space<vmem>>, vector<16x80xf32>,
    %c0_28 = arith.constant 0 : index
    %c0_29 = arith.constant 0 : index
    %27 = vector.load %arg2[%c0_28, %c0_29] : memref<8x144xbf16, #tpu.memory_space<vmem>>, vector<8x144xbf16>
    %c0_30 = arith.constant 0 : index
    %c0_31 = arith.constant 0 : index
    %28 = vector.load %arg5[%c0_30, %c0_31] : memref<144x80xf32, #tpu.memory_space<vmem>>, vector<144x80xf32>
    %29 = arith.truncf %28 : vector<144x80xf32> to vector<144x80xbf16>
    %cst = arith.constant dense<0.000000e+00> : vector<8x80xf32>
    %30 = tpu.matmul %27, %29, %cst {dimension_numbers = #tpu.dot_dimension_numbers<[1], [0], [0], [1], [0, 0, 1, 1], [], []>} : vector<8x144xbf16>, vector<144x80xbf16>, vector<8x80xf32> -> vector<8x80xf32>
    %c0_32 = arith.constant 0 : index
    %c0_33 = arith.constant 0 : index
    %31 = vector.load %arg3[%c0_32, %c0_33] : memref<1x80xf32, #tpu.memory_space<vmem>>, vector<1x80xf32>
    %32 = vector.broadcast %31 : vector<1x80xf32> to vector<8x80xf32>
    %33 = arith.mulf %30, %32 : vector<8x80xf32>
    %cst_34 = arith.constant dense<0.000000e+00> : vector<8xf32>
    %34 = vector.multi_reduction <add>, %33, %cst_34 [1] : vector<8x80xf32> to vector<8xf32>
    %35 = vector.shape_cast %34 : vector<8xf32> to vector<8x1xf32>
    %cst_35 = arith.constant 6.400000e+01 : f32
    %36 = vector.broadcast %cst_35 : f32 to vector<8x1xf32>
    %37 = arith.divf %35, %36 : vector<8x1xf32>
    %38 = vector.broadcast %37 : vector<8x1xf32> to vector<8x80xf32>
    %39 = arith.subf %30, %38 : vector<8x80xf32>
    %40 = vector.broadcast %31 : vector<1x80xf32> to vector<8x80xf32>
    %41 = arith.mulf %39, %40 : vector<8x80xf32>
    %42 = arith.mulf %41, %41 : vector<8x80xf32>
    %cst_36 = arith.constant dense<0.000000e+00> : vector<8xf32>
    %43 = vector.multi_reduction <add>, %42, %cst_36 [1] : vector<8x80xf32> to vector<8xf32>
    %44 = vector.shape_cast %43 : vector<8xf32> to vector<8x1xf32>
    %cst_37 = arith.constant 6.400000e+01 : f32
    %45 = vector.broadcast %cst_37 : f32 to vector<8x1xf32>
    %46 = arith.divf %44, %45 : vector<8x1xf32>
    %47 = vector.broadcast %37 : vector<8x1xf32> to vector<8x80xf32>
    %48 = arith.subf %30, %47 : vector<8x80xf32>
    %cst_38 = arith.constant 9.99999974E-6 : f32
    %49 = vector.broadcast %cst_38 : f32 to vector<8x1xf32>
    %50 = arith.addf %46, %49 : vector<8x1xf32>
    %51 = math.rsqrt %50 : vector<8x1xf32>
    %52 = vector.broadcast %51 : vector<8x1xf32> to vector<8x80xf32>
    %53 = arith.mulf %48, %52 : vector<8x80xf32>
    %cst_39 = arith.constant 0.000000e+00 : f32
    %54 = vector.broadcast %cst_39 : f32 to vector<8x80xf32>
    %55 = arith.cmpf oge, %53, %54 : vector<8x80xf32>
    %cst_40 = arith.constant 2.000000e-01 : f32
    %56 = vector.broadcast %cst_40 : f32 to vector<8x80xf32>
    %57 = arith.mulf %56, %53 : vector<8x80xf32>
    %58 = arith.select %55, %53, %57 : vector<8x80xi1>, vector<8x80xf32>
    %59 = tpu.iota {dimensions = array<i32: 0>} : vector<8x1xi32>
    %c4_i32 = arith.constant 4 : i32
    %60 = vector.broadcast %c4_i32 : i32 to vector<8x1xi32>
    %61 = arith.cmpi slt, %59, %60 : vector<8x1xi32>
    %62 = vector.shape_cast %61 : vector<8x1xi1> to vector<8x1xi1>
    %63 = vector.broadcast %62 : vector<8x1xi1> to vector<8x80xi1>
    %64 = arith.select %63, %58, %30 : vector<8x80xi1>, vector<8x80xf32>
    %c0_41 = arith.constant 0 : index
    %c0_42 = arith.constant 0 : index
    %c0_43 = arith.constant 0 : index
    %65 = vector.load %arg4[%c0_41, %c0_42, %c0_43] : memref<1x8x80xf32, #tpu.memory_space<vmem>>, vector<1x8x80xf32>
    %66 = vector.shape_cast %65 : vector<1x8x80xf32> to vector<8x80xf32>
    %67 = vector.shape_cast %64 : vector<8x80xf32> to vector<1x8x80xf32>
    tpu.vector_store %arg4[%c0_41, %c0_42, %c0_43], %67 {strides = array<i32>} : memref<1x8x80xf32, #tpu.memory_space<vmem>>, vector<1x8x80xf32>,
    return
  }
  func.func @transform_0(%arg0: i32) -> (i32, i32, i32) {
    %c0_i32 = arith.constant 0 : i32
    %c0_i32_0 = arith.constant 0 : i32
    %c0_i32_1 = arith.constant 0 : i32
    return %arg0, %c0_i32, %c0_i32_0 : i32, i32, i32
  }
  func.func @transform_1(%arg0: i32) -> (i32, i32) {
    %c0_i32 = arith.constant 0 : i32
    %c0_i32_0 = arith.constant 0 : i32
    %c0_i32_1 = arith.constant 0 : i32
    return %c0_i32, %c0_i32_0 : i32, i32
  }
  func.func @transform_2(%arg0: i32) -> (i32, i32) {
    %c0_i32 = arith.constant 0 : i32
    %c0_i32_0 = arith.constant 0 : i32
    %c0_i32_1 = arith.constant 0 : i32
    return %c0_i32, %c0_i32_0 : i32, i32
  }
  func.func @transform_3(%arg0: i32) -> (i32, i32, i32) {
    %c0_i32 = arith.constant 0 : i32
    %c0_i32_0 = arith.constant 0 : i32
    %c0_i32_1 = arith.constant 0 : i32
    return %arg0, %c0_i32, %c0_i32_0 : i32, i32, i32
  }
}

module attributes {stable_mosaic.version = 11 : i64} {
  func.func @_mdconv3x3_kernel(%arg0: i32, %arg1: memref<1x32x102xf32, #tpu.memory_space<vmem>>, %arg2: memref<8x288xbf16, #tpu.memory_space<vmem>>, %arg3: memref<1x80xf32, #tpu.memory_space<vmem>>, %arg4: memref<1x8x80xf32, #tpu.memory_space<vmem>>, %arg5: memref<288x80xf32, #tpu.memory_space<vmem>>) attributes {dimension_semantics = [#tpu.dimension_semantics<parallel>], iteration_bounds = array<i64: 2>, scalar_prefetch = 0 : i64, scratch_operands = 1 : i64, tpu.core_type = #tpu.core_type<tc>, window_params = [{transform_indices = @transform_0, window_bounds = array<i64: 1, 32, 102>}, {pipeline_mode = #tpu.pipeline_mode<synchronous>, transform_indices = @transform_1, window_bounds = array<i64: 8, 288>}, {pipeline_mode = #tpu.pipeline_mode<synchronous>, transform_indices = @transform_2, window_bounds = array<i64: 1, 80>}, {transform_indices = @transform_3, window_bounds = array<i64: 1, 8, 80>}]} {
    %c0 = arith.constant 0 : index
    %c0_0 = arith.constant 0 : index
    %c0_1 = arith.constant 0 : index
    %0 = vector.load %arg1[%c0, %c0_0, %c0_1] : memref<1x32x102xf32, #tpu.memory_space<vmem>>, vector<1x32x80xf32>
    %1 = vector.shape_cast %0 : vector<1x32x80xf32> to vector<32x80xf32>
    %c0_2 = arith.constant 0 : index
    %c0_3 = arith.constant 0 : index
    %2 = vector.load %arg5[%c0_2, %c0_3] : memref<288x80xf32, #tpu.memory_space<vmem>>, vector<32x80xf32>
    tpu.vector_store %arg5[%c0_2, %c0_3], %1 {strides = array<i32>} : memref<288x80xf32, #tpu.memory_space<vmem>>, vector<32x80xf32>,
    %c0_4 = arith.constant 0 : index
    %c0_5 = arith.constant 0 : index
    %c1 = arith.constant 1 : index
    %3 = vector.load %arg1[%c0_4, %c0_5, %c1] : memref<1x32x102xf32, #tpu.memory_space<vmem>>, vector<1x32x80xf32>
    %4 = vector.shape_cast %3 : vector<1x32x80xf32> to vector<32x80xf32>
    %c32 = arith.constant 32 : index
    %c0_6 = arith.constant 0 : index
    %5 = vector.load %arg5[%c32, %c0_6] : memref<288x80xf32, #tpu.memory_space<vmem>>, vector<32x80xf32>
    tpu.vector_store %arg5[%c32, %c0_6], %4 {strides = array<i32>} : memref<288x80xf32, #tpu.memory_space<vmem>>, vector<32x80xf32>,
    %c0_7 = arith.constant 0 : index
    %c0_8 = arith.constant 0 : index
    %c2 = arith.constant 2 : index
    %6 = vector.load %arg1[%c0_7, %c0_8, %c2] : memref<1x32x102xf32, #tpu.memory_space<vmem>>, vector<1x32x80xf32>
    %7 = vector.shape_cast %6 : vector<1x32x80xf32> to vector<32x80xf32>
    %c64 = arith.constant 64 : index
    %c0_9 = arith.constant 0 : index
    %8 = vector.load %arg5[%c64, %c0_9] : memref<288x80xf32, #tpu.memory_space<vmem>>, vector<32x80xf32>
    tpu.vector_store %arg5[%c64, %c0_9], %7 {strides = array<i32>} : memref<288x80xf32, #tpu.memory_space<vmem>>, vector<32x80xf32>,
    %c0_10 = arith.constant 0 : index
    %c0_11 = arith.constant 0 : index
    %c10 = arith.constant 10 : index
    %9 = vector.load %arg1[%c0_10, %c0_11, %c10] : memref<1x32x102xf32, #tpu.memory_space<vmem>>, vector<1x32x80xf32>
    %10 = vector.shape_cast %9 : vector<1x32x80xf32> to vector<32x80xf32>
    %c96 = arith.constant 96 : index
    %c0_12 = arith.constant 0 : index
    %11 = vector.load %arg5[%c96, %c0_12] : memref<288x80xf32, #tpu.memory_space<vmem>>, vector<32x80xf32>
    tpu.vector_store %arg5[%c96, %c0_12], %10 {strides = array<i32>} : memref<288x80xf32, #tpu.memory_space<vmem>>, vector<32x80xf32>,
    %c0_13 = arith.constant 0 : index
    %c0_14 = arith.constant 0 : index
    %c11 = arith.constant 11 : index
    %12 = vector.load %arg1[%c0_13, %c0_14, %c11] : memref<1x32x102xf32, #tpu.memory_space<vmem>>, vector<1x32x80xf32>
    %13 = vector.shape_cast %12 : vector<1x32x80xf32> to vector<32x80xf32>
    %c128 = arith.constant 128 : index
    %c0_15 = arith.constant 0 : index
    %14 = vector.load %arg5[%c128, %c0_15] : memref<288x80xf32, #tpu.memory_space<vmem>>, vector<32x80xf32>
    tpu.vector_store %arg5[%c128, %c0_15], %13 {strides = array<i32>} : memref<288x80xf32, #tpu.memory_space<vmem>>, vector<32x80xf32>,
    %c0_16 = arith.constant 0 : index
    %c0_17 = arith.constant 0 : index
    %c12 = arith.constant 12 : index
    %15 = vector.load %arg1[%c0_16, %c0_17, %c12] : memref<1x32x102xf32, #tpu.memory_space<vmem>>, vector<1x32x80xf32>
    %16 = vector.shape_cast %15 : vector<1x32x80xf32> to vector<32x80xf32>
    %c160 = arith.constant 160 : index
    %c0_18 = arith.constant 0 : index
    %17 = vector.load %arg5[%c160, %c0_18] : memref<288x80xf32, #tpu.memory_space<vmem>>, vector<32x80xf32>
    tpu.vector_store %arg5[%c160, %c0_18], %16 {strides = array<i32>} : memref<288x80xf32, #tpu.memory_space<vmem>>, vector<32x80xf32>,
    %c0_19 = arith.constant 0 : index
    %c0_20 = arith.constant 0 : index
    %c20 = arith.constant 20 : index
    %18 = vector.load %arg1[%c0_19, %c0_20, %c20] : memref<1x32x102xf32, #tpu.memory_space<vmem>>, vector<1x32x80xf32>
    %19 = vector.shape_cast %18 : vector<1x32x80xf32> to vector<32x80xf32>
    %c192 = arith.constant 192 : index
    %c0_21 = arith.constant 0 : index
    %20 = vector.load %arg5[%c192, %c0_21] : memref<288x80xf32, #tpu.memory_space<vmem>>, vector<32x80xf32>
    tpu.vector_store %arg5[%c192, %c0_21], %19 {strides = array<i32>} : memref<288x80xf32, #tpu.memory_space<vmem>>, vector<32x80xf32>,
    %c0_22 = arith.constant 0 : index
    %c0_23 = arith.constant 0 : index
    %c21 = arith.constant 21 : index
    %21 = vector.load %arg1[%c0_22, %c0_23, %c21] : memref<1x32x102xf32, #tpu.memory_space<vmem>>, vector<1x32x80xf32>
    %22 = vector.shape_cast %21 : vector<1x32x80xf32> to vector<32x80xf32>
    %c224 = arith.constant 224 : index
    %c0_24 = arith.constant 0 : index
    %23 = vector.load %arg5[%c224, %c0_24] : memref<288x80xf32, #tpu.memory_space<vmem>>, vector<32x80xf32>
    tpu.vector_store %arg5[%c224, %c0_24], %22 {strides = array<i32>} : memref<288x80xf32, #tpu.memory_space<vmem>>, vector<32x80xf32>,
    %c0_25 = arith.constant 0 : index
    %c0_26 = arith.constant 0 : index
    %c22 = arith.constant 22 : index
    %24 = vector.load %arg1[%c0_25, %c0_26, %c22] : memref<1x32x102xf32, #tpu.memory_space<vmem>>, vector<1x32x80xf32>
    %25 = vector.shape_cast %24 : vector<1x32x80xf32> to vector<32x80xf32>
    %c256 = arith.constant 256 : index
    %c0_27 = arith.constant 0 : index
    %26 = vector.load %arg5[%c256, %c0_27] : memref<288x80xf32, #tpu.memory_space<vmem>>, vector<32x80xf32>
    tpu.vector_store %arg5[%c256, %c0_27], %25 {strides = array<i32>} : memref<288x80xf32, #tpu.memory_space<vmem>>, vector<32x80xf32>,
    %c0_28 = arith.constant 0 : index
    %c0_29 = arith.constant 0 : index
    %27 = vector.load %arg2[%c0_28, %c0_29] : memref<8x288xbf16, #tpu.memory_space<vmem>>, vector<8x288xbf16>
    %c0_30 = arith.constant 0 : index
    %c0_31 = arith.constant 0 : index
    %28 = vector.load %arg5[%c0_30, %c0_31] : memref<288x80xf32, #tpu.memory_space<vmem>>, vector<288x80xf32>
    %29 = arith.truncf %28 : vector<288x80xf32> to vector<288x80xbf16>
    %cst = arith.constant dense<0.000000e+00> : vector<8x80xf32>
    %30 = tpu.matmul %27, %29, %cst {dimension_numbers = #tpu.dot_dimension_numbers<[1], [0], [0], [1], [0, 0, 1, 1], [], []>} : vector<8x288xbf16>, vector<288x80xbf16>, vector<8x80xf32> -> vector<8x80xf32>
    %c0_32 = arith.constant 0 : index
    %c0_33 = arith.constant 0 : index
    %31 = vector.load %arg3[%c0_32, %c0_33] : memref<1x80xf32, #tpu.memory_space<vmem>>, vector<1x80xf32>
    %32 = vector.broadcast %31 : vector<1x80xf32> to vector<8x80xf32>
    %33 = arith.mulf %30, %32 : vector<8x80xf32>
    %cst_34 = arith.constant dense<0.000000e+00> : vector<8xf32>
    %34 = vector.multi_reduction <add>, %33, %cst_34 [1] : vector<8x80xf32> to vector<8xf32>
    %35 = vector.shape_cast %34 : vector<8xf32> to vector<8x1xf32>
    %cst_35 = arith.constant 6.400000e+01 : f32
    %36 = vector.broadcast %cst_35 : f32 to vector<8x1xf32>
    %37 = arith.divf %35, %36 : vector<8x1xf32>
    %38 = vector.broadcast %37 : vector<8x1xf32> to vector<8x80xf32>
    %39 = arith.subf %30, %38 : vector<8x80xf32>
    %40 = vector.broadcast %31 : vector<1x80xf32> to vector<8x80xf32>
    %41 = arith.mulf %39, %40 : vector<8x80xf32>
    %42 = arith.mulf %41, %41 : vector<8x80xf32>
    %cst_36 = arith.constant dense<0.000000e+00> : vector<8xf32>
    %43 = vector.multi_reduction <add>, %42, %cst_36 [1] : vector<8x80xf32> to vector<8xf32>
    %44 = vector.shape_cast %43 : vector<8xf32> to vector<8x1xf32>
    %cst_37 = arith.constant 6.400000e+01 : f32
    %45 = vector.broadcast %cst_37 : f32 to vector<8x1xf32>
    %46 = arith.divf %44, %45 : vector<8x1xf32>
    %47 = vector.broadcast %37 : vector<8x1xf32> to vector<8x80xf32>
    %48 = arith.subf %30, %47 : vector<8x80xf32>
    %cst_38 = arith.constant 9.99999974E-6 : f32
    %49 = vector.broadcast %cst_38 : f32 to vector<8x1xf32>
    %50 = arith.addf %46, %49 : vector<8x1xf32>
    %51 = math.rsqrt %50 : vector<8x1xf32>
    %52 = vector.broadcast %51 : vector<8x1xf32> to vector<8x80xf32>
    %53 = arith.mulf %48, %52 : vector<8x80xf32>
    %cst_39 = arith.constant 0.000000e+00 : f32
    %54 = vector.broadcast %cst_39 : f32 to vector<8x80xf32>
    %55 = arith.cmpf oge, %53, %54 : vector<8x80xf32>
    %cst_40 = arith.constant 2.000000e-01 : f32
    %56 = vector.broadcast %cst_40 : f32 to vector<8x80xf32>
    %57 = arith.mulf %56, %53 : vector<8x80xf32>
    %58 = arith.select %55, %53, %57 : vector<8x80xi1>, vector<8x80xf32>
    %59 = tpu.iota {dimensions = array<i32: 0>} : vector<8x1xi32>
    %c4_i32 = arith.constant 4 : i32
    %60 = vector.broadcast %c4_i32 : i32 to vector<8x1xi32>
    %61 = arith.cmpi slt, %59, %60 : vector<8x1xi32>
    %62 = vector.shape_cast %61 : vector<8x1xi1> to vector<8x1xi1>
    %63 = vector.broadcast %62 : vector<8x1xi1> to vector<8x80xi1>
    %64 = arith.select %63, %58, %30 : vector<8x80xi1>, vector<8x80xf32>
    %c0_41 = arith.constant 0 : index
    %c0_42 = arith.constant 0 : index
    %c0_43 = arith.constant 0 : index
    %65 = vector.load %arg4[%c0_41, %c0_42, %c0_43] : memref<1x8x80xf32, #tpu.memory_space<vmem>>, vector<1x8x80xf32>
    %66 = vector.shape_cast %65 : vector<1x8x80xf32> to vector<8x80xf32>
    %67 = vector.shape_cast %64 : vector<8x80xf32> to vector<1x8x80xf32>
    tpu.vector_store %arg4[%c0_41, %c0_42, %c0_43], %67 {strides = array<i32>} : memref<1x8x80xf32, #tpu.memory_space<vmem>>, vector<1x8x80xf32>,
    return
  }
  func.func @transform_0(%arg0: i32) -> (i32, i32, i32) {
    %c0_i32 = arith.constant 0 : i32
    %c0_i32_0 = arith.constant 0 : i32
    %c0_i32_1 = arith.constant 0 : i32
    return %arg0, %c0_i32, %c0_i32_0 : i32, i32, i32
  }
  func.func @transform_1(%arg0: i32) -> (i32, i32) {
    %c0_i32 = arith.constant 0 : i32
    %c0_i32_0 = arith.constant 0 : i32
    %c0_i32_1 = arith.constant 0 : i32
    return %c0_i32, %c0_i32_0 : i32, i32
  }
  func.func @transform_2(%arg0: i32) -> (i32, i32) {
    %c0_i32 = arith.constant 0 : i32
    %c0_i32_0 = arith.constant 0 : i32
    %c0_i32_1 = arith.constant 0 : i32
    return %c0_i32, %c0_i32_0 : i32, i32
  }
  func.func @transform_3(%arg0: i32) -> (i32, i32, i32) {
    %c0_i32 = arith.constant 0 : i32
    %c0_i32_0 = arith.constant 0 : i32
    %c0_i32_1 = arith.constant 0 : i32
    return %arg0, %c0_i32, %c0_i32_0 : i32, i32, i32
  }
}

module attributes {stable_mosaic.version = 11 : i64} {
  func.func @_mdgemm_kernel(%arg0: i32, %arg1: memref<1x16x64xf32, #tpu.memory_space<vmem>>, %arg2: memref<16x16xbf16, #tpu.memory_space<vmem>>, %arg3: memref<1x16x64xf32, #tpu.memory_space<vmem>>) attributes {dimension_semantics = [#tpu.dimension_semantics<parallel>], iteration_bounds = array<i64: 2>, scalar_prefetch = 0 : i64, scratch_operands = 0 : i64, tpu.core_type = #tpu.core_type<tc>, window_params = [{transform_indices = @transform_0, window_bounds = array<i64: 1, 16, 64>}, {pipeline_mode = #tpu.pipeline_mode<synchronous>, transform_indices = @transform_1, window_bounds = array<i64: 16, 16>}, {transform_indices = @transform_2, window_bounds = array<i64: 1, 16, 64>}]} {
    %c0 = arith.constant 0 : index
    %c0_0 = arith.constant 0 : index
    %0 = vector.load %arg2[%c0, %c0_0] : memref<16x16xbf16, #tpu.memory_space<vmem>>, vector<16x16xbf16>
    %c0_1 = arith.constant 0 : index
    %c0_2 = arith.constant 0 : index
    %c0_3 = arith.constant 0 : index
    %1 = vector.load %arg1[%c0_1, %c0_2, %c0_3] : memref<1x16x64xf32, #tpu.memory_space<vmem>>, vector<1x16x64xf32>
    %2 = vector.shape_cast %1 : vector<1x16x64xf32> to vector<16x64xf32>
    %3 = arith.truncf %2 : vector<16x64xf32> to vector<16x64xbf16>
    %cst = arith.constant dense<0.000000e+00> : vector<16x64xf32>
    %4 = tpu.matmul %0, %3, %cst {dimension_numbers = #tpu.dot_dimension_numbers<[1], [0], [0], [1], [0, 0, 1, 1], [], []>} : vector<16x16xbf16>, vector<16x64xbf16>, vector<16x64xf32> -> vector<16x64xf32>
    %c0_4 = arith.constant 0 : index
    %c0_5 = arith.constant 0 : index
    %c0_6 = arith.constant 0 : index
    %5 = vector.load %arg3[%c0_4, %c0_5, %c0_6] : memref<1x16x64xf32, #tpu.memory_space<vmem>>, vector<1x16x64xf32>
    %6 = vector.shape_cast %5 : vector<1x16x64xf32> to vector<16x64xf32>
    %7 = vector.shape_cast %4 : vector<16x64xf32> to vector<1x16x64xf32>
    tpu.vector_store %arg3[%c0_4, %c0_5, %c0_6], %7 {strides = array<i32>} : memref<1x16x64xf32, #tpu.memory_space<vmem>>, vector<1x16x64xf32>,
    return
  }
  func.func @transform_0(%arg0: i32) -> (i32, i32, i32) {
    %c0_i32 = arith.constant 0 : i32
    %c0_i32_0 = arith.constant 0 : i32
    %c0_i32_1 = arith.constant 0 : i32
    return %arg0, %c0_i32, %c0_i32_0 : i32, i32, i32
  }
  func.func @transform_1(%arg0: i32) -> (i32, i32) {
    %c0_i32 = arith.constant 0 : i32
    %c0_i32_0 = arith.constant 0 : i32
    %c0_i32_1 = arith.constant 0 : i32
    return %c0_i32, %c0_i32_0 : i32, i32
  }
  func.func @transform_2(%arg0: i32) -> (i32, i32, i32) {
    %c0_i32 = arith.constant 0 : i32
    %c0_i32_0 = arith.constant 0 : i32
    %c0_i32_1 = arith.constant 0 : i32
    return %arg0, %c0_i32, %c0_i32_0 : i32, i32, i32
  }
}

module attributes {stable_mosaic.version = 11 : i64} {
  func.func @_inorm_lrelu_kernel(%arg0: i32, %arg1: memref<8x256xf32, #tpu.memory_space<vmem>>, %arg2: memref<8x256xf32, #tpu.memory_space<vmem>>) attributes {dimension_semantics = [#tpu.dimension_semantics<parallel>], iteration_bounds = array<i64: 1>, scalar_prefetch = 0 : i64, scratch_operands = 0 : i64, tpu.core_type = #tpu.core_type<tc>, window_params = [{transform_indices = @transform_0, window_bounds = array<i64: 8, 256>}, {transform_indices = @transform_1, window_bounds = array<i64: 8, 256>}]} {
    %c0 = arith.constant 0 : index
    %c0_0 = arith.constant 0 : index
    %0 = vector.load %arg1[%c0, %c0_0] : memref<8x256xf32, #tpu.memory_space<vmem>>, vector<8x256xf32>
    %cst = arith.constant dense<0.000000e+00> : vector<8xf32>
    %1 = vector.multi_reduction <add>, %0, %cst [1] : vector<8x256xf32> to vector<8xf32>
    %2 = vector.shape_cast %1 : vector<8xf32> to vector<8x1xf32>
    %cst_1 = arith.constant 3.906250e-03 : f32
    %3 = vector.broadcast %cst_1 : f32 to vector<8x1xf32>
    %4 = arith.mulf %2, %3 : vector<8x1xf32>
    %5 = vector.broadcast %4 : vector<8x1xf32> to vector<8x256xf32>
    %6 = arith.subf %0, %5 : vector<8x256xf32>
    %7 = arith.mulf %6, %6 : vector<8x256xf32>
    %cst_2 = arith.constant dense<0.000000e+00> : vector<8xf32>
    %8 = vector.multi_reduction <add>, %7, %cst_2 [1] : vector<8x256xf32> to vector<8xf32>
    %9 = vector.shape_cast %8 : vector<8xf32> to vector<8x1xf32>
    %cst_3 = arith.constant 3.906250e-03 : f32
    %10 = vector.broadcast %cst_3 : f32 to vector<8x1xf32>
    %11 = arith.mulf %9, %10 : vector<8x1xf32>
    %cst_4 = arith.constant 9.99999974E-6 : f32
    %12 = vector.broadcast %cst_4 : f32 to vector<8x1xf32>
    %13 = arith.addf %11, %12 : vector<8x1xf32>
    %14 = math.rsqrt %13 : vector<8x1xf32>
    %15 = vector.broadcast %14 : vector<8x1xf32> to vector<8x256xf32>
    %16 = arith.mulf %6, %15 : vector<8x256xf32>
    %cst_5 = arith.constant 0.000000e+00 : f32
    %17 = vector.broadcast %cst_5 : f32 to vector<8x256xf32>
    %18 = arith.cmpf oge, %16, %17 : vector<8x256xf32>
    %cst_6 = arith.constant 2.000000e-01 : f32
    %19 = vector.broadcast %cst_6 : f32 to vector<8x256xf32>
    %20 = arith.mulf %19, %16 : vector<8x256xf32>
    %21 = arith.select %18, %16, %20 : vector<8x256xi1>, vector<8x256xf32>
    %c0_7 = arith.constant 0 : index
    %c0_8 = arith.constant 0 : index
    %22 = vector.load %arg2[%c0_7, %c0_8] : memref<8x256xf32, #tpu.memory_space<vmem>>, vector<8x256xf32>
    tpu.vector_store %arg2[%c0_7, %c0_8], %21 {strides = array<i32>} : memref<8x256xf32, #tpu.memory_space<vmem>>, vector<8x256xf32>,
    return
  }
  func.func @transform_0(%arg0: i32) -> (i32, i32) {
    %c0_i32 = arith.constant 0 : i32
    %c0_i32_0 = arith.constant 0 : i32
    return %arg0, %c0_i32 : i32, i32
  }
  func.func @transform_1(%arg0: i32) -> (i32, i32) {
    %c0_i32 = arith.constant 0 : i32
    %c0_i32_0 = arith.constant 0 : i32
    return %arg0, %c0_i32 : i32, i32
  }
}

module attributes {stable_mosaic.version = 11 : i64} {
  func.func @_mdconv3x3_kernel(%arg0: i32, %arg1: memref<1x8x326xf32, #tpu.memory_space<vmem>>, %arg2: memref<4x72xbf16, #tpu.memory_space<vmem>>, %arg3: memref<1x288xf32, #tpu.memory_space<vmem>>, %arg4: memref<1x4x288xf32, #tpu.memory_space<vmem>>, %arg5: memref<72x288xf32, #tpu.memory_space<vmem>>) attributes {dimension_semantics = [#tpu.dimension_semantics<parallel>], iteration_bounds = array<i64: 2>, scalar_prefetch = 0 : i64, scratch_operands = 1 : i64, tpu.core_type = #tpu.core_type<tc>, window_params = [{transform_indices = @transform_0, window_bounds = array<i64: 1, 8, 326>}, {pipeline_mode = #tpu.pipeline_mode<synchronous>, transform_indices = @transform_1, window_bounds = array<i64: 4, 72>}, {pipeline_mode = #tpu.pipeline_mode<synchronous>, transform_indices = @transform_2, window_bounds = array<i64: 1, 288>}, {transform_indices = @transform_3, window_bounds = array<i64: 1, 4, 288>}]} {
    %c0 = arith.constant 0 : index
    %c0_0 = arith.constant 0 : index
    %c0_1 = arith.constant 0 : index
    %0 = vector.load %arg1[%c0, %c0_0, %c0_1] : memref<1x8x326xf32, #tpu.memory_space<vmem>>, vector<1x8x288xf32>
    %1 = vector.shape_cast %0 : vector<1x8x288xf32> to vector<8x288xf32>
    %c0_2 = arith.constant 0 : index
    %c0_3 = arith.constant 0 : index
    %2 = vector.load %arg5[%c0_2, %c0_3] : memref<72x288xf32, #tpu.memory_space<vmem>>, vector<8x288xf32>
    tpu.vector_store %arg5[%c0_2, %c0_3], %1 {strides = array<i32>} : memref<72x288xf32, #tpu.memory_space<vmem>>, vector<8x288xf32>,
    %c0_4 = arith.constant 0 : index
    %c0_5 = arith.constant 0 : index
    %c1 = arith.constant 1 : index
    %3 = vector.load %arg1[%c0_4, %c0_5, %c1] : memref<1x8x326xf32, #tpu.memory_space<vmem>>, vector<1x8x288xf32>
    %4 = vector.shape_cast %3 : vector<1x8x288xf32> to vector<8x288xf32>
    %c8 = arith.constant 8 : index
    %c0_6 = arith.constant 0 : index
    %5 = vector.load %arg5[%c8, %c0_6] : memref<72x288xf32, #tpu.memory_space<vmem>>, vector<8x288xf32>
    tpu.vector_store %arg5[%c8, %c0_6], %4 {strides = array<i32>} : memref<72x288xf32, #tpu.memory_space<vmem>>, vector<8x288xf32>,
    %c0_7 = arith.constant 0 : index
    %c0_8 = arith.constant 0 : index
    %c2 = arith.constant 2 : index
    %6 = vector.load %arg1[%c0_7, %c0_8, %c2] : memref<1x8x326xf32, #tpu.memory_space<vmem>>, vector<1x8x288xf32>
    %7 = vector.shape_cast %6 : vector<1x8x288xf32> to vector<8x288xf32>
    %c16 = arith.constant 16 : index
    %c0_9 = arith.constant 0 : index
    %8 = vector.load %arg5[%c16, %c0_9] : memref<72x288xf32, #tpu.memory_space<vmem>>, vector<8x288xf32>
    tpu.vector_store %arg5[%c16, %c0_9], %7 {strides = array<i32>} : memref<72x288xf32, #tpu.memory_space<vmem>>, vector<8x288xf32>,
    %c0_10 = arith.constant 0 : index
    %c0_11 = arith.constant 0 : index
    %c18 = arith.constant 18 : index
    %9 = vector.load %arg1[%c0_10, %c0_11, %c18] : memref<1x8x326xf32, #tpu.memory_space<vmem>>, vector<1x8x288xf32>
    %10 = vector.shape_cast %9 : vector<1x8x288xf32> to vector<8x288xf32>
    %c24 = arith.constant 24 : index
    %c0_12 = arith.constant 0 : index
    %11 = vector.load %arg5[%c24, %c0_12] : memref<72x288xf32, #tpu.memory_space<vmem>>, vector<8x288xf32>
    tpu.vector_store %arg5[%c24, %c0_12], %10 {strides = array<i32>} : memref<72x288xf32, #tpu.memory_space<vmem>>, vector<8x288xf32>,
    %c0_13 = arith.constant 0 : index
    %c0_14 = arith.constant 0 : index
    %c19 = arith.constant 19 : index
    %12 = vector.load %arg1[%c0_13, %c0_14, %c19] : memref<1x8x326xf32, #tpu.memory_space<vmem>>, vector<1x8x288xf32>
    %13 = vector.shape_cast %12 : vector<1x8x288xf32> to vector<8x288xf32>
    %c32 = arith.constant 32 : index
    %c0_15 = arith.constant 0 : index
    %14 = vector.load %arg5[%c32, %c0_15] : memref<72x288xf32, #tpu.memory_space<vmem>>, vector<8x288xf32>
    tpu.vector_store %arg5[%c32, %c0_15], %13 {strides = array<i32>} : memref<72x288xf32, #tpu.memory_space<vmem>>, vector<8x288xf32>,
    %c0_16 = arith.constant 0 : index
    %c0_17 = arith.constant 0 : index
    %c20 = arith.constant 20 : index
    %15 = vector.load %arg1[%c0_16, %c0_17, %c20] : memref<1x8x326xf32, #tpu.memory_space<vmem>>, vector<1x8x288xf32>
    %16 = vector.shape_cast %15 : vector<1x8x288xf32> to vector<8x288xf32>
    %c40 = arith.constant 40 : index
    %c0_18 = arith.constant 0 : index
    %17 = vector.load %arg5[%c40, %c0_18] : memref<72x288xf32, #tpu.memory_space<vmem>>, vector<8x288xf32>
    tpu.vector_store %arg5[%c40, %c0_18], %16 {strides = array<i32>} : memref<72x288xf32, #tpu.memory_space<vmem>>, vector<8x288xf32>,
    %c0_19 = arith.constant 0 : index
    %c0_20 = arith.constant 0 : index
    %c36 = arith.constant 36 : index
    %18 = vector.load %arg1[%c0_19, %c0_20, %c36] : memref<1x8x326xf32, #tpu.memory_space<vmem>>, vector<1x8x288xf32>
    %19 = vector.shape_cast %18 : vector<1x8x288xf32> to vector<8x288xf32>
    %c48 = arith.constant 48 : index
    %c0_21 = arith.constant 0 : index
    %20 = vector.load %arg5[%c48, %c0_21] : memref<72x288xf32, #tpu.memory_space<vmem>>, vector<8x288xf32>
    tpu.vector_store %arg5[%c48, %c0_21], %19 {strides = array<i32>} : memref<72x288xf32, #tpu.memory_space<vmem>>, vector<8x288xf32>,
    %c0_22 = arith.constant 0 : index
    %c0_23 = arith.constant 0 : index
    %c37 = arith.constant 37 : index
    %21 = vector.load %arg1[%c0_22, %c0_23, %c37] : memref<1x8x326xf32, #tpu.memory_space<vmem>>, vector<1x8x288xf32>
    %22 = vector.shape_cast %21 : vector<1x8x288xf32> to vector<8x288xf32>
    %c56 = arith.constant 56 : index
    %c0_24 = arith.constant 0 : index
    %23 = vector.load %arg5[%c56, %c0_24] : memref<72x288xf32, #tpu.memory_space<vmem>>, vector<8x288xf32>
    tpu.vector_store %arg5[%c56, %c0_24], %22 {strides = array<i32>} : memref<72x288xf32, #tpu.memory_space<vmem>>, vector<8x288xf32>,
    %c0_25 = arith.constant 0 : index
    %c0_26 = arith.constant 0 : index
    %c38 = arith.constant 38 : index
    %24 = vector.load %arg1[%c0_25, %c0_26, %c38] : memref<1x8x326xf32, #tpu.memory_space<vmem>>, vector<1x8x288xf32>
    %25 = vector.shape_cast %24 : vector<1x8x288xf32> to vector<8x288xf32>
    %c64 = arith.constant 64 : index
    %c0_27 = arith.constant 0 : index
    %26 = vector.load %arg5[%c64, %c0_27] : memref<72x288xf32, #tpu.memory_space<vmem>>, vector<8x288xf32>
    tpu.vector_store %arg5[%c64, %c0_27], %25 {strides = array<i32>} : memref<72x288xf32, #tpu.memory_space<vmem>>, vector<8x288xf32>,
    %c0_28 = arith.constant 0 : index
    %c0_29 = arith.constant 0 : index
    %27 = vector.load %arg2[%c0_28, %c0_29] : memref<4x72xbf16, #tpu.memory_space<vmem>>, vector<4x72xbf16>
    %c0_30 = arith.constant 0 : index
    %c0_31 = arith.constant 0 : index
    %28 = vector.load %arg5[%c0_30, %c0_31] : memref<72x288xf32, #tpu.memory_space<vmem>>, vector<72x288xf32>
    %29 = arith.truncf %28 : vector<72x288xf32> to vector<72x288xbf16>
    %cst = arith.constant dense<0.000000e+00> : vector<4x288xf32>
    %30 = tpu.matmul %27, %29, %cst {dimension_numbers = #tpu.dot_dimension_numbers<[1], [0], [0], [1], [0, 0, 1, 1], [], []>} : vector<4x72xbf16>, vector<72x288xbf16>, vector<4x288xf32> -> vector<4x288xf32>
    %c0_32 = arith.constant 0 : index
    %c0_33 = arith.constant 0 : index
    %31 = vector.load %arg3[%c0_32, %c0_33] : memref<1x288xf32, #tpu.memory_space<vmem>>, vector<1x288xf32>
    %32 = vector.broadcast %31 : vector<1x288xf32> to vector<4x288xf32>
    %33 = arith.mulf %30, %32 : vector<4x288xf32>
    %cst_34 = arith.constant dense<0.000000e+00> : vector<4xf32>
    %34 = vector.multi_reduction <add>, %33, %cst_34 [1] : vector<4x288xf32> to vector<4xf32>
    %35 = vector.shape_cast %34 : vector<4xf32> to vector<4x1xf32>
    %cst_35 = arith.constant 2.560000e+02 : f32
    %36 = vector.broadcast %cst_35 : f32 to vector<4x1xf32>
    %37 = arith.divf %35, %36 : vector<4x1xf32>
    %38 = vector.broadcast %37 : vector<4x1xf32> to vector<4x288xf32>
    %39 = arith.subf %30, %38 : vector<4x288xf32>
    %40 = vector.broadcast %31 : vector<1x288xf32> to vector<4x288xf32>
    %41 = arith.mulf %39, %40 : vector<4x288xf32>
    %42 = arith.mulf %41, %41 : vector<4x288xf32>
    %cst_36 = arith.constant dense<0.000000e+00> : vector<4xf32>
    %43 = vector.multi_reduction <add>, %42, %cst_36 [1] : vector<4x288xf32> to vector<4xf32>
    %44 = vector.shape_cast %43 : vector<4xf32> to vector<4x1xf32>
    %cst_37 = arith.constant 2.560000e+02 : f32
    %45 = vector.broadcast %cst_37 : f32 to vector<4x1xf32>
    %46 = arith.divf %44, %45 : vector<4x1xf32>
    %47 = vector.broadcast %37 : vector<4x1xf32> to vector<4x288xf32>
    %48 = arith.subf %30, %47 : vector<4x288xf32>
    %cst_38 = arith.constant 9.99999974E-6 : f32
    %49 = vector.broadcast %cst_38 : f32 to vector<4x1xf32>
    %50 = arith.addf %46, %49 : vector<4x1xf32>
    %51 = math.rsqrt %50 : vector<4x1xf32>
    %52 = vector.broadcast %51 : vector<4x1xf32> to vector<4x288xf32>
    %53 = arith.mulf %48, %52 : vector<4x288xf32>
    %cst_39 = arith.constant 0.000000e+00 : f32
    %54 = vector.broadcast %cst_39 : f32 to vector<4x288xf32>
    %55 = arith.cmpf oge, %53, %54 : vector<4x288xf32>
    %cst_40 = arith.constant 2.000000e-01 : f32
    %56 = vector.broadcast %cst_40 : f32 to vector<4x288xf32>
    %57 = arith.mulf %56, %53 : vector<4x288xf32>
    %58 = arith.select %55, %53, %57 : vector<4x288xi1>, vector<4x288xf32>
    %59 = tpu.iota {dimensions = array<i32: 0>} : vector<4x1xi32>
    %c2_i32 = arith.constant 2 : i32
    %60 = vector.broadcast %c2_i32 : i32 to vector<4x1xi32>
    %61 = arith.cmpi slt, %59, %60 : vector<4x1xi32>
    %62 = vector.shape_cast %61 : vector<4x1xi1> to vector<4x1xi1>
    %63 = vector.broadcast %62 : vector<4x1xi1> to vector<4x288xi1>
    %64 = arith.select %63, %58, %30 : vector<4x288xi1>, vector<4x288xf32>
    %c0_41 = arith.constant 0 : index
    %c0_42 = arith.constant 0 : index
    %c0_43 = arith.constant 0 : index
    %65 = vector.load %arg4[%c0_41, %c0_42, %c0_43] : memref<1x4x288xf32, #tpu.memory_space<vmem>>, vector<1x4x288xf32>
    %66 = vector.shape_cast %65 : vector<1x4x288xf32> to vector<4x288xf32>
    %67 = vector.shape_cast %64 : vector<4x288xf32> to vector<1x4x288xf32>
    tpu.vector_store %arg4[%c0_41, %c0_42, %c0_43], %67 {strides = array<i32>} : memref<1x4x288xf32, #tpu.memory_space<vmem>>, vector<1x4x288xf32>,
    return
  }
  func.func @transform_0(%arg0: i32) -> (i32, i32, i32) {
    %c0_i32 = arith.constant 0 : i32
    %c0_i32_0 = arith.constant 0 : i32
    %c0_i32_1 = arith.constant 0 : i32
    return %arg0, %c0_i32, %c0_i32_0 : i32, i32, i32
  }
  func.func @transform_1(%arg0: i32) -> (i32, i32) {
    %c0_i32 = arith.constant 0 : i32
    %c0_i32_0 = arith.constant 0 : i32
    %c0_i32_1 = arith.constant 0 : i32
    return %c0_i32, %c0_i32_0 : i32, i32
  }
  func.func @transform_2(%arg0: i32) -> (i32, i32) {
    %c0_i32 = arith.constant 0 : i32
    %c0_i32_0 = arith.constant 0 : i32
    %c0_i32_1 = arith.constant 0 : i32
    return %c0_i32, %c0_i32_0 : i32, i32
  }
  func.func @transform_3(%arg0: i32) -> (i32, i32, i32) {
    %c0_i32 = arith.constant 0 : i32
    %c0_i32_0 = arith.constant 0 : i32
    %c0_i32_1 = arith.constant 0 : i32
    return %arg0, %c0_i32, %c0_i32_0 : i32, i32, i32
  }
}

module attributes {stable_mosaic.version = 11 : i64} {
  func.func @_mdconv3x3_kernel(%arg0: i32, %arg1: memref<1x16x326xf32, #tpu.memory_space<vmem>>, %arg2: memref<4x144xbf16, #tpu.memory_space<vmem>>, %arg3: memref<1x288xf32, #tpu.memory_space<vmem>>, %arg4: memref<1x4x288xf32, #tpu.memory_space<vmem>>, %arg5: memref<144x288xf32, #tpu.memory_space<vmem>>) attributes {dimension_semantics = [#tpu.dimension_semantics<parallel>], iteration_bounds = array<i64: 2>, scalar_prefetch = 0 : i64, scratch_operands = 1 : i64, tpu.core_type = #tpu.core_type<tc>, window_params = [{transform_indices = @transform_0, window_bounds = array<i64: 1, 16, 326>}, {pipeline_mode = #tpu.pipeline_mode<synchronous>, transform_indices = @transform_1, window_bounds = array<i64: 4, 144>}, {pipeline_mode = #tpu.pipeline_mode<synchronous>, transform_indices = @transform_2, window_bounds = array<i64: 1, 288>}, {transform_indices = @transform_3, window_bounds = array<i64: 1, 4, 288>}]} {
    %c0 = arith.constant 0 : index
    %c0_0 = arith.constant 0 : index
    %c0_1 = arith.constant 0 : index
    %0 = vector.load %arg1[%c0, %c0_0, %c0_1] : memref<1x16x326xf32, #tpu.memory_space<vmem>>, vector<1x16x288xf32>
    %1 = vector.shape_cast %0 : vector<1x16x288xf32> to vector<16x288xf32>
    %c0_2 = arith.constant 0 : index
    %c0_3 = arith.constant 0 : index
    %2 = vector.load %arg5[%c0_2, %c0_3] : memref<144x288xf32, #tpu.memory_space<vmem>>, vector<16x288xf32>
    tpu.vector_store %arg5[%c0_2, %c0_3], %1 {strides = array<i32>} : memref<144x288xf32, #tpu.memory_space<vmem>>, vector<16x288xf32>,
    %c0_4 = arith.constant 0 : index
    %c0_5 = arith.constant 0 : index
    %c1 = arith.constant 1 : index
    %3 = vector.load %arg1[%c0_4, %c0_5, %c1] : memref<1x16x326xf32, #tpu.memory_space<vmem>>, vector<1x16x288xf32>
    %4 = vector.shape_cast %3 : vector<1x16x288xf32> to vector<16x288xf32>
    %c16 = arith.constant 16 : index
    %c0_6 = arith.constant 0 : index
    %5 = vector.load %arg5[%c16, %c0_6] : memref<144x288xf32, #tpu.memory_space<vmem>>, vector<16x288xf32>
    tpu.vector_store %arg5[%c16, %c0_6], %4 {strides = array<i32>} : memref<144x288xf32, #tpu.memory_space<vmem>>, vector<16x288xf32>,
    %c0_7 = arith.constant 0 : index
    %c0_8 = arith.constant 0 : index
    %c2 = arith.constant 2 : index
    %6 = vector.load %arg1[%c0_7, %c0_8, %c2] : memref<1x16x326xf32, #tpu.memory_space<vmem>>, vector<1x16x288xf32>
    %7 = vector.shape_cast %6 : vector<1x16x288xf32> to vector<16x288xf32>
    %c32 = arith.constant 32 : index
    %c0_9 = arith.constant 0 : index
    %8 = vector.load %arg5[%c32, %c0_9] : memref<144x288xf32, #tpu.memory_space<vmem>>, vector<16x288xf32>
    tpu.vector_store %arg5[%c32, %c0_9], %7 {strides = array<i32>} : memref<144x288xf32, #tpu.memory_space<vmem>>, vector<16x288xf32>,
    %c0_10 = arith.constant 0 : index
    %c0_11 = arith.constant 0 : index
    %c18 = arith.constant 18 : index
    %9 = vector.load %arg1[%c0_10, %c0_11, %c18] : memref<1x16x326xf32, #tpu.memory_space<vmem>>, vector<1x16x288xf32>
    %10 = vector.shape_cast %9 : vector<1x16x288xf32> to vector<16x288xf32>
    %c48 = arith.constant 48 : index
    %c0_12 = arith.constant 0 : index
    %11 = vector.load %arg5[%c48, %c0_12] : memref<144x288xf32, #tpu.memory_space<vmem>>, vector<16x288xf32>
    tpu.vector_store %arg5[%c48, %c0_12], %10 {strides = array<i32>} : memref<144x288xf32, #tpu.memory_space<vmem>>, vector<16x288xf32>,
    %c0_13 = arith.constant 0 : index
    %c0_14 = arith.constant 0 : index
    %c19 = arith.constant 19 : index
    %12 = vector.load %arg1[%c0_13, %c0_14, %c19] : memref<1x16x326xf32, #tpu.memory_space<vmem>>, vector<1x16x288xf32>
    %13 = vector.shape_cast %12 : vector<1x16x288xf32> to vector<16x288xf32>
    %c64 = arith.constant 64 : index
    %c0_15 = arith.constant 0 : index
    %14 = vector.load %arg5[%c64, %c0_15] : memref<144x288xf32, #tpu.memory_space<vmem>>, vector<16x288xf32>
    tpu.vector_store %arg5[%c64, %c0_15], %13 {strides = array<i32>} : memref<144x288xf32, #tpu.memory_space<vmem>>, vector<16x288xf32>,
    %c0_16 = arith.constant 0 : index
    %c0_17 = arith.constant 0 : index
    %c20 = arith.constant 20 : index
    %15 = vector.load %arg1[%c0_16, %c0_17, %c20] : memref<1x16x326xf32, #tpu.memory_space<vmem>>, vector<1x16x288xf32>
    %16 = vector.shape_cast %15 : vector<1x16x288xf32> to vector<16x288xf32>
    %c80 = arith.constant 80 : index
    %c0_18 = arith.constant 0 : index
    %17 = vector.load %arg5[%c80, %c0_18] : memref<144x288xf32, #tpu.memory_space<vmem>>, vector<16x288xf32>
    tpu.vector_store %arg5[%c80, %c0_18], %16 {strides = array<i32>} : memref<144x288xf32, #tpu.memory_space<vmem>>, vector<16x288xf32>,
    %c0_19 = arith.constant 0 : index
    %c0_20 = arith.constant 0 : index
    %c36 = arith.constant 36 : index
    %18 = vector.load %arg1[%c0_19, %c0_20, %c36] : memref<1x16x326xf32, #tpu.memory_space<vmem>>, vector<1x16x288xf32>
    %19 = vector.shape_cast %18 : vector<1x16x288xf32> to vector<16x288xf32>
    %c96 = arith.constant 96 : index
    %c0_21 = arith.constant 0 : index
    %20 = vector.load %arg5[%c96, %c0_21] : memref<144x288xf32, #tpu.memory_space<vmem>>, vector<16x288xf32>
    tpu.vector_store %arg5[%c96, %c0_21], %19 {strides = array<i32>} : memref<144x288xf32, #tpu.memory_space<vmem>>, vector<16x288xf32>,
    %c0_22 = arith.constant 0 : index
    %c0_23 = arith.constant 0 : index
    %c37 = arith.constant 37 : index
    %21 = vector.load %arg1[%c0_22, %c0_23, %c37] : memref<1x16x326xf32, #tpu.memory_space<vmem>>, vector<1x16x288xf32>
    %22 = vector.shape_cast %21 : vector<1x16x288xf32> to vector<16x288xf32>
    %c112 = arith.constant 112 : index
    %c0_24 = arith.constant 0 : index
    %23 = vector.load %arg5[%c112, %c0_24] : memref<144x288xf32, #tpu.memory_space<vmem>>, vector<16x288xf32>
    tpu.vector_store %arg5[%c112, %c0_24], %22 {strides = array<i32>} : memref<144x288xf32, #tpu.memory_space<vmem>>, vector<16x288xf32>,
    %c0_25 = arith.constant 0 : index
    %c0_26 = arith.constant 0 : index
    %c38 = arith.constant 38 : index
    %24 = vector.load %arg1[%c0_25, %c0_26, %c38] : memref<1x16x326xf32, #tpu.memory_space<vmem>>, vector<1x16x288xf32>
    %25 = vector.shape_cast %24 : vector<1x16x288xf32> to vector<16x288xf32>
    %c128 = arith.constant 128 : index
    %c0_27 = arith.constant 0 : index
    %26 = vector.load %arg5[%c128, %c0_27] : memref<144x288xf32, #tpu.memory_space<vmem>>, vector<16x288xf32>
    tpu.vector_store %arg5[%c128, %c0_27], %25 {strides = array<i32>} : memref<144x288xf32, #tpu.memory_space<vmem>>, vector<16x288xf32>,
    %c0_28 = arith.constant 0 : index
    %c0_29 = arith.constant 0 : index
    %27 = vector.load %arg2[%c0_28, %c0_29] : memref<4x144xbf16, #tpu.memory_space<vmem>>, vector<4x144xbf16>
    %c0_30 = arith.constant 0 : index
    %c0_31 = arith.constant 0 : index
    %28 = vector.load %arg5[%c0_30, %c0_31] : memref<144x288xf32, #tpu.memory_space<vmem>>, vector<144x288xf32>
    %29 = arith.truncf %28 : vector<144x288xf32> to vector<144x288xbf16>
    %cst = arith.constant dense<0.000000e+00> : vector<4x288xf32>
    %30 = tpu.matmul %27, %29, %cst {dimension_numbers = #tpu.dot_dimension_numbers<[1], [0], [0], [1], [0, 0, 1, 1], [], []>} : vector<4x144xbf16>, vector<144x288xbf16>, vector<4x288xf32> -> vector<4x288xf32>
    %c0_32 = arith.constant 0 : index
    %c0_33 = arith.constant 0 : index
    %31 = vector.load %arg3[%c0_32, %c0_33] : memref<1x288xf32, #tpu.memory_space<vmem>>, vector<1x288xf32>
    %32 = vector.broadcast %31 : vector<1x288xf32> to vector<4x288xf32>
    %33 = arith.mulf %30, %32 : vector<4x288xf32>
    %cst_34 = arith.constant dense<0.000000e+00> : vector<4xf32>
    %34 = vector.multi_reduction <add>, %33, %cst_34 [1] : vector<4x288xf32> to vector<4xf32>
    %35 = vector.shape_cast %34 : vector<4xf32> to vector<4x1xf32>
    %cst_35 = arith.constant 2.560000e+02 : f32
    %36 = vector.broadcast %cst_35 : f32 to vector<4x1xf32>
    %37 = arith.divf %35, %36 : vector<4x1xf32>
    %38 = vector.broadcast %37 : vector<4x1xf32> to vector<4x288xf32>
    %39 = arith.subf %30, %38 : vector<4x288xf32>
    %40 = vector.broadcast %31 : vector<1x288xf32> to vector<4x288xf32>
    %41 = arith.mulf %39, %40 : vector<4x288xf32>
    %42 = arith.mulf %41, %41 : vector<4x288xf32>
    %cst_36 = arith.constant dense<0.000000e+00> : vector<4xf32>
    %43 = vector.multi_reduction <add>, %42, %cst_36 [1] : vector<4x288xf32> to vector<4xf32>
    %44 = vector.shape_cast %43 : vector<4xf32> to vector<4x1xf32>
    %cst_37 = arith.constant 2.560000e+02 : f32
    %45 = vector.broadcast %cst_37 : f32 to vector<4x1xf32>
    %46 = arith.divf %44, %45 : vector<4x1xf32>
    %47 = vector.broadcast %37 : vector<4x1xf32> to vector<4x288xf32>
    %48 = arith.subf %30, %47 : vector<4x288xf32>
    %cst_38 = arith.constant 9.99999974E-6 : f32
    %49 = vector.broadcast %cst_38 : f32 to vector<4x1xf32>
    %50 = arith.addf %46, %49 : vector<4x1xf32>
    %51 = math.rsqrt %50 : vector<4x1xf32>
    %52 = vector.broadcast %51 : vector<4x1xf32> to vector<4x288xf32>
    %53 = arith.mulf %48, %52 : vector<4x288xf32>
    %cst_39 = arith.constant 0.000000e+00 : f32
    %54 = vector.broadcast %cst_39 : f32 to vector<4x288xf32>
    %55 = arith.cmpf oge, %53, %54 : vector<4x288xf32>
    %cst_40 = arith.constant 2.000000e-01 : f32
    %56 = vector.broadcast %cst_40 : f32 to vector<4x288xf32>
    %57 = arith.mulf %56, %53 : vector<4x288xf32>
    %58 = arith.select %55, %53, %57 : vector<4x288xi1>, vector<4x288xf32>
    %59 = tpu.iota {dimensions = array<i32: 0>} : vector<4x1xi32>
    %c2_i32 = arith.constant 2 : i32
    %60 = vector.broadcast %c2_i32 : i32 to vector<4x1xi32>
    %61 = arith.cmpi slt, %59, %60 : vector<4x1xi32>
    %62 = vector.shape_cast %61 : vector<4x1xi1> to vector<4x1xi1>
    %63 = vector.broadcast %62 : vector<4x1xi1> to vector<4x288xi1>
    %64 = arith.select %63, %58, %30 : vector<4x288xi1>, vector<4x288xf32>
    %c0_41 = arith.constant 0 : index
    %c0_42 = arith.constant 0 : index
    %c0_43 = arith.constant 0 : index
    %65 = vector.load %arg4[%c0_41, %c0_42, %c0_43] : memref<1x4x288xf32, #tpu.memory_space<vmem>>, vector<1x4x288xf32>
    %66 = vector.shape_cast %65 : vector<1x4x288xf32> to vector<4x288xf32>
    %67 = vector.shape_cast %64 : vector<4x288xf32> to vector<1x4x288xf32>
    tpu.vector_store %arg4[%c0_41, %c0_42, %c0_43], %67 {strides = array<i32>} : memref<1x4x288xf32, #tpu.memory_space<vmem>>, vector<1x4x288xf32>,
    return
  }
  func.func @transform_0(%arg0: i32) -> (i32, i32, i32) {
    %c0_i32 = arith.constant 0 : i32
    %c0_i32_0 = arith.constant 0 : i32
    %c0_i32_1 = arith.constant 0 : i32
    return %arg0, %c0_i32, %c0_i32_0 : i32, i32, i32
  }
  func.func @transform_1(%arg0: i32) -> (i32, i32) {
    %c0_i32 = arith.constant 0 : i32
    %c0_i32_0 = arith.constant 0 : i32
    %c0_i32_1 = arith.constant 0 : i32
    return %c0_i32, %c0_i32_0 : i32, i32
  }
  func.func @transform_2(%arg0: i32) -> (i32, i32) {
    %c0_i32 = arith.constant 0 : i32
    %c0_i32_0 = arith.constant 0 : i32
    %c0_i32_1 = arith.constant 0 : i32
    return %c0_i32, %c0_i32_0 : i32, i32
  }
  func.func @transform_3(%arg0: i32) -> (i32, i32, i32) {
    %c0_i32 = arith.constant 0 : i32
    %c0_i32_0 = arith.constant 0 : i32
    %c0_i32_1 = arith.constant 0 : i32
    return %arg0, %c0_i32, %c0_i32_0 : i32, i32, i32
  }
}

module attributes {stable_mosaic.version = 11 : i64} {
  func.func @_gemm_bias_kernel(%arg0: i32, %arg1: memref<1x4x256xf32, #tpu.memory_space<vmem>>, %arg2: memref<2x4xbf16, #tpu.memory_space<vmem>>, %arg3: memref<2x1xf32, #tpu.memory_space<vmem>>, %arg4: memref<1x2x256xf32, #tpu.memory_space<vmem>>) attributes {dimension_semantics = [#tpu.dimension_semantics<parallel>], iteration_bounds = array<i64: 2>, scalar_prefetch = 0 : i64, scratch_operands = 0 : i64, tpu.core_type = #tpu.core_type<tc>, window_params = [{transform_indices = @transform_0, window_bounds = array<i64: 1, 4, 256>}, {pipeline_mode = #tpu.pipeline_mode<synchronous>, transform_indices = @transform_1, window_bounds = array<i64: 2, 4>}, {pipeline_mode = #tpu.pipeline_mode<synchronous>, transform_indices = @transform_2, window_bounds = array<i64: 2, 1>}, {transform_indices = @transform_3, window_bounds = array<i64: 1, 2, 256>}]} {
    %c0 = arith.constant 0 : index
    %c0_0 = arith.constant 0 : index
    %0 = vector.load %arg2[%c0, %c0_0] : memref<2x4xbf16, #tpu.memory_space<vmem>>, vector<2x4xbf16>
    %c0_1 = arith.constant 0 : index
    %c0_2 = arith.constant 0 : index
    %c0_3 = arith.constant 0 : index
    %1 = vector.load %arg1[%c0_1, %c0_2, %c0_3] : memref<1x4x256xf32, #tpu.memory_space<vmem>>, vector<1x4x256xf32>
    %2 = vector.shape_cast %1 : vector<1x4x256xf32> to vector<4x256xf32>
    %3 = arith.truncf %2 : vector<4x256xf32> to vector<4x256xbf16>
    %cst = arith.constant dense<0.000000e+00> : vector<2x256xf32>
    %4 = tpu.matmul %0, %3, %cst {dimension_numbers = #tpu.dot_dimension_numbers<[1], [0], [0], [1], [0, 0, 1, 1], [], []>} : vector<2x4xbf16>, vector<4x256xbf16>, vector<2x256xf32> -> vector<2x256xf32>
    %c0_4 = arith.constant 0 : index
    %c0_5 = arith.constant 0 : index
    %5 = vector.load %arg3[%c0_4, %c0_5] : memref<2x1xf32, #tpu.memory_space<vmem>>, vector<2x1xf32>
    %6 = vector.broadcast %5 : vector<2x1xf32> to vector<2x256xf32>
    %7 = arith.addf %4, %6 : vector<2x256xf32>
    %c0_6 = arith.constant 0 : index
    %c0_7 = arith.constant 0 : index
    %c0_8 = arith.constant 0 : index
    %8 = vector.load %arg4[%c0_6, %c0_7, %c0_8] : memref<1x2x256xf32, #tpu.memory_space<vmem>>, vector<1x2x256xf32>
    %9 = vector.shape_cast %8 : vector<1x2x256xf32> to vector<2x256xf32>
    %10 = vector.shape_cast %7 : vector<2x256xf32> to vector<1x2x256xf32>
    tpu.vector_store %arg4[%c0_6, %c0_7, %c0_8], %10 {strides = array<i32>} : memref<1x2x256xf32, #tpu.memory_space<vmem>>, vector<1x2x256xf32>,
    return
  }
  func.func @transform_0(%arg0: i32) -> (i32, i32, i32) {
    %c0_i32 = arith.constant 0 : i32
    %c0_i32_0 = arith.constant 0 : i32
    %c0_i32_1 = arith.constant 0 : i32
    return %arg0, %c0_i32, %c0_i32_0 : i32, i32, i32
  }
  func.func @transform_1(%arg0: i32) -> (i32, i32) {
    %c0_i32 = arith.constant 0 : i32
    %c0_i32_0 = arith.constant 0 : i32
    %c0_i32_1 = arith.constant 0 : i32
    return %c0_i32, %c0_i32_0 : i32, i32
  }
  func.func @transform_2(%arg0: i32) -> (i32, i32) {
    %c0_i32 = arith.constant 0 : i32
    %c0_i32_0 = arith.constant 0 : i32
    %c0_i32_1 = arith.constant 0 : i32
    return %c0_i32, %c0_i32_0 : i32, i32
  }
  func.func @transform_3(%arg0: i32) -> (i32, i32, i32) {
    %c0_i32 = arith.constant 0 : i32
    %c0_i32_0 = arith.constant 0 : i32
    %c0_i32_1 = arith.constant 0 : i32
    return %arg0, %c0_i32, %c0_i32_0 : i32, i32, i32
  }
}

</mosaic_0001>

<bundles_post_ra>
// kernel: unet_forward.26
= control target key start
LH: loop header
LB: loop body
LE: loop exit
PB: predicated region body
PF: predicated region fallthrough
CT: control target
= control target key end

     0   :  { %vm12_vm0 = vcmask 1043456   ;;  %v63_v5 = vmov 839922192   ;;  %v23_v7 = vlaneseq  ;;  %s84_s0 = inlined_call_operand.vmem [shape: f32[4,256], index: 0, kind: input, shape index: {}]   ;;  %s85_s1 = inlined_call_operand.vmem [shape: f32[4,256], index: 1, kind: output, shape index: {}]  }
   0x1   :  { %v8_v0 = vld [vmem:[%s84_s0] sm:$0xff]  ;;  %v21_v6 = vunpack.c.l.s4 %v63_v5 }
   0x2   :  { %v10_v1 = vcombine.high %v8_v0, %v8_v0  ;;  %v13_v2 = vsel %vm12_vm0, %v8_v0, 0.0  ;;  %v24_v9 = vshrl.u32 %v23_v7, 7 }
   0x3   :  { %v22_v8 = vunpack.c.0.s8 %v21_v6 }
   0x4   :  { %v14_v3 = vsel %vm12_vm0, %v10_v1, 0.0 }
   0x5   :  { %v15_v4 = vadd.f32 %v14_v3, %v13_v2  ;;  %v25_v10 = vsub.s32 %v22_v8, %v24_v9 }
   0x7   :  { %16 = vadd.xlane.f32.xlu0 %v15_v4 }
  0x94   :  { %v17_v11 = vpop.xlane.xlu0 %16 }
  0x95   :  { %v18_v12 = vmul.f32 0.00390625, %v17_v11 }
  0x97   :  { %v26_v13 = vrot.slane %v18_v12, %v25_v10 }
  0x99   :  { %v28_v14 = vsub.f32 %v8_v0, %v26_v13 }
  0x9b   :  { %v29_v15 = vmul.f32 %v28_v14, %v28_v14 }
  0x9d   :  { %v31_v16 = vcombine.high %v29_v15, %v29_v15  ;;  %v33_v17 = vsel %vm12_vm0, %v29_v15, 0.0 }
  0x9f   :  { %v34_v18 = vsel %vm12_vm0, %v31_v16, 0.0 }
  0xa0   :  { %v35_v19 = vadd.f32 %v34_v18, %v33_v17 }
  0xa2   :  { %36 = vadd.xlane.f32.xlu0 %v35_v19 }
 0x12f   :  { %v37_v20 = vpop.xlane.xlu0 %36 }
 0x130   :  { %v38_v21 = vmul.f32 0.00390625, %v37_v20 }
 0x132   :  { %v39_v22 = vadd.f32 1e-05, %v38_v21 }
 0x134   :  { %61 = vrsqrt.f32 %v39_v22 }
 0x13e   :  { %v62_v23 = vpop.eup %61 }
 0x13f   :  { %v48_v24 = vrot.slane %v62_v23, %v25_v10 }
 0x141   :  { %v50_v25 = vmul.f32 %v48_v24, %v28_v14 }
 0x143   :  { %vm51_vm1 = vcmp.ge.f32.partialorder %v50_v25, 0.0  ;;  %v52_v26 = vmul.f32 0.2, %v50_v25 }
 0x145   :  { %v53_v27 = vsel %vm51_vm1, %v50_v25, %v52_v26 }
 0x146   :  { %54 = vst [vmem:[%s85_s1] sm:$0xff] %v53_v27 }

// kernel: unet_forward.25
= control target key start
LH: loop header
LB: loop body
LE: loop exit
PB: predicated region body
PF: predicated region fallthrough
CT: control target
= control target key end

     0   :  { %s689_s12 = smov 0   ;;  %s769_s0 = inlined_call_operand.vmem [shape: f32[2,4,326], index: 0, kind: input, shape index: {}]   ;;  %s770_s1 = inlined_call_operand.vmem [shape: bf16[4,36], index: 1, kind: input, shape index: {}]   ;;  %s771_s2 = inlined_call_operand.vmem [shape: f32[1,288], index: 2, kind: input, shape index: {}]   ;;  %s772_s3 = inlined_call_operand.vmem [shape: f32[2,4,288], index: 3, kind: output, shape index: {}]  }
   0x1 LB: > { %s596_s13 = sadd.s32 4294967295, %s656_s12   ;;  %p600_p0 = scmp.ge.s32.totalorder %s656_s12, 1  ;;  %s656_s12 = sphi %s689_s12, %s13_s12  }
   0x2   : > { %p137_p1 = scmp.lt.s32.totalorder %s656_s12, 3 }
   0x4   : > { %p138_p2 = pnand %p600_p0, %p137_p1 }
   0x5   : > { %p161_p3 = scmp.lt.s32.totalorder (!%p138_p2), %s596_s13, 1  ;;  %s658_s18 = smov (!%p138_p2), 126   ;;  %vm179_vm0 = vcmask (!%p138_p2), 257024   ;;  %v661_v6 = vmov (!%p138_p2), 0.0   ;;  %v667_v13 = vmov (!%p138_p2), 0   ;;  %vm668_vm1 = vmmov (!%p138_p2), 0  }
   0x6   : > { %141 = sbr.rel (%p138_p2) target bundleno = 734 (0x2de), region = 32  ;;  %s659_s19 = smov (!%p138_p2), 127   ;;  %612 = vmatprep.subr.bf16.mxu1 (!%p138_p2), %v661_v6  ;;  %417 = vmatprep.mubr.bf16.mxu0 (!%p138_p2), %v667_v13  ;;  %vm214_vm2 = vcmask (!%p138_p2), 1031168   ;;  %vm201_vm3 = vcmask (!%p138_p2), 261124   ;;  %vm235_vm4 = vcmask (!%p138_p2), 900096   ;;  %vm193_vm5 = vcmask (!%p138_p2), 1039360  }
   0x7   : > { %s660_s20 = smov (!%p138_p2), 110   ;;  %s662_s21 = smov (!%p138_p2), 109   ;;  %618 = vmatprep.mubr.msk.bf16.mxu1 (!%p138_p2), %vm668_vm1, %v661_v6  ;;  %vm255_vm6 = vcmask (!%p138_p2), 891904   ;;  %vm276_vm7 = vcmask (!%p138_p2), 883712   ;;  %vm296_vm8 = vcmask (!%p138_p2), 752640   ;;  %vm317_vm9 = vcmask (!%p138_p2), 744448  }
   0x8   : > { %s663_s22 = smov (!%p138_p2), 108   ;;  %s664_s23 = smov (!%p138_p2), 92   ;;  %vm337_vm10 = vcmask (!%p138_p2), 736256   ;;  %vm375_vm11 = vcmask (!%p138_p2), 1041408   ;;  %vm371_vm12 = vcmask (!%p138_p2), 293888   ;;  %vm486_vm13 = vcmask (!%p138_p2), 1043456  }
   0x9   : > { %s665_s24 = smov (!%p138_p2), 91   ;;  %s666_s25 = smov (!%p138_p2), 90  }
   0xd   : > { %s774_s13 = smov (!%p161_p3, %s596_s13), 1 }
   0xe   : > { %s622_s14 = smul.u32 12, %s774_s13 }
  0x10   : > { %s705_s17 = scalar_lea.vmem %s769_s0, %s622_s14  ;;  %s170_s5 = scalar_lea.vmem %s772_s3, %s622_s14 }
  0x11   : > { %v204_v0 = vld [vmem:[%s705_s17 + $0x8] sm:$0xf]  ;;  %v181_v1 = vld [vmem:[%s705_s17] sm:$0xff] }
  0x12   : > { %212 = vrot.lane.b32.xlu1 %v204_v0, %s658_s18  ;;  %189 = vrot.lane.b32.xlu0 %v181_v1, %s659_s19  ;;  %v207_v2 = vcombine.high %v181_v1, %v181_v1  ;;  %177 = vst [vmem:[#allocation2] sm:$0xf] %v181_v1  ;;  %v173_v3 = vld [vmem:[%s705_s17 + $0x8] sm:$0xf]  ;;  %v185_v7 = vcombine.low %v181_v1, %v181_v1 }
  0x13   : > { %v644_v4 = vld [vmem:[%s705_s17 + $0x8] ss:$0 sps:$4 sm:$0xff]   ;;  %180 = vst.msk [vmem:[#allocation2 + $0x10] sm:$0xf] %vm179_vm0, %v173_v3 }
  0x14   : > { %178 = vst [vmem:[#allocation2 + $0x8] sm:$0xf] %v207_v2  ;;  %v645_v5 = vld [vmem:[%s705_s17 + $0x8] ss:$0 sps:$4 sm:$0xff]  }
  0x15   : > { %v245_v8 = vld [vmem:[%s705_s17 + $0x8] sm:$0xf] }
  0x16   : > { %210 = vrot.lane.b32.xlu1 %v207_v2, %s658_s18  ;;  %231 = vrot.lane.b32.xlu0 %v181_v1, %s660_s20  ;;  %v646_v9 = vld [vmem:[%s705_s17 + $0x8] ss:$0 sps:$4 sm:$0xff]  }
  0x17   : > { %v286_v10 = vld [vmem:[%s705_s17 + $0x8] sm:$0xf] }
  0x18   : > { %v647_v11 = vld [vmem:[%s705_s17 + $0x8] ss:$0 sps:$4 sm:$0xff]  }
  0x19   : > { %v327_v12 = vld [vmem:[%s705_s17 + $0x8] sm:$0xf] }
  0x1a   : > { %233 = vrot.lane.b32.xlu1 %v644_v4, %s660_s20  ;;  %191 = vrot.lane.b32.xlu0 %v645_v5, %s659_s19 }
  0x1e   : > { %208 = vrot.lane.b32.xlu1 %v181_v1, %s658_s18  ;;  %187 = vrot.lane.b32.xlu0 %v185_v7, %s659_s19 }
  0x22   : > { %251 = vrot.lane.b32.xlu1 %v207_v2, %s662_s21  ;;  %229 = vrot.lane.b32.xlu0 %v185_v7, %s660_s20 }
  0x26   : > { %272 = vrot.lane.b32.xlu1 %v181_v1, %s663_s22  ;;  %253 = vrot.lane.b32.xlu0 %v245_v8, %s662_s21 }
  0x2a   : > { %292 = vrot.lane.b32.xlu1 %v207_v2, %s664_s23  ;;  %274 = vrot.lane.b32.xlu0 %v646_v9, %s663_s22 }
  0x2e   : > { %313 = vrot.lane.b32.xlu1 %v181_v1, %s665_s24  ;;  %294 = vrot.lane.b32.xlu0 %v286_v10, %s664_s23 }
  0x32   : > { %249 = vrot.lane.b32.xlu1 %v181_v1, %s662_s21  ;;  %315 = vrot.lane.b32.xlu0 %v647_v11, %s665_s24 }
  0x36   : > { %290 = vrot.lane.b32.xlu1 %v181_v1, %s664_s23  ;;  %270 = vrot.lane.b32.xlu0 %v185_v7, %s663_s22 }
  0x3a   : > { %331 = vrot.lane.b32.xlu1 %v181_v1, %s666_s25  ;;  %311 = vrot.lane.b32.xlu0 %v185_v7, %s665_s24 }
  0x3e   : > { %335 = vrot.lane.b32.xlu1 %v327_v12, %s666_s25  ;;  %333 = vrot.lane.b32.xlu0 %v207_v2, %s666_s25 }
  0x84   : > { %v213_v14 = vpop.permute.xlu1 %212  ;;  %v190_v15 = vpop.permute.xlu0 %189 }
  0x85   : > { %222 = vst.msk [vmem:[#allocation2 + $0x28] sm:$0xf] %vm179_vm0, %v213_v14 }
  0x88   : > { %v211_v16 = vpop.permute.xlu1 %210  ;;  %v232_v17 = vpop.permute.xlu0 %231 }
  0x89   : > { %v216_v18 = vsel %vm214_vm2, %v211_v16, %v213_v14 }
  0x8a   : > { %221 = vst [vmem:[#allocation2 + $0x20] sm:$0xf] %v216_v18 }
  0x8c   : > { %v234_v19 = vpop.permute.xlu1 %233  ;;  %v192_v20 = vpop.permute.xlu0 %191 }
  0x8d   : > { %v237_v21 = vsel %vm235_vm4, %v232_v17, %v234_v19  ;;  %243 = vst.msk [vmem:[#allocation2 + $0x28] sm:$0xf0] %vm201_vm3, %v234_v19  ;;  %v195_v22 = vsel %vm193_vm5, %v190_v15, %v192_v20  ;;  %202 = vst.msk [vmem:[#allocation2 + $0x10] sm:$0xf0] %vm201_vm3, %v192_v20 }
  0x8e   : > { %242 = vst [vmem:[#allocation2 + $0x20] sm:$0xf0] %v237_v21  ;;  %200 = vst [vmem:[#allocation2 + $0x8] sm:$0xf0] %v195_v22  ;;  %v466_v21 = vld [vmem:[%s771_s2] sm:$0x7] }
  0x90   : > { %v209_v23 = vpop.permute.xlu1 %208  ;;  %v188_v24 = vpop.permute.xlu0 %187 }
  0x91   : > { %v215_v25 = vsel %vm214_vm2, %v209_v23, %v211_v16  ;;  %v194_v26 = vsel %vm193_vm5, %v188_v24, %v190_v15  ;;  %v346_v16 = vld [vmem:[%s770_s1] sm:$0x3] }
  0x92   : > { %220 = vst [vmem:[#allocation2 + $0x18] sm:$0xf] %v215_v25  ;;  %199 = vst [vmem:[#allocation2] sm:$0xf0] %v194_v26 }
  0x94   : > { %v252_v27 = vpop.permute.xlu1 %251  ;;  %v230_v28 = vpop.permute.xlu0 %229  ;;  %v349_v29 = vld [vmem:[#allocation2 + $0x10] sm:$0xff]  ;;  %v352_v30 = vld [vmem:[#allocation2 + $0x28] sm:$0xff] }
  0x95   : > { %v236_v31 = vsel %vm235_vm4, %v230_v28, %v232_v17  ;;  %v364_v32 = vpack.c.bf16 %v352_v30, %v349_v29  ;;  %v348_v33 = vld [vmem:[#allocation2 + $0x8] sm:$0xff]  ;;  %v351_v34 = vld [vmem:[#allocation2 + $0x20] sm:$0xff]  ;;  %v468_v17 = vlaneseq }
  0x96   : > { %241 = vst [vmem:[#allocation2 + $0x18] sm:$0xf0] %v236_v31  ;;  %v363_v35 = vpack.c.bf16 %v351_v34, %v348_v33 }
  0x97   : > { %613 = vmatpush3.bf16.msra.mxu1 %v364_v32  ;;  %v745_v18 = vshrl.u32 %v468_v17, 7 }
  0x98   : > { %v273_v36 = vpop.permute.xlu1 %272  ;;  %v254_v37 = vpop.permute.xlu0 %253  ;;  %385 = vmatprep.subr.bf16.mxu0 %v363_v35  ;;  %614 = vmatprep.subr.bf16.mxu1 %v661_v6 }
  0x99   : > { %v257_v38 = vsel %vm255_vm6, %v252_v27, %v254_v37  ;;  %263 = vst.msk [vmem:[#allocation2 + $0x40] sm:$0xf] %vm179_vm0, %v254_v37  ;;  %v347_v42 = vld [vmem:[#allocation2] sm:$0xff]  ;;  %v478_v19 = vsub.s32 2, %v745_v18  ;;  %v470_v20 = vsub.s32 0, %v745_v18  ;;  %v474_v22 = vsub.s32 1, %v745_v18 }
  0x9a   : > { %262 = vst [vmem:[#allocation2 + $0x38] sm:$0xf] %v257_v38  ;;  %vm529_vm14 = vcmp.lt.s32.totalorder %v745_v18, 2 }
  0x9b   : > { %v479_v23 = vrot.slane %v466_v21, %v478_v19  ;;  %v471_v24 = vrot.slane %v466_v21, %v470_v20  ;;  %v475_v25 = vrot.slane %v466_v21, %v474_v22 }
  0x9c   : > { %v293_v39 = vpop.permute.xlu1 %292  ;;  %v275_v40 = vpop.permute.xlu0 %274 }
  0x9d   : > { %v278_v41 = vsel %vm276_vm7, %v273_v36, %v275_v40  ;;  %284 = vst.msk [vmem:[#allocation2 + $0x40] sm:$0xf0] %vm201_vm3, %v275_v40  ;;  %v350_v43 = vld [vmem:[#allocation2 + $0x18] sm:$0xff] }
  0x9e   : > { %283 = vst [vmem:[#allocation2 + $0x38] sm:$0xf0] %v278_v41  ;;  %v362_v44 = vpack.c.bf16 %v350_v43, %v347_v42 }
  0xa0   : > { %v314_v45 = vpop.permute.xlu1 %313  ;;  %v295_v46 = vpop.permute.xlu0 %294  ;;  %386 = vmatpush1.bf16.msra.mxu0 %v362_v44 }
  0xa1   : > { %v298_v47 = vsel %vm296_vm8, %v293_v39, %v295_v46  ;;  %304 = vst.msk [vmem:[#allocation2 + $0x58] sm:$0xf] %vm179_vm0, %v295_v46 }
  0xa2   : > { %303 = vst [vmem:[#allocation2 + $0x50] sm:$0xf] %v298_v47 }
  0xa4   : > { %v250_v48 = vpop.permute.xlu1 %249  ;;  %v316_v49 = vpop.permute.xlu0 %315  ;;  %v355_v58 = vld [vmem:[#allocation2 + $0x40] sm:$0xff] }
  0xa5   : > { %v256_v50 = vsel %vm255_vm6, %v250_v48, %v252_v27  ;;  %v319_v51 = vsel %vm317_vm9, %v314_v45, %v316_v49  ;;  %325 = vst.msk [vmem:[#allocation2 + $0x58] sm:$0xf0] %vm201_vm3, %v316_v49  ;;  %v354_v62 = vld [vmem:[#allocation2 + $0x38] sm:$0xff] }
  0xa6   : > { %261 = vst [vmem:[#allocation2 + $0x30] sm:$0xf] %v256_v50  ;;  %324 = vst [vmem:[#allocation2 + $0x50] sm:$0xf0] %v319_v51 }
  0xa8   : > { %v291_v52 = vpop.permute.xlu1 %290  ;;  %v271_v53 = vpop.permute.xlu0 %270 }
  0xa9   : > { %v297_v54 = vsel %vm296_vm8, %v291_v52, %v293_v39  ;;  %v277_v55 = vsel %vm276_vm7, %v271_v53, %v273_v36 }
  0xaa   : > { %302 = vst [vmem:[#allocation2 + $0x48] sm:$0xf] %v297_v54  ;;  %282 = vst [vmem:[#allocation2 + $0x30] sm:$0xf0] %v277_v55 }
  0xac   : > { %v332_v56 = vpop.permute.xlu1 %331  ;;  %v312_v57 = vpop.permute.xlu0 %311  ;;  %v358_v59 = vld [vmem:[#allocation2 + $0x58] sm:$0xff] }
  0xad   : > { %v318_v60 = vsel %vm317_vm9, %v312_v57, %v314_v45  ;;  %v367_v61 = vpack.c.bf16 %v358_v59, %v355_v58  ;;  %v357_v63 = vld [vmem:[#allocation2 + $0x50] sm:$0xff] }
  0xae   : > { %323 = vst [vmem:[#allocation2 + $0x48] sm:$0xf0] %v318_v60  ;;  %v366_v0 = vpack.c.bf16 %v357_v63, %v354_v62 }
  0xaf   : > { %615 = vmatpush3.bf16.msra.mxu1 %v367_v61 }
  0xb0   : > { %v336_v1 = vpop.permute.xlu1 %335  ;;  %v334_v2 = vpop.permute.xlu0 %333  ;;  %387 = vmatprep.subr.bf16.mxu0 %v366_v0  ;;  %616 = vmatprep.subr.bf16.mxu1 %v661_v6 }
  0xb1   : > { %345 = vst.msk [vmem:[#allocation2 + $0x70] sm:$0xf] %vm179_vm0, %v336_v1  ;;  %v338_v3 = vsel %vm337_vm10, %v332_v56, %v334_v2  ;;  %v339_v4 = vsel %vm337_vm10, %v334_v2, %v336_v1  ;;  %v353_v5 = vld [vmem:[#allocation2 + $0x30] sm:$0xff] }
  0xb2   : > { %343 = vst [vmem:[#allocation2 + $0x60] sm:$0xf] %v338_v3  ;;  %344 = vst [vmem:[#allocation2 + $0x68] sm:$0xf] %v339_v4 }
  0xb5   : > { %v356_v7 = vld [vmem:[#allocation2 + $0x48] sm:$0xff] }
  0xb6   : > { %v365_v8 = vpack.c.bf16 %v356_v7, %v353_v5 }
  0xb8   : > { %388 = vmatpush1.bf16.msra.mxu0 %v365_v8  ;;  %v361_v9 = vld [vmem:[#allocation2 + $0x70] sm:$0xf] }
  0xb9   : > { %v360_v10 = vld [vmem:[#allocation2 + $0x68] sm:$0xf]  ;;  %v370_v11 = vpack.c.bf16 %v361_v9, %v361_v9  ;;  %v359_v12 = vld [vmem:[#allocation2 + $0x60] sm:$0xf] }
  0xba   : > { %v369_v13 = vpack.c.bf16 %v360_v10, %v360_v10  ;;  %v368_v14 = vpack.c.bf16 %v359_v12, %v359_v12 }
  0xbb   : > { %v383_v15 = vsel %vm375_vm11, %v370_v11, 0 }
  0xbc   : > { %603 = vmatprep.subr.msk.bf16.mxu0 %vm375_vm11, %v369_v13  ;;  %617 = vmatpush3.bf16.msra.mxu1 %v383_v15  ;;  %v377_v6 = vsel %vm375_vm11, %v368_v14, 0 }
  0xbd   : > { %390 = vmatpush1.bf16.msra.mxu0 %v377_v6 }
  0xbf   : > { %619 = vmatmul.mubr.msk.bf16.vlgmr.msra.gmra.mrb[0].mxu1 %vm371_vm12, %v346_v16 }
  0xc0   : > { %604 = vmatmul.mubr.msk.bf16.vlgmr.msra.gmra.mrb[0].mxu0 %vm371_vm12, %v346_v16 }
 0x192   : > { %v460_v26 = vpop.f32.mrb[0].mxu1 }
 0x193   : > { %v419_v27 = vpop.f32.mrb[0].mxu0  ;;  %v485_v28 = vmul.f32 %v479_v23, %v460_v26  ;;  %v620_v29 = vpop.f32.mrb[1].mxu1 }
 0x194   : > { %v483_v30 = vmul.f32 %v471_v24, %v419_v27  ;;  %v421_v31 = vpop.f32.mrb[1].mxu0  ;;  %v463_v32 = vpop.f32.mrb[2].mxu1 }
 0x195   : > { %v484_v33 = vmul.f32 %v475_v25, %v421_v31  ;;  %v423_v34 = vpop.f32.mrb[2].mxu0  ;;  %v621_v35 = vpop.f32.mrb[3].mxu1  ;;  %v490_v39 = vsel %vm179_vm0, %v485_v28, 0.0 }
 0x196   : > { %v424_v36 = vpop.f32.mrb[3].mxu0  ;;  %v487_v37 = vsel %vm486_vm13, %v483_v30, 0.0 }
 0x197   : > { %v488_v38 = vsel %vm486_vm13, %v484_v33, 0.0 }
 0x198   : > { %v489_v40 = vadd.f32 %v488_v38, %v487_v37 }
 0x19a   : > { %v491_v41 = vadd.f32 %v490_v39, %v489_v40 }
 0x19c   : > { %492 = vadd.xlane.f32.xlu0 %v491_v41 }
 0x229   : > { %v493_v42 = vpop.xlane.xlu0 %492 }
 0x22a   : > { %v495_v43 = vmul.f32 0.00390625, %v493_v42 }
 0x22c   : > { %v496_v44 = vsub.f32 %v419_v27, %v495_v43  ;;  %v497_v45 = vsub.f32 %v421_v31, %v495_v43  ;;  %v498_v46 = vsub.f32 %v460_v26, %v495_v43 }
 0x22e   : > { %v499_v47 = vmul.f32 %v496_v44, %v471_v24  ;;  %v500_v48 = vmul.f32 %v497_v45, %v475_v25  ;;  %v501_v49 = vmul.f32 %v498_v46, %v479_v23 }
 0x230   : > { %v502_v50 = vmul.f32 %v499_v47, %v499_v47  ;;  %v503_v51 = vmul.f32 %v500_v48, %v500_v48  ;;  %v504_v52 = vmul.f32 %v501_v49, %v501_v49 }
 0x232   : > { %v505_v53 = vsel %vm486_vm13, %v502_v50, 0.0  ;;  %v506_v54 = vsel %vm486_vm13, %v503_v51, 0.0  ;;  %v508_v56 = vsel %vm179_vm0, %v504_v52, 0.0 }
 0x233   : > { %v507_v55 = vadd.f32 %v506_v54, %v505_v53 }
 0x235   : > { %v509_v57 = vadd.f32 %v508_v56, %v507_v55 }
 0x237   : > { %510 = vadd.xlane.f32.xlu1 %v509_v57 }
 0x2c4   : > { %v511_v58 = vpop.xlane.xlu1 %510 }
 0x2c5   : > { %v512_v59 = vmul.f32 0.00390625, %v511_v58 }
 0x2c7   : > { %v513_v60 = vadd.f32 1e-05, %v512_v59 }
 0x2c9   : > { %648 = vrsqrt.f32 %v513_v60 }
 0x2d3   : > { %v649_v61 = vpop.eup %648 }
 0x2d4   : > { %v515_v62 = vmul.f32 %v649_v61, %v496_v44  ;;  %v516_v63 = vmul.f32 %v649_v61, %v497_v45  ;;  %v517_v0 = vmul.f32 %v649_v61, %v498_v46 }
 0x2d6   : > { %vm518_vm15 = vcmp.ge.f32.partialorder %v515_v62, 0.0  ;;  %vm519_vm1 = vcmp.ge.f32.partialorder %v516_v63, 0.0  ;;  %vm520_vm2 = vcmp.ge.f32.partialorder %v517_v0, 0.0  ;;  %v521_v1 = vmul.f32 0.2, %v515_v62 }
 0x2d7   : > { %v522_v2 = vmul.f32 0.2, %v516_v63  ;;  %v523_v3 = vmul.f32 0.2, %v517_v0 }
 0x2d8   : > { %v524_v4 = vsel %vm518_vm15, %v515_v62, %v521_v1 }
 0x2d9   : > { %v525_v5 = vsel %vm519_vm1, %v516_v63, %v522_v2  ;;  %v526_v7 = vsel %vm520_vm2, %v517_v0, %v523_v3  ;;  %v532_v8 = vsel %vm529_vm14, %v524_v4, %v419_v27 }
 0x2da   : > { %v533_v9 = vsel %vm529_vm14, %v525_v5, %v421_v31  ;;  %v534_v10 = vsel %vm529_vm14, %v526_v7, %v460_v26 }
 0x2db   : > { %v537_v11 = vcombine.low %v532_v8, %v533_v9  ;;  %540 = vst.msk [vmem:[%s170_s5 + $0x8] sm:$0xf] %vm179_vm0, %v534_v10 }
 0x2dd   : > { %539 = vst [vmem:[%s170_s5] sm:$0xff] %v537_v11 }
 0x2de PF: > { %s13_s12 = sadd.s32 1, %s656_s12  }
 0x2df   : > { %p10_p4 = scmp.ge.s32.totalorder %s13_s12, 4  }
 0x2e1   :  { %12 = sbr.rel (!%p10_p4) target bundleno = 1 (0x1), region = 62 }

// kernel: unet_forward.27
= control target key start
LH: loop header
LB: loop body
LE: loop exit
PB: predicated region body
PF: predicated region fallthrough
CT: control target
= control target key end

     0   :  { %s639_s12 = smov 0   ;;  %s684_s0 = inlined_call_operand.vmem [shape: f32[2,8,326], index: 0, kind: input, shape index: {}]   ;;  %s685_s1 = inlined_call_operand.vmem [shape: bf16[4,72], index: 1, kind: input, shape index: {}]   ;;  %s686_s2 = inlined_call_operand.vmem [shape: f32[1,288], index: 2, kind: input, shape index: {}]   ;;  %s687_s3 = inlined_call_operand.vmem [shape: f32[2,4,288], index: 3, kind: output, shape index: {}]  }
   0x1 LB: > { %s547_s13 = sadd.s32 4294967295, %s606_s12   ;;  %p551_p0 = scmp.ge.s32.totalorder %s606_s12, 1  ;;  %s606_s12 = sphi %s639_s12, %s13_s12  }
   0x2   : > { %p137_p1 = scmp.lt.s32.totalorder %s606_s12, 3 }
   0x4   : > { %p138_p2 = pnand %p551_p0, %p137_p1 }
   0x5   : > { %p161_p3 = scmp.lt.s32.totalorder (!%p138_p2), %s547_s13, 1  ;;  %vm177_vm0 = vcmask (!%p138_p2), 261120   ;;  %s608_s17 = smov (!%p138_p2), 127   ;;  %v609_v3 = vmov (!%p138_p2), 0.0   ;;  %v617_v4 = vmov (!%p138_p2), 0   ;;  %vm618_vm1 = vmmov (!%p138_p2), 0  }
   0x6   : > { %141 = sbr.rel (%p138_p2) target bundleno = 406 (0x196), region = 32  ;;  %565 = vmatprep.subr.bf16.mxu1 (!%p138_p2), %v609_v3  ;;  %s610_s18 = smov (!%p138_p2), 126   ;;  %436 = vmatprep.mubr.bf16.mxu0 (!%p138_p2), %v617_v4  ;;  %vm191_vm2 = vcmask (!%p138_p2), 1039360   ;;  %vm212_vm3 = vcmask (!%p138_p2), 1031168   ;;  %vm233_vm4 = vcmask (!%p138_p2), 900096   ;;  %vm254_vm5 = vcmask (!%p138_p2), 891904  }
   0x7   : > { %s611_s19 = smov (!%p138_p2), 110   ;;  %s612_s20 = smov (!%p138_p2), 109   ;;  %575 = vmatprep.mubr.msk.bf16.mxu1 (!%p138_p2), %vm618_vm1, %v609_v3  ;;  %vm275_vm6 = vcmask (!%p138_p2), 883712   ;;  %vm296_vm7 = vcmask (!%p138_p2), 752640   ;;  %vm317_vm8 = vcmask (!%p138_p2), 744448   ;;  %vm338_vm9 = vcmask (!%p138_p2), 736256  }
   0x8   : > { %s613_s21 = smov (!%p138_p2), 108   ;;  %s614_s22 = smov (!%p138_p2), 92   ;;  %vm394_vm10 = vcmask (!%p138_p2), 1043456   ;;  %vm390_vm11 = vcmask (!%p138_p2), 588800   ;;  %vm490_vm12 = vcmask (!%p138_p2), 257024  }
   0x9   : > { %s615_s23 = smov (!%p138_p2), 91   ;;  %s616_s24 = smov (!%p138_p2), 90  }
   0xd   : > { %s689_s13 = smov (!%p161_p3, %s547_s13), 1 }
   0xe   : > { %s579_s2 = smul.u32 24, %s689_s13 }
   0xf   : > { %s580_s27 = smul.u32 12, %s689_s13 }
  0x10   : > { %s165_s16 = scalar_lea.vmem %s684_s0, %s579_s2 }
  0x11   : > { %v180_v0 = vld [vmem:[%s165_s16 + $0x8] sm:$0xff]  ;;  %v179_v1 = vld [vmem:[%s165_s16] sm:$0xff]  ;;  %v181_v2 = vld [vmem:[%s165_s16 + $0x10] sm:$0xff]  ;;  %s170_s30 = scalar_lea.vmem %s687_s3, %s580_s27 }
  0x12   : > { %187 = vrot.lane.b32.xlu0 %v180_v0, %s608_s17  ;;  %185 = vrot.lane.b32.xlu1 %v179_v1, %s608_s17  ;;  %178 = vst.msk [vmem:[#allocation2 + $0x10] sm:$0xff] %vm177_vm0, %v181_v2 }
  0x16   : > { %189 = vrot.lane.b32.xlu0 %v181_v2, %s608_s17  ;;  %208 = vrot.lane.b32.xlu1 %v180_v0, %s610_s18 }
  0x19   : > { %v350_v16 = vld [vmem:[#allocation2 + $0x10] sm:$0xff] }
  0x1a   : > { %210 = vrot.lane.b32.xlu0 %v181_v2, %s610_s18  ;;  %229 = vrot.lane.b32.xlu1 %v180_v0, %s611_s19 }
  0x1e   : > { %231 = vrot.lane.b32.xlu0 %v181_v2, %s611_s19  ;;  %206 = vrot.lane.b32.xlu1 %v179_v1, %s610_s18 }
  0x22   : > { %227 = vrot.lane.b32.xlu0 %v179_v1, %s611_s19  ;;  %250 = vrot.lane.b32.xlu1 %v180_v0, %s612_s20 }
  0x26   : > { %252 = vrot.lane.b32.xlu0 %v181_v2, %s612_s20  ;;  %271 = vrot.lane.b32.xlu1 %v180_v0, %s613_s21 }
  0x2a   : > { %273 = vrot.lane.b32.xlu0 %v181_v2, %s613_s21  ;;  %248 = vrot.lane.b32.xlu1 %v179_v1, %s612_s20 }
  0x2e   : > { %269 = vrot.lane.b32.xlu0 %v179_v1, %s613_s21  ;;  %292 = vrot.lane.b32.xlu1 %v180_v0, %s614_s22 }
  0x32   : > { %294 = vrot.lane.b32.xlu0 %v181_v2, %s614_s22  ;;  %313 = vrot.lane.b32.xlu1 %v180_v0, %s615_s23 }
  0x36   : > { %315 = vrot.lane.b32.xlu0 %v181_v2, %s615_s23  ;;  %290 = vrot.lane.b32.xlu1 %v179_v1, %s614_s22 }
  0x3a   : > { %311 = vrot.lane.b32.xlu0 %v179_v1, %s615_s23  ;;  %332 = vrot.lane.b32.xlu1 %v179_v1, %s616_s24 }
  0x3e   : > { %334 = vrot.lane.b32.xlu0 %v180_v0, %s616_s24  ;;  %336 = vrot.lane.b32.xlu1 %v181_v2, %s616_s24 }
  0x84   : > { %v188_v5 = vpop.permute.xlu0 %187  ;;  %v186_v6 = vpop.permute.xlu1 %185 }
  0x85   : > { %v192_v7 = vsel %vm191_vm2, %v186_v6, %v188_v5 }
  0x86   : > { %v375_v12 = vpack.c.bf16 %v192_v7, %v179_v1 }
  0x88   : > { %v190_v8 = vpop.permute.xlu0 %189  ;;  %v209_v9 = vpop.permute.xlu1 %208 }
  0x89   : > { %v193_v10 = vsel %vm191_vm2, %v188_v5, %v190_v8  ;;  %199 = vst.msk [vmem:[#allocation2 + $0x28] sm:$0xff] %vm177_vm0, %v190_v8  ;;  %v347_v5 = vld [vmem:[%s685_s1] sm:$0x3] }
  0x8a   : > { %v376_v11 = vpack.c.bf16 %v193_v10, %v180_v0 }
  0x8c   : > { %v211_v13 = vpop.permute.xlu0 %210  ;;  %v230_v14 = vpop.permute.xlu1 %229  ;;  %404 = vmatprep.subr.bf16.mxu0 %v376_v11 }
  0x8d   : > { %v214_v15 = vsel %vm212_vm3, %v209_v9, %v211_v13  ;;  %220 = vst.msk [vmem:[#allocation2 + $0x40] sm:$0xff] %vm177_vm0, %v211_v13  ;;  %405 = vmatpush1.bf16.msra.mxu0 %v375_v12 }
  0x90   : > { %v232_v17 = vpop.permute.xlu0 %231  ;;  %v207_v18 = vpop.permute.xlu1 %206  ;;  %v353_v19 = vld [vmem:[#allocation2 + $0x28] sm:$0xff] }
  0x91   : > { %v235_v20 = vsel %vm233_vm4, %v230_v14, %v232_v17  ;;  %241 = vst.msk [vmem:[#allocation2 + $0x58] sm:$0xff] %vm177_vm0, %v232_v17  ;;  %v213_v21 = vsel %vm212_vm3, %v207_v18, %v209_v9  ;;  %v377_v22 = vpack.c.bf16 %v353_v19, %v350_v16 }
  0x92   : > { %v379_v23 = vpack.c.bf16 %v235_v20, %v214_v15 }
  0x93   : > { %566 = vmatpush3.bf16.msra.mxu1 %v377_v22 }
  0x94   : > { %v228_v24 = vpop.permute.xlu0 %227  ;;  %v251_v25 = vpop.permute.xlu1 %250  ;;  %567 = vmatprep.subr.bf16.mxu1 %v609_v3  ;;  %406 = vmatprep.subr.bf16.mxu0 %v379_v23  ;;  %v356_v27 = vld [vmem:[#allocation2 + $0x40] sm:$0xff] }
  0x95   : > { %v234_v26 = vsel %vm233_vm4, %v228_v24, %v230_v14 }
  0x96   : > { %v378_v28 = vpack.c.bf16 %v234_v26, %v213_v21 }
  0x98   : > { %v253_v29 = vpop.permute.xlu0 %252  ;;  %v272_v30 = vpop.permute.xlu1 %271  ;;  %v359_v31 = vld [vmem:[#allocation2 + $0x58] sm:$0xff]  ;;  %407 = vmatpush1.bf16.msra.mxu0 %v378_v28 }
  0x99   : > { %v256_v32 = vsel %vm254_vm5, %v251_v25, %v253_v29  ;;  %262 = vst.msk [vmem:[#allocation2 + $0x70] sm:$0xff] %vm177_vm0, %v253_v29  ;;  %v380_v33 = vpack.c.bf16 %v359_v31, %v356_v27 }
  0x9b   : > { %568 = vmatpush3.bf16.msra.mxu1 %v380_v33 }
  0x9c   : > { %v274_v34 = vpop.permute.xlu0 %273  ;;  %v249_v35 = vpop.permute.xlu1 %248  ;;  %569 = vmatprep.subr.bf16.mxu1 %v609_v3 }
  0x9d   : > { %v277_v36 = vsel %vm275_vm6, %v272_v30, %v274_v34  ;;  %283 = vst.msk [vmem:[#allocation2 + $0x88] sm:$0xff] %vm177_vm0, %v274_v34  ;;  %v255_v37 = vsel %vm254_vm5, %v249_v35, %v251_v25 }
  0x9e   : > { %v382_v38 = vpack.c.bf16 %v277_v36, %v256_v32 }
  0xa0   : > { %v270_v39 = vpop.permute.xlu0 %269  ;;  %v293_v40 = vpop.permute.xlu1 %292  ;;  %408 = vmatprep.subr.bf16.mxu0 %v382_v38  ;;  %v362_v42 = vld [vmem:[#allocation2 + $0x70] sm:$0xff] }
  0xa1   : > { %v276_v41 = vsel %vm275_vm6, %v270_v39, %v272_v30 }
  0xa2   : > { %v381_v43 = vpack.c.bf16 %v276_v41, %v255_v37 }
  0xa4   : > { %v295_v44 = vpop.permute.xlu0 %294  ;;  %v314_v45 = vpop.permute.xlu1 %313  ;;  %v365_v46 = vld [vmem:[#allocation2 + $0x88] sm:$0xff]  ;;  %409 = vmatpush1.bf16.msra.mxu0 %v381_v43 }
  0xa5   : > { %v298_v47 = vsel %vm296_vm7, %v293_v40, %v295_v44  ;;  %304 = vst.msk [vmem:[#allocation2 + $0xa0] sm:$0xff] %vm177_vm0, %v295_v44  ;;  %v383_v48 = vpack.c.bf16 %v365_v46, %v362_v42 }
  0xa7   : > { %570 = vmatpush3.bf16.msra.mxu1 %v383_v48 }
  0xa8   : > { %v316_v49 = vpop.permute.xlu0 %315  ;;  %v291_v50 = vpop.permute.xlu1 %290  ;;  %571 = vmatprep.subr.bf16.mxu1 %v609_v3 }
  0xa9   : > { %v319_v51 = vsel %vm317_vm8, %v314_v45, %v316_v49  ;;  %325 = vst.msk [vmem:[#allocation2 + $0xb8] sm:$0xff] %vm177_vm0, %v316_v49  ;;  %v297_v52 = vsel %vm296_vm7, %v291_v50, %v293_v40 }
  0xaa   : > { %v385_v53 = vpack.c.bf16 %v319_v51, %v298_v47 }
  0xac   : > { %v312_v54 = vpop.permute.xlu0 %311  ;;  %v333_v55 = vpop.permute.xlu1 %332  ;;  %410 = vmatprep.subr.bf16.mxu0 %v385_v53  ;;  %v368_v57 = vld [vmem:[#allocation2 + $0xa0] sm:$0xff] }
  0xad   : > { %v318_v56 = vsel %vm317_vm8, %v312_v54, %v314_v45 }
  0xae   : > { %v384_v58 = vpack.c.bf16 %v318_v56, %v297_v52 }
  0xb0   : > { %v335_v59 = vpop.permute.xlu0 %334  ;;  %v337_v60 = vpop.permute.xlu1 %336  ;;  %v371_v61 = vld [vmem:[#allocation2 + $0xb8] sm:$0xff]  ;;  %411 = vmatpush1.bf16.msra.mxu0 %v384_v58 }
  0xb1   : > { %v339_v62 = vsel %vm338_vm9, %v333_v55, %v335_v59  ;;  %v340_v63 = vsel %vm338_vm9, %v335_v59, %v337_v60  ;;  %346 = vst.msk [vmem:[#allocation2 + $0xd0] sm:$0xff] %vm177_vm0, %v337_v60  ;;  %v386_v0 = vpack.c.bf16 %v371_v61, %v368_v57 }
  0xb2   : > { %v388_v1 = vpack.c.bf16 %v340_v63, %v340_v63  ;;  %v387_v2 = vpack.c.bf16 %v339_v62, %v339_v62 }
  0xb3   : > { %572 = vmatpush3.bf16.msra.mxu1 %v386_v0 }
  0xb4   : > { %573 = vmatprep.subr.bf16.mxu1 %v609_v3  ;;  %554 = vmatprep.subr.msk.bf16.mxu0 %vm394_vm10, %v388_v1  ;;  %v396_v4 = vsel %vm394_vm10, %v387_v2, 0 }
  0xb5   : > { %413 = vmatpush1.bf16.msra.mxu0 %v396_v4 }
  0xb8   : > { %v374_v6 = vld [vmem:[#allocation2 + $0xd0] sm:$0xff]  ;;  %555 = vmatmul.mubr.msk.bf16.vlgmr.msra.gmra.mrb[0].mxu0 %vm390_vm11, %v347_v5 }
  0xb9   : > { %v389_v7 = vpack.c.bf16 %v374_v6, %v374_v6 }
  0xbb   : > { %v402_v8 = vsel %vm394_vm10, %v389_v7, 0 }
  0xbc   : > { %574 = vmatpush3.bf16.msra.mxu1 %v402_v8 }
  0xbf   : > { %576 = vmatmul.mubr.msk.bf16.vlgmr.msra.gmra.mrb[0].mxu1 %vm390_vm11, %v347_v5 }
 0x18b   : > { %v438_v9 = vpop.f32.mrb[0].mxu0 }
 0x18c   : > { %v440_v3 = vpop.f32.mrb[1].mxu0 }
 0x18d   : > { %v487_v10 = vcombine.low %v438_v9, %v440_v3  ;;  %v442_v11 = vpop.f32.mrb[2].mxu0 }
 0x18e   : > { %v443_v12 = vpop.f32.mrb[3].mxu0 }
 0x18f   : > { %489 = vst [vmem:[%s170_s30] sm:$0xff] %v487_v10 }
 0x192   : > { %v479_v13 = vpop.f32.mrb[0].mxu1 }
 0x193   : > { %491 = vst.msk [vmem:[%s170_s30 + $0x8] sm:$0xf] %vm490_vm12, %v479_v13  ;;  %v577_v14 = vpop.f32.mrb[1].mxu1 }
 0x194   : > { %v482_v15 = vpop.f32.mrb[2].mxu1 }
 0x195   : > { %v578_v16 = vpop.f32.mrb[3].mxu1 }
 0x196 PF: > { %s13_s12 = sadd.s32 1, %s606_s12  }
 0x197   : > { %p10_p4 = scmp.ge.s32.totalorder %s13_s12, 4  }
 0x199   :  { %12 = sbr.rel (!%p10_p4) target bundleno = 1 (0x1), region = 62 }

// kernel: unet_forward.28
= control target key start
LH: loop header
LB: loop body
LE: loop exit
PB: predicated region body
PF: predicated region fallthrough
CT: control target
= control target key end

     0   :  { %vm33_vm0 = vcmask 130048   ;;  %vm1268_vm1 = vmmov 0   ;;  %s1695_s0 = inlined_call_operand.vmem [shape: f32[8,16,16], index: 0, kind: input, shape index: {}]   ;;  %s1696_s1 = inlined_call_operand.vmem [shape: bf16[16,8], index: 1, kind: input, shape index: {}]   ;;  %s1697_s3 = inlined_call_operand.vmem [shape: f32[8,16,16], index: 3, kind: output, shape index: {0}]   ;;  %s1698_s2 = inlined_call_operand.vmem [shape: bf16[8,16], index: 2, kind: input, shape index: {}]   ;;  %s1699_s4 = inlined_call_operand.vmem [shape: f32[8,8,8], index: 4, kind: output, shape index: {1}]  }
   0x1   :  { %v1297_v0 = vld [vmem:[%s1695_s0 + $0x10] sm:$0xff]  ;;  %v1302_v1 = vld [vmem:[%s1695_s0] sm:$0xff]  ;;  %v1307_v2 = vld [vmem:[%s1695_s0 + $0x18] sm:$0xff] }
   0x2   :  { %v40_v3 = vsel %vm33_vm0, %v1297_v0, 0.0  ;;  %v34_v4 = vsel %vm33_vm0, %v1302_v1, 0.0  ;;  %v1316_v5 = vld [vmem:[%s1695_s0 + $0x8] sm:$0xff]  ;;  %v43_v6 = vsel %vm33_vm0, %v1307_v2, 0.0  ;;  %v1330_v9 = vld [vmem:[%s1695_s0 + $0x20] sm:$0xff]  ;;  %v1339_v12 = vld [vmem:[%s1695_s0 + $0x38] sm:$0xff] }
   0x3   :  { %41 = vadd.xlane.f32.xlu1 %v40_v3  ;;  %35 = vadd.xlane.f32.xlu0 %v34_v4  ;;  %v37_v7 = vsel %vm33_vm0, %v1316_v5, 0.0  ;;  %v1325_v8 = vld [vmem:[%s1695_s0 + $0x28] sm:$0xff]  ;;  %v46_v11 = vsel %vm33_vm0, %v1330_v9, 0.0  ;;  %v1344_v13 = vld [vmem:[%s1695_s0 + $0x30] sm:$0xff]  ;;  %v55_v14 = vsel %vm33_vm0, %v1339_v12, 0.0  ;;  %v1358_v17 = vld [vmem:[%s1695_s0 + $0x40] sm:$0xff] }
   0x4   :  { %v49_v10 = vsel %vm33_vm0, %v1325_v8, 0.0  ;;  %v52_v15 = vsel %vm33_vm0, %v1344_v13, 0.0  ;;  %v1353_v16 = vld [vmem:[%s1695_s0 + $0x48] sm:$0xff]  ;;  %v58_v19 = vsel %vm33_vm0, %v1358_v17, 0.0  ;;  %v1367_v20 = vld [vmem:[%s1695_s0 + $0x58] sm:$0xff]  ;;  %v1372_v21 = vld [vmem:[%s1695_s0 + $0x50] sm:$0xff] }
   0x5   :  { %v61_v18 = vsel %vm33_vm0, %v1353_v16, 0.0  ;;  %v67_v22 = vsel %vm33_vm0, %v1367_v20, 0.0  ;;  %v64_v23 = vsel %vm33_vm0, %v1372_v21, 0.0  ;;  %v1381_v24 = vld [vmem:[%s1695_s0 + $0x68] sm:$0xff]  ;;  %v1386_v25 = vld [vmem:[%s1695_s0 + $0x60] sm:$0xff]  ;;  %v1395_v28 = vld [vmem:[%s1695_s0 + $0x78] sm:$0xff] }
   0x6   :  { %v73_v26 = vsel %vm33_vm0, %v1381_v24, 0.0  ;;  %v70_v27 = vsel %vm33_vm0, %v1386_v25, 0.0  ;;  %v1400_v29 = vld [vmem:[%s1695_s0 + $0x70] sm:$0xff]  ;;  %v79_v30 = vsel %vm33_vm0, %v1395_v28, 0.0 }
   0x7   :  { %44 = vadd.xlane.f32.xlu1 %v43_v6  ;;  %38 = vadd.xlane.f32.xlu0 %v37_v7  ;;  %v76_v31 = vsel %vm33_vm0, %v1400_v29, 0.0 }
   0xb   :  { %50 = vadd.xlane.f32.xlu1 %v49_v10  ;;  %47 = vadd.xlane.f32.xlu0 %v46_v11 }
   0xf   :  { %56 = vadd.xlane.f32.xlu1 %v55_v14  ;;  %53 = vadd.xlane.f32.xlu0 %v52_v15 }
  0x13   :  { %62 = vadd.xlane.f32.xlu1 %v61_v18  ;;  %59 = vadd.xlane.f32.xlu0 %v58_v19 }
  0x17   :  { %68 = vadd.xlane.f32.xlu1 %v67_v22  ;;  %65 = vadd.xlane.f32.xlu0 %v64_v23 }
  0x1b   :  { %74 = vadd.xlane.f32.xlu1 %v73_v26  ;;  %71 = vadd.xlane.f32.xlu0 %v70_v27 }
  0x1f   :  { %80 = vadd.xlane.f32.xlu1 %v79_v30  ;;  %77 = vadd.xlane.f32.xlu0 %v76_v31 }
  0x90   :  { %v42_v32 = vpop.xlane.xlu1 %41  ;;  %v36_v33 = vpop.xlane.xlu0 %35 }
  0x94   :  { %v45_v34 = vpop.xlane.xlu1 %44  ;;  %v39_v35 = vpop.xlane.xlu0 %38 }
  0x95   :  { %v89_v36 = vadd.f32 %v45_v34, %v42_v32  ;;  %v82_v37 = vadd.f32 %v39_v35, %v36_v33 }
  0x97   :  { %v90_v38 = vrot.slane %v89_v36, 4  ;;  %v83_v39 = vrot.slane %v82_v37, 4 }
  0x98   :  { %v51_v40 = vpop.xlane.xlu1 %50  ;;  %v48_v41 = vpop.xlane.xlu0 %47 }
  0x99   :  { %v91_v42 = vadd.f32 %v90_v38, %v89_v36  ;;  %v84_v43 = vadd.f32 %v83_v39, %v82_v37  ;;  %v96_v44 = vadd.f32 %v51_v40, %v48_v41 }
  0x9b   :  { %v92_v45 = vrot.slane %v91_v42, 2  ;;  %v85_v46 = vrot.slane %v84_v43, 2  ;;  %v97_v47 = vrot.slane %v96_v44, 4 }
  0x9c   :  { %v57_v48 = vpop.xlane.xlu1 %56  ;;  %v54_v49 = vpop.xlane.xlu0 %53 }
  0x9d   :  { %v93_v50 = vadd.f32 %v92_v45, %v91_v42  ;;  %v86_v51 = vadd.f32 %v85_v46, %v84_v43  ;;  %v98_v52 = vadd.f32 %v97_v47, %v96_v44  ;;  %v103_v53 = vadd.f32 %v57_v48, %v54_v49 }
  0x9f   :  { %v94_v54 = vrot.slane %v93_v50, 1  ;;  %v87_v55 = vrot.slane %v86_v51, 1  ;;  %v99_v56 = vrot.slane %v98_v52, 2  ;;  %v104_v57 = vrot.slane %v103_v53, 4 }
  0xa0   :  { %v63_v58 = vpop.xlane.xlu1 %62  ;;  %v60_v59 = vpop.xlane.xlu0 %59 }
  0xa1   :  { %v95_v60 = vadd.f32 %v94_v54, %v93_v50  ;;  %v88_v61 = vadd.f32 %v87_v55, %v86_v51  ;;  %v100_v62 = vadd.f32 %v99_v56, %v98_v52  ;;  %v105_v63 = vadd.f32 %v104_v57, %v103_v53 }
  0xa2   :  { %v110_v3 = vadd.f32 %v63_v58, %v60_v59 }
  0xa3   :  { %v101_v4 = vrot.slane %v100_v62, 1  ;;  %v106_v6 = vrot.slane %v105_v63, 2  ;;  %v138_v7 = vmul.f32 0.00390625, %v88_v61  ;;  %v139_v10 = vmul.f32 0.00390625, %v95_v60 }
  0xa4   :  { %v111_v11 = vrot.slane %v110_v3, 4  ;;  %v69_v14 = vpop.xlane.xlu1 %68  ;;  %v66_v15 = vpop.xlane.xlu0 %65 }
  0xa5   :  { %v102_v18 = vadd.f32 %v101_v4, %v100_v62  ;;  %v107_v19 = vadd.f32 %v106_v6, %v105_v63  ;;  %v117_v22 = vadd.f32 %v69_v14, %v66_v15  ;;  %v1407_v23 = vsub.f32 %v1316_v5, %v138_v7 }
  0xa6   :  { %v112_v26 = vadd.f32 %v111_v11, %v110_v3  ;;  %v1410_v27 = vsub.f32 %v1302_v1, %v138_v7  ;;  %v1413_v30 = vsub.f32 %v1307_v2, %v139_v10  ;;  %v1416_v31 = vsub.f32 %v1297_v0, %v139_v10 }
  0xa7   :  { %v108_v32 = vrot.slane %v107_v19, 1  ;;  %v118_v33 = vrot.slane %v117_v22, 4  ;;  %v163_v34 = vmul.f32 %v1407_v23, %v1407_v23  ;;  %v140_v35 = vmul.f32 0.00390625, %v102_v18 }
  0xa8   :  { %v113_v36 = vrot.slane %v112_v26, 2  ;;  %v75_v37 = vpop.xlane.xlu1 %74  ;;  %v72_v5 = vpop.xlane.xlu0 %71  ;;  %v162_v38 = vmul.f32 %v1410_v27, %v1410_v27  ;;  %v165_v1 = vmul.f32 %v1413_v30, %v1413_v30  ;;  %v164_v2 = vmul.f32 %v1416_v31, %v1416_v31 }
  0xa9   :  { %v109_v0 = vadd.f32 %v108_v32, %v107_v19  ;;  %v119_v39 = vadd.f32 %v118_v33, %v117_v22  ;;  %v124_v40 = vadd.f32 %v75_v37, %v72_v5  ;;  %v181_v41 = vsel %vm33_vm0, %v163_v34, 0.0 }
  0xaa   :  { %v114_v42 = vadd.f32 %v113_v36, %v112_v26  ;;  %182 = vadd.xlane.f32.xlu1 %v181_v41  ;;  %v178_v43 = vsel %vm33_vm0, %v162_v38, 0.0  ;;  %v1429_v46 = vsub.f32 %v1325_v8, %v140_v35  ;;  %v1432_v47 = vsub.f32 %v1330_v9, %v140_v35 }
  0xab   :  { %v120_v44 = vrot.slane %v119_v39, 2  ;;  %v125_v45 = vrot.slane %v124_v40, 4  ;;  %179 = vadd.xlane.f32.xlu0 %v178_v43  ;;  %v187_v51 = vsel %vm33_vm0, %v165_v1, 0.0  ;;  %v184_v52 = vsel %vm33_vm0, %v164_v2, 0.0 }
  0xac   :  { %v115_v48 = vrot.slane %v114_v42, 1  ;;  %v81_v49 = vpop.xlane.xlu1 %80  ;;  %v78_v50 = vpop.xlane.xlu0 %77  ;;  %v141_v53 = vmul.f32 0.00390625, %v109_v0  ;;  %v167_v57 = vmul.f32 %v1429_v46, %v1429_v46  ;;  %v166_v8 = vmul.f32 %v1432_v47, %v1432_v47 }
  0xad   :  { %v121_v54 = vadd.f32 %v120_v44, %v119_v39  ;;  %v126_v55 = vadd.f32 %v125_v45, %v124_v40  ;;  %v131_v56 = vadd.f32 %v81_v49, %v78_v50 }
  0xae   :  { %v116_v58 = vadd.f32 %v115_v48, %v114_v42  ;;  %188 = vadd.xlane.f32.xlu1 %v187_v51  ;;  %v1441_v9 = vsub.f32 %v1339_v12, %v141_v53  ;;  %v1444_v59 = vsub.f32 %v1344_v13, %v141_v53  ;;  %v193_v10 = vsel %vm33_vm0, %v167_v57, 0.0 }
  0xaf   :  { %v122_v60 = vrot.slane %v121_v54, 1  ;;  %v127_v61 = vrot.slane %v126_v55, 2  ;;  %v132_v62 = vrot.slane %v131_v56, 4  ;;  %185 = vadd.xlane.f32.xlu0 %v184_v52  ;;  %v190_v12 = vsel %vm33_vm0, %v166_v8, 0.0 }
  0xb0   :  { %v169_v63 = vmul.f32 %v1441_v9, %v1441_v9  ;;  %v142_v3 = vmul.f32 0.00390625, %v116_v58  ;;  %v168_v13 = vmul.f32 %v1444_v59, %v1444_v59  ;;  %v1267_v51 = vmov 0.0  }
  0xb1   :  { %v123_v4 = vadd.f32 %v122_v60, %v121_v54  ;;  %v128_v6 = vadd.f32 %v127_v61, %v126_v55  ;;  %v133_v7 = vadd.f32 %v132_v62, %v131_v56  ;;  %1152 = vmatprep.subr.bf16.mxu0 %v1267_v51  ;;  %1158 = vmatprep.subr.bf16.mxu1 %v1267_v51 }
  0xb2   :  { %194 = vadd.xlane.f32.xlu1 %v193_v10  ;;  %v1453_v11 = vsub.f32 %v1353_v16, %v142_v3  ;;  %v1456_v14 = vsub.f32 %v1358_v17, %v142_v3  ;;  %v199_v22 = vsel %vm33_vm0, %v169_v63, 0.0  ;;  %v196_v16 = vsel %vm33_vm0, %v168_v13, 0.0  ;;  %1154 = vmatprep.mubr.msk.bf16.mxu0 %vm1268_vm1, %v1267_v51 }
  0xb3   :  { %v129_v15 = vrot.slane %v128_v6, 1  ;;  %v134_v18 = vrot.slane %v133_v7, 2  ;;  %191 = vadd.xlane.f32.xlu0 %v190_v12  ;;  %v143_v19 = vmul.f32 0.00390625, %v123_v4  ;;  %1160 = vmatprep.mubr.msk.bf16.mxu1 %vm1268_vm1, %v1267_v51 }
  0xb4   :  { %v171_v33 = vmul.f32 %v1453_v11, %v1453_v11  ;;  %v170_v17 = vmul.f32 %v1456_v14, %v1456_v14 }
  0xb5   :  { %v130_v26 = vadd.f32 %v129_v15, %v128_v6  ;;  %v135_v32 = vadd.f32 %v134_v18, %v133_v7  ;;  %v1462_v34 = vsub.f32 %v1367_v20, %v143_v19  ;;  %v1468_v35 = vsub.f32 %v1372_v21, %v143_v19 }
  0xb6   :  { %200 = vadd.xlane.f32.xlu1 %v199_v22  ;;  %v205_v38 = vsel %vm33_vm0, %v171_v33, 0.0  ;;  %v202_v2 = vsel %vm33_vm0, %v170_v17, 0.0 }
  0xb7   :  { %v136_v36 = vrot.slane %v135_v32, 1  ;;  %197 = vadd.xlane.f32.xlu0 %v196_v16  ;;  %v144_v37 = vmul.f32 0.00390625, %v130_v26  ;;  %v173_v1 = vmul.f32 %v1462_v34, %v1462_v34  ;;  %v172_v0 = vmul.f32 %v1468_v35, %v1468_v35 }
  0xb9   :  { %v137_v5 = vadd.f32 %v136_v36, %v135_v32  ;;  %v1474_v20 = vsub.f32 %v1381_v24, %v144_v37  ;;  %v1480_v21 = vsub.f32 %v1386_v25, %v144_v37  ;;  %v211_v40 = vsel %vm33_vm0, %v173_v1, 0.0 }
  0xba   :  { %206 = vadd.xlane.f32.xlu1 %v205_v38  ;;  %v208_v24 = vsel %vm33_vm0, %v172_v0, 0.0 }
  0xbb   :  { %203 = vadd.xlane.f32.xlu0 %v202_v2  ;;  %v145_v39 = vmul.f32 0.00390625, %v137_v5  ;;  %v175_v41 = vmul.f32 %v1474_v20, %v1474_v20  ;;  %v174_v43 = vmul.f32 %v1480_v21, %v1480_v21 }
  0xbd   :  { %v1486_v42 = vsub.f32 %v1395_v28, %v145_v39  ;;  %v1492_v44 = vsub.f32 %v1400_v29, %v145_v39  ;;  %v217_v25 = vsel %vm33_vm0, %v175_v41, 0.0  ;;  %v214_v48 = vsel %vm33_vm0, %v174_v43, 0.0  ;;  %v1505_v29 = vld [vmem:[%s1696_s1] sm:$0xff]  }
  0xbe   :  { %212 = vadd.xlane.f32.xlu1 %v211_v40  ;;  %1153 = vmatpush3.bf16.msra.mxu0 %v1505_v29 }
  0xbf   :  { %209 = vadd.xlane.f32.xlu0 %v208_v24  ;;  %v177_v45 = vmul.f32 %v1486_v42, %v1486_v42  ;;  %v176_v28 = vmul.f32 %v1492_v44, %v1492_v44  ;;  %1159 = vmatpush3.bf16.msra.mxu1 %v1505_v29 }
  0xc0   :  { %1164 = vmatprep.subr.bf16.mxu0 %v1267_v51  ;;  %1170 = vmatprep.subr.bf16.mxu1 %v1267_v51 }
  0xc1   :  { %v223_v49 = vsel %vm33_vm0, %v177_v45, 0.0  ;;  %v220_v50 = vsel %vm33_vm0, %v176_v28, 0.0 }
  0xc2   :  { %218 = vadd.xlane.f32.xlu1 %v217_v25 }
  0xc3   :  { %215 = vadd.xlane.f32.xlu0 %v214_v48 }
  0xc6   :  { %224 = vadd.xlane.f32.xlu1 %v223_v49 }
  0xc7   :  { %221 = vadd.xlane.f32.xlu0 %v220_v50 }
 0x137   :  { %v183_v52 = vpop.xlane.xlu1 %182 }
 0x138   :  { %v180_v53 = vpop.xlane.xlu0 %179 }
 0x139   :  { %v226_v54 = vadd.f32 %v183_v52, %v180_v53 }
 0x13b   :  { %v227_v55 = vrot.slane %v226_v54, 4  ;;  %v189_v56 = vpop.xlane.xlu1 %188 }
 0x13c   :  { %v186_v57 = vpop.xlane.xlu0 %185 }
 0x13d   :  { %v228_v58 = vadd.f32 %v227_v55, %v226_v54  ;;  %v233_v8 = vadd.f32 %v189_v56, %v186_v57 }
 0x13f   :  { %v229_v60 = vrot.slane %v228_v58, 2  ;;  %v234_v61 = vrot.slane %v233_v8, 4  ;;  %v195_v62 = vpop.xlane.xlu1 %194 }
 0x140   :  { %v192_v63 = vpop.xlane.xlu0 %191 }
 0x141   :  { %v230_v3 = vadd.f32 %v229_v60, %v228_v58  ;;  %v235_v4 = vadd.f32 %v234_v61, %v233_v8  ;;  %v240_v6 = vadd.f32 %v195_v62, %v192_v63 }
 0x143   :  { %v231_v7 = vrot.slane %v230_v3, 1  ;;  %v236_v10 = vrot.slane %v235_v4, 2  ;;  %v241_v12 = vrot.slane %v240_v6, 4  ;;  %v201_v13 = vpop.xlane.xlu1 %200 }
 0x144   :  { %v198_v15 = vpop.xlane.xlu0 %197 }
 0x145   :  { %v232_v18 = vadd.f32 %v231_v7, %v230_v3  ;;  %v237_v19 = vadd.f32 %v236_v10, %v235_v4  ;;  %v242_v22 = vadd.f32 %v241_v12, %v240_v6  ;;  %v247_v26 = vadd.f32 %v201_v13, %v198_v15 }
 0x147   :  { %v282_v32 = vmul.f32 0.00390625, %v232_v18  ;;  %v238_v33 = vrot.slane %v237_v19, 1  ;;  %v243_v16 = vrot.slane %v242_v22, 2  ;;  %v248_v17 = vrot.slane %v247_v26, 4  ;;  %v207_v36 = vpop.xlane.xlu1 %206 }
 0x148   :  { %v204_v37 = vpop.xlane.xlu0 %203 }
 0x149   :  { %v290_v5 = vadd.f32 1e-05, %v282_v32  ;;  %v239_v38 = vadd.f32 %v238_v33, %v237_v19  ;;  %v244_v1 = vadd.f32 %v243_v16, %v242_v22  ;;  %v249_v2 = vadd.f32 %v248_v17, %v247_v26 }
 0x14a   :  { %v254_v0 = vadd.f32 %v207_v36, %v204_v37 }
 0x14b   :  { %1251 = vrsqrt.f32 %v290_v5  ;;  %v283_v39 = vmul.f32 0.00390625, %v239_v38  ;;  %v245_v40 = vrot.slane %v244_v1, 1  ;;  %v250_v41 = vrot.slane %v249_v2, 2  ;;  %v213_v24 = vpop.xlane.xlu1 %212 }
 0x14c   :  { %v255_v43 = vrot.slane %v254_v0, 4  ;;  %v210_v25 = vpop.xlane.xlu0 %209 }
 0x14d   :  { %v291_v45 = vadd.f32 1e-05, %v283_v39  ;;  %v246_v48 = vadd.f32 %v245_v40, %v244_v1  ;;  %v251_v28 = vadd.f32 %v250_v41, %v249_v2  ;;  %v261_v49 = vadd.f32 %v213_v24, %v210_v25 }
 0x14e   :  { %v256_v50 = vadd.f32 %v255_v43, %v254_v0 }
 0x14f   :  { %1253 = vrsqrt.f32 %v291_v45  ;;  %v284_v52 = vmul.f32 0.00390625, %v246_v48  ;;  %v252_v53 = vrot.slane %v251_v28, 1  ;;  %v262_v54 = vrot.slane %v261_v49, 4  ;;  %v219_v55 = vpop.xlane.xlu1 %218 }
 0x150   :  { %v257_v56 = vrot.slane %v256_v50, 2  ;;  %v216_v57 = vpop.xlane.xlu0 %215 }
 0x151   :  { %v292_v58 = vadd.f32 1e-05, %v284_v52  ;;  %v253_v8 = vadd.f32 %v252_v53, %v251_v28  ;;  %v263_v60 = vadd.f32 %v262_v54, %v261_v49  ;;  %v268_v61 = vadd.f32 %v219_v55, %v216_v57 }
 0x152   :  { %v258_v62 = vadd.f32 %v257_v56, %v256_v50 }
 0x153   :  { %1255 = vrsqrt.f32 %v292_v58  ;;  %v285_v63 = vmul.f32 0.00390625, %v253_v8  ;;  %v264_v3 = vrot.slane %v263_v60, 2  ;;  %v269_v4 = vrot.slane %v268_v61, 4  ;;  %v225_v6 = vpop.xlane.xlu1 %224 }
 0x154   :  { %v259_v7 = vrot.slane %v258_v62, 1  ;;  %v222_v10 = vpop.xlane.xlu0 %221 }
 0x155   :  { %v1252_v12 = vpop.eup %1251  ;;  %v293_v13 = vadd.f32 1e-05, %v285_v63  ;;  %v265_v15 = vadd.f32 %v264_v3, %v263_v60  ;;  %v270_v18 = vadd.f32 %v269_v4, %v268_v61  ;;  %v275_v19 = vadd.f32 %v225_v6, %v222_v10 }
 0x156   :  { %v260_v22 = vadd.f32 %v259_v7, %v258_v62  ;;  %v306_v26 = vmul.f32 %v1252_v12, %v1410_v27  ;;  %v307_v32 = vmul.f32 %v1252_v12, %v1407_v23 }
 0x157   :  { %1257 = vrsqrt.f32 %v293_v13  ;;  %v266_v33 = vrot.slane %v265_v15, 1  ;;  %v271_v16 = vrot.slane %v270_v18, 2  ;;  %v276_v17 = vrot.slane %v275_v19, 4 }
 0x158   :  { %v286_v36 = vmul.f32 0.00390625, %v260_v22  ;;  %vm322_vm2 = vcmp.ge.f32.partialorder %v306_v26, 0.0  ;;  %vm323_vm3 = vcmp.ge.f32.partialorder %v307_v32, 0.0  ;;  %v338_v37 = vmul.f32 0.2, %v306_v26 }
 0x159   :  { %v1254_v5 = vpop.eup %1253  ;;  %v267_v38 = vadd.f32 %v266_v33, %v265_v15  ;;  %v272_v1 = vadd.f32 %v271_v16, %v270_v18  ;;  %v277_v2 = vadd.f32 %v276_v17, %v275_v19  ;;  %v339_v0 = vmul.f32 0.2, %v307_v32 }
 0x15a   :  { %v294_v39 = vadd.f32 1e-05, %v286_v36  ;;  %v354_v40 = vsel %vm322_vm2, %v306_v26, %v338_v37  ;;  %v308_v41 = vmul.f32 %v1254_v5, %v1416_v31  ;;  %v309_v27 = vmul.f32 %v1254_v5, %v1413_v30 }
 0x15b   :  { %v287_v23 = vmul.f32 0.00390625, %v267_v38  ;;  %v273_v24 = vrot.slane %v272_v1, 1  ;;  %v278_v43 = vrot.slane %v277_v2, 2  ;;  %v355_v25 = vsel %vm323_vm3, %v307_v32, %v339_v0  ;;  %370 = vst.msk [vmem:[%s1697_s3] sm:$0xff] %vm33_vm0, %v354_v40 }
 0x15c   :  { %1259 = vrsqrt.f32 %v294_v39  ;;  %371 = vst.msk [vmem:[%s1697_s3 + $0x8] sm:$0xff] %vm33_vm0, %v355_v25  ;;  %v386_v45 = vpack.c.bf16 %v355_v25, %v354_v40  ;;  %vm324_vm4 = vcmp.ge.f32.partialorder %v308_v41, 0.0  ;;  %vm325_vm5 = vcmp.ge.f32.partialorder %v309_v27, 0.0 }
 0x15d   :  { %v1256_v31 = vpop.eup %1255  ;;  %v295_v30 = vadd.f32 1e-05, %v287_v23  ;;  %v274_v48 = vadd.f32 %v273_v24, %v272_v1  ;;  %v279_v28 = vadd.f32 %v278_v43, %v277_v2  ;;  %v340_v49 = vmul.f32 0.2, %v308_v41 }
 0x15e   :  { %1155 = vmatmul.mubr.msk.bf16.vlgmr.msra.gmra.mrb[0].mxu0 %vm33_vm0, %v386_v45  ;;  %v341_v50 = vmul.f32 0.2, %v309_v27  ;;  %v310_v52 = vmul.f32 %v1256_v31, %v1432_v47  ;;  %v311_v53 = vmul.f32 %v1256_v31, %v1429_v46 }
 0x15f   :  { %1261 = vrsqrt.f32 %v295_v30  ;;  %v288_v54 = vmul.f32 0.00390625, %v274_v48  ;;  %v280_v55 = vrot.slane %v279_v28, 1  ;;  %v356_v56 = vsel %vm324_vm4, %v308_v41, %v340_v49  ;;  %1165 = vmatpush3.bf16.msra.mxu0 %v1505_v29  ;;  %1166 = vmatprep.mubr.msk.bf16.mxu0 %vm1268_vm1, %v1267_v51 }
 0x160   :  { %v357_v57 = vsel %vm325_vm5, %v309_v27, %v341_v50  ;;  %372 = vst.msk [vmem:[%s1697_s3 + $0x10] sm:$0xff] %vm33_vm0, %v356_v56  ;;  %vm326_vm6 = vcmp.ge.f32.partialorder %v310_v52, 0.0  ;;  %vm327_vm7 = vcmp.ge.f32.partialorder %v311_v53, 0.0  ;;  %v342_v47 = vmul.f32 0.2, %v310_v52  ;;  %1176 = vmatprep.subr.bf16.mxu0 %v1267_v51 }
 0x161   :  { %v1258_v46 = vpop.eup %1257  ;;  %v296_v58 = vadd.f32 1e-05, %v288_v54  ;;  %v281_v8 = vadd.f32 %v280_v55, %v279_v28  ;;  %373 = vst.msk [vmem:[%s1697_s3 + $0x18] sm:$0xff] %vm33_vm0, %v357_v57  ;;  %v387_v60 = vpack.c.bf16 %v357_v57, %v356_v56  ;;  %v343_v61 = vmul.f32 0.2, %v311_v53 }
 0x162   :  { %v358_v62 = vsel %vm326_vm6, %v310_v52, %v342_v47  ;;  %v312_v63 = vmul.f32 %v1258_v46, %v1444_v59  ;;  %v313_v3 = vmul.f32 %v1258_v46, %v1441_v9  ;;  %v754_v50 = vld [vmem:[%s1698_s2] sm:$0xf]  ;;  %vm1086_vm4 = vcmask 64512  }
 0x163   :  { %1263 = vrsqrt.f32 %v296_v58  ;;  %v289_v4 = vmul.f32 0.00390625, %v281_v8  ;;  %1161 = vmatmul.mubr.msk.bf16.vlgmr.msra.gmra.mrb[0].mxu1 %vm33_vm0, %v387_v60  ;;  %v359_v6 = vsel %vm327_vm7, %v311_v53, %v343_v61  ;;  %374 = vst.msk [vmem:[%s1697_s3 + $0x20] sm:$0xff] %vm33_vm0, %v358_v62 }
 0x164   :  { %375 = vst.msk [vmem:[%s1697_s3 + $0x28] sm:$0xff] %vm33_vm0, %v359_v6  ;;  %v388_v7 = vpack.c.bf16 %v359_v6, %v358_v62  ;;  %1171 = vmatpush3.bf16.msra.mxu1 %v1505_v29  ;;  %1172 = vmatprep.mubr.msk.bf16.mxu1 %vm1268_vm1, %v1267_v51  ;;  %vm328_vm8 = vcmp.ge.f32.partialorder %v312_v63, 0.0  ;;  %vm329_vm9 = vcmp.ge.f32.partialorder %v313_v3, 0.0  ;;  %v344_v9 = vmul.f32 0.2, %v312_v63 }
 0x165   :  { %v297_v59 = vadd.f32 1e-05, %v289_v4  ;;  %v345_v10 = vmul.f32 0.2, %v313_v3  ;;  %1182 = vmatprep.subr.bf16.mxu1 %v1267_v51 }
 0x166   :  { %v1260_v12 = vpop.eup %1259  ;;  %1167 = vmatmul.mubr.msk.bf16.vlgmr.msra.gmra.mrb[4].mxu0 %vm33_vm0, %v388_v7  ;;  %v360_v13 = vsel %vm328_vm8, %v312_v63, %v344_v9 }
 0x167   :  { %1265 = vrsqrt.f32 %v297_v59  ;;  %v361_v15 = vsel %vm329_vm9, %v313_v3, %v345_v10  ;;  %376 = vst.msk [vmem:[%s1697_s3 + $0x30] sm:$0xff] %vm33_vm0, %v360_v13  ;;  %1177 = vmatpush3.bf16.msra.mxu0 %v1505_v29  ;;  %1178 = vmatprep.mubr.msk.bf16.mxu0 %vm1268_vm1, %v1267_v51  ;;  %v314_v18 = vmul.f32 %v1260_v12, %v1456_v14 }
 0x168   :  { %v315_v19 = vmul.f32 %v1260_v12, %v1453_v11  ;;  %377 = vst.msk [vmem:[%s1697_s3 + $0x38] sm:$0xff] %vm33_vm0, %v361_v15  ;;  %v389_v22 = vpack.c.bf16 %v361_v15, %v360_v13  ;;  %1188 = vmatprep.subr.bf16.mxu0 %v1267_v51 }
 0x169   :  { %v1262_v26 = vpop.eup %1261  ;;  %vm330_vm10 = vcmp.ge.f32.partialorder %v314_v18, 0.0  ;;  %v346_v32 = vmul.f32 0.2, %v314_v18 }
 0x16a   :  { %vm331_vm11 = vcmp.ge.f32.partialorder %v315_v19, 0.0  ;;  %v347_v33 = vmul.f32 0.2, %v315_v19  ;;  %v316_v16 = vmul.f32 %v1262_v26, %v1468_v35  ;;  %v317_v17 = vmul.f32 %v1262_v26, %v1462_v34 }
 0x16b   :  { %1173 = vmatmul.mubr.msk.bf16.vlgmr.msra.gmra.mrb[4].mxu1 %vm33_vm0, %v389_v22  ;;  %v362_v11 = vsel %vm330_vm10, %v314_v18, %v346_v32 }
 0x16c   :  { %v363_v14 = vsel %vm331_vm11, %v315_v19, %v347_v33  ;;  %378 = vst.msk [vmem:[%s1697_s3 + $0x40] sm:$0xff] %vm33_vm0, %v362_v11  ;;  %1183 = vmatpush3.bf16.msra.mxu1 %v1505_v29  ;;  %1184 = vmatprep.mubr.msk.bf16.mxu1 %vm1268_vm1, %v1267_v51  ;;  %vm332_vm12 = vcmp.ge.f32.partialorder %v316_v16, 0.0  ;;  %vm333_vm13 = vcmp.ge.f32.partialorder %v317_v17, 0.0  ;;  %v348_v34 = vmul.f32 0.2, %v316_v16 }
 0x16d   :  { %379 = vst.msk [vmem:[%s1697_s3 + $0x48] sm:$0xff] %vm33_vm0, %v363_v14  ;;  %v390_v36 = vpack.c.bf16 %v363_v14, %v362_v11  ;;  %v1264_v35 = vpop.eup %1263  ;;  %v349_v37 = vmul.f32 0.2, %v317_v17  ;;  %1194 = vmatprep.subr.bf16.mxu1 %v1267_v51 }
 0x16e   :  { %v364_v5 = vsel %vm332_vm12, %v316_v16, %v348_v34  ;;  %v318_v38 = vmul.f32 %v1264_v35, %v1480_v21  ;;  %v319_v1 = vmul.f32 %v1264_v35, %v1474_v20 }
 0x16f   :  { %1179 = vmatmul.mubr.msk.bf16.vlgmr.msra.gmra.mrb[8].mxu0 %vm33_vm0, %v390_v36  ;;  %v365_v2 = vsel %vm333_vm13, %v317_v17, %v349_v37  ;;  %380 = vst.msk [vmem:[%s1697_s3 + $0x50] sm:$0xff] %vm33_vm0, %v364_v5 }
 0x170   :  { %1189 = vmatpush3.bf16.msra.mxu0 %v1505_v29  ;;  %1190 = vmatprep.mubr.msk.bf16.mxu0 %vm1268_vm1, %v1267_v51  ;;  %381 = vst.msk [vmem:[%s1697_s3 + $0x58] sm:$0xff] %vm33_vm0, %v365_v2  ;;  %v391_v0 = vpack.c.bf16 %v365_v2, %v364_v5  ;;  %vm334_vm14 = vcmp.ge.f32.partialorder %v318_v38, 0.0  ;;  %vm335_vm15 = vcmp.ge.f32.partialorder %v319_v1, 0.0  ;;  %v350_v20 = vmul.f32 0.2, %v318_v38 }
 0x171   :  { %1200 = vmatprep.subr.bf16.mxu0 %v1267_v51  ;;  %v1266_v21 = vpop.eup %1265  ;;  %v351_v39 = vmul.f32 0.2, %v319_v1 }
 0x172   :  { %v366_v40 = vsel %vm334_vm14, %v318_v38, %v350_v20  ;;  %v320_v41 = vmul.f32 %v1266_v21, %v1492_v44  ;;  %v321_v27 = vmul.f32 %v1266_v21, %v1486_v42 }
 0x173   :  { %1185 = vmatmul.mubr.msk.bf16.vlgmr.msra.gmra.mrb[8].mxu1 %vm33_vm0, %v391_v0  ;;  %v367_v23 = vsel %vm335_vm15, %v319_v1, %v351_v39  ;;  %382 = vst.msk [vmem:[%s1697_s3 + $0x60] sm:$0xff] %vm33_vm0, %v366_v40 }
 0x174   :  { %383 = vst.msk [vmem:[%s1697_s3 + $0x68] sm:$0xff] %vm33_vm0, %v367_v23  ;;  %v392_v24 = vpack.c.bf16 %v367_v23, %v366_v40  ;;  %1195 = vmatpush3.bf16.msra.mxu1 %v1505_v29  ;;  %1196 = vmatprep.mubr.msk.bf16.mxu1 %vm1268_vm1, %v1267_v51  ;;  %vm336_vm2 = vcmp.ge.f32.partialorder %v320_v41, 0.0  ;;  %vm337_vm3 = vcmp.ge.f32.partialorder %v321_v27, 0.0  ;;  %v352_v42 = vmul.f32 0.2, %v320_v41 }
 0x175   :  { %v353_v44 = vmul.f32 0.2, %v321_v27  ;;  %1206 = vmatprep.subr.bf16.mxu1 %v1267_v51 }
 0x176   :  { %v368_v43 = vsel %vm336_vm2, %v320_v41, %v352_v42 }
 0x177   :  { %1191 = vmatmul.mubr.msk.bf16.vlgmr.msra.gmra.mrb[12].mxu0 %vm33_vm0, %v392_v24  ;;  %v369_v25 = vsel %vm337_vm3, %v321_v27, %v353_v44  ;;  %384 = vst.msk [vmem:[%s1697_s3 + $0x70] sm:$0xff] %vm33_vm0, %v368_v43 }
 0x178   :  { %1202 = vmatprep.mubr.msk.bf16.mxu0 %vm1268_vm1, %v1267_v51  ;;  %385 = vst.msk [vmem:[%s1697_s3 + $0x78] sm:$0xff] %vm33_vm0, %v369_v25  ;;  %v393_v29 = vpack.c.bf16 %v369_v25, %v368_v43 }
 0x17b   :  { %1197 = vmatmul.mubr.msk.bf16.vlgmr.msra.gmra.mrb[12].mxu1 %vm33_vm0, %v393_v29 }
 0x17c   :  { %1208 = vmatprep.mubr.msk.bf16.mxu1 %vm1268_vm1, %v1267_v51 }
 0x231   :  { %v439_v45 = vpop.f32.mrb[0].mxu0 }
 0x232   :  { %v1156_v31 = vpop.f32.mrb[1].mxu0 }
 0x233   :  { %v442_v30 = vpop.f32.mrb[2].mxu0 }
 0x234   :  { %v755_v48 = vpack.c.bf16 %v442_v30, %v439_v45  ;;  %v1157_v28 = vpop.f32.mrb[3].mxu0 }
 0x236   :  { %v483_v49 = vpop.f32.mrb[0].mxu1  ;;  %1201 = vmatpush3.bf16.msra.mxu0 %v755_v48 }
 0x237   :  { %v1162_v52 = vpop.f32.mrb[1].mxu1  ;;  %1212 = vmatprep.subr.bf16.mxu0 %v1267_v51 }
 0x238   :  { %v486_v53 = vpop.f32.mrb[2].mxu1 }
 0x239   :  { %v756_v54 = vpack.c.bf16 %v486_v53, %v483_v49  ;;  %v1163_v55 = vpop.f32.mrb[3].mxu1  ;;  %v527_v56 = vpop.f32.mrb[4].mxu0  ;;  %1203 = vmatmul.mubr.msk.bf16.vlgmr.msra.gmra.mrb[16].mxu0 %vm33_vm0, %v754_v50 }
 0x23a   :  { %v1168_v57 = vpop.f32.mrb[5].mxu0  ;;  %1214 = vmatprep.mubr.msk.bf16.mxu0 %vm1268_vm1, %v1267_v51 }
 0x23b   :  { %1207 = vmatpush3.bf16.msra.mxu1 %v756_v54  ;;  %v530_v47 = vpop.f32.mrb[6].mxu0 }
 0x23c   :  { %v757_v46 = vpack.c.bf16 %v530_v47, %v527_v56  ;;  %v1169_v58 = vpop.f32.mrb[7].mxu0  ;;  %1218 = vmatprep.subr.bf16.mxu1 %v1267_v51 }
 0x23e   :  { %v571_v8 = vpop.f32.mrb[4].mxu1  ;;  %1213 = vmatpush3.bf16.msra.mxu0 %v757_v46  ;;  %1209 = vmatmul.mubr.msk.bf16.vlgmr.msra.gmra.mrb[16].mxu1 %vm33_vm0, %v754_v50 }
 0x23f   :  { %v1174_v60 = vpop.f32.mrb[5].mxu1  ;;  %1224 = vmatprep.subr.bf16.mxu0 %v1267_v51  ;;  %1220 = vmatprep.mubr.msk.bf16.mxu1 %vm1268_vm1, %v1267_v51 }
 0x240   :  { %v574_v61 = vpop.f32.mrb[6].mxu1 }
 0x241   :  { %v758_v62 = vpack.c.bf16 %v574_v61, %v571_v8  ;;  %v1175_v63 = vpop.f32.mrb[7].mxu1  ;;  %1215 = vmatmul.mubr.msk.bf16.vlgmr.msra.gmra.mrb[20].mxu0 %vm33_vm0, %v754_v50 }
 0x242   :  { %v615_v3 = vpop.f32.mrb[8].mxu0  ;;  %1226 = vmatprep.mubr.msk.bf16.mxu0 %vm1268_vm1, %v1267_v51 }
 0x243   :  { %v1180_v4 = vpop.f32.mrb[9].mxu0  ;;  %1219 = vmatpush3.bf16.msra.mxu1 %v758_v62 }
 0x244   :  { %v618_v6 = vpop.f32.mrb[10].mxu0  ;;  %1230 = vmatprep.subr.bf16.mxu1 %v1267_v51 }
 0x245   :  { %v759_v7 = vpack.c.bf16 %v618_v6, %v615_v3  ;;  %v1181_v9 = vpop.f32.mrb[11].mxu0 }
 0x246   :  { %v659_v59 = vpop.f32.mrb[8].mxu1  ;;  %1221 = vmatmul.mubr.msk.bf16.vlgmr.msra.gmra.mrb[20].mxu1 %vm33_vm0, %v754_v50 }
 0x247   :  { %1225 = vmatpush3.bf16.msra.mxu0 %v759_v7  ;;  %v1186_v10 = vpop.f32.mrb[9].mxu1  ;;  %1232 = vmatprep.mubr.msk.bf16.mxu1 %vm1268_vm1, %v1267_v51 }
 0x248   :  { %1236 = vmatprep.subr.bf16.mxu0 %v1267_v51  ;;  %v662_v12 = vpop.f32.mrb[10].mxu1 }
 0x249   :  { %v760_v13 = vpack.c.bf16 %v662_v12, %v659_v59  ;;  %v1187_v15 = vpop.f32.mrb[11].mxu1 }
 0x24a   :  { %v703_v18 = vpop.f32.mrb[12].mxu0  ;;  %1227 = vmatmul.mubr.msk.bf16.vlgmr.msra.gmra.mrb[24].mxu0 %vm33_vm0, %v754_v50 }
 0x24b   :  { %v1192_v19 = vpop.f32.mrb[13].mxu0  ;;  %1238 = vmatprep.mubr.msk.bf16.mxu0 %vm1268_vm1, %v1267_v51  ;;  %1231 = vmatpush3.bf16.msra.mxu1 %v760_v13 }
 0x24c   :  { %v706_v22 = vpop.f32.mrb[14].mxu0  ;;  %1242 = vmatprep.subr.bf16.mxu1 %v1267_v51 }
 0x24d   :  { %v761_v26 = vpack.c.bf16 %v706_v22, %v703_v18  ;;  %v1193_v32 = vpop.f32.mrb[15].mxu0 }
 0x24e   :  { %v747_v33 = vpop.f32.mrb[12].mxu1  ;;  %1233 = vmatmul.mubr.msk.bf16.vlgmr.msra.gmra.mrb[24].mxu1 %vm33_vm0, %v754_v50 }
 0x24f   :  { %1237 = vmatpush3.bf16.msra.mxu0 %v761_v26  ;;  %v1198_v16 = vpop.f32.mrb[13].mxu1  ;;  %1244 = vmatprep.mubr.msk.bf16.mxu1 %vm1268_vm1, %v1267_v51 }
 0x250   :  { %v750_v17 = vpop.f32.mrb[14].mxu1 }
 0x251   :  { %v762_v11 = vpack.c.bf16 %v750_v17, %v747_v33  ;;  %v1199_v14 = vpop.f32.mrb[15].mxu1 }
 0x252   :  { %1239 = vmatmul.mubr.msk.bf16.vlgmr.msra.gmra.mrb[28].mxu0 %vm33_vm0, %v754_v50 }
 0x253   :  { %1243 = vmatpush3.bf16.msra.mxu1 %v762_v11 }
 0x256   :  { %1245 = vmatmul.mubr.msk.bf16.vlgmr.msra.gmra.mrb[28].mxu1 %vm33_vm0, %v754_v50 }
 0x30c   :  { %v800_v36 = vpop.f32.mrb[16].mxu0 }
 0x30d   :  { %1087 = vst.msk [vmem:[%s1699_s4] sm:$0xff] %vm1086_vm4, %v800_v36  ;;  %v1204_v34 = vpop.f32.mrb[17].mxu0 }
 0x30e   :  { %v803_v35 = vpop.f32.mrb[18].mxu0 }
 0x30f   :  { %v1205_v37 = vpop.f32.mrb[19].mxu0 }
 0x311   :  { %v840_v5 = vpop.f32.mrb[16].mxu1 }
 0x312   :  { %1088 = vst.msk [vmem:[%s1699_s4 + $0x8] sm:$0xff] %vm1086_vm4, %v840_v5  ;;  %v1210_v51 = vpop.f32.mrb[17].mxu1 }
 0x313   :  { %v843_v38 = vpop.f32.mrb[18].mxu1 }
 0x314   :  { %v1211_v1 = vpop.f32.mrb[19].mxu1  ;;  %v880_v2 = vpop.f32.mrb[20].mxu0 }
 0x315   :  { %1089 = vst.msk [vmem:[%s1699_s4 + $0x10] sm:$0xff] %vm1086_vm4, %v880_v2  ;;  %v1216_v0 = vpop.f32.mrb[21].mxu0 }
 0x316   :  { %v883_v20 = vpop.f32.mrb[22].mxu0 }
 0x317   :  { %v1217_v21 = vpop.f32.mrb[23].mxu0 }
 0x319   :  { %v920_v39 = vpop.f32.mrb[20].mxu1 }
 0x31a   :  { %1090 = vst.msk [vmem:[%s1699_s4 + $0x18] sm:$0xff] %vm1086_vm4, %v920_v39  ;;  %v1222_v40 = vpop.f32.mrb[21].mxu1 }
 0x31b   :  { %v923_v41 = vpop.f32.mrb[22].mxu1 }
 0x31c   :  { %v1223_v27 = vpop.f32.mrb[23].mxu1 }
 0x31d   :  { %v960_v23 = vpop.f32.mrb[24].mxu0 }
 0x31e   :  { %1091 = vst.msk [vmem:[%s1699_s4 + $0x20] sm:$0xff] %vm1086_vm4, %v960_v23  ;;  %v1228_v24 = vpop.f32.mrb[25].mxu0 }
 0x31f   :  { %v963_v42 = vpop.f32.mrb[26].mxu0 }
 0x320   :  { %v1229_v44 = vpop.f32.mrb[27].mxu0 }
 0x321   :  { %v1000_v43 = vpop.f32.mrb[24].mxu1 }
 0x322   :  { %1092 = vst.msk [vmem:[%s1699_s4 + $0x28] sm:$0xff] %vm1086_vm4, %v1000_v43  ;;  %v1234_v25 = vpop.f32.mrb[25].mxu1 }
 0x323   :  { %v1003_v29 = vpop.f32.mrb[26].mxu1 }
 0x324   :  { %v1235_v45 = vpop.f32.mrb[27].mxu1 }
 0x325   :  { %v1040_v31 = vpop.f32.mrb[28].mxu0 }
 0x326   :  { %1093 = vst.msk [vmem:[%s1699_s4 + $0x30] sm:$0xff] %vm1086_vm4, %v1040_v31  ;;  %v1240_v30 = vpop.f32.mrb[29].mxu0 }
 0x327   :  { %v1043_v48 = vpop.f32.mrb[30].mxu0 }
 0x328   :  { %v1241_v28 = vpop.f32.mrb[31].mxu0 }
 0x329   :  { %v1080_v49 = vpop.f32.mrb[28].mxu1 }
 0x32a   :  { %1094 = vst.msk [vmem:[%s1699_s4 + $0x38] sm:$0xff] %vm1086_vm4, %v1080_v49  ;;  %v1246_v50 = vpop.f32.mrb[29].mxu1 }
 0x32b   :  { %v1083_v52 = vpop.f32.mrb[30].mxu1 }
 0x32c   :  { %v1247_v53 = vpop.f32.mrb[31].mxu1 }

// kernel: unet_forward.29
= control target key start
LH: loop header
LB: loop body
LE: loop exit
PB: predicated region body
PF: predicated region fallthrough
CT: control target
= control target key end

     0   :  { %s456_s12 = smov 0   ;;  %s498_s0 = inlined_call_operand.vmem [shape: f32[2,8,102], index: 0, kind: input, shape index: {}]   ;;  %s499_s1 = inlined_call_operand.vmem [shape: bf16[8,72], index: 1, kind: input, shape index: {}]   ;;  %s500_s2 = inlined_call_operand.vmem [shape: f32[1,80], index: 2, kind: input, shape index: {}]   ;;  %s501_s3 = inlined_call_operand.vmem [shape: f32[2,8,80], index: 3, kind: output, shape index: {}]  }
   0x1 LB: > { %s367_s13 = sadd.s32 4294967295, %s424_s12   ;;  %p371_p0 = scmp.ge.s32.totalorder %s424_s12, 1  ;;  %s424_s12 = sphi %s456_s12, %s13_s12  }
   0x2   : > { %p136_p1 = scmp.lt.s32.totalorder %s424_s12, 3 }
   0x4   : > { %p137_p2 = pnand %p371_p0, %p136_p1 }
   0x5   : > { %p158_p3 = scmp.lt.s32.totalorder (!%p137_p2), %s367_s13, 1  ;;  %v426_v0 = vmov (!%p137_p2), 0.0   ;;  %vm168_vm0 = vcmask (!%p137_p2), 654336   ;;  %s427_s18 = smov (!%p137_p2), 127   ;;  %vm435_vm1 = vmmov (!%p137_p2), 0   ;;  %vm237_vm2 = vcmask (!%p137_p2), 1043456  }
   0x6   : > { %140 = sbr.rel (%p137_p2) target bundleno = 691 (0x2b3), region = 32  ;;  %384 = vmatprep.subr.bf16.mxu0 (!%p137_p2), %v426_v0  ;;  %s428_s19 = smov (!%p137_p2), 118   ;;  %394 = vmatprep.mubr.msk.bf16.mxu0 (!%p137_p2), %vm435_vm1, %v426_v0  ;;  %v218_v25 = vld [vmem:[%s499_s1] sm:$0xf] (!%p137_p2)  ;;  %vm233_vm3 = vcmask (!%p137_p2), 588800   ;;  %v307_v42 = vlaneseq (!%p137_p2) }
   0x7   : > { %s429_s20 = smov (!%p137_p2), 126   ;;  %s430_s21 = smov (!%p137_p2), 117   ;;  %v375_v26 = vld [vmem:[%s500_s2] ss:$0 sm:$0xff] (!%p137_p2) }
   0x8   : > { %s431_s22 = smov (!%p137_p2), 116   ;;  %s432_s23 = smov (!%p137_p2), 108   ;;  %v308_v43 = vshrl.u32 (!%p137_p2), %v307_v42, 7 }
   0x9   : > { %s433_s24 = smov (!%p137_p2), 107   ;;  %s434_s25 = smov (!%p137_p2), 106  }
   0xa   : > { %vm309_vm4 = vcmp.lt.s32.totalorder (!%p137_p2), %v308_v43, 4 }
   0xd   : > { %s503_s13 = smov (!%p158_p3, %s367_s13), 1 }
   0xe   : > { %s372_s14 = sshll.u32 %s503_s13, 3 }
   0xf   : > { %s161_s17 = scalar_lea.vmem %s498_s0, %s372_s14  ;;  %s165_s5 = scalar_lea.vmem %s501_s3, %s372_s14 }
  0x10   : > { %v170_v1 = vld [vmem:[%s161_s17] sm:$0xff] }
  0x11   : > { %172 = vrot.lane.b32.xlu0 %v170_v1, %s427_s18  ;;  %184 = vrot.lane.b32.xlu1 %v170_v1, %s428_s19  ;;  %169 = vst.msk [vmem:[#allocation2] sm:$0xff] %vm168_vm0, %v170_v1 }
  0x15   : > { %178 = vrot.lane.b32.xlu0 %v170_v1, %s429_s20  ;;  %190 = vrot.lane.b32.xlu1 %v170_v1, %s430_s21 }
  0x18   : > { %v219_v6 = vld [vmem:[#allocation2] sm:$0xff] }
  0x19   : > { %196 = vrot.lane.b32.xlu0 %v170_v1, %s431_s22  ;;  %202 = vrot.lane.b32.xlu1 %v170_v1, %s432_s23 }
  0x1d   : > { %208 = vrot.lane.b32.xlu0 %v170_v1, %s433_s24  ;;  %214 = vrot.lane.b32.xlu1 %v170_v1, %s434_s25 }
  0x83   : > { %v173_v2 = vpop.permute.xlu0 %172  ;;  %v185_v3 = vpop.permute.xlu1 %184 }
  0x84   : > { %175 = vst.msk [vmem:[#allocation2 + $0x8] sm:$0xff] %vm168_vm0, %v173_v2  ;;  %187 = vst.msk [vmem:[#allocation2 + $0x18] sm:$0xff] %vm168_vm0, %v185_v3 }
  0x87   : > { %v179_v4 = vpop.permute.xlu0 %178  ;;  %v191_v5 = vpop.permute.xlu1 %190 }
  0x88   : > { %181 = vst.msk [vmem:[#allocation2 + $0x10] sm:$0xff] %vm168_vm0, %v179_v4  ;;  %193 = vst.msk [vmem:[#allocation2 + $0x20] sm:$0xff] %vm168_vm0, %v191_v5 }
  0x8b   : > { %v197_v7 = vpop.permute.xlu0 %196  ;;  %v203_v8 = vpop.permute.xlu1 %202  ;;  %v220_v9 = vld [vmem:[#allocation2 + $0x8] sm:$0xff]  ;;  %v222_v11 = vld [vmem:[#allocation2 + $0x18] sm:$0xff] }
  0x8c   : > { %199 = vst.msk [vmem:[#allocation2 + $0x28] sm:$0xff] %vm168_vm0, %v197_v7  ;;  %205 = vst.msk [vmem:[#allocation2 + $0x30] sm:$0xff] %vm168_vm0, %v203_v8  ;;  %v228_v10 = vpack.c.bf16 %v220_v9, %v219_v6 }
  0x8e   : > { %385 = vmatpush3.bf16.msra.mxu0 %v228_v10 }
  0x8f   : > { %v209_v12 = vpop.permute.xlu0 %208  ;;  %386 = vmatprep.subr.bf16.mxu0 %v426_v0  ;;  %v215_v13 = vpop.permute.xlu1 %214  ;;  %v221_v14 = vld [vmem:[#allocation2 + $0x10] sm:$0xff]  ;;  %v223_v16 = vld [vmem:[#allocation2 + $0x20] sm:$0xff] }
  0x90   : > { %211 = vst.msk [vmem:[#allocation2 + $0x38] sm:$0xff] %vm168_vm0, %v209_v12  ;;  %217 = vst.msk [vmem:[#allocation2 + $0x40] sm:$0xff] %vm168_vm0, %v215_v13  ;;  %v229_v15 = vpack.c.bf16 %v222_v11, %v221_v14 }
  0x92   : > { %387 = vmatpush3.bf16.msra.mxu0 %v229_v15 }
  0x93   : > { %388 = vmatprep.subr.bf16.mxu0 %v426_v0  ;;  %v224_v17 = vld [vmem:[#allocation2 + $0x28] sm:$0xff]  ;;  %v225_v19 = vld [vmem:[#allocation2 + $0x30] sm:$0xff] }
  0x94   : > { %v230_v18 = vpack.c.bf16 %v224_v17, %v223_v16 }
  0x96   : > { %389 = vmatpush3.bf16.msra.mxu0 %v230_v18 }
  0x97   : > { %390 = vmatprep.subr.bf16.mxu0 %v426_v0  ;;  %v226_v20 = vld [vmem:[#allocation2 + $0x38] sm:$0xff]  ;;  %v227_v21 = vld [vmem:[#allocation2 + $0x40] sm:$0xff] }
  0x98   : > { %v231_v22 = vpack.c.bf16 %v226_v20, %v225_v19  ;;  %v232_v23 = vpack.c.bf16 %v227_v21, %v227_v21 }
  0x9a   : > { %391 = vmatpush3.bf16.msra.mxu0 %v231_v22  ;;  %v239_v24 = vsel %vm237_vm2, %v232_v23, 0 }
  0x9b   : > { %392 = vmatprep.subr.bf16.mxu0 %v426_v0 }
  0x9e   : > { %393 = vmatpush3.bf16.msra.mxu0 %v239_v24 }
  0xa1   : > { %395 = vmatmul.mubr.msk.bf16.vlgmr.msra.gmra.mrb[0].mxu0 %vm233_vm3, %v218_v25 }
 0x174   : > { %v275_v27 = vpop.f32.mrb[0].mxu0 }
 0x175   : > { %v396_v28 = vpop.f32.mrb[1].mxu0  ;;  %v288_v29 = vmul.f32 %v375_v26, %v275_v27 }
 0x176   : > { %v278_v30 = vpop.f32.mrb[2].mxu0 }
 0x177   : > { %v397_v31 = vpop.f32.mrb[3].mxu0  ;;  %v289_v32 = vsel %vm168_vm0, %v288_v29, 0.0 }
 0x178   : > { %290 = vadd.xlane.f32.xlu0 %v289_v32 }
 0x205   : > { %v291_v33 = vpop.xlane.xlu0 %290 }
 0x206   : > { %v293_v34 = vmul.f32 0.015625, %v291_v33 }
 0x208   : > { %v294_v35 = vsub.f32 %v275_v27, %v293_v34 }
 0x20a   : > { %v295_v36 = vmul.f32 %v375_v26, %v294_v35 }
 0x20c   : > { %v296_v37 = vmul.f32 %v295_v36, %v295_v36 }
 0x20e   : > { %v297_v38 = vsel %vm168_vm0, %v296_v37, 0.0 }
 0x20f   : > { %298 = vadd.xlane.f32.xlu1 %v297_v38 }
 0x29c   : > { %v299_v39 = vpop.xlane.xlu1 %298 }
 0x29d   : > { %v300_v40 = vmul.f32 0.015625, %v299_v39 }
 0x29f   : > { %v301_v41 = vadd.f32 1e-05, %v300_v40 }
 0x2a1   : > { %416 = vrsqrt.f32 %v301_v41 }
 0x2ab   : > { %v417_v44 = vpop.eup %416 }
 0x2ac   : > { %v303_v45 = vmul.f32 %v417_v44, %v294_v35 }
 0x2ae   : > { %vm304_vm5 = vcmp.ge.f32.partialorder %v303_v45, 0.0  ;;  %v305_v46 = vmul.f32 0.2, %v303_v45 }
 0x2b0   : > { %v306_v47 = vsel %vm304_vm5, %v303_v45, %v305_v46 }
 0x2b1   : > { %v312_v48 = vsel %vm309_vm4, %v306_v47, %v275_v27 }
 0x2b2   : > { %313 = vst.msk [vmem:[%s165_s5] sm:$0xff] %vm168_vm0, %v312_v48 }
 0x2b3 PF: > { %s13_s12 = sadd.s32 1, %s424_s12  }
 0x2b4   : > { %p10_p4 = scmp.ge.s32.totalorder %s13_s12, 4  }
 0x2b6   :  { %12 = sbr.rel (!%p10_p4) target bundleno = 1 (0x1), region = 62 }

// kernel: unet_forward.30
= control target key start
LH: loop header
LB: loop body
LE: loop exit
PB: predicated region body
PF: predicated region fallthrough
CT: control target
= control target key end

     0   :  { %vm9_vm0 = vcmask 523264   ;;  %s52_s0 = inlined_call_operand.vmem [shape: f32[8,64], index: 0, kind: input, shape index: {}]   ;;  %s53_s1 = inlined_call_operand.vmem [shape: f32[8,64], index: 1, kind: output, shape index: {}]  }
   0x1   :  { %v8_v0 = vld [vmem:[%s52_s0] sm:$0xff] }
   0x2   :  { %v10_v1 = vsel %vm9_vm0, %v8_v0, 0.0 }
   0x3   :  { %11 = vadd.xlane.f32.xlu0 %v10_v1 }
  0x90   :  { %v12_v2 = vpop.xlane.xlu0 %11 }
  0x91   :  { %v13_v3 = vmul.f32 0.015625, %v12_v2 }
  0x93   :  { %v14_v4 = vsub.f32 %v8_v0, %v13_v3 }
  0x95   :  { %v15_v5 = vmul.f32 %v14_v4, %v14_v4 }
  0x97   :  { %v16_v6 = vsel %vm9_vm0, %v15_v5, 0.0 }
  0x98   :  { %17 = vadd.xlane.f32.xlu0 %v16_v6 }
 0x125   :  { %v18_v7 = vpop.xlane.xlu0 %17 }
 0x126   :  { %v19_v8 = vmul.f32 0.015625, %v18_v7 }
 0x128   :  { %v20_v9 = vadd.f32 1e-05, %v19_v8 }
 0x12a   :  { %31 = vrsqrt.f32 %v20_v9 }
 0x134   :  { %v32_v10 = vpop.eup %31 }
 0x135   :  { %v22_v11 = vmul.f32 %v32_v10, %v14_v4 }
 0x137   :  { %vm23_vm1 = vcmp.ge.f32.partialorder %v22_v11, 0.0  ;;  %v24_v12 = vmul.f32 0.2, %v22_v11 }
 0x139   :  { %v25_v13 = vsel %vm23_vm1, %v22_v11, %v24_v12 }
 0x13a   :  { %26 = vst.msk [vmem:[%s53_s1] sm:$0xff] %vm9_vm0, %v25_v13 }

// kernel: unet_forward.31
= control target key start
LH: loop header
LB: loop body
LE: loop exit
PB: predicated region body
PF: predicated region fallthrough
CT: control target
= control target key end

     0   :  { %s473_s12 = smov 0   ;;  %s531_s0 = inlined_call_operand.vmem [shape: f32[2,16,102], index: 0, kind: input, shape index: {}]   ;;  %s532_s1 = inlined_call_operand.vmem [shape: bf16[8,144], index: 1, kind: input, shape index: {}]   ;;  %s533_s2 = inlined_call_operand.vmem [shape: f32[1,80], index: 2, kind: input, shape index: {}]   ;;  %s534_s3 = inlined_call_operand.vmem [shape: f32[2,8,80], index: 3, kind: output, shape index: {}]  }
   0x1 LB: > { %s403_s13 = sadd.s32 4294967295, %s442_s12   ;;  %p407_p0 = scmp.ge.s32.totalorder %s442_s12, 1  ;;  %s442_s12 = sphi %s473_s12, %s13_s12  }
   0x2   : > { %p137_p1 = scmp.lt.s32.totalorder %s442_s12, 3 }
   0x4   : > { %p138_p2 = pnand %p407_p0, %p137_p1 }
   0x5   : > { %p160_p3 = scmp.lt.s32.totalorder (!%p138_p2), %s403_s13, 1  ;;  %v444_v0 = vmov (!%p138_p2), 0   ;;  %vm172_vm0 = vcmask (!%p138_p2), 654336   ;;  %s445_s17 = smov (!%p138_p2), 126   ;;  %v494_v6 = vld [vmem:[%s532_s1] sm:$0xff] (!%p138_p2)  ;;  %vm305_vm1 = vcmask (!%p138_p2), 130048  }
   0x6   : > { %141 = sbr.rel (%p138_p2) target bundleno = 392 (0x188), region = 32  ;;  %309 = vmatprep.subr.bf16.mxu0 (!%p138_p2), %v444_v0  ;;  %s446_s18 = smov (!%p138_p2), 127   ;;  %v412_v7 = vcombine.high (!%p138_p2), %v494_v6, %v494_v6  ;;  %v411_v48 = vcombine.low (!%p138_p2), %v494_v6, %v494_v6 }
   0x7   : > { %s447_s19 = smov (!%p138_p2), 118   ;;  %s448_s20 = smov (!%p138_p2), 117  }
   0x8   : > { %s449_s21 = smov (!%p138_p2), 116   ;;  %s450_s22 = smov (!%p138_p2), 108   ;;  %413 = vmatprep.mubr.msk.bf16.mxu0 (!%p138_p2), %vm305_vm1, %v412_v7 }
   0x9   : > { %s451_s23 = smov (!%p138_p2), 107   ;;  %s452_s24 = smov (!%p138_p2), 106  }
   0xd   : > { %s536_s13 = smov (!%p160_p3, %s403_s13), 1 }
   0xe   : > { %s416_s2 = sshll.u32 %s536_s13, 4  ;;  %s410_s27 = sshll.u32 %s536_s13, 3 }
   0xf   : > { %s164_s16 = scalar_lea.vmem %s531_s0, %s416_s2  ;;  %s168_s30 = scalar_lea.vmem %s534_s3, %s410_s27 }
  0x10   : > { %v187_v1 = vld [vmem:[%s164_s16] sm:$0xff]  ;;  %v188_v2 = vld [vmem:[%s164_s16 + $0x8] sm:$0xff] }
  0x11   : > { %191 = vrot.lane.b32.xlu1 %v187_v1, %s445_s17  ;;  %179 = vrot.lane.b32.xlu0 %v187_v1, %s446_s18  ;;  %173 = vst.msk [vmem:[#allocation2] sm:$0xff] %vm172_vm0, %v187_v1  ;;  %174 = vst.msk [vmem:[#allocation2 + $0x8] sm:$0xff] %vm172_vm0, %v188_v2 }
  0x15   : > { %193 = vrot.lane.b32.xlu1 %v188_v2, %s445_s17  ;;  %181 = vrot.lane.b32.xlu0 %v188_v2, %s446_s18 }
  0x18   : > { %v272_v3 = vld [vmem:[#allocation2] sm:$0xff]  ;;  %v273_v4 = vld [vmem:[#allocation2 + $0x8] sm:$0xff] }
  0x19   : > { %205 = vrot.lane.b32.xlu1 %v188_v2, %s447_s19  ;;  %203 = vrot.lane.b32.xlu0 %v187_v1, %s447_s19  ;;  %v290_v5 = vpack.c.bf16 %v273_v4, %v272_v3 }
  0x1b   : > { %310 = vmatpush1.bf16.msra.mxu0 %v290_v5 }
  0x1c   : > { %311 = vmatprep.subr.bf16.mxu0 %v444_v0 }
  0x1d   : > { %217 = vrot.lane.b32.xlu1 %v188_v2, %s448_s20  ;;  %215 = vrot.lane.b32.xlu0 %v187_v1, %s448_s20 }
  0x21   : > { %229 = vrot.lane.b32.xlu1 %v188_v2, %s449_s21  ;;  %227 = vrot.lane.b32.xlu0 %v187_v1, %s449_s21 }
  0x25   : > { %241 = vrot.lane.b32.xlu1 %v188_v2, %s450_s22  ;;  %239 = vrot.lane.b32.xlu0 %v187_v1, %s450_s22 }
  0x29   : > { %253 = vrot.lane.b32.xlu1 %v188_v2, %s451_s23  ;;  %251 = vrot.lane.b32.xlu0 %v187_v1, %s451_s23 }
  0x2d   : > { %265 = vrot.lane.b32.xlu1 %v188_v2, %s452_s24  ;;  %263 = vrot.lane.b32.xlu0 %v187_v1, %s452_s24 }
  0x83   : > { %v192_v8 = vpop.permute.xlu1 %191  ;;  %v180_v9 = vpop.permute.xlu0 %179 }
  0x84   : > { %197 = vst.msk [vmem:[#allocation2 + $0x20] sm:$0xff] %vm172_vm0, %v192_v8  ;;  %185 = vst.msk [vmem:[#allocation2 + $0x10] sm:$0xff] %vm172_vm0, %v180_v9 }
  0x87   : > { %v194_v10 = vpop.permute.xlu1 %193  ;;  %v182_v11 = vpop.permute.xlu0 %181 }
  0x88   : > { %198 = vst.msk [vmem:[#allocation2 + $0x28] sm:$0xff] %vm172_vm0, %v194_v10  ;;  %186 = vst.msk [vmem:[#allocation2 + $0x18] sm:$0xff] %vm172_vm0, %v182_v11 }
  0x8b   : > { %v206_v12 = vpop.permute.xlu1 %205  ;;  %v204_v13 = vpop.permute.xlu0 %203  ;;  %v274_v14 = vld [vmem:[#allocation2 + $0x10] sm:$0xff]  ;;  %v276_v19 = vld [vmem:[#allocation2 + $0x20] sm:$0xff] }
  0x8c   : > { %210 = vst.msk [vmem:[#allocation2 + $0x38] sm:$0xff] %vm172_vm0, %v206_v12  ;;  %209 = vst.msk [vmem:[#allocation2 + $0x30] sm:$0xff] %vm172_vm0, %v204_v13 }
  0x8f   : > { %v275_v15 = vld [vmem:[#allocation2 + $0x18] sm:$0xff]  ;;  %v218_v16 = vpop.permute.xlu1 %217  ;;  %v216_v17 = vpop.permute.xlu0 %215  ;;  %v277_v20 = vld [vmem:[#allocation2 + $0x28] sm:$0xff] }
  0x90   : > { %v291_v18 = vpack.c.bf16 %v275_v15, %v274_v14  ;;  %222 = vst.msk [vmem:[#allocation2 + $0x48] sm:$0xff] %vm172_vm0, %v218_v16  ;;  %221 = vst.msk [vmem:[#allocation2 + $0x40] sm:$0xff] %vm172_vm0, %v216_v17  ;;  %v292_v25 = vpack.c.bf16 %v277_v20, %v276_v19 }
  0x92   : > { %312 = vmatpush1.bf16.msra.mxu0 %v291_v18 }
  0x93   : > { %313 = vmatprep.subr.bf16.mxu0 %v444_v0  ;;  %v230_v21 = vpop.permute.xlu1 %229  ;;  %v228_v22 = vpop.permute.xlu0 %227  ;;  %v278_v23 = vld [vmem:[#allocation2 + $0x30] sm:$0xff]  ;;  %v279_v24 = vld [vmem:[#allocation2 + $0x38] sm:$0xff] }
  0x94   : > { %234 = vst.msk [vmem:[#allocation2 + $0x58] sm:$0xff] %vm172_vm0, %v230_v21  ;;  %233 = vst.msk [vmem:[#allocation2 + $0x50] sm:$0xff] %vm172_vm0, %v228_v22  ;;  %v293_v26 = vpack.c.bf16 %v279_v24, %v278_v23 }
  0x96   : > { %314 = vmatpush1.bf16.msra.mxu0 %v292_v25 }
  0x97   : > { %315 = vmatprep.subr.bf16.mxu0 %v444_v0  ;;  %v242_v27 = vpop.permute.xlu1 %241  ;;  %v240_v28 = vpop.permute.xlu0 %239  ;;  %v280_v29 = vld [vmem:[#allocation2 + $0x40] sm:$0xff]  ;;  %v281_v30 = vld [vmem:[#allocation2 + $0x48] sm:$0xff] }
  0x98   : > { %246 = vst.msk [vmem:[#allocation2 + $0x68] sm:$0xff] %vm172_vm0, %v242_v27  ;;  %245 = vst.msk [vmem:[#allocation2 + $0x60] sm:$0xff] %vm172_vm0, %v240_v28  ;;  %v294_v31 = vpack.c.bf16 %v281_v30, %v280_v29 }
  0x9a   : > { %316 = vmatpush1.bf16.msra.mxu0 %v293_v26 }
  0x9b   : > { %317 = vmatprep.subr.bf16.mxu0 %v444_v0  ;;  %v254_v32 = vpop.permute.xlu1 %253  ;;  %v252_v33 = vpop.permute.xlu0 %251  ;;  %v282_v34 = vld [vmem:[#allocation2 + $0x50] sm:$0xff]  ;;  %v283_v35 = vld [vmem:[#allocation2 + $0x58] sm:$0xff] }
  0x9c   : > { %258 = vst.msk [vmem:[#allocation2 + $0x78] sm:$0xff] %vm172_vm0, %v254_v32  ;;  %257 = vst.msk [vmem:[#allocation2 + $0x70] sm:$0xff] %vm172_vm0, %v252_v33  ;;  %v295_v36 = vpack.c.bf16 %v283_v35, %v282_v34 }
  0x9e   : > { %318 = vmatpush1.bf16.msra.mxu0 %v294_v31 }
  0x9f   : > { %319 = vmatprep.subr.bf16.mxu0 %v444_v0  ;;  %v266_v37 = vpop.permute.xlu1 %265  ;;  %v264_v38 = vpop.permute.xlu0 %263  ;;  %v284_v39 = vld [vmem:[#allocation2 + $0x60] sm:$0xff]  ;;  %v285_v40 = vld [vmem:[#allocation2 + $0x68] sm:$0xff] }
  0xa0   : > { %270 = vst.msk [vmem:[#allocation2 + $0x88] sm:$0xff] %vm172_vm0, %v266_v37  ;;  %269 = vst.msk [vmem:[#allocation2 + $0x80] sm:$0xff] %vm172_vm0, %v264_v38  ;;  %v296_v41 = vpack.c.bf16 %v285_v40, %v284_v39 }
  0xa2   : > { %320 = vmatpush1.bf16.msra.mxu0 %v295_v36 }
  0xa3   : > { %321 = vmatprep.subr.bf16.mxu0 %v444_v0  ;;  %v286_v42 = vld [vmem:[#allocation2 + $0x70] sm:$0xff]  ;;  %v287_v43 = vld [vmem:[#allocation2 + $0x78] sm:$0xff] }
  0xa4   : > { %v297_v44 = vpack.c.bf16 %v287_v43, %v286_v42 }
  0xa6   : > { %322 = vmatpush1.bf16.msra.mxu0 %v296_v41 }
  0xa7   : > { %323 = vmatprep.subr.bf16.mxu0 %v444_v0  ;;  %v288_v45 = vld [vmem:[#allocation2 + $0x80] sm:$0xff]  ;;  %v289_v46 = vld [vmem:[#allocation2 + $0x88] sm:$0xff] }
  0xa8   : > { %v298_v47 = vpack.c.bf16 %v289_v46, %v288_v45 }
  0xaa   : > { %324 = vmatpush1.bf16.msra.mxu0 %v297_v44 }
  0xab   : > { %325 = vmatprep.subr.bf16.mxu0 %v444_v0 }
  0xae   : > { %326 = vmatpush1.bf16.msra.mxu0 %v298_v47 }
  0xb1   : > { %342 = vmatmul.mubr.bf16.vlgmr.msra.gmra.mrb[0].mxu0 %v411_v48 }
 0x184   : > { %v343_v49 = vpop.f32.mrb[0].mxu0 }
 0x185   : > { %349 = vst.msk [vmem:[%s168_s30] sm:$0xff] %vm172_vm0, %v343_v49  ;;  %v345_v50 = vpop.f32.mrb[1].mxu0 }
 0x186   : > { %v346_v51 = vpop.f32.mrb[2].mxu0 }
 0x187   : > { %v347_v52 = vpop.f32.mrb[3].mxu0 }
 0x188 PF: > { %s13_s12 = sadd.s32 1, %s442_s12  }
 0x189   : > { %p10_p4 = scmp.ge.s32.totalorder %s13_s12, 4  }
 0x18b   :  { %12 = sbr.rel (!%p10_p4) target bundleno = 1 (0x1), region = 62 }

// kernel: unet_forward.32
= control target key start
LH: loop header
LB: loop body
LE: loop exit
PB: predicated region body
PF: predicated region fallthrough
CT: control target
= control target key end

     0   :  { %vm33_vm0 = vcmask 64512   ;;  %vm518_vm1 = vcmask 1043456   ;;  %vm2263_vm2 = vmmov 0   ;;  %s2835_s0 = inlined_call_operand.vmem [shape: f32[16,8,8], index: 0, kind: input, shape index: {}]   ;;  %s2836_s1 = inlined_call_operand.vmem [shape: bf16[8,4], index: 1, kind: input, shape index: {}]   ;;  %s2837_s3 = inlined_call_operand.vmem [shape: f32[16,8,8], index: 3, kind: output, shape index: {0}]   ;;  %s2838_s2 = inlined_call_operand.vmem [shape: bf16[4,8], index: 2, kind: input, shape index: {}]   ;;  %s2839_s4 = inlined_call_operand.vmem [shape: f32[16,4,4], index: 4, kind: output, shape index: {1}]  }
   0x1   :  { %v2292_v0 = vld [vmem:[%s2835_s0] sm:$0xff]  ;;  %v2297_v1 = vld [vmem:[%s2835_s0 + $0x10] sm:$0xff]  ;;  %v2302_v2 = vld [vmem:[%s2835_s0 + $0x8] sm:$0xff] }
   0x2   :  { %v34_v3 = vsel %vm33_vm0, %v2292_v0, 0.0  ;;  %v40_v4 = vsel %vm33_vm0, %v2297_v1, 0.0  ;;  %v2311_v5 = vld [vmem:[%s2835_s0 + $0x18] sm:$0xff]  ;;  %v37_v6 = vsel %vm33_vm0, %v2302_v2, 0.0  ;;  %v2320_v8 = vld [vmem:[%s2835_s0 + $0x20] sm:$0xff]  ;;  %v2325_v9 = vld [vmem:[%s2835_s0 + $0x28] sm:$0xff] }
   0x3   :  { %35 = vadd.xlane.f32.xlu0 %v34_v3  ;;  %41 = vadd.xlane.f32.xlu1 %v40_v4  ;;  %v43_v7 = vsel %vm33_vm0, %v2311_v5, 0.0  ;;  %v46_v10 = vsel %vm33_vm0, %v2320_v8, 0.0  ;;  %v49_v11 = vsel %vm33_vm0, %v2325_v9, 0.0  ;;  %v2334_v12 = vld [vmem:[%s2835_s0 + $0x30] sm:$0xff]  ;;  %v2339_v13 = vld [vmem:[%s2835_s0 + $0x38] sm:$0xff]  ;;  %v2348_v16 = vld [vmem:[%s2835_s0 + $0x40] sm:$0xff] }
   0x4   :  { %v52_v14 = vsel %vm33_vm0, %v2334_v12, 0.0  ;;  %v55_v15 = vsel %vm33_vm0, %v2339_v13, 0.0  ;;  %v2353_v17 = vld [vmem:[%s2835_s0 + $0x48] sm:$0xff]  ;;  %v58_v18 = vsel %vm33_vm0, %v2348_v16, 0.0  ;;  %v2362_v20 = vld [vmem:[%s2835_s0 + $0x50] sm:$0xff]  ;;  %v2367_v21 = vld [vmem:[%s2835_s0 + $0x58] sm:$0xff] }
   0x5   :  { %v61_v19 = vsel %vm33_vm0, %v2353_v17, 0.0  ;;  %v64_v22 = vsel %vm33_vm0, %v2362_v20, 0.0  ;;  %v67_v23 = vsel %vm33_vm0, %v2367_v21, 0.0  ;;  %v2376_v24 = vld [vmem:[%s2835_s0 + $0x60] sm:$0xff]  ;;  %v2381_v25 = vld [vmem:[%s2835_s0 + $0x68] sm:$0xff]  ;;  %v2390_v28 = vld [vmem:[%s2835_s0 + $0x70] sm:$0xff] }
   0x6   :  { %v70_v26 = vsel %vm33_vm0, %v2376_v24, 0.0  ;;  %v73_v27 = vsel %vm33_vm0, %v2381_v25, 0.0  ;;  %v2395_v29 = vld [vmem:[%s2835_s0 + $0x78] sm:$0xff]  ;;  %v76_v30 = vsel %vm33_vm0, %v2390_v28, 0.0 }
   0x7   :  { %38 = vadd.xlane.f32.xlu0 %v37_v6  ;;  %44 = vadd.xlane.f32.xlu1 %v43_v7  ;;  %v79_v31 = vsel %vm33_vm0, %v2395_v29, 0.0 }
   0xb   :  { %47 = vadd.xlane.f32.xlu0 %v46_v10  ;;  %50 = vadd.xlane.f32.xlu1 %v49_v11 }
   0xf   :  { %53 = vadd.xlane.f32.xlu0 %v52_v14  ;;  %56 = vadd.xlane.f32.xlu1 %v55_v15 }
  0x13   :  { %59 = vadd.xlane.f32.xlu0 %v58_v18  ;;  %62 = vadd.xlane.f32.xlu1 %v61_v19 }
  0x17   :  { %65 = vadd.xlane.f32.xlu0 %v64_v22  ;;  %68 = vadd.xlane.f32.xlu1 %v67_v23 }
  0x1b   :  { %71 = vadd.xlane.f32.xlu0 %v70_v26  ;;  %74 = vadd.xlane.f32.xlu1 %v73_v27 }
  0x1f   :  { %77 = vadd.xlane.f32.xlu0 %v76_v30  ;;  %80 = vadd.xlane.f32.xlu1 %v79_v31 }
  0x90   :  { %v36_v32 = vpop.xlane.xlu0 %35  ;;  %v42_v33 = vpop.xlane.xlu1 %41 }
  0x91   :  { %v82_v34 = vrot.slane %v36_v32, 4  ;;  %v94_v35 = vrot.slane %v42_v33, 4 }
  0x93   :  { %v83_v36 = vadd.f32 %v82_v34, %v36_v32  ;;  %v95_v37 = vadd.f32 %v94_v35, %v42_v33 }
  0x94   :  { %v39_v38 = vpop.xlane.xlu0 %38  ;;  %v45_v39 = vpop.xlane.xlu1 %44 }
  0x95   :  { %v84_v40 = vrot.slane %v83_v36, 2  ;;  %v96_v41 = vrot.slane %v95_v37, 2  ;;  %v88_v42 = vrot.slane %v39_v38, 4  ;;  %v100_v43 = vrot.slane %v45_v39, 4 }
  0x97   :  { %v85_v44 = vadd.f32 %v84_v40, %v83_v36  ;;  %v97_v45 = vadd.f32 %v96_v41, %v95_v37  ;;  %v89_v46 = vadd.f32 %v88_v42, %v39_v38  ;;  %v101_v47 = vadd.f32 %v100_v43, %v45_v39 }
  0x98   :  { %v48_v48 = vpop.xlane.xlu0 %47  ;;  %v51_v49 = vpop.xlane.xlu1 %50 }
  0x99   :  { %v86_v50 = vrot.slane %v85_v44, 1  ;;  %v98_v51 = vrot.slane %v97_v45, 1  ;;  %v90_v52 = vrot.slane %v89_v46, 2  ;;  %v102_v53 = vrot.slane %v101_v47, 2 }
  0x9a   :  { %v106_v54 = vrot.slane %v48_v48, 4  ;;  %v112_v55 = vrot.slane %v51_v49, 4 }
  0x9b   :  { %v87_v56 = vadd.f32 %v86_v50, %v85_v44  ;;  %v99_v57 = vadd.f32 %v98_v51, %v97_v45  ;;  %v91_v58 = vadd.f32 %v90_v52, %v89_v46  ;;  %v103_v59 = vadd.f32 %v102_v53, %v101_v47 }
  0x9c   :  { %v107_v60 = vadd.f32 %v106_v54, %v48_v48  ;;  %v113_v61 = vadd.f32 %v112_v55, %v51_v49  ;;  %v54_v62 = vpop.xlane.xlu0 %53  ;;  %v57_v63 = vpop.xlane.xlu1 %56 }
  0x9d   :  { %v178_v3 = vmul.f32 0.015625, %v87_v56  ;;  %v180_v4 = vmul.f32 0.015625, %v99_v57  ;;  %v92_v6 = vrot.slane %v91_v58, 1  ;;  %v104_v7 = vrot.slane %v103_v59, 1 }
  0x9e   :  { %v108_v10 = vrot.slane %v107_v60, 2  ;;  %v114_v11 = vrot.slane %v113_v61, 2  ;;  %v118_v14 = vrot.slane %v54_v62, 4  ;;  %v124_v15 = vrot.slane %v57_v63, 4 }
  0x9f   :  { %v93_v18 = vadd.f32 %v92_v6, %v91_v58  ;;  %v105_v19 = vadd.f32 %v104_v7, %v103_v59  ;;  %v2402_v22 = vsub.f32 %v2292_v0, %v178_v3  ;;  %v2405_v23 = vsub.f32 %v2297_v1, %v180_v4 }
  0xa0   :  { %v109_v26 = vadd.f32 %v108_v10, %v107_v60  ;;  %v115_v27 = vadd.f32 %v114_v11, %v113_v61  ;;  %v119_v30 = vadd.f32 %v118_v14, %v54_v62  ;;  %v125_v31 = vadd.f32 %v124_v15, %v57_v63  ;;  %v60_v32 = vpop.xlane.xlu0 %59  ;;  %v63_v33 = vpop.xlane.xlu1 %62 }
  0xa1   :  { %v179_v34 = vmul.f32 0.015625, %v93_v18  ;;  %v181_v35 = vmul.f32 0.015625, %v105_v19  ;;  %v130_v36 = vrot.slane %v60_v32, 4  ;;  %v136_v37 = vrot.slane %v63_v33, 4 }
  0xa2   :  { %v110_v38 = vrot.slane %v109_v26, 1  ;;  %v116_v39 = vrot.slane %v115_v27, 1  ;;  %v120_v40 = vrot.slane %v119_v30, 2  ;;  %v126_v41 = vrot.slane %v125_v31, 2 }
  0xa3   :  { %v131_v42 = vadd.f32 %v130_v36, %v60_v32  ;;  %v137_v0 = vadd.f32 %v136_v37, %v63_v33  ;;  %v210_v1 = vmul.f32 %v2402_v22, %v2402_v22  ;;  %v212_v43 = vmul.f32 %v2405_v23, %v2405_v23 }
  0xa4   :  { %v111_v44 = vadd.f32 %v110_v38, %v109_v26  ;;  %v117_v45 = vadd.f32 %v116_v39, %v115_v27  ;;  %v121_v46 = vadd.f32 %v120_v40, %v119_v30  ;;  %v127_v47 = vadd.f32 %v126_v41, %v125_v31  ;;  %v66_v48 = vpop.xlane.xlu0 %65  ;;  %v69_v49 = vpop.xlane.xlu1 %68 }
  0xa5   :  { %v132_v50 = vrot.slane %v131_v42, 2  ;;  %v138_v51 = vrot.slane %v137_v0, 2  ;;  %v226_v52 = vsel %vm33_vm0, %v210_v1, 0.0  ;;  %v142_v53 = vrot.slane %v66_v48, 4 }
  0xa6   :  { %v182_v54 = vmul.f32 0.015625, %v111_v44  ;;  %v183_v55 = vmul.f32 0.015625, %v117_v45  ;;  %v122_v56 = vrot.slane %v121_v46, 1  ;;  %v128_v57 = vrot.slane %v127_v47, 1  ;;  %227 = vadd.xlane.f32.xlu0 %v226_v52 }
  0xa7   :  { %v133_v58 = vadd.f32 %v132_v50, %v131_v42  ;;  %v139_v59 = vadd.f32 %v138_v51, %v137_v0  ;;  %v143_v60 = vadd.f32 %v142_v53, %v66_v48  ;;  %v148_v61 = vrot.slane %v69_v49, 4 }
  0xa8   :  { %v123_v62 = vadd.f32 %v122_v56, %v121_v46  ;;  %v129_v63 = vadd.f32 %v128_v57, %v127_v47  ;;  %v232_v3 = vsel %vm33_vm0, %v212_v43, 0.0  ;;  %v2414_v4 = vsub.f32 %v2302_v2, %v179_v34  ;;  %v72_v6 = vpop.xlane.xlu0 %71  ;;  %v75_v7 = vpop.xlane.xlu1 %74 }
  0xa9   :  { %v134_v10 = vrot.slane %v133_v58, 1  ;;  %v140_v11 = vrot.slane %v139_v59, 1  ;;  %v144_v14 = vrot.slane %v143_v60, 2  ;;  %v149_v15 = vadd.f32 %v148_v61, %v69_v49 }
  0xaa   :  { %v184_v18 = vmul.f32 0.015625, %v123_v62  ;;  %v185_v19 = vmul.f32 0.015625, %v129_v63  ;;  %233 = vadd.xlane.f32.xlu0 %v232_v3  ;;  %v211_v26 = vmul.f32 %v2414_v4, %v2414_v4  ;;  %v154_v27 = vrot.slane %v72_v6, 4 }
  0xab   :  { %v135_v30 = vadd.f32 %v134_v10, %v133_v58  ;;  %v141_v31 = vadd.f32 %v140_v11, %v139_v59  ;;  %v145_v32 = vadd.f32 %v144_v14, %v143_v60  ;;  %v150_v33 = vrot.slane %v149_v15, 2 }
  0xac   :  { %v229_v2 = vsel %vm33_vm0, %v211_v26, 0.0  ;;  %v155_v34 = vadd.f32 %v154_v27, %v72_v6  ;;  %v160_v36 = vrot.slane %v75_v7, 4  ;;  %v2420_v37 = vsub.f32 %v2311_v5, %v181_v35  ;;  %v78_v38 = vpop.xlane.xlu0 %77  ;;  %v81_v39 = vpop.xlane.xlu1 %80 }
  0xad   :  { %v186_v40 = vmul.f32 0.015625, %v135_v30  ;;  %v187_v41 = vmul.f32 0.015625, %v141_v31  ;;  %v146_v42 = vrot.slane %v145_v32, 1  ;;  %v151_v0 = vadd.f32 %v150_v33, %v149_v15  ;;  %230 = vadd.xlane.f32.xlu1 %v229_v2 }
  0xae   :  { %v156_v1 = vrot.slane %v155_v34, 2  ;;  %v161_v43 = vadd.f32 %v160_v36, %v75_v7  ;;  %v213_v44 = vmul.f32 %v2420_v37, %v2420_v37  ;;  %v2425_v45 = vsub.f32 %v2320_v8, %v182_v54 }
  0xaf   :  { %v147_v46 = vadd.f32 %v146_v42, %v145_v32  ;;  %v152_v47 = vrot.slane %v151_v0, 1  ;;  %v166_v48 = vrot.slane %v78_v38, 4  ;;  %v172_v5 = vrot.slane %v81_v39, 4 }
  0xb0   :  { %v157_v35 = vadd.f32 %v156_v1, %v155_v34  ;;  %v162_v49 = vrot.slane %v161_v43, 2  ;;  %v235_v50 = vsel %vm33_vm0, %v213_v44, 0.0  ;;  %v214_v51 = vmul.f32 %v2425_v45, %v2425_v45 }
  0xb1   :  { %v188_v52 = vmul.f32 0.015625, %v147_v46  ;;  %v153_v53 = vadd.f32 %v152_v47, %v151_v0  ;;  %236 = vadd.xlane.f32.xlu1 %v235_v50  ;;  %v167_v56 = vadd.f32 %v166_v48, %v78_v38  ;;  %v173_v57 = vadd.f32 %v172_v5, %v81_v39 }
  0xb2   :  { %v158_v58 = vrot.slane %v157_v35, 1  ;;  %v163_v59 = vadd.f32 %v162_v49, %v161_v43  ;;  %v238_v8 = vsel %vm33_vm0, %v214_v51, 0.0  ;;  %v2432_v54 = vsub.f32 %v2325_v9, %v183_v55 }
  0xb3   :  { %v189_v60 = vmul.f32 0.015625, %v153_v53  ;;  %239 = vadd.xlane.f32.xlu0 %v238_v8  ;;  %v168_v61 = vrot.slane %v167_v56, 2  ;;  %v174_v62 = vrot.slane %v173_v57, 2  ;;  %v2435_v63 = vsub.f32 %v2334_v12, %v184_v18 }
  0xb4   :  { %v159_v3 = vadd.f32 %v158_v58, %v157_v35  ;;  %v164_v6 = vrot.slane %v163_v59, 1  ;;  %v215_v7 = vmul.f32 %v2432_v54, %v2432_v54  ;;  %v2440_v10 = vsub.f32 %v2339_v13, %v185_v19 }
  0xb5   :  { %v169_v11 = vadd.f32 %v168_v61, %v167_v56  ;;  %v175_v14 = vadd.f32 %v174_v62, %v173_v57  ;;  %v216_v9 = vmul.f32 %v2435_v63, %v2435_v63  ;;  %v2445_v55 = vsub.f32 %v2348_v16, %v186_v40 }
  0xb6   :  { %v190_v15 = vmul.f32 0.015625, %v159_v3  ;;  %v165_v26 = vadd.f32 %v164_v6, %v163_v59  ;;  %v241_v12 = vsel %vm33_vm0, %v215_v7, 0.0  ;;  %v217_v18 = vmul.f32 %v2440_v10, %v2440_v10 }
  0xb7   :  { %v170_v27 = vrot.slane %v169_v11, 1  ;;  %v176_v30 = vrot.slane %v175_v14, 1  ;;  %242 = vadd.xlane.f32.xlu1 %v241_v12  ;;  %v244_v13 = vsel %vm33_vm0, %v216_v9, 0.0  ;;  %v218_v19 = vmul.f32 %v2445_v55, %v2445_v55 }
  0xb8   :  { %v191_v31 = vmul.f32 0.015625, %v165_v26  ;;  %245 = vadd.xlane.f32.xlu0 %v244_v13  ;;  %v247_v16 = vsel %vm33_vm0, %v217_v18, 0.0  ;;  %v2455_v32 = vsub.f32 %v2353_v17, %v187_v41  ;;  %v2458_v33 = vsub.f32 %v2362_v20, %v188_v52 }
  0xb9   :  { %v171_v2 = vadd.f32 %v170_v27, %v169_v11  ;;  %v177_v34 = vadd.f32 %v176_v30, %v175_v14  ;;  %v250_v36 = vsel %vm33_vm0, %v218_v19, 0.0  ;;  %v2462_v38 = vsub.f32 %v2367_v21, %v189_v60 }
  0xba   :  { %v219_v39 = vmul.f32 %v2455_v32, %v2455_v32  ;;  %v220_v40 = vmul.f32 %v2458_v33, %v2458_v33  ;;  %v2469_v42 = vsub.f32 %v2376_v24, %v190_v15  ;;  %v2475_v21 = vsub.f32 %v2381_v25, %v191_v31 }
  0xbb   :  { %v192_v17 = vmul.f32 0.015625, %v171_v2  ;;  %248 = vadd.xlane.f32.xlu1 %v247_v16  ;;  %v193_v20 = vmul.f32 0.015625, %v177_v34  ;;  %v221_v0 = vmul.f32 %v2462_v38, %v2462_v38  ;;  %v2262_v50 = vmov 0.0  }
  0xbc   :  { %251 = vadd.xlane.f32.xlu0 %v250_v36  ;;  %v253_v41 = vsel %vm33_vm0, %v219_v39, 0.0  ;;  %v256_v1 = vsel %vm33_vm0, %v220_v40, 0.0  ;;  %v222_v43 = vmul.f32 %v2469_v42, %v2469_v42  ;;  %v223_v46 = vmul.f32 %v2475_v21, %v2475_v21  ;;  %2036 = vmatprep.subr.bf16.mxu0 %v2262_v50 }
  0xbd   :  { %v2481_v24 = vsub.f32 %v2390_v28, %v192_v17  ;;  %v259_v44 = vsel %vm33_vm0, %v221_v0, 0.0  ;;  %v2487_v47 = vsub.f32 %v2395_v29, %v193_v20  ;;  %v514_v29 = vld [vmem:[%s2836_s1] sm:$0xf]  ;;  %2042 = vmatprep.subr.bf16.mxu1 %v2262_v50  ;;  %2038 = vmatprep.mubr.msk.bf16.mxu0 %vm2263_vm2, %v2262_v50 }
  0xbe   :  { %v262_v25 = vsel %vm33_vm0, %v222_v43, 0.0  ;;  %v265_v28 = vsel %vm33_vm0, %v223_v46, 0.0  ;;  %v2502_v51 = vsel %vm518_vm1, %v514_v29, 0  ;;  %2044 = vmatprep.mubr.msk.bf16.mxu1 %vm2263_vm2, %v2262_v50 }
  0xbf   :  { %254 = vadd.xlane.f32.xlu1 %v253_v41  ;;  %v224_v48 = vmul.f32 %v2481_v24, %v2481_v24  ;;  %v225_v5 = vmul.f32 %v2487_v47, %v2487_v47  ;;  %2037 = vmatpush3.bf16.msra.mxu0 %v2502_v51 }
  0xc0   :  { %257 = vadd.xlane.f32.xlu0 %v256_v1  ;;  %2043 = vmatpush3.bf16.msra.mxu1 %v2502_v51 }
  0xc1   :  { %v268_v35 = vsel %vm33_vm0, %v224_v48, 0.0  ;;  %v271_v49 = vsel %vm33_vm0, %v225_v5, 0.0  ;;  %2048 = vmatprep.subr.bf16.mxu0 %v2262_v50  ;;  %2054 = vmatprep.subr.bf16.mxu1 %v2262_v50 }
  0xc3   :  { %260 = vadd.xlane.f32.xlu1 %v259_v44 }
  0xc4   :  { %263 = vadd.xlane.f32.xlu0 %v262_v25 }
  0xc7   :  { %266 = vadd.xlane.f32.xlu1 %v265_v28 }
  0xc8   :  { %269 = vadd.xlane.f32.xlu0 %v268_v35 }
  0xcb   :  { %272 = vadd.xlane.f32.xlu1 %v271_v49 }
 0x133   :  { %v228_v52 = vpop.xlane.xlu0 %227 }
 0x134   :  { %v274_v53 = vrot.slane %v228_v52, 4 }
 0x136   :  { %v275_v56 = vadd.f32 %v274_v53, %v228_v52 }
 0x137   :  { %v234_v57 = vpop.xlane.xlu0 %233 }
 0x138   :  { %v276_v58 = vrot.slane %v275_v56, 2  ;;  %v286_v59 = vrot.slane %v234_v57, 4 }
 0x13a   :  { %v277_v8 = vadd.f32 %v276_v58, %v275_v56  ;;  %v231_v60 = vpop.xlane.xlu1 %230  ;;  %v287_v61 = vadd.f32 %v286_v59, %v234_v57 }
 0x13b   :  { %v280_v62 = vrot.slane %v231_v60, 4 }
 0x13c   :  { %v278_v3 = vrot.slane %v277_v8, 1  ;;  %v288_v6 = vrot.slane %v287_v61, 2 }
 0x13d   :  { %v281_v7 = vadd.f32 %v280_v62, %v231_v60 }
 0x13e   :  { %v279_v11 = vadd.f32 %v278_v3, %v277_v8  ;;  %v289_v14 = vadd.f32 %v288_v6, %v287_v61  ;;  %v237_v9 = vpop.xlane.xlu1 %236 }
 0x13f   :  { %v282_v15 = vrot.slane %v281_v7, 2  ;;  %v292_v26 = vrot.slane %v237_v9, 4 }
 0x140   :  { %v290_v12 = vrot.slane %v289_v14, 1  ;;  %v240_v18 = vpop.xlane.xlu0 %239  ;;  %v370_v19 = vmul.f32 0.015625, %v279_v11 }
 0x141   :  { %v283_v27 = vadd.f32 %v282_v15, %v281_v7  ;;  %v293_v30 = vadd.f32 %v292_v26, %v237_v9  ;;  %v298_v13 = vrot.slane %v240_v18, 4 }
 0x142   :  { %v291_v31 = vadd.f32 %v290_v12, %v289_v14  ;;  %v386_v1 = vadd.f32 1e-05, %v370_v19 }
 0x143   :  { %v284_v16 = vrot.slane %v283_v27, 1  ;;  %v294_v2 = vrot.slane %v293_v30, 2  ;;  %v299_v34 = vadd.f32 %v298_v13, %v240_v18 }
 0x144   :  { %v372_v36 = vmul.f32 0.015625, %v291_v31  ;;  %v243_v39 = vpop.xlane.xlu1 %242  ;;  %2230 = vrsqrt.f32 %v386_v1 }
 0x145   :  { %v285_v40 = vadd.f32 %v284_v16, %v283_v27  ;;  %v295_v17 = vadd.f32 %v294_v2, %v293_v30  ;;  %v300_v20 = vrot.slane %v299_v34, 2  ;;  %v304_v41 = vrot.slane %v243_v39, 4  ;;  %v246_v0 = vpop.xlane.xlu0 %245 }
 0x146   :  { %v388_v43 = vadd.f32 1e-05, %v372_v36  ;;  %v310_v44 = vrot.slane %v246_v0, 4 }
 0x147   :  { %v371_v46 = vmul.f32 0.015625, %v285_v40  ;;  %v296_v25 = vrot.slane %v295_v17, 1  ;;  %v301_v48 = vadd.f32 %v300_v20, %v299_v34  ;;  %v305_v28 = vadd.f32 %v304_v41, %v243_v39 }
 0x148   :  { %v311_v5 = vadd.f32 %v310_v44, %v246_v0  ;;  %v249_v35 = vpop.xlane.xlu1 %248  ;;  %2232 = vrsqrt.f32 %v388_v43 }
 0x149   :  { %v387_v49 = vadd.f32 1e-05, %v371_v46  ;;  %v297_v29 = vadd.f32 %v296_v25, %v295_v17  ;;  %v302_v52 = vrot.slane %v301_v48, 1  ;;  %v306_v53 = vrot.slane %v305_v28, 2  ;;  %v252_v56 = vpop.xlane.xlu0 %251 }
 0x14a   :  { %v312_v57 = vrot.slane %v311_v5, 2  ;;  %v316_v58 = vrot.slane %v249_v35, 4  ;;  %v322_v59 = vrot.slane %v252_v56, 4 }
 0x14b   :  { %v373_v8 = vmul.f32 0.015625, %v297_v29  ;;  %v303_v60 = vadd.f32 %v302_v52, %v301_v48  ;;  %v307_v61 = vadd.f32 %v306_v53, %v305_v28  ;;  %2234 = vrsqrt.f32 %v387_v49 }
 0x14c   :  { %v313_v62 = vadd.f32 %v312_v57, %v311_v5  ;;  %v317_v3 = vadd.f32 %v316_v58, %v249_v35  ;;  %v323_v6 = vadd.f32 %v322_v59, %v252_v56  ;;  %v255_v7 = vpop.xlane.xlu1 %254 }
 0x14d   :  { %v389_v11 = vadd.f32 1e-05, %v373_v8  ;;  %v374_v14 = vmul.f32 0.015625, %v303_v60  ;;  %v308_v9 = vrot.slane %v307_v61, 1  ;;  %v328_v15 = vrot.slane %v255_v7, 4  ;;  %v258_v26 = vpop.xlane.xlu0 %257 }
 0x14e   :  { %v314_v12 = vrot.slane %v313_v62, 1  ;;  %v318_v18 = vrot.slane %v317_v3, 2  ;;  %v324_v27 = vrot.slane %v323_v6, 2  ;;  %v334_v30 = vrot.slane %v258_v26, 4  ;;  %v2231_v5 = vpop.eup %2230 }
 0x14f   :  { %2236 = vrsqrt.f32 %v389_v11  ;;  %v390_v13 = vadd.f32 1e-05, %v374_v14  ;;  %v309_v19 = vadd.f32 %v308_v9, %v307_v61  ;;  %v329_v31 = vadd.f32 %v328_v15, %v255_v7 }
 0x150   :  { %v315_v16 = vadd.f32 %v314_v12, %v313_v62  ;;  %v319_v2 = vadd.f32 %v318_v18, %v317_v3  ;;  %v325_v34 = vadd.f32 %v324_v27, %v323_v6  ;;  %v335_v36 = vadd.f32 %v334_v30, %v258_v26  ;;  %v261_v39 = vpop.xlane.xlu1 %260 }
 0x151   :  { %2238 = vrsqrt.f32 %v390_v13  ;;  %v375_v40 = vmul.f32 0.015625, %v309_v19  ;;  %v330_v17 = vrot.slane %v329_v31, 2  ;;  %v340_v20 = vrot.slane %v261_v39, 4  ;;  %v264_v41 = vpop.xlane.xlu0 %263 }
 0x152   :  { %v376_v0 = vmul.f32 0.015625, %v315_v16  ;;  %v320_v1 = vrot.slane %v319_v2, 1  ;;  %v326_v43 = vrot.slane %v325_v34, 1  ;;  %v336_v44 = vrot.slane %v335_v36, 2  ;;  %v2233_v56 = vpop.eup %2232 }
 0x153   :  { %v391_v46 = vadd.f32 1e-05, %v375_v40  ;;  %v331_v25 = vadd.f32 %v330_v17, %v329_v31  ;;  %v341_v48 = vadd.f32 %v340_v20, %v261_v39  ;;  %v346_v28 = vrot.slane %v264_v41, 4 }
 0x154   :  { %v392_v35 = vadd.f32 1e-05, %v376_v0  ;;  %v321_v49 = vadd.f32 %v320_v1, %v319_v2  ;;  %v327_v29 = vadd.f32 %v326_v43, %v325_v34  ;;  %v337_v52 = vadd.f32 %v336_v44, %v335_v36  ;;  %v267_v53 = vpop.xlane.xlu1 %266 }
 0x155   :  { %2240 = vrsqrt.f32 %v391_v46  ;;  %v332_v57 = vrot.slane %v331_v25, 1  ;;  %v342_v58 = vrot.slane %v341_v48, 2  ;;  %v347_v59 = vadd.f32 %v346_v28, %v264_v41  ;;  %v270_v8 = vpop.xlane.xlu0 %269  ;;  %v2235_v60 = vpop.eup %2234 }
 0x156   :  { %2242 = vrsqrt.f32 %v392_v35  ;;  %v377_v61 = vmul.f32 0.015625, %v321_v49  ;;  %v378_v62 = vmul.f32 0.015625, %v327_v29  ;;  %v338_v3 = vrot.slane %v337_v52, 1 }
 0x157   :  { %v333_v6 = vadd.f32 %v332_v57, %v331_v25  ;;  %v343_v7 = vadd.f32 %v342_v58, %v341_v48  ;;  %v348_v11 = vrot.slane %v347_v59, 2  ;;  %v352_v14 = vrot.slane %v267_v53, 4 }
 0x158   :  { %v393_v9 = vadd.f32 1e-05, %v377_v61  ;;  %v394_v15 = vadd.f32 1e-05, %v378_v62  ;;  %v339_v26 = vadd.f32 %v338_v3, %v337_v52  ;;  %v358_v12 = vrot.slane %v270_v8, 4  ;;  %v273_v18 = vpop.xlane.xlu1 %272 }
 0x159   :  { %v2237_v27 = vpop.eup %2236  ;;  %v379_v30 = vmul.f32 0.015625, %v333_v6  ;;  %v344_v13 = vrot.slane %v343_v7, 1  ;;  %v349_v19 = vadd.f32 %v348_v11, %v347_v59  ;;  %v353_v31 = vadd.f32 %v352_v14, %v267_v53 }
 0x15a   :  { %2244 = vrsqrt.f32 %v393_v9  ;;  %v380_v16 = vmul.f32 0.015625, %v339_v26  ;;  %v359_v2 = vadd.f32 %v358_v12, %v270_v8  ;;  %v364_v34 = vrot.slane %v273_v18, 4 }
 0x15b   :  { %v2239_v36 = vpop.eup %2238  ;;  %2246 = vrsqrt.f32 %v394_v15  ;;  %v395_v39 = vadd.f32 1e-05, %v379_v30  ;;  %v345_v40 = vadd.f32 %v344_v13, %v343_v7  ;;  %v350_v17 = vrot.slane %v349_v19, 1 }
 0x15c   :  { %v396_v20 = vadd.f32 1e-05, %v380_v16  ;;  %v354_v41 = vrot.slane %v353_v31, 2  ;;  %v360_v0 = vrot.slane %v359_v2, 2  ;;  %v365_v1 = vadd.f32 %v364_v34, %v273_v18 }
 0x15d   :  { %2248 = vrsqrt.f32 %v395_v39  ;;  %v381_v43 = vmul.f32 0.015625, %v345_v40  ;;  %v351_v44 = vadd.f32 %v350_v17, %v349_v19  ;;  %v418_v46 = vmul.f32 %v2231_v5, %v2402_v22 }
 0x15e   :  { %2250 = vrsqrt.f32 %v396_v20  ;;  %v355_v25 = vadd.f32 %v354_v41, %v353_v31  ;;  %v361_v48 = vadd.f32 %v360_v0, %v359_v2  ;;  %v366_v28 = vrot.slane %v365_v1, 2 }
 0x15f   :  { %v2241_v35 = vpop.eup %2240  ;;  %v397_v49 = vadd.f32 1e-05, %v381_v43  ;;  %v382_v29 = vmul.f32 0.015625, %v351_v44  ;;  %vm434_vm3 = vcmp.ge.f32.partialorder %v418_v46, 0.0  ;;  %v450_v52 = vmul.f32 0.2, %v418_v46 }
 0x160   :  { %v2243_v53 = vpop.eup %2242  ;;  %v356_v57 = vrot.slane %v355_v25, 1  ;;  %v362_v58 = vrot.slane %v361_v48, 1  ;;  %v367_v59 = vadd.f32 %v366_v28, %v365_v1  ;;  %v419_v8 = vmul.f32 %v2235_v60, %v2414_v4 }
 0x161   :  { %2252 = vrsqrt.f32 %v397_v49  ;;  %v398_v61 = vadd.f32 1e-05, %v382_v29  ;;  %v466_v62 = vsel %vm434_vm3, %v418_v46, %v450_v52  ;;  %v420_v22 = vmul.f32 %v2233_v56, %v2405_v23 }
 0x162   :  { %v357_v5 = vadd.f32 %v356_v57, %v355_v25  ;;  %v363_v3 = vadd.f32 %v362_v58, %v361_v48  ;;  %v368_v6 = vrot.slane %v367_v59, 1  ;;  %482 = vst.msk [vmem:[%s2837_s3] sm:$0xff] %vm33_vm0, %v466_v62  ;;  %v498_v7 = vpack.c.bf16 %v466_v62, %v466_v62 }
 0x163   :  { %2254 = vrsqrt.f32 %v398_v61  ;;  %vm435_vm4 = vcmp.ge.f32.partialorder %v419_v8, 0.0  ;;  %v451_v11 = vmul.f32 0.2, %v419_v8  ;;  %vm436_vm5 = vcmp.ge.f32.partialorder %v420_v22, 0.0 }
 0x164   :  { %v2245_v14 = vpop.eup %2244  ;;  %v383_v4 = vmul.f32 0.015625, %v357_v5  ;;  %v384_v60 = vmul.f32 0.015625, %v363_v3  ;;  %v369_v9 = vadd.f32 %v368_v6, %v367_v59  ;;  %2039 = vmatmul.mubr.msk.bf16.vlgmr.msra.gmra.mrb[0].mxu0 %vm33_vm0, %v498_v7  ;;  %v452_v23 = vmul.f32 0.2, %v420_v22 }
 0x165   :  { %v2247_v56 = vpop.eup %2246  ;;  %v467_v15 = vsel %vm435_vm4, %v419_v8, %v451_v11  ;;  %2049 = vmatpush3.bf16.msra.mxu0 %v2502_v51  ;;  %2050 = vmatprep.mubr.msk.bf16.mxu0 %vm2263_vm2, %v2262_v50  ;;  %v421_v26 = vmul.f32 %v2237_v27, %v2420_v37  ;;  %v422_v12 = vmul.f32 %v2239_v36, %v2425_v45 }
 0x166   :  { %v399_v18 = vadd.f32 1e-05, %v383_v4  ;;  %v400_v30 = vadd.f32 1e-05, %v384_v60  ;;  %v385_v13 = vmul.f32 0.015625, %v369_v9  ;;  %483 = vst.msk [vmem:[%s2837_s3 + $0x8] sm:$0xff] %vm33_vm0, %v467_v15  ;;  %v499_v19 = vpack.c.bf16 %v467_v15, %v467_v15  ;;  %2060 = vmatprep.subr.bf16.mxu0 %v2262_v50 }
 0x167   :  { %v2249_v31 = vpop.eup %2248  ;;  %v468_v16 = vsel %vm436_vm5, %v420_v22, %v452_v23  ;;  %vm437_vm6 = vcmp.ge.f32.partialorder %v421_v26, 0.0  ;;  %v453_v2 = vmul.f32 0.2, %v421_v26  ;;  %vm438_vm7 = vcmp.ge.f32.partialorder %v422_v12, 0.0 }
 0x168   :  { %v2251_v37 = vpop.eup %2250  ;;  %2256 = vrsqrt.f32 %v399_v18  ;;  %v401_v45 = vadd.f32 1e-05, %v385_v13  ;;  %2045 = vmatmul.mubr.msk.bf16.vlgmr.msra.gmra.mrb[0].mxu1 %vm33_vm0, %v499_v19  ;;  %484 = vst.msk [vmem:[%s2837_s3 + $0x10] sm:$0xff] %vm33_vm0, %v468_v16  ;;  %v454_v27 = vmul.f32 0.2, %v422_v12  ;;  %v423_v36 = vmul.f32 %v2241_v35, %v2432_v54 }
 0x169   :  { %2258 = vrsqrt.f32 %v400_v30  ;;  %2055 = vmatpush3.bf16.msra.mxu1 %v2502_v51  ;;  %2056 = vmatprep.mubr.msk.bf16.mxu1 %vm2263_vm2, %v2262_v50  ;;  %v469_v34 = vsel %vm437_vm6, %v421_v26, %v453_v2  ;;  %v424_v39 = vmul.f32 %v2243_v53, %v2435_v63  ;;  %v500_v40 = vpack.c.bf16 %v468_v16, %v468_v16 }
 0x16a   :  { %2260 = vrsqrt.f32 %v401_v45  ;;  %485 = vst.msk [vmem:[%s2837_s3 + $0x18] sm:$0xff] %vm33_vm0, %v469_v34  ;;  %v470_v17 = vsel %vm438_vm7, %v422_v12, %v454_v27  ;;  %2066 = vmatprep.subr.bf16.mxu1 %v2262_v50  ;;  %v425_v20 = vmul.f32 %v2245_v14, %v2440_v10  ;;  %vm439_vm8 = vcmp.ge.f32.partialorder %v423_v36, 0.0  ;;  %v2680_v45 = vld [vmem:[%s2838_s2] sm:$0x3] }
 0x16b   :  { %v2253_v41 = vpop.eup %2252  ;;  %486 = vst.msk [vmem:[%s2837_s3 + $0x20] sm:$0xff] %vm33_vm0, %v470_v17  ;;  %v455_v54 = vmul.f32 0.2, %v423_v36  ;;  %vm440_vm9 = vcmp.ge.f32.partialorder %v424_v39, 0.0  ;;  %v456_v63 = vmul.f32 0.2, %v424_v39  ;;  %v426_v1 = vmul.f32 %v2247_v56, %v2445_v55 }
 0x16c   :  { %2051 = vmatmul.mubr.msk.bf16.vlgmr.msra.gmra.mrb[4].mxu0 %vm33_vm0, %v500_v40  ;;  %vm441_vm10 = vcmp.ge.f32.partialorder %v425_v20, 0.0  ;;  %v457_v0 = vmul.f32 0.2, %v425_v20  ;;  %v427_v44 = vmul.f32 %v2249_v31, %v2455_v32  ;;  %v428_v46 = vmul.f32 %v2251_v37, %v2458_v33 }
 0x16d   :  { %v2255_v43 = vpop.eup %2254  ;;  %2061 = vmatpush3.bf16.msra.mxu0 %v2502_v51  ;;  %2062 = vmatprep.mubr.msk.bf16.mxu0 %vm2263_vm2, %v2262_v50  ;;  %v471_v10 = vsel %vm439_vm8, %v423_v36, %v455_v54  ;;  %v501_v25 = vpack.c.bf16 %v469_v34, %v469_v34  ;;  %v472_v55 = vsel %vm440_vm9, %v424_v39, %v456_v63  ;;  %vm442_vm11 = vcmp.ge.f32.partialorder %v426_v1, 0.0 }
 0x16e   :  { %487 = vst.msk [vmem:[%s2837_s3 + $0x28] sm:$0xff] %vm33_vm0, %v471_v10  ;;  %2072 = vmatprep.subr.bf16.mxu0 %v2262_v50  ;;  %v2565_v48 = vsel %vm441_vm10, %v425_v20, %v457_v0  ;;  %488 = vst.msk [vmem:[%s2837_s3 + $0x30] sm:$0xff] %vm33_vm0, %v472_v55  ;;  %v458_v32 = vmul.f32 0.2, %v426_v1  ;;  %vm443_vm12 = vcmp.ge.f32.partialorder %v427_v44, 0.0  ;;  %vm444_vm13 = vcmp.ge.f32.partialorder %v428_v46, 0.0 }
 0x16f   :  { %489 = vst.msk [vmem:[%s2837_s3 + $0x38] sm:$0xff] %vm33_vm0, %v2565_v48  ;;  %v459_v33 = vmul.f32 0.2, %v427_v44  ;;  %v460_v28 = vmul.f32 0.2, %v428_v46  ;;  %v429_v35 = vmul.f32 %v2253_v41, %v2462_v38  ;;  %v430_v29 = vmul.f32 %v2255_v43, %v2469_v42 }
 0x170   :  { %2057 = vmatmul.mubr.msk.bf16.vlgmr.msra.gmra.mrb[4].mxu1 %vm33_vm0, %v501_v25  ;;  %v474_v49 = vsel %vm442_vm11, %v426_v1, %v458_v32  ;;  %v502_v53 = vpack.c.bf16 %v470_v17, %v470_v17  ;;  %v503_v3 = vpack.c.bf16 %v471_v10, %v471_v10  ;;  %v504_v14 = vpack.c.bf16 %v472_v55, %v472_v55 }
 0x171   :  { %2067 = vmatpush3.bf16.msra.mxu1 %v2502_v51  ;;  %2068 = vmatprep.mubr.msk.bf16.mxu1 %vm2263_vm2, %v2262_v50  ;;  %490 = vst.msk [vmem:[%s2837_s3 + $0x40] sm:$0xff] %vm33_vm0, %v474_v49  ;;  %v475_v57 = vsel %vm443_vm12, %v427_v44, %v459_v33  ;;  %v476_v58 = vsel %vm444_vm13, %v428_v46, %v460_v28  ;;  %vm445_vm14 = vcmp.ge.f32.partialorder %v429_v35, 0.0  ;;  %v461_v42 = vmul.f32 0.2, %v429_v35 }
 0x172   :  { %v2257_v52 = vpop.eup %2256  ;;  %2078 = vmatprep.subr.bf16.mxu1 %v2262_v50  ;;  %491 = vst.msk [vmem:[%s2837_s3 + $0x48] sm:$0xff] %vm33_vm0, %v475_v57  ;;  %492 = vst.msk [vmem:[%s2837_s3 + $0x50] sm:$0xff] %vm33_vm0, %v476_v58  ;;  %vm446_vm15 = vcmp.ge.f32.partialorder %v430_v29, 0.0  ;;  %v462_v61 = vmul.f32 0.2, %v430_v29  ;;  %v505_v60 = vpack.c.bf16 %v2565_v48, %v2565_v48  ;;  %v506_v9 = vpack.c.bf16 %v474_v49, %v474_v49 }
 0x173   :  { %v2259_v38 = vpop.eup %2258  ;;  %v431_v62 = vmul.f32 %v2257_v52, %v2475_v21  ;;  %v477_v5 = vsel %vm445_vm14, %v429_v35, %v461_v42  ;;  %v507_v23 = vpack.c.bf16 %v475_v57, %v475_v57  ;;  %v508_v56 = vpack.c.bf16 %v476_v58, %v476_v58 }
 0x174   :  { %v2261_v59 = vpop.eup %2260  ;;  %v432_v8 = vmul.f32 %v2259_v38, %v2481_v24  ;;  %2063 = vmatmul.mubr.msk.bf16.vlgmr.msra.gmra.mrb[8].mxu0 %vm33_vm0, %v502_v53  ;;  %493 = vst.msk [vmem:[%s2837_s3 + $0x58] sm:$0xff] %vm33_vm0, %v477_v5  ;;  %v478_v24 = vsel %vm446_vm15, %v430_v29, %v462_v61  ;;  %v509_v15 = vpack.c.bf16 %v477_v5, %v477_v5  ;;  %vm1915_vm6 = vcmask 27648  }
 0x175   :  { %v433_v22 = vmul.f32 %v2261_v59, %v2487_v47  ;;  %2073 = vmatpush3.bf16.msra.mxu0 %v2502_v51  ;;  %2074 = vmatprep.mubr.msk.bf16.mxu0 %vm2263_vm2, %v2262_v50  ;;  %vm447_vm3 = vcmp.ge.f32.partialorder %v431_v62, 0.0  ;;  %v463_v6 = vmul.f32 0.2, %v431_v62  ;;  %494 = vst.msk [vmem:[%s2837_s3 + $0x60] sm:$0xff] %vm33_vm0, %v478_v24  ;;  %v510_v26 = vpack.c.bf16 %v478_v24, %v478_v24 }
 0x176   :  { %2084 = vmatprep.subr.bf16.mxu0 %v2262_v50  ;;  %vm448_vm4 = vcmp.ge.f32.partialorder %v432_v8, 0.0  ;;  %v464_v21 = vmul.f32 0.2, %v432_v8 }
 0x177   :  { %vm449_vm5 = vcmp.ge.f32.partialorder %v433_v22, 0.0  ;;  %v479_v47 = vsel %vm447_vm3, %v431_v62, %v463_v6  ;;  %v465_v7 = vmul.f32 0.2, %v433_v22 }
 0x178   :  { %2069 = vmatmul.mubr.msk.bf16.vlgmr.msra.gmra.mrb[8].mxu1 %vm33_vm0, %v503_v3  ;;  %495 = vst.msk [vmem:[%s2837_s3 + $0x68] sm:$0xff] %vm33_vm0, %v479_v47  ;;  %v480_v11 = vsel %vm448_vm4, %v432_v8, %v464_v21  ;;  %v511_v12 = vpack.c.bf16 %v479_v47, %v479_v47 }
 0x179   :  { %2079 = vmatpush3.bf16.msra.mxu1 %v2502_v51  ;;  %2080 = vmatprep.mubr.msk.bf16.mxu1 %vm2263_vm2, %v2262_v50  ;;  %496 = vst.msk [vmem:[%s2837_s3 + $0x70] sm:$0xff] %vm33_vm0, %v480_v11  ;;  %v481_v4 = vsel %vm449_vm5, %v433_v22, %v465_v7  ;;  %v512_v18 = vpack.c.bf16 %v480_v11, %v480_v11 }
 0x17a   :  { %2090 = vmatprep.subr.bf16.mxu1 %v2262_v50  ;;  %497 = vst.msk [vmem:[%s2837_s3 + $0x78] sm:$0xff] %vm33_vm0, %v481_v4  ;;  %v513_v30 = vpack.c.bf16 %v481_v4, %v481_v4 }
 0x17c   :  { %2075 = vmatmul.mubr.msk.bf16.vlgmr.msra.gmra.mrb[12].mxu0 %vm33_vm0, %v504_v14 }
 0x17d   :  { %2085 = vmatpush3.bf16.msra.mxu0 %v2502_v51  ;;  %2086 = vmatprep.mubr.msk.bf16.mxu0 %vm2263_vm2, %v2262_v50 }
 0x17e   :  { %2096 = vmatprep.subr.bf16.mxu0 %v2262_v50 }
 0x180   :  { %2081 = vmatmul.mubr.msk.bf16.vlgmr.msra.gmra.mrb[12].mxu1 %vm33_vm0, %v505_v60 }
 0x181   :  { %2091 = vmatpush3.bf16.msra.mxu1 %v2502_v51  ;;  %2092 = vmatprep.mubr.msk.bf16.mxu1 %vm2263_vm2, %v2262_v50 }
 0x182   :  { %2102 = vmatprep.subr.bf16.mxu1 %v2262_v50 }
 0x184   :  { %2087 = vmatmul.mubr.msk.bf16.vlgmr.msra.gmra.mrb[16].mxu0 %vm33_vm0, %v506_v9 }
 0x185   :  { %2097 = vmatpush3.bf16.msra.mxu0 %v2502_v51  ;;  %2098 = vmatprep.mubr.msk.bf16.mxu0 %vm2263_vm2, %v2262_v50 }
 0x186   :  { %2108 = vmatprep.subr.bf16.mxu0 %v2262_v50 }
 0x188   :  { %2093 = vmatmul.mubr.msk.bf16.vlgmr.msra.gmra.mrb[16].mxu1 %vm33_vm0, %v507_v23 }
 0x189   :  { %2103 = vmatpush3.bf16.msra.mxu1 %v2502_v51  ;;  %2104 = vmatprep.mubr.msk.bf16.mxu1 %vm2263_vm2, %v2262_v50 }
 0x18a   :  { %2114 = vmatprep.subr.bf16.mxu1 %v2262_v50 }
 0x18c   :  { %2099 = vmatmul.mubr.msk.bf16.vlgmr.msra.gmra.mrb[20].mxu0 %vm33_vm0, %v508_v56 }
 0x18d   :  { %2109 = vmatpush3.bf16.msra.mxu0 %v2502_v51  ;;  %2110 = vmatprep.mubr.msk.bf16.mxu0 %vm2263_vm2, %v2262_v50 }
 0x18e   :  { %2120 = vmatprep.subr.bf16.mxu0 %v2262_v50 }
 0x190   :  { %2105 = vmatmul.mubr.msk.bf16.vlgmr.msra.gmra.mrb[20].mxu1 %vm33_vm0, %v509_v15 }
 0x191   :  { %2115 = vmatpush3.bf16.msra.mxu1 %v2502_v51  ;;  %2116 = vmatprep.mubr.msk.bf16.mxu1 %vm2263_vm2, %v2262_v50 }
 0x192   :  { %2126 = vmatprep.subr.bf16.mxu1 %v2262_v50 }
 0x194   :  { %2111 = vmatmul.mubr.msk.bf16.vlgmr.msra.gmra.mrb[24].mxu0 %vm33_vm0, %v510_v26 }
 0x195   :  { %2121 = vmatpush3.bf16.msra.mxu0 %v2502_v51  ;;  %2122 = vmatprep.mubr.msk.bf16.mxu0 %vm2263_vm2, %v2262_v50 }
 0x196   :  { %2132 = vmatprep.subr.bf16.mxu0 %v2262_v50 }
 0x198   :  { %2117 = vmatmul.mubr.msk.bf16.vlgmr.msra.gmra.mrb[24].mxu1 %vm33_vm0, %v511_v12 }
 0x199   :  { %2127 = vmatpush3.bf16.msra.mxu1 %v2502_v51  ;;  %2128 = vmatprep.mubr.msk.bf16.mxu1 %vm2263_vm2, %v2262_v50 }
 0x19a   :  { %2138 = vmatprep.subr.bf16.mxu1 %v2262_v50 }
 0x19c   :  { %2123 = vmatmul.mubr.msk.bf16.vlgmr.msra.gmra.mrb[28].mxu0 %vm33_vm0, %v512_v18 }
 0x19d   :  { %2134 = vmatprep.mubr.msk.bf16.mxu0 %vm2263_vm2, %v2262_v50 }
 0x1a0   :  { %2129 = vmatmul.mubr.msk.bf16.vlgmr.msra.gmra.mrb[28].mxu1 %vm33_vm0, %v513_v30 }
 0x1a1   :  { %2140 = vmatprep.mubr.msk.bf16.mxu1 %vm2263_vm2, %v2262_v50 }
 0x237   :  { %v556_v13 = vpop.f32.mrb[0].mxu0 }
 0x238   :  { %v1208_v19 = vpack.c.bf16 %v556_v13, %v556_v13  ;;  %v2040_v51 = vpop.f32.mrb[1].mxu0 }
 0x239   :  { %v559_v31 = vpop.f32.mrb[2].mxu0 }
 0x23a   :  { %v1228_v16 = vsel %vm518_vm1, %v1208_v19, 0  ;;  %v2041_v2 = vpop.f32.mrb[3].mxu0 }
 0x23b   :  { %v599_v37 = vpop.f32.mrb[0].mxu1  ;;  %2133 = vmatpush3.bf16.msra.mxu0 %v1228_v16 }
 0x23c   :  { %v1209_v27 = vpack.c.bf16 %v599_v37, %v599_v37  ;;  %v2046_v34 = vpop.f32.mrb[1].mxu1  ;;  %2144 = vmatprep.subr.bf16.mxu0 %v2262_v50 }
 0x23d   :  { %v602_v36 = vpop.f32.mrb[2].mxu1 }
 0x23e   :  { %v1271_v39 = vsel %vm518_vm1, %v1209_v27, 0  ;;  %v2047_v40 = vpop.f32.mrb[3].mxu1  ;;  %2135 = vmatmul.mubr.msk.bf16.vlgmr.msra.gmra.mrb[32].mxu0 %vm33_vm0, %v2680_v45 }
 0x23f   :  { %v642_v17 = vpop.f32.mrb[4].mxu0  ;;  %2139 = vmatpush3.bf16.msra.mxu1 %v1271_v39  ;;  %2146 = vmatprep.mubr.msk.bf16.mxu0 %vm2263_vm2, %v2262_v50 }
 0x240   :  { %v1210_v20 = vpack.c.bf16 %v642_v17, %v642_v17  ;;  %v2052_v41 = vpop.f32.mrb[5].mxu0  ;;  %2150 = vmatprep.subr.bf16.mxu1 %v2262_v50 }
 0x241   :  { %v645_v54 = vpop.f32.mrb[6].mxu0 }
 0x242   :  { %v1314_v63 = vsel %vm518_vm1, %v1210_v20, 0  ;;  %v2053_v0 = vpop.f32.mrb[7].mxu0  ;;  %2141 = vmatmul.mubr.msk.bf16.vlgmr.msra.gmra.mrb[32].mxu1 %vm33_vm0, %v2680_v45 }
 0x243   :  { %v685_v1 = vpop.f32.mrb[4].mxu1  ;;  %2145 = vmatpush3.bf16.msra.mxu0 %v1314_v63  ;;  %2152 = vmatprep.mubr.msk.bf16.mxu1 %vm2263_vm2, %v2262_v50 }
 0x244   :  { %v1211_v43 = vpack.c.bf16 %v685_v1, %v685_v1  ;;  %v2058_v10 = vpop.f32.mrb[5].mxu1  ;;  %2156 = vmatprep.subr.bf16.mxu0 %v2262_v50 }
 0x245   :  { %v688_v44 = vpop.f32.mrb[6].mxu1 }
 0x246   :  { %v1357_v46 = vsel %vm518_vm1, %v1211_v43, 0  ;;  %v2059_v25 = vpop.f32.mrb[7].mxu1  ;;  %2147 = vmatmul.mubr.msk.bf16.vlgmr.msra.gmra.mrb[36].mxu0 %vm33_vm0, %v2680_v45 }
 0x247   :  { %v728_v55 = vpop.f32.mrb[8].mxu0  ;;  %2151 = vmatpush3.bf16.msra.mxu1 %v1357_v46  ;;  %2158 = vmatprep.mubr.msk.bf16.mxu0 %vm2263_vm2, %v2262_v50 }
 0x248   :  { %v1212_v48 = vpack.c.bf16 %v728_v55, %v728_v55  ;;  %v2064_v32 = vpop.f32.mrb[9].mxu0  ;;  %2162 = vmatprep.subr.bf16.mxu1 %v2262_v50 }
 0x249   :  { %v731_v33 = vpop.f32.mrb[10].mxu0 }
 0x24a   :  { %v1400_v28 = vsel %vm518_vm1, %v1212_v48, 0  ;;  %v2065_v35 = vpop.f32.mrb[11].mxu0  ;;  %2153 = vmatmul.mubr.msk.bf16.vlgmr.msra.gmra.mrb[36].mxu1 %vm33_vm0, %v2680_v45 }
 0x24b   :  { %v771_v49 = vpop.f32.mrb[8].mxu1  ;;  %2157 = vmatpush3.bf16.msra.mxu0 %v1400_v28  ;;  %2164 = vmatprep.mubr.msk.bf16.mxu1 %vm2263_vm2, %v2262_v50 }
 0x24c   :  { %v1213_v29 = vpack.c.bf16 %v771_v49, %v771_v49  ;;  %v2070_v52 = vpop.f32.mrb[9].mxu1  ;;  %2168 = vmatprep.subr.bf16.mxu0 %v2262_v50 }
 0x24d   :  { %v774_v53 = vpop.f32.mrb[10].mxu1 }
 0x24e   :  { %v1443_v57 = vsel %vm518_vm1, %v1213_v29, 0  ;;  %v2071_v58 = vpop.f32.mrb[11].mxu1  ;;  %2159 = vmatmul.mubr.msk.bf16.vlgmr.msra.gmra.mrb[40].mxu0 %vm33_vm0, %v2680_v45 }
 0x24f   :  { %v814_v38 = vpop.f32.mrb[12].mxu0  ;;  %2163 = vmatpush3.bf16.msra.mxu1 %v1443_v57  ;;  %2170 = vmatprep.mubr.msk.bf16.mxu0 %vm2263_vm2, %v2262_v50 }
 0x250   :  { %v1214_v42 = vpack.c.bf16 %v814_v38, %v814_v38  ;;  %v2076_v59 = vpop.f32.mrb[13].mxu0  ;;  %2174 = vmatprep.subr.bf16.mxu1 %v2262_v50 }
 0x251   :  { %v817_v8 = vpop.f32.mrb[14].mxu0 }
 0x252   :  { %v1486_v61 = vsel %vm518_vm1, %v1214_v42, 0  ;;  %v2077_v62 = vpop.f32.mrb[15].mxu0  ;;  %2165 = vmatmul.mubr.msk.bf16.vlgmr.msra.gmra.mrb[40].mxu1 %vm33_vm0, %v2680_v45 }
 0x253   :  { %v857_v22 = vpop.f32.mrb[12].mxu1  ;;  %2169 = vmatpush3.bf16.msra.mxu0 %v1486_v61  ;;  %2176 = vmatprep.mubr.msk.bf16.mxu1 %vm2263_vm2, %v2262_v50 }
 0x254   :  { %v1215_v5 = vpack.c.bf16 %v857_v22, %v857_v22  ;;  %v2082_v3 = vpop.f32.mrb[13].mxu1  ;;  %2180 = vmatprep.subr.bf16.mxu0 %v2262_v50 }
 0x255   :  { %v860_v24 = vpop.f32.mrb[14].mxu1 }
 0x256   :  { %v1529_v6 = vsel %vm518_vm1, %v1215_v5, 0  ;;  %v2083_v21 = vpop.f32.mrb[15].mxu1  ;;  %2171 = vmatmul.mubr.msk.bf16.vlgmr.msra.gmra.mrb[44].mxu0 %vm33_vm0, %v2680_v45 }
 0x257   :  { %v900_v47 = vpop.f32.mrb[16].mxu0  ;;  %2175 = vmatpush3.bf16.msra.mxu1 %v1529_v6  ;;  %2182 = vmatprep.mubr.msk.bf16.mxu0 %vm2263_vm2, %v2262_v50 }
 0x258   :  { %v1216_v7 = vpack.c.bf16 %v900_v47, %v900_v47  ;;  %v2088_v11 = vpop.f32.mrb[17].mxu0  ;;  %2186 = vmatprep.subr.bf16.mxu1 %v2262_v50 }
 0x259   :  { %v903_v14 = vpop.f32.mrb[18].mxu0 }
 0x25a   :  { %v1572_v4 = vsel %vm518_vm1, %v1216_v7, 0  ;;  %v2089_v60 = vpop.f32.mrb[19].mxu0  ;;  %2177 = vmatmul.mubr.msk.bf16.vlgmr.msra.gmra.mrb[44].mxu1 %vm33_vm0, %v2680_v45 }
 0x25b   :  { %v943_v9 = vpop.f32.mrb[16].mxu1  ;;  %2181 = vmatpush3.bf16.msra.mxu0 %v1572_v4  ;;  %2188 = vmatprep.mubr.msk.bf16.mxu1 %vm2263_vm2, %v2262_v50 }
 0x25c   :  { %v1217_v23 = vpack.c.bf16 %v943_v9, %v943_v9  ;;  %v2094_v56 = vpop.f32.mrb[17].mxu1  ;;  %2192 = vmatprep.subr.bf16.mxu0 %v2262_v50 }
 0x25d   :  { %v946_v15 = vpop.f32.mrb[18].mxu1 }
 0x25e   :  { %v1615_v26 = vsel %vm518_vm1, %v1217_v23, 0  ;;  %v2095_v12 = vpop.f32.mrb[19].mxu1  ;;  %2183 = vmatmul.mubr.msk.bf16.vlgmr.msra.gmra.mrb[48].mxu0 %vm33_vm0, %v2680_v45 }
 0x25f   :  { %v986_v18 = vpop.f32.mrb[20].mxu0  ;;  %2187 = vmatpush3.bf16.msra.mxu1 %v1615_v26  ;;  %2194 = vmatprep.mubr.msk.bf16.mxu0 %vm2263_vm2, %v2262_v50 }
 0x260   :  { %v1218_v30 = vpack.c.bf16 %v986_v18, %v986_v18  ;;  %v2100_v13 = vpop.f32.mrb[21].mxu0  ;;  %2198 = vmatprep.subr.bf16.mxu1 %v2262_v50 }
 0x261   :  { %v989_v19 = vpop.f32.mrb[22].mxu0 }
 0x262   :  { %v1658_v51 = vsel %vm518_vm1, %v1218_v30, 0  ;;  %v2101_v31 = vpop.f32.mrb[23].mxu0  ;;  %2189 = vmatmul.mubr.msk.bf16.vlgmr.msra.gmra.mrb[48].mxu1 %vm33_vm0, %v2680_v45 }
 0x263   :  { %v1029_v16 = vpop.f32.mrb[20].mxu1  ;;  %2193 = vmatpush3.bf16.msra.mxu0 %v1658_v51  ;;  %2200 = vmatprep.mubr.msk.bf16.mxu1 %vm2263_vm2, %v2262_v50 }
 0x264   :  { %v1219_v2 = vpack.c.bf16 %v1029_v16, %v1029_v16  ;;  %v2106_v37 = vpop.f32.mrb[21].mxu1  ;;  %2204 = vmatprep.subr.bf16.mxu0 %v2262_v50 }
 0x265   :  { %v1032_v27 = vpop.f32.mrb[22].mxu1 }
 0x266   :  { %v1701_v34 = vsel %vm518_vm1, %v1219_v2, 0  ;;  %v2107_v36 = vpop.f32.mrb[23].mxu1  ;;  %2195 = vmatmul.mubr.msk.bf16.vlgmr.msra.gmra.mrb[52].mxu0 %vm33_vm0, %v2680_v45 }
 0x267   :  { %v1072_v39 = vpop.f32.mrb[24].mxu0  ;;  %2199 = vmatpush3.bf16.msra.mxu1 %v1701_v34  ;;  %2206 = vmatprep.mubr.msk.bf16.mxu0 %vm2263_vm2, %v2262_v50 }
 0x268   :  { %v1220_v40 = vpack.c.bf16 %v1072_v39, %v1072_v39  ;;  %v2112_v17 = vpop.f32.mrb[25].mxu0  ;;  %2210 = vmatprep.subr.bf16.mxu1 %v2262_v50 }
 0x269   :  { %v1075_v20 = vpop.f32.mrb[26].mxu0 }
 0x26a   :  { %v1744_v41 = vsel %vm518_vm1, %v1220_v40, 0  ;;  %v2113_v54 = vpop.f32.mrb[27].mxu0  ;;  %2201 = vmatmul.mubr.msk.bf16.vlgmr.msra.gmra.mrb[52].mxu1 %vm33_vm0, %v2680_v45 }
 0x26b   :  { %v1115_v63 = vpop.f32.mrb[24].mxu1  ;;  %2205 = vmatpush3.bf16.msra.mxu0 %v1744_v41  ;;  %2212 = vmatprep.mubr.msk.bf16.mxu1 %vm2263_vm2, %v2262_v50 }
 0x26c   :  { %v1221_v0 = vpack.c.bf16 %v1115_v63, %v1115_v63  ;;  %v2118_v1 = vpop.f32.mrb[25].mxu1  ;;  %2216 = vmatprep.subr.bf16.mxu0 %v2262_v50 }
 0x26d   :  { %v1118_v43 = vpop.f32.mrb[26].mxu1 }
 0x26e   :  { %v1787_v10 = vsel %vm518_vm1, %v1221_v0, 0  ;;  %v2119_v44 = vpop.f32.mrb[27].mxu1  ;;  %2207 = vmatmul.mubr.msk.bf16.vlgmr.msra.gmra.mrb[56].mxu0 %vm33_vm0, %v2680_v45 }
 0x26f   :  { %v1158_v46 = vpop.f32.mrb[28].mxu0  ;;  %2211 = vmatpush3.bf16.msra.mxu1 %v1787_v10  ;;  %2218 = vmatprep.mubr.msk.bf16.mxu0 %vm2263_vm2, %v2262_v50 }
 0x270   :  { %v1222_v25 = vpack.c.bf16 %v1158_v46, %v1158_v46  ;;  %v2124_v55 = vpop.f32.mrb[29].mxu0  ;;  %2222 = vmatprep.subr.bf16.mxu1 %v2262_v50 }
 0x271   :  { %v1161_v48 = vpop.f32.mrb[30].mxu0 }
 0x272   :  { %v1830_v32 = vsel %vm518_vm1, %v1222_v25, 0  ;;  %v2125_v33 = vpop.f32.mrb[31].mxu0  ;;  %2213 = vmatmul.mubr.msk.bf16.vlgmr.msra.gmra.mrb[56].mxu1 %vm33_vm0, %v2680_v45 }
 0x273   :  { %v1201_v28 = vpop.f32.mrb[28].mxu1  ;;  %2217 = vmatpush3.bf16.msra.mxu0 %v1830_v32  ;;  %2224 = vmatprep.mubr.msk.bf16.mxu1 %vm2263_vm2, %v2262_v50 }
 0x274   :  { %v1223_v35 = vpack.c.bf16 %v1201_v28, %v1201_v28  ;;  %v2130_v49 = vpop.f32.mrb[29].mxu1 }
 0x275   :  { %v1204_v29 = vpop.f32.mrb[30].mxu1 }
 0x276   :  { %v1873_v52 = vsel %vm518_vm1, %v1223_v35, 0  ;;  %v2131_v53 = vpop.f32.mrb[31].mxu1  ;;  %2219 = vmatmul.mubr.msk.bf16.vlgmr.msra.gmra.mrb[60].mxu0 %vm33_vm0, %v2680_v45 }
 0x277   :  { %2223 = vmatpush3.bf16.msra.mxu1 %v1873_v52 }
 0x27a   :  { %2225 = vmatmul.mubr.msk.bf16.vlgmr.msra.gmra.mrb[60].mxu1 %vm33_vm0, %v2680_v45 }
 0x311   :  { %v1264_v57 = vpop.f32.mrb[32].mxu0 }
 0x312   :  { %1916 = vst.msk [vmem:[%s2839_s4] sm:$0xf] %vm1915_vm6, %v1264_v57  ;;  %v2136_v50 = vpop.f32.mrb[33].mxu0 }
 0x313   :  { %v1267_v58 = vpop.f32.mrb[34].mxu0 }
 0x314   :  { %v2137_v38 = vpop.f32.mrb[35].mxu0 }
 0x315   :  { %v1307_v42 = vpop.f32.mrb[32].mxu1 }
 0x316   :  { %1917 = vst.msk [vmem:[%s2839_s4 + $0x4] sm:$0xf] %vm1915_vm6, %v1307_v42  ;;  %v2142_v59 = vpop.f32.mrb[33].mxu1 }
 0x317   :  { %v1310_v8 = vpop.f32.mrb[34].mxu1 }
 0x318   :  { %v2143_v61 = vpop.f32.mrb[35].mxu1 }
 0x319   :  { %v1350_v45 = vpop.f32.mrb[36].mxu0 }
 0x31a   :  { %1918 = vst.msk [vmem:[%s2839_s4 + $0x8] sm:$0xf] %vm1915_vm6, %v1350_v45  ;;  %v2148_v62 = vpop.f32.mrb[37].mxu0 }
 0x31b   :  { %v1353_v22 = vpop.f32.mrb[38].mxu0 }
 0x31c   :  { %v2149_v5 = vpop.f32.mrb[39].mxu0 }
 0x31d   :  { %v1393_v3 = vpop.f32.mrb[36].mxu1 }
 0x31e   :  { %1919 = vst.msk [vmem:[%s2839_s4 + $0xc] sm:$0xf] %vm1915_vm6, %v1393_v3  ;;  %v2154_v24 = vpop.f32.mrb[37].mxu1 }
 0x31f   :  { %v1396_v6 = vpop.f32.mrb[38].mxu1 }
 0x320   :  { %v2155_v21 = vpop.f32.mrb[39].mxu1 }
 0x321   :  { %v1436_v47 = vpop.f32.mrb[40].mxu0 }
 0x322   :  { %1920 = vst.msk [vmem:[%s2839_s4 + $0x10] sm:$0xf] %vm1915_vm6, %v1436_v47  ;;  %v2160_v7 = vpop.f32.mrb[41].mxu0 }
 0x323   :  { %v1439_v11 = vpop.f32.mrb[42].mxu0 }
 0x324   :  { %v2161_v14 = vpop.f32.mrb[43].mxu0 }
 0x325   :  { %v1479_v4 = vpop.f32.mrb[40].mxu1 }
 0x326   :  { %1921 = vst.msk [vmem:[%s2839_s4 + $0x14] sm:$0xf] %vm1915_vm6, %v1479_v4  ;;  %v2166_v60 = vpop.f32.mrb[41].mxu1 }
 0x327   :  { %v1482_v9 = vpop.f32.mrb[42].mxu1 }
 0x328   :  { %v2167_v23 = vpop.f32.mrb[43].mxu1 }
 0x329   :  { %v1522_v56 = vpop.f32.mrb[44].mxu0 }
 0x32a   :  { %1922 = vst.msk [vmem:[%s2839_s4 + $0x18] sm:$0xf] %vm1915_vm6, %v1522_v56  ;;  %v2172_v15 = vpop.f32.mrb[45].mxu0 }
 0x32b   :  { %v1525_v26 = vpop.f32.mrb[46].mxu0 }
 0x32c   :  { %v2173_v12 = vpop.f32.mrb[47].mxu0 }
 0x32d   :  { %v1565_v18 = vpop.f32.mrb[44].mxu1 }
 0x32e   :  { %1923 = vst.msk [vmem:[%s2839_s4 + $0x1c] sm:$0xf] %vm1915_vm6, %v1565_v18  ;;  %v2178_v30 = vpop.f32.mrb[45].mxu1 }
 0x32f   :  { %v1568_v13 = vpop.f32.mrb[46].mxu1 }
 0x330   :  { %v2179_v19 = vpop.f32.mrb[47].mxu1 }
 0x331   :  { %v1608_v51 = vpop.f32.mrb[48].mxu0 }
 0x332   :  { %1924 = vst.msk [vmem:[%s2839_s4 + $0x20] sm:$0xf] %vm1915_vm6, %v1608_v51  ;;  %v2184_v31 = vpop.f32.mrb[49].mxu0 }
 0x333   :  { %v1611_v16 = vpop.f32.mrb[50].mxu0 }
 0x334   :  { %v2185_v2 = vpop.f32.mrb[51].mxu0 }
 0x335   :  { %v1651_v37 = vpop.f32.mrb[48].mxu1 }
 0x336   :  { %1925 = vst.msk [vmem:[%s2839_s4 + $0x24] sm:$0xf] %vm1915_vm6, %v1651_v37  ;;  %v2190_v27 = vpop.f32.mrb[49].mxu1 }
 0x337   :  { %v1654_v34 = vpop.f32.mrb[50].mxu1 }
 0x338   :  { %v2191_v36 = vpop.f32.mrb[51].mxu1 }
 0x339   :  { %v1694_v39 = vpop.f32.mrb[52].mxu0 }
 0x33a   :  { %1926 = vst.msk [vmem:[%s2839_s4 + $0x28] sm:$0xf] %vm1915_vm6, %v1694_v39  ;;  %v2196_v40 = vpop.f32.mrb[53].mxu0 }
 0x33b   :  { %v1697_v17 = vpop.f32.mrb[54].mxu0 }
 0x33c   :  { %v2197_v20 = vpop.f32.mrb[55].mxu0 }
 0x33d   :  { %v1737_v41 = vpop.f32.mrb[52].mxu1 }
 0x33e   :  { %1927 = vst.msk [vmem:[%s2839_s4 + $0x2c] sm:$0xf] %vm1915_vm6, %v1737_v41  ;;  %v2202_v54 = vpop.f32.mrb[53].mxu1 }
 0x33f   :  { %v1740_v63 = vpop.f32.mrb[54].mxu1 }
 0x340   :  { %v2203_v0 = vpop.f32.mrb[55].mxu1 }
 0x341   :  { %v1780_v1 = vpop.f32.mrb[56].mxu0 }
 0x342   :  { %1928 = vst.msk [vmem:[%s2839_s4 + $0x30] sm:$0xf] %vm1915_vm6, %v1780_v1  ;;  %v2208_v43 = vpop.f32.mrb[57].mxu0 }
 0x343   :  { %v1783_v10 = vpop.f32.mrb[58].mxu0 }
 0x344   :  { %v2209_v44 = vpop.f32.mrb[59].mxu0 }
 0x345   :  { %v1823_v46 = vpop.f32.mrb[56].mxu1 }
 0x346   :  { %1929 = vst.msk [vmem:[%s2839_s4 + $0x34] sm:$0xf] %vm1915_vm6, %v1823_v46  ;;  %v2214_v25 = vpop.f32.mrb[57].mxu1 }
 0x347   :  { %v1826_v55 = vpop.f32.mrb[58].mxu1 }
 0x348   :  { %v2215_v48 = vpop.f32.mrb[59].mxu1 }
 0x349   :  { %v1866_v32 = vpop.f32.mrb[60].mxu0 }
 0x34a   :  { %1930 = vst.msk [vmem:[%s2839_s4 + $0x38] sm:$0xf] %vm1915_vm6, %v1866_v32  ;;  %v2220_v33 = vpop.f32.mrb[61].mxu0 }
 0x34b   :  { %v1869_v28 = vpop.f32.mrb[62].mxu0 }
 0x34c   :  { %v2221_v35 = vpop.f32.mrb[63].mxu0 }
 0x34d   :  { %v1909_v49 = vpop.f32.mrb[60].mxu1 }
 0x34e   :  { %1931 = vst.msk [vmem:[%s2839_s4 + $0x3c] sm:$0xf] %vm1915_vm6, %v1909_v49  ;;  %v2226_v29 = vpop.f32.mrb[61].mxu1 }
 0x34f   :  { %v1912_v52 = vpop.f32.mrb[62].mxu1 }
 0x350   :  { %v2227_v53 = vpop.f32.mrb[63].mxu1 }

// kernel: unet_forward.33
= control target key start
LH: loop header
LB: loop body
LE: loop exit
PB: predicated region body
PF: predicated region fallthrough
CT: control target
= control target key end

     0   :  { %s544_s12 = smov 0   ;;  %s608_s0 = inlined_call_operand.vmem [shape: f32[2,16,38], index: 0, kind: input, shape index: {}]   ;;  %s609_s1 = inlined_call_operand.vmem [shape: bf16[16,144], index: 1, kind: input, shape index: {}]   ;;  %s610_s2 = inlined_call_operand.vmem [shape: f32[1,24], index: 2, kind: input, shape index: {}]   ;;  %s611_s3 = inlined_call_operand.vmem [shape: f32[2,16,24], index: 3, kind: output, shape index: {}]  }
   0x1 LB: > { %s468_s13 = sadd.s32 4294967295, %s513_s12   ;;  %p472_p0 = scmp.ge.s32.totalorder %s513_s12, 1  ;;  %s513_s12 = sphi %s544_s12, %s13_s12  }
   0x2   : > { %p137_p1 = scmp.lt.s32.totalorder %s513_s12, 3 }
   0x4   : > { %p138_p2 = pnand %p472_p0, %p137_p1 }
   0x5   : > { %p161_p3 = scmp.lt.s32.totalorder (!%p138_p2), %s468_s13, 1  ;;  %v515_v0 = vmov (!%p138_p2), 0   ;;  %vm174_vm0 = vcmask (!%p138_p2), 195584   ;;  %s516_s18 = smov (!%p138_p2), 126   ;;  %v504_v6 = vld [vmem:[%s609_s1 + $0x4] ss:$8 sps:$4 sm:$0xff] (!%p138_p2)  }
   0x6   : > { %141 = sbr.rel (%p138_p2) target bundleno = 706 (0x2c2), region = 32  ;;  %315 = vmatprep.subr.bf16.mxu0 (!%p138_p2), %v515_v0  ;;  %s517_s19 = smov (!%p138_p2), 127   ;;  %vm311_vm1 = vcmask (!%p138_p2), 130048   ;;  %v502_v47 = vld [vmem:[%s609_s1] ss:$8 sps:$4 sm:$0xff] (!%p138_p2)  }
   0x7   : > { %s518_s20 = smov (!%p138_p2), 122   ;;  %s519_s21 = smov (!%p138_p2), 121   ;;  %479 = vmatprep.mubr.msk.bf16.mxu0 (!%p138_p2), %vm311_vm1, %v504_v6  ;;  %v480_v48 = vld [vmem:[%s610_s2] ss:$0 sm:$0xff] (!%p138_p2) }
   0x8   : > { %s520_s22 = smov (!%p138_p2), 120   ;;  %s521_s23 = smov (!%p138_p2), 116  }
   0x9   : > { %s522_s24 = smov (!%p138_p2), 115   ;;  %s523_s25 = smov (!%p138_p2), 114  }
   0xd   : > { %s613_s13 = smov (!%p161_p3, %s468_s13), 1 }
   0xe   : > { %s483_s14 = sshll.u32 %s613_s13, 4 }
   0xf   : > { %s165_s17 = scalar_lea.vmem %s608_s0, %s483_s14  ;;  %s170_s7 = scalar_lea.vmem %s611_s3, %s483_s14 }
  0x10   : > { %v189_v1 = vld [vmem:[%s165_s17] sm:$0xff]  ;;  %v190_v2 = vld [vmem:[%s165_s17 + $0x8] sm:$0xff] }
  0x11   : > { %193 = vrot.lane.b32.xlu1 %v189_v1, %s516_s18  ;;  %181 = vrot.lane.b32.xlu0 %v189_v1, %s517_s19  ;;  %175 = vst.msk [vmem:[#allocation2] sm:$0xff] %vm174_vm0, %v189_v1  ;;  %176 = vst.msk [vmem:[#allocation2 + $0x8] sm:$0xff] %vm174_vm0, %v190_v2 }
  0x15   : > { %195 = vrot.lane.b32.xlu1 %v190_v2, %s516_s18  ;;  %183 = vrot.lane.b32.xlu0 %v190_v2, %s517_s19 }
  0x18   : > { %v275_v3 = vld [vmem:[#allocation2] sm:$0xff]  ;;  %v276_v4 = vld [vmem:[#allocation2 + $0x8] sm:$0xff] }
  0x19   : > { %207 = vrot.lane.b32.xlu1 %v190_v2, %s518_s20  ;;  %205 = vrot.lane.b32.xlu0 %v189_v1, %s518_s20  ;;  %v293_v5 = vpack.c.bf16 %v276_v4, %v275_v3 }
  0x1b   : > { %316 = vmatpush1.bf16.msra.mxu0 %v293_v5 }
  0x1c   : > { %317 = vmatprep.subr.bf16.mxu0 %v515_v0 }
  0x1d   : > { %219 = vrot.lane.b32.xlu1 %v190_v2, %s519_s21  ;;  %217 = vrot.lane.b32.xlu0 %v189_v1, %s519_s21 }
  0x21   : > { %231 = vrot.lane.b32.xlu1 %v190_v2, %s520_s22  ;;  %229 = vrot.lane.b32.xlu0 %v189_v1, %s520_s22 }
  0x25   : > { %243 = vrot.lane.b32.xlu1 %v190_v2, %s521_s23  ;;  %241 = vrot.lane.b32.xlu0 %v189_v1, %s521_s23 }
  0x29   : > { %255 = vrot.lane.b32.xlu1 %v190_v2, %s522_s24  ;;  %253 = vrot.lane.b32.xlu0 %v189_v1, %s522_s24 }
  0x2d   : > { %267 = vrot.lane.b32.xlu1 %v190_v2, %s523_s25  ;;  %265 = vrot.lane.b32.xlu0 %v189_v1, %s523_s25 }
  0x83   : > { %v194_v7 = vpop.permute.xlu1 %193  ;;  %v182_v8 = vpop.permute.xlu0 %181 }
  0x84   : > { %199 = vst.msk [vmem:[#allocation2 + $0x20] sm:$0xff] %vm174_vm0, %v194_v7  ;;  %187 = vst.msk [vmem:[#allocation2 + $0x10] sm:$0xff] %vm174_vm0, %v182_v8 }
  0x87   : > { %v196_v9 = vpop.permute.xlu1 %195  ;;  %v184_v10 = vpop.permute.xlu0 %183 }
  0x88   : > { %200 = vst.msk [vmem:[#allocation2 + $0x28] sm:$0xff] %vm174_vm0, %v196_v9  ;;  %188 = vst.msk [vmem:[#allocation2 + $0x18] sm:$0xff] %vm174_vm0, %v184_v10 }
  0x8b   : > { %v208_v11 = vpop.permute.xlu1 %207  ;;  %v206_v12 = vpop.permute.xlu0 %205  ;;  %v277_v13 = vld [vmem:[#allocation2 + $0x10] sm:$0xff]  ;;  %v279_v18 = vld [vmem:[#allocation2 + $0x20] sm:$0xff] }
  0x8c   : > { %212 = vst.msk [vmem:[#allocation2 + $0x38] sm:$0xff] %vm174_vm0, %v208_v11  ;;  %211 = vst.msk [vmem:[#allocation2 + $0x30] sm:$0xff] %vm174_vm0, %v206_v12 }
  0x8f   : > { %v278_v14 = vld [vmem:[#allocation2 + $0x18] sm:$0xff]  ;;  %v220_v15 = vpop.permute.xlu1 %219  ;;  %v218_v16 = vpop.permute.xlu0 %217  ;;  %v280_v19 = vld [vmem:[#allocation2 + $0x28] sm:$0xff] }
  0x90   : > { %v294_v17 = vpack.c.bf16 %v278_v14, %v277_v13  ;;  %224 = vst.msk [vmem:[#allocation2 + $0x48] sm:$0xff] %vm174_vm0, %v220_v15  ;;  %223 = vst.msk [vmem:[#allocation2 + $0x40] sm:$0xff] %vm174_vm0, %v218_v16  ;;  %v295_v24 = vpack.c.bf16 %v280_v19, %v279_v18 }
  0x92   : > { %318 = vmatpush1.bf16.msra.mxu0 %v294_v17 }
  0x93   : > { %319 = vmatprep.subr.bf16.mxu0 %v515_v0  ;;  %v232_v20 = vpop.permute.xlu1 %231  ;;  %v230_v21 = vpop.permute.xlu0 %229  ;;  %v281_v22 = vld [vmem:[#allocation2 + $0x30] sm:$0xff]  ;;  %v282_v23 = vld [vmem:[#allocation2 + $0x38] sm:$0xff] }
  0x94   : > { %236 = vst.msk [vmem:[#allocation2 + $0x58] sm:$0xff] %vm174_vm0, %v232_v20  ;;  %235 = vst.msk [vmem:[#allocation2 + $0x50] sm:$0xff] %vm174_vm0, %v230_v21  ;;  %v296_v25 = vpack.c.bf16 %v282_v23, %v281_v22 }
  0x96   : > { %320 = vmatpush1.bf16.msra.mxu0 %v295_v24 }
  0x97   : > { %321 = vmatprep.subr.bf16.mxu0 %v515_v0  ;;  %v244_v26 = vpop.permute.xlu1 %243  ;;  %v242_v27 = vpop.permute.xlu0 %241  ;;  %v283_v28 = vld [vmem:[#allocation2 + $0x40] sm:$0xff]  ;;  %v284_v29 = vld [vmem:[#allocation2 + $0x48] sm:$0xff] }
  0x98   : > { %248 = vst.msk [vmem:[#allocation2 + $0x68] sm:$0xff] %vm174_vm0, %v244_v26  ;;  %247 = vst.msk [vmem:[#allocation2 + $0x60] sm:$0xff] %vm174_vm0, %v242_v27  ;;  %v297_v30 = vpack.c.bf16 %v284_v29, %v283_v28 }
  0x9a   : > { %322 = vmatpush1.bf16.msra.mxu0 %v296_v25 }
  0x9b   : > { %323 = vmatprep.subr.bf16.mxu0 %v515_v0  ;;  %v256_v31 = vpop.permute.xlu1 %255  ;;  %v254_v32 = vpop.permute.xlu0 %253  ;;  %v285_v33 = vld [vmem:[#allocation2 + $0x50] sm:$0xff]  ;;  %v286_v34 = vld [vmem:[#allocation2 + $0x58] sm:$0xff] }
  0x9c   : > { %260 = vst.msk [vmem:[#allocation2 + $0x78] sm:$0xff] %vm174_vm0, %v256_v31  ;;  %259 = vst.msk [vmem:[#allocation2 + $0x70] sm:$0xff] %vm174_vm0, %v254_v32  ;;  %v298_v35 = vpack.c.bf16 %v286_v34, %v285_v33 }
  0x9e   : > { %324 = vmatpush1.bf16.msra.mxu0 %v297_v30 }
  0x9f   : > { %325 = vmatprep.subr.bf16.mxu0 %v515_v0  ;;  %v268_v36 = vpop.permute.xlu1 %267  ;;  %v266_v37 = vpop.permute.xlu0 %265  ;;  %v287_v38 = vld [vmem:[#allocation2 + $0x60] sm:$0xff]  ;;  %v288_v39 = vld [vmem:[#allocation2 + $0x68] sm:$0xff] }
  0xa0   : > { %272 = vst.msk [vmem:[#allocation2 + $0x88] sm:$0xff] %vm174_vm0, %v268_v36  ;;  %271 = vst.msk [vmem:[#allocation2 + $0x80] sm:$0xff] %vm174_vm0, %v266_v37  ;;  %v299_v40 = vpack.c.bf16 %v288_v39, %v287_v38 }
  0xa2   : > { %326 = vmatpush1.bf16.msra.mxu0 %v298_v35 }
  0xa3   : > { %327 = vmatprep.subr.bf16.mxu0 %v515_v0  ;;  %v289_v41 = vld [vmem:[#allocation2 + $0x70] sm:$0xff]  ;;  %v290_v42 = vld [vmem:[#allocation2 + $0x78] sm:$0xff] }
  0xa4   : > { %v300_v43 = vpack.c.bf16 %v290_v42, %v289_v41 }
  0xa6   : > { %328 = vmatpush1.bf16.msra.mxu0 %v299_v40 }
  0xa7   : > { %329 = vmatprep.subr.bf16.mxu0 %v515_v0  ;;  %v291_v44 = vld [vmem:[#allocation2 + $0x80] sm:$0xff]  ;;  %v292_v45 = vld [vmem:[#allocation2 + $0x88] sm:$0xff] }
  0xa8   : > { %v301_v46 = vpack.c.bf16 %v292_v45, %v291_v44 }
  0xaa   : > { %330 = vmatpush1.bf16.msra.mxu0 %v300_v43 }
  0xab   : > { %331 = vmatprep.subr.bf16.mxu0 %v515_v0 }
  0xae   : > { %332 = vmatpush1.bf16.msra.mxu0 %v301_v46 }
  0xb1   : > { %348 = vmatmul.mubr.bf16.vlgmr.msra.gmra.mrb[0].mxu0 %v502_v47 }
 0x184   : > { %v349_v49 = vpop.f32.mrb[0].mxu0 }
 0x185   : > { %v363_v50 = vmul.f32 %v480_v48, %v349_v49  ;;  %v351_v51 = vpop.f32.mrb[1].mxu0 }
 0x186   : > { %v352_v52 = vpop.f32.mrb[2].mxu0 }
 0x187   : > { %412 = vst.msk [vmem:[%s170_s7 + $0x8] sm:$0xff] %vm174_vm0, %v352_v52  ;;  %v354_v53 = vpop.f32.mrb[3].mxu0  ;;  %v365_v54 = vsel %vm174_vm0, %v363_v50, 0.0 }
 0x188   : > { %366 = vadd.xlane.f32.xlu0 %v365_v54 }
 0x215   : > { %v367_v55 = vpop.xlane.xlu0 %366 }
 0x216   : > { %v372_v56 = vmul.f32 0.0625, %v367_v55 }
 0x218   : > { %v374_v57 = vsub.f32 %v349_v49, %v372_v56 }
 0x21a   : > { %v376_v58 = vmul.f32 %v480_v48, %v374_v57 }
 0x21c   : > { %v378_v59 = vmul.f32 %v376_v58, %v376_v58 }
 0x21e   : > { %v380_v60 = vsel %vm174_vm0, %v378_v59, 0.0 }
 0x21f   : > { %381 = vadd.xlane.f32.xlu1 %v380_v60 }
 0x2ac   : > { %v382_v61 = vpop.xlane.xlu1 %381 }
 0x2ad   : > { %v386_v62 = vmul.f32 0.0625, %v382_v61 }
 0x2af   : > { %v388_v63 = vadd.f32 1e-05, %v386_v62 }
 0x2b1   : > { %505 = vrsqrt.f32 %v388_v63 }
 0x2bb   : > { %v506_v0 = vpop.eup %505 }
 0x2bc   : > { %v392_v1 = vmul.f32 %v506_v0, %v374_v57 }
 0x2be   : > { %vm394_vm2 = vcmp.ge.f32.partialorder %v392_v1, 0.0  ;;  %v396_v2 = vmul.f32 0.2, %v392_v1 }
 0x2c0   : > { %v398_v3 = vsel %vm394_vm2, %v392_v1, %v396_v2 }
 0x2c1   : > { %411 = vst.msk [vmem:[%s170_s7] sm:$0xff] %vm174_vm0, %v398_v3 }
 0x2c2 PF: > { %s13_s12 = sadd.s32 1, %s513_s12  }
 0x2c3   : > { %p10_p4 = scmp.ge.s32.totalorder %s13_s12, 4  }
 0x2c5   :  { %12 = sbr.rel (!%p10_p4) target bundleno = 1 (0x1), region = 62 }

// kernel: unet_forward.34
= control target key start
LH: loop header
LB: loop body
LE: loop exit
PB: predicated region body
PF: predicated region fallthrough
CT: control target
= control target key end

     0   :  { %vm10_vm0 = vcmask 130048   ;;  %s81_s0 = inlined_call_operand.vmem [shape: f32[16,16], index: 0, kind: input, shape index: {}]   ;;  %s82_s1 = inlined_call_operand.vmem [shape: f32[16,16], index: 1, kind: output, shape index: {}]  }
   0x1   :  { %v8_v0 = vld [vmem:[%s81_s0] sm:$0xff]  ;;  %v9_v1 = vld [vmem:[%s81_s0 + $0x8] sm:$0xff] }
   0x2   :  { %v11_v2 = vsel %vm10_vm0, %v8_v0, 0.0  ;;  %v14_v3 = vsel %vm10_vm0, %v9_v1, 0.0 }
   0x3   :  { %12 = vadd.xlane.f32.xlu0 %v11_v2 }
   0x7   :  { %15 = vadd.xlane.f32.xlu0 %v14_v3 }
  0x90   :  { %v13_v4 = vpop.xlane.xlu0 %12 }
  0x91   :  { %v17_v5 = vmul.f32 0.0625, %v13_v4 }
  0x93   :  { %v19_v6 = vsub.f32 %v8_v0, %v17_v5 }
  0x94   :  { %v16_v7 = vpop.xlane.xlu0 %15 }
  0x95   :  { %v18_v8 = vmul.f32 0.0625, %v16_v7  ;;  %v21_v9 = vmul.f32 %v19_v6, %v19_v6 }
  0x97   :  { %v20_v10 = vsub.f32 %v9_v1, %v18_v8  ;;  %v23_v11 = vsel %vm10_vm0, %v21_v9, 0.0 }
  0x98   :  { %24 = vadd.xlane.f32.xlu1 %v23_v11 }
  0x99   :  { %v22_v12 = vmul.f32 %v20_v10, %v20_v10 }
  0x9b   :  { %v26_v13 = vsel %vm10_vm0, %v22_v12, 0.0 }
  0x9c   :  { %27 = vadd.xlane.f32.xlu1 %v26_v13 }
 0x125   :  { %v25_v14 = vpop.xlane.xlu1 %24 }
 0x126   :  { %v29_v15 = vmul.f32 0.0625, %v25_v14 }
 0x128   :  { %v31_v16 = vadd.f32 1e-05, %v29_v15 }
 0x129   :  { %v28_v17 = vpop.xlane.xlu1 %27 }
 0x12a   :  { %49 = vrsqrt.f32 %v31_v16  ;;  %v30_v18 = vmul.f32 0.0625, %v28_v17 }
 0x12c   :  { %v32_v19 = vadd.f32 1e-05, %v30_v18 }
 0x12e   :  { %51 = vrsqrt.f32 %v32_v19 }
 0x134   :  { %v50_v20 = vpop.eup %49 }
 0x135   :  { %v35_v21 = vmul.f32 %v50_v20, %v19_v6 }
 0x137   :  { %vm37_vm1 = vcmp.ge.f32.partialorder %v35_v21, 0.0  ;;  %v39_v22 = vmul.f32 0.2, %v35_v21 }
 0x138   :  { %v52_v23 = vpop.eup %51 }
 0x139   :  { %v41_v24 = vsel %vm37_vm1, %v35_v21, %v39_v22  ;;  %v36_v25 = vmul.f32 %v52_v23, %v20_v10 }
 0x13a   :  { %43 = vst.msk [vmem:[%s82_s1] sm:$0xff] %vm10_vm0, %v41_v24 }
 0x13b   :  { %vm38_vm2 = vcmp.ge.f32.partialorder %v36_v25, 0.0  ;;  %v40_v26 = vmul.f32 0.2, %v36_v25 }
 0x13d   :  { %v42_v27 = vsel %vm38_vm2, %v36_v25, %v40_v26 }
 0x13e   :  { %44 = vst.msk [vmem:[%s82_s1 + $0x8] sm:$0xff] %vm10_vm0, %v42_v27 }

// kernel: unet_forward.37
= control target key start
LH: loop header
LB: loop body
LE: loop exit
PB: predicated region body
PF: predicated region fallthrough
CT: control target
= control target key end

     0   :  { %s343_s9 = smov 0   ;;  %s368_s0 = inlined_call_operand.vmem [shape: f32[2,32,16], index: 0, kind: input, shape index: {}]   ;;  %s369_s1 = inlined_call_operand.vmem [shape: bf16[32,32], index: 1, kind: input, shape index: {}]   ;;  %s370_s2 = inlined_call_operand.vmem [shape: f32[2,32,16], index: 2, kind: output, shape index: {}]  }
   0x1 LB: > { %s281_s10 = sadd.s32 4294967295, %s326_s9   ;;  %p285_p0 = scmp.ge.s32.totalorder %s326_s9, 1  ;;  %s326_s9 = sphi %s343_s9, %s12_s9  }
   0x2   : > { %p112_p1 = scmp.lt.s32.totalorder %s326_s9, 3 }
   0x4   : > { %p113_p2 = pnand %p285_p0, %p112_p1 }
   0x5   : > { %p134_p3 = scmp.lt.s32.totalorder (!%p113_p2), %s281_s10, 1  ;;  %v318_v0 = vld [vmem:[%s369_s1] sm:$0xff] (!%p113_p2)   ;;  %vm165_vm0 = vcmask (!%p113_p2), 261120   ;;  %v319_v7 = vld [vmem:[%s369_s1 + $0x8] sm:$0xff] (!%p113_p2)   ;;  %vm221_vm1 = vcmask (!%p113_p2), 130048  }
   0x6   : > { %116 = sbr.rel (%p113_p2) target bundleno = 243 (0xf3), region = 28  ;;  %306 = vmatprep.mubr.msk.bf16.mxu0 (!%p113_p2), %vm165_vm0, %v318_v0 }
   0xd   : > { %s372_s10 = smov (!%p134_p3, %s281_s10), 1 }
   0xe   : > { %s296_s13 = sshll.u32 %s372_s10, 5 }
   0xf   : > { %s138_s16 = scalar_lea.vmem %s368_s0, %s296_s13  ;;  %s143_s21 = scalar_lea.vmem %s370_s2, %s296_s13 }
  0x10   : > { %v149_v1 = vld [vmem:[%s138_s16] sm:$0xff]  ;;  %v150_v2 = vld [vmem:[%s138_s16 + $0x8] sm:$0xff]  ;;  %v151_v3 = vld [vmem:[%s138_s16 + $0x10] sm:$0xff] }
  0x11   : > { %v153_v4 = vpack.c.bf16 %v150_v2, %v149_v1  ;;  %v152_v5 = vld [vmem:[%s138_s16 + $0x18] sm:$0xff] }
  0x12   : > { %v154_v6 = vpack.c.bf16 %v152_v5, %v151_v3 }
  0x13   : > { %302 = vmatprep.subr.bf16.mxu0 %v153_v4 }
  0x14   : > { %303 = vmatpush3.bf16.msra.mxu0 %v153_v4 }
  0x15   : > { %304 = vmatprep.subr.bf16.mxu0 %v154_v6 }
  0x18   : > { %305 = vmatpush3.bf16.msra.mxu0 %v154_v6 }
  0x1b   : > { %307 = vmatmul.mubr.msk.bf16.vlgmr.msra.gmra.mrb[0].mxu0 %vm165_vm0, %v319_v7 }
  0xee   : > { %v308_v8 = vpop.f32.mrb[0].mxu0 }
  0xef   : > { %224 = vst.msk [vmem:[%s143_s21 + $0x10] sm:$0xff] %vm221_vm1, %v308_v8  ;;  %v206_v9 = vpop.f32.mrb[1].mxu0 }
  0xf0   : > { %222 = vst.msk [vmem:[%s143_s21] sm:$0xff] %vm221_vm1, %v206_v9  ;;  %v309_v10 = vpop.f32.mrb[2].mxu0 }
  0xf1   : > { %225 = vst.msk [vmem:[%s143_s21 + $0x18] sm:$0xff] %vm221_vm1, %v309_v10  ;;  %v209_v11 = vpop.f32.mrb[3].mxu0 }
  0xf2   : > { %223 = vst.msk [vmem:[%s143_s21 + $0x8] sm:$0xff] %vm221_vm1, %v209_v11 }
  0xf3 PF: > { %s12_s9 = sadd.s32 1, %s326_s9  }
  0xf4   : > { %p9_p4 = scmp.ge.s32.totalorder %s12_s9, 4  }
  0xf6   :  { %11 = sbr.rel (!%p9_p4) target bundleno = 1 (0x1), region = 58 }

// kernel: unet_forward.35
= control target key start
LH: loop header
LB: loop body
LE: loop exit
PB: predicated region body
PF: predicated region fallthrough
CT: control target
= control target key end

     0   :  { %s757_s12 = smov 0   ;;  %s833_s0 = inlined_call_operand.vmem [shape: f32[2,32,38], index: 0, kind: input, shape index: {}]   ;;  %s834_s1 = inlined_call_operand.vmem [shape: bf16[16,288], index: 1, kind: input, shape index: {}]   ;;  %s835_s2 = inlined_call_operand.vmem [shape: f32[1,24], index: 2, kind: input, shape index: {}]   ;;  %s836_s3 = inlined_call_operand.vmem [shape: f32[2,16,24], index: 3, kind: output, shape index: {}]  }
   0x1 LB: > { %s644_s13 = sadd.s32 4294967295, %s725_s12   ;;  %p648_p0 = scmp.ge.s32.totalorder %s725_s12, 1  ;;  %s725_s12 = sphi %s757_s12, %s13_s12  }
   0x2   : > { %p137_p1 = scmp.lt.s32.totalorder %s725_s12, 3 }
   0x4   : > { %p138_p2 = pnand %p648_p0, %p137_p1 }
   0x5   : > { %p161_p3 = scmp.lt.s32.totalorder (!%p138_p2), %s644_s13, 1  ;;  %vm176_vm0 = vcmask (!%p138_p2), 195584   ;;  %s727_s18 = smov (!%p138_p2), 121   ;;  %v734_v4 = vmov (!%p138_p2), 0.0   ;;  %v715_v5 = vld [vmem:[%s834_s1 + $0x4] ss:$12 sps:$4 sm:$0xff] (!%p138_p2)  }
   0x6   : > { %141 = sbr.rel (%p138_p2) target bundleno = 736 (0x2e0), region = 32  ;;  %s728_s19 = smov (!%p138_p2), 120   ;;  %687 = vmatprep.subr.bf16.mxu1 (!%p138_p2), %v734_v4  ;;  %482 = vmatprep.mubr.bf16.mxu0 (!%p138_p2), %v715_v5  ;;  %vm736_vm1 = vmmov (!%p138_p2), 0   ;;  %vm446_vm2 = vcmask (!%p138_p2), 261120  }
   0x7   : > { %s729_s20 = smov (!%p138_p2), 127   ;;  %s730_s21 = smov (!%p138_p2), 116   ;;  %691 = vmatprep.mubr.msk.bf16.mxu1 (!%p138_p2), %vm736_vm1, %v734_v4 }
   0x8   : > { %s731_s22 = smov (!%p138_p2), 126   ;;  %s732_s23 = smov (!%p138_p2), 115  }
   0x9   : > { %s733_s24 = smov (!%p138_p2), 122   ;;  %s735_s25 = smov (!%p138_p2), 114  }
   0xd   : > { %s838_s13 = smov (!%p161_p3, %s644_s13), 1 }
   0xe   : > { %s660_s14 = sshll.u32 %s838_s13, 5  ;;  %s661_s5 = sshll.u32 %s838_s13, 4 }
   0xf   : > { %s165_s17 = scalar_lea.vmem %s833_s0, %s660_s14  ;;  %s170_s10 = scalar_lea.vmem %s836_s3, %s661_s5 }
  0x10   : > { %v255_v0 = vld [vmem:[%s165_s17 + $0x10] sm:$0xff]  ;;  %v253_v1 = vld [vmem:[%s165_s17] sm:$0xff]  ;;  %v256_v2 = vld [vmem:[%s165_s17 + $0x18] sm:$0xff] }
  0x11   : > { %265 = vrot.lane.b32.xlu1 %v255_v0, %s727_s18  ;;  %261 = vrot.lane.b32.xlu0 %v253_v1, %s727_s18  ;;  %v254_v3 = vld [vmem:[%s165_s17 + $0x8] sm:$0xff]  ;;  %177 = vst.msk [vmem:[#allocation2] sm:$0xff] %vm176_vm0, %v253_v1  ;;  %179 = vst.msk [vmem:[#allocation2 + $0x10] sm:$0xff] %vm176_vm0, %v255_v0 }
  0x12   : > { %180 = vst.msk [vmem:[#allocation2 + $0x18] sm:$0xff] %vm176_vm0, %v256_v2  ;;  %178 = vst.msk [vmem:[#allocation2 + $0x8] sm:$0xff] %vm176_vm0, %v254_v3 }
  0x15   : > { %267 = vrot.lane.b32.xlu1 %v256_v2, %s727_s18  ;;  %263 = vrot.lane.b32.xlu0 %v254_v3, %s727_s18 }
  0x18   : > { %v377_v12 = vld [vmem:[#allocation2] sm:$0xff]  ;;  %v379_v21 = vld [vmem:[#allocation2 + $0x10] sm:$0xff] }
  0x19   : > { %287 = vrot.lane.b32.xlu1 %v254_v3, %s728_s19  ;;  %285 = vrot.lane.b32.xlu0 %v253_v1, %s728_s19  ;;  %v378_v13 = vld [vmem:[#allocation2 + $0x8] sm:$0xff]  ;;  %v380_v22 = vld [vmem:[#allocation2 + $0x18] sm:$0xff] }
  0x1a   : > { %v413_v18 = vpack.c.bf16 %v378_v13, %v377_v12  ;;  %v414_v27 = vpack.c.bf16 %v380_v22, %v379_v21 }
  0x1d   : > { %191 = vrot.lane.b32.xlu1 %v254_v3, %s729_s20  ;;  %189 = vrot.lane.b32.xlu0 %v253_v1, %s729_s20 }
  0x21   : > { %291 = vrot.lane.b32.xlu1 %v256_v2, %s728_s19  ;;  %289 = vrot.lane.b32.xlu0 %v255_v0, %s728_s19 }
  0x25   : > { %195 = vrot.lane.b32.xlu1 %v256_v2, %s729_s20  ;;  %193 = vrot.lane.b32.xlu0 %v255_v0, %s729_s20 }
  0x29   : > { %311 = vrot.lane.b32.xlu1 %v254_v3, %s730_s21  ;;  %309 = vrot.lane.b32.xlu0 %v253_v1, %s730_s21 }
  0x2d   : > { %215 = vrot.lane.b32.xlu1 %v254_v3, %s731_s22  ;;  %213 = vrot.lane.b32.xlu0 %v253_v1, %s731_s22 }
  0x31   : > { %315 = vrot.lane.b32.xlu1 %v256_v2, %s730_s21  ;;  %313 = vrot.lane.b32.xlu0 %v255_v0, %s730_s21 }
  0x35   : > { %219 = vrot.lane.b32.xlu1 %v256_v2, %s731_s22  ;;  %217 = vrot.lane.b32.xlu0 %v255_v0, %s731_s22 }
  0x39   : > { %335 = vrot.lane.b32.xlu1 %v254_v3, %s732_s23  ;;  %333 = vrot.lane.b32.xlu0 %v253_v1, %s732_s23 }
  0x3d   : > { %239 = vrot.lane.b32.xlu1 %v254_v3, %s733_s24  ;;  %237 = vrot.lane.b32.xlu0 %v253_v1, %s733_s24 }
  0x41   : > { %339 = vrot.lane.b32.xlu1 %v256_v2, %s732_s23  ;;  %337 = vrot.lane.b32.xlu0 %v255_v0, %s732_s23 }
  0x45   : > { %359 = vrot.lane.b32.xlu1 %v254_v3, %s735_s25  ;;  %357 = vrot.lane.b32.xlu0 %v253_v1, %s735_s25 }
  0x49   : > { %243 = vrot.lane.b32.xlu1 %v256_v2, %s733_s24  ;;  %241 = vrot.lane.b32.xlu0 %v255_v0, %s733_s24 }
  0x4d   : > { %363 = vrot.lane.b32.xlu1 %v256_v2, %s735_s25  ;;  %361 = vrot.lane.b32.xlu0 %v255_v0, %s735_s25 }
  0x83   : > { %v266_v6 = vpop.permute.xlu1 %265  ;;  %v262_v7 = vpop.permute.xlu0 %261 }
  0x84   : > { %275 = vst.msk [vmem:[#allocation2 + $0x90] sm:$0xff] %vm176_vm0, %v266_v6  ;;  %273 = vst.msk [vmem:[#allocation2 + $0x80] sm:$0xff] %vm176_vm0, %v262_v7 }
  0x87   : > { %v268_v8 = vpop.permute.xlu1 %267  ;;  %v264_v9 = vpop.permute.xlu0 %263 }
  0x88   : > { %276 = vst.msk [vmem:[#allocation2 + $0x98] sm:$0xff] %vm176_vm0, %v268_v8  ;;  %274 = vst.msk [vmem:[#allocation2 + $0x88] sm:$0xff] %vm176_vm0, %v264_v9 }
  0x8b   : > { %v288_v10 = vpop.permute.xlu1 %287  ;;  %v286_v11 = vpop.permute.xlu0 %285  ;;  %v393_v16 = vld [vmem:[#allocation2 + $0x80] sm:$0xff]  ;;  %v395_v23 = vld [vmem:[#allocation2 + $0x90] sm:$0xff] }
  0x8c   : > { %298 = vst.msk [vmem:[#allocation2 + $0xa8] sm:$0xff] %vm176_vm0, %v288_v10  ;;  %297 = vst.msk [vmem:[#allocation2 + $0xa0] sm:$0xff] %vm176_vm0, %v286_v11 }
  0x8f   : > { %v192_v14 = vpop.permute.xlu1 %191  ;;  %v190_v15 = vpop.permute.xlu0 %189  ;;  %v394_v17 = vld [vmem:[#allocation2 + $0x88] sm:$0xff]  ;;  %v396_v19 = vld [vmem:[#allocation2 + $0x98] sm:$0xff] }
  0x90   : > { %202 = vst.msk [vmem:[#allocation2 + $0x28] sm:$0xff] %vm176_vm0, %v192_v14  ;;  %201 = vst.msk [vmem:[#allocation2 + $0x20] sm:$0xff] %vm176_vm0, %v190_v15  ;;  %v421_v20 = vpack.c.bf16 %v394_v17, %v393_v16  ;;  %v422_v24 = vpack.c.bf16 %v396_v19, %v395_v23 }
  0x92   : > { %662 = vmatprep.subr.bf16.mxu0 %v421_v20 }
  0x93   : > { %v292_v25 = vpop.permute.xlu1 %291  ;;  %v290_v26 = vpop.permute.xlu0 %289  ;;  %663 = vmatpush3.bf16.msra.mxu0 %v413_v18  ;;  %v397_v28 = vld [vmem:[#allocation2 + $0xa0] sm:$0xff]  ;;  %v398_v29 = vld [vmem:[#allocation2 + $0xa8] sm:$0xff] }
  0x94   : > { %300 = vst.msk [vmem:[#allocation2 + $0xb8] sm:$0xff] %vm176_vm0, %v292_v25  ;;  %299 = vst.msk [vmem:[#allocation2 + $0xb0] sm:$0xff] %vm176_vm0, %v290_v26  ;;  %664 = vmatprep.subr.bf16.mxu0 %v422_v24  ;;  %v423_v30 = vpack.c.bf16 %v398_v29, %v397_v28  ;;  %v713_v26 = vld [vmem:[%s834_s1] ss:$12 sps:$4 sm:$0xff]  }
  0x97   : > { %v196_v31 = vpop.permute.xlu1 %195  ;;  %v194_v32 = vpop.permute.xlu0 %193  ;;  %665 = vmatpush3.bf16.msra.mxu0 %v414_v27  ;;  %v381_v33 = vld [vmem:[#allocation2 + $0x20] sm:$0xff]  ;;  %v382_v34 = vld [vmem:[#allocation2 + $0x28] sm:$0xff] }
  0x98   : > { %204 = vst.msk [vmem:[#allocation2 + $0x38] sm:$0xff] %vm176_vm0, %v196_v31  ;;  %203 = vst.msk [vmem:[#allocation2 + $0x30] sm:$0xff] %vm176_vm0, %v194_v32  ;;  %666 = vmatprep.subr.bf16.mxu0 %v423_v30  ;;  %v415_v35 = vpack.c.bf16 %v382_v34, %v381_v33  ;;  %v716_v30 = vld [vmem:[%s834_s1 + $0x8] ss:$12 sps:$4 sm:$0xff]  }
  0x9b   : > { %v312_v36 = vpop.permute.xlu1 %311  ;;  %v310_v37 = vpop.permute.xlu0 %309  ;;  %667 = vmatpush3.bf16.msra.mxu0 %v415_v35  ;;  %v399_v38 = vld [vmem:[#allocation2 + $0xb0] sm:$0xff]  ;;  %v400_v39 = vld [vmem:[#allocation2 + $0xb8] sm:$0xff] }
  0x9c   : > { %322 = vst.msk [vmem:[#allocation2 + $0xc8] sm:$0xff] %vm176_vm0, %v312_v36  ;;  %321 = vst.msk [vmem:[#allocation2 + $0xc0] sm:$0xff] %vm176_vm0, %v310_v37  ;;  %v424_v40 = vpack.c.bf16 %v400_v39, %v399_v38  ;;  %v657_v37 = vld [vmem:[%s835_s2] ss:$0 sm:$0xff] }
  0x9e   : > { %668 = vmatprep.subr.bf16.mxu0 %v424_v40 }
  0x9f   : > { %v216_v41 = vpop.permute.xlu1 %215  ;;  %v214_v42 = vpop.permute.xlu0 %213  ;;  %v383_v43 = vld [vmem:[#allocation2 + $0x30] sm:$0xff]  ;;  %v384_v44 = vld [vmem:[#allocation2 + $0x38] sm:$0xff] }
  0xa0   : > { %226 = vst.msk [vmem:[#allocation2 + $0x48] sm:$0xff] %vm176_vm0, %v216_v41  ;;  %225 = vst.msk [vmem:[#allocation2 + $0x40] sm:$0xff] %vm176_vm0, %v214_v42  ;;  %v416_v45 = vpack.c.bf16 %v384_v44, %v383_v43 }
  0xa2   : > { %669 = vmatpush3.bf16.msra.mxu0 %v416_v45 }
  0xa3   : > { %v316_v46 = vpop.permute.xlu1 %315  ;;  %v314_v47 = vpop.permute.xlu0 %313  ;;  %v401_v48 = vld [vmem:[#allocation2 + $0xc0] sm:$0xff]  ;;  %v402_v49 = vld [vmem:[#allocation2 + $0xc8] sm:$0xff] }
  0xa4   : > { %324 = vst.msk [vmem:[#allocation2 + $0xd8] sm:$0xff] %vm176_vm0, %v316_v46  ;;  %323 = vst.msk [vmem:[#allocation2 + $0xd0] sm:$0xff] %vm176_vm0, %v314_v47  ;;  %v425_v50 = vpack.c.bf16 %v402_v49, %v401_v48 }
  0xa6   : > { %670 = vmatprep.subr.bf16.mxu0 %v425_v50 }
  0xa7   : > { %v220_v51 = vpop.permute.xlu1 %219  ;;  %v218_v52 = vpop.permute.xlu0 %217  ;;  %v385_v53 = vld [vmem:[#allocation2 + $0x40] sm:$0xff]  ;;  %v386_v54 = vld [vmem:[#allocation2 + $0x48] sm:$0xff] }
  0xa8   : > { %228 = vst.msk [vmem:[#allocation2 + $0x58] sm:$0xff] %vm176_vm0, %v220_v51  ;;  %227 = vst.msk [vmem:[#allocation2 + $0x50] sm:$0xff] %vm176_vm0, %v218_v52  ;;  %v417_v55 = vpack.c.bf16 %v386_v54, %v385_v53 }
  0xaa   : > { %671 = vmatpush3.bf16.msra.mxu0 %v417_v55 }
  0xab   : > { %v336_v56 = vpop.permute.xlu1 %335  ;;  %v334_v57 = vpop.permute.xlu0 %333  ;;  %v403_v58 = vld [vmem:[#allocation2 + $0xd0] sm:$0xff]  ;;  %v404_v59 = vld [vmem:[#allocation2 + $0xd8] sm:$0xff] }
  0xac   : > { %346 = vst.msk [vmem:[#allocation2 + $0xe8] sm:$0xff] %vm176_vm0, %v336_v56  ;;  %345 = vst.msk [vmem:[#allocation2 + $0xe0] sm:$0xff] %vm176_vm0, %v334_v57  ;;  %v426_v60 = vpack.c.bf16 %v404_v59, %v403_v58 }
  0xae   : > { %672 = vmatprep.subr.bf16.mxu0 %v426_v60 }
  0xaf   : > { %v240_v61 = vpop.permute.xlu1 %239  ;;  %v238_v62 = vpop.permute.xlu0 %237  ;;  %v387_v63 = vld [vmem:[#allocation2 + $0x50] sm:$0xff]  ;;  %v388_v0 = vld [vmem:[#allocation2 + $0x58] sm:$0xff] }
  0xb0   : > { %250 = vst.msk [vmem:[#allocation2 + $0x68] sm:$0xff] %vm176_vm0, %v240_v61  ;;  %249 = vst.msk [vmem:[#allocation2 + $0x60] sm:$0xff] %vm176_vm0, %v238_v62  ;;  %v418_v1 = vpack.c.bf16 %v388_v0, %v387_v63 }
  0xb2   : > { %673 = vmatpush3.bf16.msra.mxu0 %v418_v1 }
  0xb3   : > { %v340_v2 = vpop.permute.xlu1 %339  ;;  %v338_v3 = vpop.permute.xlu0 %337  ;;  %v405_v5 = vld [vmem:[#allocation2 + $0xe0] sm:$0xff]  ;;  %v406_v6 = vld [vmem:[#allocation2 + $0xe8] sm:$0xff] }
  0xb4   : > { %348 = vst.msk [vmem:[#allocation2 + $0xf8] sm:$0xff] %vm176_vm0, %v340_v2  ;;  %347 = vst.msk [vmem:[#allocation2 + $0xf0] sm:$0xff] %vm176_vm0, %v338_v3  ;;  %v427_v7 = vpack.c.bf16 %v406_v6, %v405_v5 }
  0xb6   : > { %674 = vmatprep.subr.bf16.mxu0 %v427_v7 }
  0xb7   : > { %v360_v8 = vpop.permute.xlu1 %359  ;;  %v358_v9 = vpop.permute.xlu0 %357  ;;  %v389_v10 = vld [vmem:[#allocation2 + $0x60] sm:$0xff]  ;;  %v390_v11 = vld [vmem:[#allocation2 + $0x68] sm:$0xff] }
  0xb8   : > { %370 = vst.msk [vmem:[#allocation2 + $0x108] sm:$0xff] %vm176_vm0, %v360_v8  ;;  %369 = vst.msk [vmem:[#allocation2 + $0x100] sm:$0xff] %vm176_vm0, %v358_v9  ;;  %v419_v12 = vpack.c.bf16 %v390_v11, %v389_v10 }
  0xba   : > { %675 = vmatpush3.bf16.msra.mxu0 %v419_v12 }
  0xbb   : > { %v244_v13 = vpop.permute.xlu1 %243  ;;  %v242_v14 = vpop.permute.xlu0 %241  ;;  %v407_v15 = vld [vmem:[#allocation2 + $0xf0] sm:$0xff]  ;;  %v408_v16 = vld [vmem:[#allocation2 + $0xf8] sm:$0xff] }
  0xbc   : > { %252 = vst.msk [vmem:[#allocation2 + $0x78] sm:$0xff] %vm176_vm0, %v244_v13  ;;  %251 = vst.msk [vmem:[#allocation2 + $0x70] sm:$0xff] %vm176_vm0, %v242_v14  ;;  %v428_v17 = vpack.c.bf16 %v408_v16, %v407_v15 }
  0xbe   : > { %676 = vmatprep.subr.bf16.mxu0 %v428_v17 }
  0xbf   : > { %v364_v18 = vpop.permute.xlu1 %363  ;;  %v362_v19 = vpop.permute.xlu0 %361  ;;  %v409_v20 = vld [vmem:[#allocation2 + $0x100] sm:$0xff]  ;;  %v410_v21 = vld [vmem:[#allocation2 + $0x108] sm:$0xff] }
  0xc0   : > { %372 = vst.msk [vmem:[#allocation2 + $0x118] sm:$0xff] %vm176_vm0, %v364_v18  ;;  %371 = vst.msk [vmem:[#allocation2 + $0x110] sm:$0xff] %vm176_vm0, %v362_v19  ;;  %v429_v22 = vpack.c.bf16 %v410_v21, %v409_v20 }
  0xc2   : > { %688 = vmatpush3.bf16.msra.mxu1 %v429_v22 }
  0xc3   : > { %v391_v23 = vld [vmem:[#allocation2 + $0x70] sm:$0xff]  ;;  %v392_v24 = vld [vmem:[#allocation2 + $0x78] sm:$0xff]  ;;  %689 = vmatprep.subr.bf16.mxu1 %v734_v4 }
  0xc4   : > { %v420_v25 = vpack.c.bf16 %v392_v24, %v391_v23 }
  0xc6   : > { %677 = vmatpush3.bf16.msra.mxu0 %v420_v25 }
  0xc7   : > { %v411_v27 = vld [vmem:[#allocation2 + $0x110] sm:$0xff]  ;;  %v412_v28 = vld [vmem:[#allocation2 + $0x118] sm:$0xff] }
  0xc8   : > { %v430_v29 = vpack.c.bf16 %v412_v28, %v411_v27 }
  0xc9   : > { %483 = vmatmul.mubr.bf16.vlgmr.msra.gmra.mrb[0].mxu0 %v713_v26 }
  0xca   : > { %690 = vmatpush3.bf16.msra.mxu1 %v430_v29 }
  0xcd   : > { %692 = vmatmul.mubr.msk.bf16.vlgmr.msra.gmra.mrb[0].mxu1 %vm446_vm2, %v716_v30 }
 0x19c   : > { %v678_v31 = vpop.f32.mrb[0].mxu0 }
 0x19d   : > { %v679_v4 = vpop.f32.mrb[1].mxu0 }
 0x19e   : > { %v680_v32 = vadd.f32 %v679_v4, %v678_v31  ;;  %v681_v33 = vpop.f32.mrb[2].mxu0 }
 0x19f   : > { %v682_v34 = vpop.f32.mrb[3].mxu0 }
 0x1a0   : > { %v683_v35 = vadd.f32 %v682_v34, %v681_v33  ;;  %v525_v36 = vpop.f32.mrb[0].mxu1 }
 0x1a1   : > { %v526_v38 = vadd.f32 %v680_v32, %v525_v36  ;;  %v693_v39 = vpop.f32.mrb[1].mxu1 }
 0x1a2   : > { %v528_v40 = vpop.f32.mrb[2].mxu1 }
 0x1a3   : > { %v529_v41 = vadd.f32 %v683_v35, %v528_v40  ;;  %v694_v42 = vpop.f32.mrb[3].mxu1  ;;  %v539_v43 = vmul.f32 %v657_v37, %v526_v38 }
 0x1a5   : > { %588 = vst.msk [vmem:[%s170_s10 + $0x8] sm:$0xff] %vm176_vm0, %v529_v41  ;;  %v541_v44 = vsel %vm176_vm0, %v539_v43, 0.0 }
 0x1a6   : > { %542 = vadd.xlane.f32.xlu0 %v541_v44 }
 0x233   : > { %v543_v45 = vpop.xlane.xlu0 %542 }
 0x234   : > { %v548_v46 = vmul.f32 0.0625, %v543_v45 }
 0x236   : > { %v550_v47 = vsub.f32 %v526_v38, %v548_v46 }
 0x238   : > { %v552_v48 = vmul.f32 %v657_v37, %v550_v47 }
 0x23a   : > { %v554_v49 = vmul.f32 %v552_v48, %v552_v48 }
 0x23c   : > { %v556_v50 = vsel %vm176_vm0, %v554_v49, 0.0 }
 0x23d   : > { %557 = vadd.xlane.f32.xlu1 %v556_v50 }
 0x2ca   : > { %v558_v51 = vpop.xlane.xlu1 %557 }
 0x2cb   : > { %v562_v52 = vmul.f32 0.0625, %v558_v51 }
 0x2cd   : > { %v564_v53 = vadd.f32 1e-05, %v562_v52 }
 0x2cf   : > { %717 = vrsqrt.f32 %v564_v53 }
 0x2d9   : > { %v718_v54 = vpop.eup %717 }
 0x2da   : > { %v568_v55 = vmul.f32 %v718_v54, %v550_v47 }
 0x2dc   : > { %vm570_vm3 = vcmp.ge.f32.partialorder %v568_v55, 0.0  ;;  %v572_v56 = vmul.f32 0.2, %v568_v55 }
 0x2de   : > { %v574_v57 = vsel %vm570_vm3, %v568_v55, %v572_v56 }
 0x2df   : > { %587 = vst.msk [vmem:[%s170_s10] sm:$0xff] %vm176_vm0, %v574_v57 }
 0x2e0 PF: > { %s13_s12 = sadd.s32 1, %s725_s12  }
 0x2e1   : > { %p10_p4 = scmp.ge.s32.totalorder %s13_s12, 4  }
 0x2e3   :  { %12 = sbr.rel (!%p10_p4) target bundleno = 1 (0x1), region = 62 }

// kernel: unet_forward.38
= control target key start
LH: loop header
LB: loop body
LE: loop exit
PB: predicated region body
PF: predicated region fallthrough
CT: control target
= control target key end

     0   :  { %vm10_vm0 = vcmask 523264   ;;  %s81_s0 = inlined_call_operand.vmem [shape: f32[16,64], index: 0, kind: input, shape index: {}]   ;;  %s82_s1 = inlined_call_operand.vmem [shape: f32[16,64], index: 1, kind: output, shape index: {}]  }
   0x1   :  { %v8_v0 = vld [vmem:[%s81_s0] sm:$0xff]  ;;  %v9_v1 = vld [vmem:[%s81_s0 + $0x8] sm:$0xff] }
   0x2   :  { %v11_v2 = vsel %vm10_vm0, %v8_v0, 0.0  ;;  %v14_v3 = vsel %vm10_vm0, %v9_v1, 0.0 }
   0x3   :  { %12 = vadd.xlane.f32.xlu0 %v11_v2 }
   0x7   :  { %15 = vadd.xlane.f32.xlu0 %v14_v3 }
  0x90   :  { %v13_v4 = vpop.xlane.xlu0 %12 }
  0x91   :  { %v17_v5 = vmul.f32 0.015625, %v13_v4 }
  0x93   :  { %v19_v6 = vsub.f32 %v8_v0, %v17_v5 }
  0x94   :  { %v16_v7 = vpop.xlane.xlu0 %15 }
  0x95   :  { %v18_v8 = vmul.f32 0.015625, %v16_v7  ;;  %v21_v9 = vmul.f32 %v19_v6, %v19_v6 }
  0x97   :  { %v20_v10 = vsub.f32 %v9_v1, %v18_v8  ;;  %v23_v11 = vsel %vm10_vm0, %v21_v9, 0.0 }
  0x98   :  { %24 = vadd.xlane.f32.xlu1 %v23_v11 }
  0x99   :  { %v22_v12 = vmul.f32 %v20_v10, %v20_v10 }
  0x9b   :  { %v26_v13 = vsel %vm10_vm0, %v22_v12, 0.0 }
  0x9c   :  { %27 = vadd.xlane.f32.xlu1 %v26_v13 }
 0x125   :  { %v25_v14 = vpop.xlane.xlu1 %24 }
 0x126   :  { %v29_v15 = vmul.f32 0.015625, %v25_v14 }
 0x128   :  { %v31_v16 = vadd.f32 1e-05, %v29_v15 }
 0x129   :  { %v28_v17 = vpop.xlane.xlu1 %27 }
 0x12a   :  { %49 = vrsqrt.f32 %v31_v16  ;;  %v30_v18 = vmul.f32 0.015625, %v28_v17 }
 0x12c   :  { %v32_v19 = vadd.f32 1e-05, %v30_v18 }
 0x12e   :  { %51 = vrsqrt.f32 %v32_v19 }
 0x134   :  { %v50_v20 = vpop.eup %49 }
 0x135   :  { %v35_v21 = vmul.f32 %v50_v20, %v19_v6 }
 0x137   :  { %vm37_vm1 = vcmp.ge.f32.partialorder %v35_v21, 0.0  ;;  %v39_v22 = vmul.f32 0.2, %v35_v21 }
 0x138   :  { %v52_v23 = vpop.eup %51 }
 0x139   :  { %v41_v24 = vsel %vm37_vm1, %v35_v21, %v39_v22  ;;  %v36_v25 = vmul.f32 %v52_v23, %v20_v10 }
 0x13a   :  { %43 = vst.msk [vmem:[%s82_s1] sm:$0xff] %vm10_vm0, %v41_v24 }
 0x13b   :  { %vm38_vm2 = vcmp.ge.f32.partialorder %v36_v25, 0.0  ;;  %v40_v26 = vmul.f32 0.2, %v36_v25 }
 0x13d   :  { %v42_v27 = vsel %vm38_vm2, %v36_v25, %v40_v26 }
 0x13e   :  { %44 = vst.msk [vmem:[%s82_s1 + $0x8] sm:$0xff] %vm10_vm0, %v42_v27 }

// kernel: unet_forward.43
= control target key start
LH: loop header
LB: loop body
LE: loop exit
PB: predicated region body
PF: predicated region fallthrough
CT: control target
= control target key end

     0   :  { %s317_s9 = smov 0   ;;  %s337_s0 = inlined_call_operand.vmem [shape: f32[2,16,64], index: 0, kind: input, shape index: {}]   ;;  %s338_s1 = inlined_call_operand.vmem [shape: bf16[16,16], index: 1, kind: input, shape index: {}]   ;;  %s339_s2 = inlined_call_operand.vmem [shape: f32[2,16,64], index: 2, kind: output, shape index: {}]  }
   0x1 LB: > { %s258_s10 = sadd.s32 4294967295, %s298_s9   ;;  %p262_p0 = scmp.ge.s32.totalorder %s298_s9, 1  ;;  %s298_s9 = sphi %s317_s9, %s12_s9  }
   0x2   : > { %p112_p1 = scmp.lt.s32.totalorder %s298_s9, 3 }
   0x4   : > { %p113_p2 = pnand %p262_p0, %p112_p1 }
   0x5   : > { %p134_p3 = scmp.lt.s32.totalorder (!%p113_p2), %s258_s10, 1  ;;  %v300_v0 = vmov (!%p113_p2), 0.0   ;;  %vm301_vm0 = vmmov (!%p113_p2), 0   ;;  %v291_v4 = vld [vmem:[%s338_s1] sm:$0xff] (!%p113_p2)   ;;  %vm155_vm1 = vcmask (!%p113_p2), 130048   ;;  %vm200_vm2 = vcmask (!%p113_p2), 523264  }
   0x6   : > { %116 = sbr.rel (%p113_p2) target bundleno = 237 (0xed), region = 28  ;;  %275 = vmatprep.subr.bf16.mxu0 (!%p113_p2), %v300_v0  ;;  %277 = vmatprep.mubr.msk.bf16.mxu0 (!%p113_p2), %vm301_vm0, %v300_v0 }
   0xd   : > { %s341_s10 = smov (!%p134_p3, %s258_s10), 1 }
   0xe   : > { %s271_s11 = sshll.u32 %s341_s10, 4 }
   0xf   : > { %s138_s14 = scalar_lea.vmem %s337_s0, %s271_s11  ;;  %s143_s19 = scalar_lea.vmem %s339_s2, %s271_s11 }
  0x10   : > { %v147_v1 = vld [vmem:[%s138_s14] sm:$0xff]  ;;  %v148_v2 = vld [vmem:[%s138_s14 + $0x8] sm:$0xff] }
  0x11   : > { %v149_v3 = vpack.c.bf16 %v148_v2, %v147_v1 }
  0x13   : > { %276 = vmatpush3.bf16.msra.mxu0 %v149_v3 }
  0x16   : > { %278 = vmatmul.mubr.msk.bf16.vlgmr.msra.gmra.mrb[0].mxu0 %vm155_vm1, %v291_v4 }
  0xe9   : > { %v193_v5 = vpop.f32.mrb[0].mxu0 }
  0xea   : > { %201 = vst.msk [vmem:[%s143_s19] sm:$0xff] %vm200_vm2, %v193_v5  ;;  %v279_v6 = vpop.f32.mrb[1].mxu0 }
  0xeb   : > { %v196_v7 = vpop.f32.mrb[2].mxu0 }
  0xec   : > { %202 = vst.msk [vmem:[%s143_s19 + $0x8] sm:$0xff] %vm200_vm2, %v196_v7  ;;  %v280_v8 = vpop.f32.mrb[3].mxu0 }
  0xed PF: > { %s12_s9 = sadd.s32 1, %s298_s9  }
  0xee   : > { %p9_p4 = scmp.ge.s32.totalorder %s12_s9, 4  }
  0xf0   :  { %11 = sbr.rel (!%p9_p4) target bundleno = 1 (0x1), region = 58 }

// kernel: unet_forward.41
= control target key start
LH: loop header
LB: loop body
LE: loop exit
PB: predicated region body
PF: predicated region fallthrough
CT: control target
= control target key end

     0   :  { %s508_s12 = smov 0   ;;  %s571_s0 = inlined_call_operand.vmem [shape: f32[2,16,102], index: 0, kind: input, shape index: {}]   ;;  %s572_s1 = inlined_call_operand.vmem [shape: bf16[8,144], index: 1, kind: input, shape index: {}]   ;;  %s573_s2 = inlined_call_operand.vmem [shape: f32[1,80], index: 2, kind: input, shape index: {}]   ;;  %s574_s3 = inlined_call_operand.vmem [shape: f32[2,8,80], index: 3, kind: output, shape index: {}]  }
   0x1 LB: > { %s435_s13 = sadd.s32 4294967295, %s477_s12   ;;  %p439_p0 = scmp.ge.s32.totalorder %s477_s12, 1  ;;  %s477_s12 = sphi %s508_s12, %s13_s12  }
   0x2   : > { %p137_p1 = scmp.lt.s32.totalorder %s477_s12, 3 }
   0x4   : > { %p138_p2 = pnand %p439_p0, %p137_p1 }
   0x5   : > { %p160_p3 = scmp.lt.s32.totalorder (!%p138_p2), %s435_s13, 1  ;;  %v479_v0 = vmov (!%p138_p2), 0   ;;  %vm172_vm0 = vcmask (!%p138_p2), 654336   ;;  %s480_s18 = smov (!%p138_p2), 126   ;;  %v529_v6 = vld [vmem:[%s572_s1] sm:$0xff] (!%p138_p2)  ;;  %vm305_vm1 = vcmask (!%p138_p2), 130048  }
   0x6   : > { %141 = sbr.rel (%p138_p2) target bundleno = 707 (0x2c3), region = 32  ;;  %309 = vmatprep.subr.bf16.mxu0 (!%p138_p2), %v479_v0  ;;  %s481_s19 = smov (!%p138_p2), 127   ;;  %v444_v7 = vcombine.high (!%p138_p2), %v529_v6, %v529_v6  ;;  %v443_v48 = vcombine.low (!%p138_p2), %v529_v6, %v529_v6  ;;  %v446_v49 = vld [vmem:[%s573_s2] ss:$0 sm:$0xff] (!%p138_p2) }
   0x7   : > { %s482_s20 = smov (!%p138_p2), 118   ;;  %s483_s21 = smov (!%p138_p2), 117  }
   0x8   : > { %s484_s22 = smov (!%p138_p2), 116   ;;  %s485_s23 = smov (!%p138_p2), 108   ;;  %445 = vmatprep.mubr.msk.bf16.mxu0 (!%p138_p2), %vm305_vm1, %v444_v7 }
   0x9   : > { %s486_s24 = smov (!%p138_p2), 107   ;;  %s487_s25 = smov (!%p138_p2), 106  }
   0xd   : > { %s576_s13 = smov (!%p160_p3, %s435_s13), 1 }
   0xe   : > { %s449_s14 = sshll.u32 %s576_s13, 4  ;;  %s442_s30 = sshll.u32 %s576_s13, 3 }
   0xf   : > { %s164_s17 = scalar_lea.vmem %s571_s0, %s449_s14  ;;  %s168_s6 = scalar_lea.vmem %s574_s3, %s442_s30 }
  0x10   : > { %v187_v1 = vld [vmem:[%s164_s17] sm:$0xff]  ;;  %v188_v2 = vld [vmem:[%s164_s17 + $0x8] sm:$0xff] }
  0x11   : > { %191 = vrot.lane.b32.xlu1 %v187_v1, %s480_s18  ;;  %179 = vrot.lane.b32.xlu0 %v187_v1, %s481_s19  ;;  %173 = vst.msk [vmem:[#allocation2] sm:$0xff] %vm172_vm0, %v187_v1  ;;  %174 = vst.msk [vmem:[#allocation2 + $0x8] sm:$0xff] %vm172_vm0, %v188_v2 }
  0x15   : > { %193 = vrot.lane.b32.xlu1 %v188_v2, %s480_s18  ;;  %181 = vrot.lane.b32.xlu0 %v188_v2, %s481_s19 }
  0x18   : > { %v272_v3 = vld [vmem:[#allocation2] sm:$0xff]  ;;  %v273_v4 = vld [vmem:[#allocation2 + $0x8] sm:$0xff] }
  0x19   : > { %205 = vrot.lane.b32.xlu1 %v188_v2, %s482_s20  ;;  %203 = vrot.lane.b32.xlu0 %v187_v1, %s482_s20  ;;  %v290_v5 = vpack.c.bf16 %v273_v4, %v272_v3 }
  0x1b   : > { %310 = vmatpush1.bf16.msra.mxu0 %v290_v5 }
  0x1c   : > { %311 = vmatprep.subr.bf16.mxu0 %v479_v0 }
  0x1d   : > { %217 = vrot.lane.b32.xlu1 %v188_v2, %s483_s21  ;;  %215 = vrot.lane.b32.xlu0 %v187_v1, %s483_s21 }
  0x21   : > { %229 = vrot.lane.b32.xlu1 %v188_v2, %s484_s22  ;;  %227 = vrot.lane.b32.xlu0 %v187_v1, %s484_s22 }
  0x25   : > { %241 = vrot.lane.b32.xlu1 %v188_v2, %s485_s23  ;;  %239 = vrot.lane.b32.xlu0 %v187_v1, %s485_s23 }
  0x29   : > { %253 = vrot.lane.b32.xlu1 %v188_v2, %s486_s24  ;;  %251 = vrot.lane.b32.xlu0 %v187_v1, %s486_s24 }
  0x2d   : > { %265 = vrot.lane.b32.xlu1 %v188_v2, %s487_s25  ;;  %263 = vrot.lane.b32.xlu0 %v187_v1, %s487_s25  ;;  %v375_v1 = vlaneseq }
  0x2f   : > { %v376_v2 = vshrl.u32 %v375_v1, 7 }
  0x31   : > { %vm377_vm2 = vcmp.lt.s32.totalorder %v376_v2, 4 }
  0x83   : > { %v192_v8 = vpop.permute.xlu1 %191  ;;  %v180_v9 = vpop.permute.xlu0 %179 }
  0x84   : > { %197 = vst.msk [vmem:[#allocation2 + $0x20] sm:$0xff] %vm172_vm0, %v192_v8  ;;  %185 = vst.msk [vmem:[#allocation2 + $0x10] sm:$0xff] %vm172_vm0, %v180_v9 }
  0x87   : > { %v194_v10 = vpop.permute.xlu1 %193  ;;  %v182_v11 = vpop.permute.xlu0 %181 }
  0x88   : > { %198 = vst.msk [vmem:[#allocation2 + $0x28] sm:$0xff] %vm172_vm0, %v194_v10  ;;  %186 = vst.msk [vmem:[#allocation2 + $0x18] sm:$0xff] %vm172_vm0, %v182_v11 }
  0x8b   : > { %v206_v12 = vpop.permute.xlu1 %205  ;;  %v204_v13 = vpop.permute.xlu0 %203  ;;  %v274_v14 = vld [vmem:[#allocation2 + $0x10] sm:$0xff]  ;;  %v276_v19 = vld [vmem:[#allocation2 + $0x20] sm:$0xff] }
  0x8c   : > { %210 = vst.msk [vmem:[#allocation2 + $0x38] sm:$0xff] %vm172_vm0, %v206_v12  ;;  %209 = vst.msk [vmem:[#allocation2 + $0x30] sm:$0xff] %vm172_vm0, %v204_v13 }
  0x8f   : > { %v275_v15 = vld [vmem:[#allocation2 + $0x18] sm:$0xff]  ;;  %v218_v16 = vpop.permute.xlu1 %217  ;;  %v216_v17 = vpop.permute.xlu0 %215  ;;  %v277_v20 = vld [vmem:[#allocation2 + $0x28] sm:$0xff] }
  0x90   : > { %v291_v18 = vpack.c.bf16 %v275_v15, %v274_v14  ;;  %222 = vst.msk [vmem:[#allocation2 + $0x48] sm:$0xff] %vm172_vm0, %v218_v16  ;;  %221 = vst.msk [vmem:[#allocation2 + $0x40] sm:$0xff] %vm172_vm0, %v216_v17  ;;  %v292_v25 = vpack.c.bf16 %v277_v20, %v276_v19 }
  0x92   : > { %312 = vmatpush1.bf16.msra.mxu0 %v291_v18 }
  0x93   : > { %313 = vmatprep.subr.bf16.mxu0 %v479_v0  ;;  %v230_v21 = vpop.permute.xlu1 %229  ;;  %v228_v22 = vpop.permute.xlu0 %227  ;;  %v278_v23 = vld [vmem:[#allocation2 + $0x30] sm:$0xff]  ;;  %v279_v24 = vld [vmem:[#allocation2 + $0x38] sm:$0xff] }
  0x94   : > { %234 = vst.msk [vmem:[#allocation2 + $0x58] sm:$0xff] %vm172_vm0, %v230_v21  ;;  %233 = vst.msk [vmem:[#allocation2 + $0x50] sm:$0xff] %vm172_vm0, %v228_v22  ;;  %v293_v26 = vpack.c.bf16 %v279_v24, %v278_v23 }
  0x96   : > { %314 = vmatpush1.bf16.msra.mxu0 %v292_v25 }
  0x97   : > { %315 = vmatprep.subr.bf16.mxu0 %v479_v0  ;;  %v242_v27 = vpop.permute.xlu1 %241  ;;  %v240_v28 = vpop.permute.xlu0 %239  ;;  %v280_v29 = vld [vmem:[#allocation2 + $0x40] sm:$0xff]  ;;  %v281_v30 = vld [vmem:[#allocation2 + $0x48] sm:$0xff] }
  0x98   : > { %246 = vst.msk [vmem:[#allocation2 + $0x68] sm:$0xff] %vm172_vm0, %v242_v27  ;;  %245 = vst.msk [vmem:[#allocation2 + $0x60] sm:$0xff] %vm172_vm0, %v240_v28  ;;  %v294_v31 = vpack.c.bf16 %v281_v30, %v280_v29 }
  0x9a   : > { %316 = vmatpush1.bf16.msra.mxu0 %v293_v26 }
  0x9b   : > { %317 = vmatprep.subr.bf16.mxu0 %v479_v0  ;;  %v254_v32 = vpop.permute.xlu1 %253  ;;  %v252_v33 = vpop.permute.xlu0 %251  ;;  %v282_v34 = vld [vmem:[#allocation2 + $0x50] sm:$0xff]  ;;  %v283_v35 = vld [vmem:[#allocation2 + $0x58] sm:$0xff] }
  0x9c   : > { %258 = vst.msk [vmem:[#allocation2 + $0x78] sm:$0xff] %vm172_vm0, %v254_v32  ;;  %257 = vst.msk [vmem:[#allocation2 + $0x70] sm:$0xff] %vm172_vm0, %v252_v33  ;;  %v295_v36 = vpack.c.bf16 %v283_v35, %v282_v34 }
  0x9e   : > { %318 = vmatpush1.bf16.msra.mxu0 %v294_v31 }
  0x9f   : > { %319 = vmatprep.subr.bf16.mxu0 %v479_v0  ;;  %v266_v37 = vpop.permute.xlu1 %265  ;;  %v264_v38 = vpop.permute.xlu0 %263  ;;  %v284_v39 = vld [vmem:[#allocation2 + $0x60] sm:$0xff]  ;;  %v285_v40 = vld [vmem:[#allocation2 + $0x68] sm:$0xff] }
  0xa0   : > { %270 = vst.msk [vmem:[#allocation2 + $0x88] sm:$0xff] %vm172_vm0, %v266_v37  ;;  %269 = vst.msk [vmem:[#allocation2 + $0x80] sm:$0xff] %vm172_vm0, %v264_v38  ;;  %v296_v41 = vpack.c.bf16 %v285_v40, %v284_v39 }
  0xa2   : > { %320 = vmatpush1.bf16.msra.mxu0 %v295_v36 }
  0xa3   : > { %321 = vmatprep.subr.bf16.mxu0 %v479_v0  ;;  %v286_v42 = vld [vmem:[#allocation2 + $0x70] sm:$0xff]  ;;  %v287_v43 = vld [vmem:[#allocation2 + $0x78] sm:$0xff] }
  0xa4   : > { %v297_v44 = vpack.c.bf16 %v287_v43, %v286_v42 }
  0xa6   : > { %322 = vmatpush1.bf16.msra.mxu0 %v296_v41 }
  0xa7   : > { %323 = vmatprep.subr.bf16.mxu0 %v479_v0  ;;  %v288_v45 = vld [vmem:[#allocation2 + $0x80] sm:$0xff]  ;;  %v289_v46 = vld [vmem:[#allocation2 + $0x88] sm:$0xff] }
  0xa8   : > { %v298_v47 = vpack.c.bf16 %v289_v46, %v288_v45 }
  0xaa   : > { %324 = vmatpush1.bf16.msra.mxu0 %v297_v44 }
  0xab   : > { %325 = vmatprep.subr.bf16.mxu0 %v479_v0 }
  0xae   : > { %326 = vmatpush1.bf16.msra.mxu0 %v298_v47 }
  0xb1   : > { %342 = vmatmul.mubr.bf16.vlgmr.msra.gmra.mrb[0].mxu0 %v443_v48 }
 0x184   : > { %v343_v50 = vpop.f32.mrb[0].mxu0 }
 0x185   : > { %v345_v51 = vpop.f32.mrb[1].mxu0  ;;  %v356_v52 = vmul.f32 %v446_v49, %v343_v50 }
 0x186   : > { %v346_v53 = vpop.f32.mrb[2].mxu0 }
 0x187   : > { %v347_v54 = vpop.f32.mrb[3].mxu0  ;;  %v357_v55 = vsel %vm172_vm0, %v356_v52, 0.0 }
 0x188   : > { %358 = vadd.xlane.f32.xlu0 %v357_v55 }
 0x215   : > { %v359_v56 = vpop.xlane.xlu0 %358 }
 0x216   : > { %v361_v57 = vmul.f32 0.015625, %v359_v56 }
 0x218   : > { %v362_v58 = vsub.f32 %v343_v50, %v361_v57 }
 0x21a   : > { %v363_v59 = vmul.f32 %v446_v49, %v362_v58 }
 0x21c   : > { %v364_v60 = vmul.f32 %v363_v59, %v363_v59 }
 0x21e   : > { %v365_v61 = vsel %vm172_vm0, %v364_v60, 0.0 }
 0x21f   : > { %366 = vadd.xlane.f32.xlu1 %v365_v61 }
 0x2ac   : > { %v367_v62 = vpop.xlane.xlu1 %366 }
 0x2ad   : > { %v368_v63 = vmul.f32 0.015625, %v367_v62 }
 0x2af   : > { %v369_v0 = vadd.f32 1e-05, %v368_v63 }
 0x2b1   : > { %469 = vrsqrt.f32 %v369_v0 }
 0x2bb   : > { %v470_v3 = vpop.eup %469 }
 0x2bc   : > { %v371_v4 = vmul.f32 %v470_v3, %v362_v58 }
 0x2be   : > { %vm372_vm3 = vcmp.ge.f32.partialorder %v371_v4, 0.0  ;;  %v373_v5 = vmul.f32 0.2, %v371_v4 }
 0x2c0   : > { %v374_v6 = vsel %vm372_vm3, %v371_v4, %v373_v5 }
 0x2c1   : > { %v380_v7 = vsel %vm377_vm2, %v374_v6, %v343_v50 }
 0x2c2   : > { %381 = vst.msk [vmem:[%s168_s6] sm:$0xff] %vm172_vm0, %v380_v7 }
 0x2c3 PF: > { %s13_s12 = sadd.s32 1, %s477_s12  }
 0x2c4   : > { %p10_p4 = scmp.ge.s32.totalorder %s13_s12, 4  }
 0x2c6   :  { %12 = sbr.rel (!%p10_p4) target bundleno = 1 (0x1), region = 62 }

// kernel: unet_forward.39
= control target key start
LH: loop header
LB: loop body
LE: loop exit
PB: predicated region body
PF: predicated region fallthrough
CT: control target
= control target key end

     0   :  { %s717_s12 = smov 0   ;;  %s795_s0 = inlined_call_operand.vmem [shape: f32[2,32,102], index: 0, kind: input, shape index: {}]   ;;  %s796_s1 = inlined_call_operand.vmem [shape: bf16[8,288], index: 1, kind: input, shape index: {}]   ;;  %s797_s2 = inlined_call_operand.vmem [shape: f32[1,80], index: 2, kind: input, shape index: {}]   ;;  %s798_s3 = inlined_call_operand.vmem [shape: f32[2,8,80], index: 3, kind: output, shape index: {}]  }
   0x1 LB: > { %s607_s13 = sadd.s32 4294967295, %s685_s12   ;;  %p611_p0 = scmp.ge.s32.totalorder %s685_s12, 1  ;;  %s685_s12 = sphi %s717_s12, %s13_s12  }
   0x2   : > { %p137_p1 = scmp.lt.s32.totalorder %s685_s12, 3 }
   0x4   : > { %p138_p2 = pnand %p611_p0, %p137_p1 }
   0x5   : > { %p160_p3 = scmp.lt.s32.totalorder (!%p138_p2), %s607_s13, 1  ;;  %vm174_vm0 = vcmask (!%p138_p2), 654336   ;;  %s687_s18 = smov (!%p138_p2), 117   ;;  %v694_v4 = vmov (!%p138_p2), 0.0   ;;  %v739_v5 = vld [vmem:[%s796_s1] sm:$0xff] (!%p138_p2)  ;;  %vm696_vm1 = vmmov (!%p138_p2), 0  }
   0x6   : > { %141 = sbr.rel (%p138_p2) target bundleno = 737 (0x2e1), region = 32  ;;  %s688_s19 = smov (!%p138_p2), 116   ;;  %648 = vmatprep.subr.bf16.mxu1 (!%p138_p2), %v694_v4  ;;  %v616_v6 = vcombine.high (!%p138_p2), %v739_v5, %v739_v5  ;;  %652 = vmatprep.mubr.msk.bf16.mxu1 (!%p138_p2), %vm696_vm1, %v694_v4  ;;  %vm437_vm2 = vcmask (!%p138_p2), 261120  }
   0x7   : > { %s689_s20 = smov (!%p138_p2), 127   ;;  %s690_s21 = smov (!%p138_p2), 108  }
   0x8   : > { %s691_s22 = smov (!%p138_p2), 126   ;;  %s692_s23 = smov (!%p138_p2), 107   ;;  %473 = vmatprep.mubr.bf16.mxu0 (!%p138_p2), %v616_v6 }
   0x9   : > { %s693_s24 = smov (!%p138_p2), 118   ;;  %s695_s25 = smov (!%p138_p2), 106  }
   0xd   : > { %s800_s13 = smov (!%p160_p3, %s607_s13), 1 }
   0xe   : > { %s622_s14 = sshll.u32 %s800_s13, 5  ;;  %s614_s5 = sshll.u32 %s800_s13, 3 }
   0xf   : > { %s164_s17 = scalar_lea.vmem %s795_s0, %s622_s14  ;;  %s168_s8 = scalar_lea.vmem %s798_s3, %s614_s5 }
  0x10   : > { %v253_v0 = vld [vmem:[%s164_s17 + $0x10] sm:$0xff]  ;;  %v251_v1 = vld [vmem:[%s164_s17] sm:$0xff]  ;;  %v254_v2 = vld [vmem:[%s164_s17 + $0x18] sm:$0xff] }
  0x11   : > { %263 = vrot.lane.b32.xlu1 %v253_v0, %s687_s18  ;;  %259 = vrot.lane.b32.xlu0 %v251_v1, %s687_s18  ;;  %v252_v3 = vld [vmem:[%s164_s17 + $0x8] sm:$0xff]  ;;  %175 = vst.msk [vmem:[#allocation2] sm:$0xff] %vm174_vm0, %v251_v1  ;;  %177 = vst.msk [vmem:[#allocation2 + $0x10] sm:$0xff] %vm174_vm0, %v253_v0 }
  0x12   : > { %178 = vst.msk [vmem:[#allocation2 + $0x18] sm:$0xff] %vm174_vm0, %v254_v2  ;;  %176 = vst.msk [vmem:[#allocation2 + $0x8] sm:$0xff] %vm174_vm0, %v252_v3 }
  0x15   : > { %265 = vrot.lane.b32.xlu1 %v254_v2, %s687_s18  ;;  %261 = vrot.lane.b32.xlu0 %v252_v3, %s687_s18 }
  0x18   : > { %v373_v13 = vld [vmem:[#allocation2] sm:$0xff]  ;;  %v375_v22 = vld [vmem:[#allocation2 + $0x10] sm:$0xff] }
  0x19   : > { %285 = vrot.lane.b32.xlu1 %v252_v3, %s688_s19  ;;  %283 = vrot.lane.b32.xlu0 %v251_v1, %s688_s19  ;;  %v374_v14 = vld [vmem:[#allocation2 + $0x8] sm:$0xff]  ;;  %v376_v23 = vld [vmem:[#allocation2 + $0x18] sm:$0xff] }
  0x1a   : > { %v409_v19 = vpack.c.bf16 %v374_v14, %v373_v13  ;;  %v410_v28 = vpack.c.bf16 %v376_v23, %v375_v22 }
  0x1d   : > { %189 = vrot.lane.b32.xlu1 %v252_v3, %s689_s20  ;;  %187 = vrot.lane.b32.xlu0 %v251_v1, %s689_s20 }
  0x21   : > { %289 = vrot.lane.b32.xlu1 %v254_v2, %s688_s19  ;;  %287 = vrot.lane.b32.xlu0 %v253_v0, %s688_s19 }
  0x25   : > { %193 = vrot.lane.b32.xlu1 %v254_v2, %s689_s20  ;;  %191 = vrot.lane.b32.xlu0 %v253_v0, %s689_s20 }
  0x29   : > { %309 = vrot.lane.b32.xlu1 %v252_v3, %s690_s21  ;;  %307 = vrot.lane.b32.xlu0 %v251_v1, %s690_s21 }
  0x2d   : > { %213 = vrot.lane.b32.xlu1 %v252_v3, %s691_s22  ;;  %211 = vrot.lane.b32.xlu0 %v251_v1, %s691_s22 }
  0x31   : > { %313 = vrot.lane.b32.xlu1 %v254_v2, %s690_s21  ;;  %311 = vrot.lane.b32.xlu0 %v253_v0, %s690_s21 }
  0x35   : > { %217 = vrot.lane.b32.xlu1 %v254_v2, %s691_s22  ;;  %215 = vrot.lane.b32.xlu0 %v253_v0, %s691_s22 }
  0x39   : > { %333 = vrot.lane.b32.xlu1 %v252_v3, %s692_s23  ;;  %331 = vrot.lane.b32.xlu0 %v251_v1, %s692_s23 }
  0x3d   : > { %237 = vrot.lane.b32.xlu1 %v252_v3, %s693_s24  ;;  %235 = vrot.lane.b32.xlu0 %v251_v1, %s693_s24 }
  0x41   : > { %337 = vrot.lane.b32.xlu1 %v254_v2, %s692_s23  ;;  %335 = vrot.lane.b32.xlu0 %v253_v0, %s692_s23 }
  0x45   : > { %357 = vrot.lane.b32.xlu1 %v252_v3, %s695_s25  ;;  %355 = vrot.lane.b32.xlu0 %v251_v1, %s695_s25 }
  0x49   : > { %241 = vrot.lane.b32.xlu1 %v254_v2, %s693_s24  ;;  %239 = vrot.lane.b32.xlu0 %v253_v0, %s693_s24 }
  0x4d   : > { %361 = vrot.lane.b32.xlu1 %v254_v2, %s695_s25  ;;  %359 = vrot.lane.b32.xlu0 %v253_v0, %s695_s25 }
  0x83   : > { %v264_v7 = vpop.permute.xlu1 %263  ;;  %v260_v8 = vpop.permute.xlu0 %259 }
  0x84   : > { %273 = vst.msk [vmem:[#allocation2 + $0x90] sm:$0xff] %vm174_vm0, %v264_v7  ;;  %271 = vst.msk [vmem:[#allocation2 + $0x80] sm:$0xff] %vm174_vm0, %v260_v8 }
  0x87   : > { %v266_v9 = vpop.permute.xlu1 %265  ;;  %v262_v10 = vpop.permute.xlu0 %261 }
  0x88   : > { %274 = vst.msk [vmem:[#allocation2 + $0x98] sm:$0xff] %vm174_vm0, %v266_v9  ;;  %272 = vst.msk [vmem:[#allocation2 + $0x88] sm:$0xff] %vm174_vm0, %v262_v10 }
  0x8b   : > { %v286_v11 = vpop.permute.xlu1 %285  ;;  %v284_v12 = vpop.permute.xlu0 %283  ;;  %v389_v17 = vld [vmem:[#allocation2 + $0x80] sm:$0xff]  ;;  %v391_v24 = vld [vmem:[#allocation2 + $0x90] sm:$0xff] }
  0x8c   : > { %296 = vst.msk [vmem:[#allocation2 + $0xa8] sm:$0xff] %vm174_vm0, %v286_v11  ;;  %295 = vst.msk [vmem:[#allocation2 + $0xa0] sm:$0xff] %vm174_vm0, %v284_v12 }
  0x8f   : > { %v190_v15 = vpop.permute.xlu1 %189  ;;  %v188_v16 = vpop.permute.xlu0 %187  ;;  %v390_v18 = vld [vmem:[#allocation2 + $0x88] sm:$0xff]  ;;  %v392_v20 = vld [vmem:[#allocation2 + $0x98] sm:$0xff] }
  0x90   : > { %200 = vst.msk [vmem:[#allocation2 + $0x28] sm:$0xff] %vm174_vm0, %v190_v15  ;;  %199 = vst.msk [vmem:[#allocation2 + $0x20] sm:$0xff] %vm174_vm0, %v188_v16  ;;  %v417_v21 = vpack.c.bf16 %v390_v18, %v389_v17  ;;  %v418_v25 = vpack.c.bf16 %v392_v20, %v391_v24 }
  0x92   : > { %623 = vmatprep.subr.bf16.mxu0 %v417_v21 }
  0x93   : > { %v290_v26 = vpop.permute.xlu1 %289  ;;  %v288_v27 = vpop.permute.xlu0 %287  ;;  %624 = vmatpush3.bf16.msra.mxu0 %v409_v19  ;;  %v393_v29 = vld [vmem:[#allocation2 + $0xa0] sm:$0xff]  ;;  %v394_v30 = vld [vmem:[#allocation2 + $0xa8] sm:$0xff] }
  0x94   : > { %298 = vst.msk [vmem:[#allocation2 + $0xb8] sm:$0xff] %vm174_vm0, %v290_v26  ;;  %297 = vst.msk [vmem:[#allocation2 + $0xb0] sm:$0xff] %vm174_vm0, %v288_v27  ;;  %625 = vmatprep.subr.bf16.mxu0 %v418_v25  ;;  %v419_v31 = vpack.c.bf16 %v394_v30, %v393_v29 }
  0x97   : > { %v194_v32 = vpop.permute.xlu1 %193  ;;  %v192_v33 = vpop.permute.xlu0 %191  ;;  %626 = vmatpush3.bf16.msra.mxu0 %v410_v28  ;;  %v377_v34 = vld [vmem:[#allocation2 + $0x20] sm:$0xff]  ;;  %v378_v35 = vld [vmem:[#allocation2 + $0x28] sm:$0xff]  ;;  %v615_v28 = vcombine.low %v739_v5, %v739_v5 }
  0x98   : > { %202 = vst.msk [vmem:[#allocation2 + $0x38] sm:$0xff] %vm174_vm0, %v194_v32  ;;  %201 = vst.msk [vmem:[#allocation2 + $0x30] sm:$0xff] %vm174_vm0, %v192_v33  ;;  %627 = vmatprep.subr.bf16.mxu0 %v419_v31  ;;  %v411_v36 = vpack.c.bf16 %v378_v35, %v377_v34  ;;  %v676_v32 = vld [vmem:[%s796_s1 + $0x8] ss:$0 sps:$4 sm:$0xff]   ;;  %v619_v5 = vld [vmem:[%s797_s2] ss:$0 sm:$0xff] }
  0x9b   : > { %v310_v37 = vpop.permute.xlu1 %309  ;;  %v308_v38 = vpop.permute.xlu0 %307  ;;  %628 = vmatpush3.bf16.msra.mxu0 %v411_v36  ;;  %v395_v39 = vld [vmem:[#allocation2 + $0xb0] sm:$0xff]  ;;  %v396_v40 = vld [vmem:[#allocation2 + $0xb8] sm:$0xff] }
  0x9c   : > { %320 = vst.msk [vmem:[#allocation2 + $0xc8] sm:$0xff] %vm174_vm0, %v310_v37  ;;  %319 = vst.msk [vmem:[#allocation2 + $0xc0] sm:$0xff] %vm174_vm0, %v308_v38  ;;  %v420_v41 = vpack.c.bf16 %v396_v40, %v395_v39 }
  0x9e   : > { %629 = vmatprep.subr.bf16.mxu0 %v420_v41 }
  0x9f   : > { %v214_v42 = vpop.permute.xlu1 %213  ;;  %v212_v43 = vpop.permute.xlu0 %211  ;;  %v379_v44 = vld [vmem:[#allocation2 + $0x30] sm:$0xff]  ;;  %v380_v45 = vld [vmem:[#allocation2 + $0x38] sm:$0xff] }
  0xa0   : > { %224 = vst.msk [vmem:[#allocation2 + $0x48] sm:$0xff] %vm174_vm0, %v214_v42  ;;  %223 = vst.msk [vmem:[#allocation2 + $0x40] sm:$0xff] %vm174_vm0, %v212_v43  ;;  %v412_v46 = vpack.c.bf16 %v380_v45, %v379_v44 }
  0xa2   : > { %630 = vmatpush3.bf16.msra.mxu0 %v412_v46 }
  0xa3   : > { %v314_v47 = vpop.permute.xlu1 %313  ;;  %v312_v48 = vpop.permute.xlu0 %311  ;;  %v397_v49 = vld [vmem:[#allocation2 + $0xc0] sm:$0xff]  ;;  %v398_v50 = vld [vmem:[#allocation2 + $0xc8] sm:$0xff] }
  0xa4   : > { %322 = vst.msk [vmem:[#allocation2 + $0xd8] sm:$0xff] %vm174_vm0, %v314_v47  ;;  %321 = vst.msk [vmem:[#allocation2 + $0xd0] sm:$0xff] %vm174_vm0, %v312_v48  ;;  %v421_v51 = vpack.c.bf16 %v398_v50, %v397_v49 }
  0xa6   : > { %631 = vmatprep.subr.bf16.mxu0 %v421_v51 }
  0xa7   : > { %v218_v52 = vpop.permute.xlu1 %217  ;;  %v216_v53 = vpop.permute.xlu0 %215  ;;  %v381_v54 = vld [vmem:[#allocation2 + $0x40] sm:$0xff]  ;;  %v382_v55 = vld [vmem:[#allocation2 + $0x48] sm:$0xff] }
  0xa8   : > { %226 = vst.msk [vmem:[#allocation2 + $0x58] sm:$0xff] %vm174_vm0, %v218_v52  ;;  %225 = vst.msk [vmem:[#allocation2 + $0x50] sm:$0xff] %vm174_vm0, %v216_v53  ;;  %v413_v56 = vpack.c.bf16 %v382_v55, %v381_v54  ;;  %v547_v53 = vlaneseq }
  0xaa   : > { %632 = vmatpush3.bf16.msra.mxu0 %v413_v56  ;;  %v548_v54 = vshrl.u32 %v547_v53, 7 }
  0xab   : > { %v334_v57 = vpop.permute.xlu1 %333  ;;  %v332_v58 = vpop.permute.xlu0 %331  ;;  %v399_v59 = vld [vmem:[#allocation2 + $0xd0] sm:$0xff]  ;;  %v400_v60 = vld [vmem:[#allocation2 + $0xd8] sm:$0xff] }
  0xac   : > { %344 = vst.msk [vmem:[#allocation2 + $0xe8] sm:$0xff] %vm174_vm0, %v334_v57  ;;  %343 = vst.msk [vmem:[#allocation2 + $0xe0] sm:$0xff] %vm174_vm0, %v332_v58  ;;  %v422_v61 = vpack.c.bf16 %v400_v60, %v399_v59  ;;  %vm549_vm3 = vcmp.lt.s32.totalorder %v548_v54, 4 }
  0xae   : > { %633 = vmatprep.subr.bf16.mxu0 %v422_v61 }
  0xaf   : > { %v238_v62 = vpop.permute.xlu1 %237  ;;  %v236_v63 = vpop.permute.xlu0 %235  ;;  %v383_v0 = vld [vmem:[#allocation2 + $0x50] sm:$0xff]  ;;  %v384_v1 = vld [vmem:[#allocation2 + $0x58] sm:$0xff] }
  0xb0   : > { %248 = vst.msk [vmem:[#allocation2 + $0x68] sm:$0xff] %vm174_vm0, %v238_v62  ;;  %247 = vst.msk [vmem:[#allocation2 + $0x60] sm:$0xff] %vm174_vm0, %v236_v63  ;;  %v414_v2 = vpack.c.bf16 %v384_v1, %v383_v0 }
  0xb2   : > { %634 = vmatpush3.bf16.msra.mxu0 %v414_v2 }
  0xb3   : > { %v338_v3 = vpop.permute.xlu1 %337  ;;  %v336_v6 = vpop.permute.xlu0 %335  ;;  %v401_v7 = vld [vmem:[#allocation2 + $0xe0] sm:$0xff]  ;;  %v402_v8 = vld [vmem:[#allocation2 + $0xe8] sm:$0xff] }
  0xb4   : > { %346 = vst.msk [vmem:[#allocation2 + $0xf8] sm:$0xff] %vm174_vm0, %v338_v3  ;;  %345 = vst.msk [vmem:[#allocation2 + $0xf0] sm:$0xff] %vm174_vm0, %v336_v6  ;;  %v423_v9 = vpack.c.bf16 %v402_v8, %v401_v7 }
  0xb6   : > { %635 = vmatprep.subr.bf16.mxu0 %v423_v9 }
  0xb7   : > { %v358_v10 = vpop.permute.xlu1 %357  ;;  %v356_v11 = vpop.permute.xlu0 %355  ;;  %v385_v12 = vld [vmem:[#allocation2 + $0x60] sm:$0xff]  ;;  %v386_v13 = vld [vmem:[#allocation2 + $0x68] sm:$0xff] }
  0xb8   : > { %368 = vst.msk [vmem:[#allocation2 + $0x108] sm:$0xff] %vm174_vm0, %v358_v10  ;;  %367 = vst.msk [vmem:[#allocation2 + $0x100] sm:$0xff] %vm174_vm0, %v356_v11  ;;  %v415_v14 = vpack.c.bf16 %v386_v13, %v385_v12 }
  0xba   : > { %636 = vmatpush3.bf16.msra.mxu0 %v415_v14 }
  0xbb   : > { %v242_v15 = vpop.permute.xlu1 %241  ;;  %v240_v16 = vpop.permute.xlu0 %239  ;;  %v403_v17 = vld [vmem:[#allocation2 + $0xf0] sm:$0xff]  ;;  %v404_v18 = vld [vmem:[#allocation2 + $0xf8] sm:$0xff] }
  0xbc   : > { %250 = vst.msk [vmem:[#allocation2 + $0x78] sm:$0xff] %vm174_vm0, %v242_v15  ;;  %249 = vst.msk [vmem:[#allocation2 + $0x70] sm:$0xff] %vm174_vm0, %v240_v16  ;;  %v424_v19 = vpack.c.bf16 %v404_v18, %v403_v17 }
  0xbe   : > { %637 = vmatprep.subr.bf16.mxu0 %v424_v19 }
  0xbf   : > { %v362_v20 = vpop.permute.xlu1 %361  ;;  %v360_v21 = vpop.permute.xlu0 %359  ;;  %v405_v22 = vld [vmem:[#allocation2 + $0x100] sm:$0xff]  ;;  %v406_v23 = vld [vmem:[#allocation2 + $0x108] sm:$0xff] }
  0xc0   : > { %370 = vst.msk [vmem:[#allocation2 + $0x118] sm:$0xff] %vm174_vm0, %v362_v20  ;;  %369 = vst.msk [vmem:[#allocation2 + $0x110] sm:$0xff] %vm174_vm0, %v360_v21  ;;  %v425_v24 = vpack.c.bf16 %v406_v23, %v405_v22 }
  0xc2   : > { %649 = vmatpush3.bf16.msra.mxu1 %v425_v24 }
  0xc3   : > { %v387_v25 = vld [vmem:[#allocation2 + $0x70] sm:$0xff]  ;;  %v388_v26 = vld [vmem:[#allocation2 + $0x78] sm:$0xff]  ;;  %650 = vmatprep.subr.bf16.mxu1 %v694_v4 }
  0xc4   : > { %v416_v27 = vpack.c.bf16 %v388_v26, %v387_v25 }
  0xc6   : > { %638 = vmatpush3.bf16.msra.mxu0 %v416_v27 }
  0xc7   : > { %v407_v29 = vld [vmem:[#allocation2 + $0x110] sm:$0xff]  ;;  %v408_v30 = vld [vmem:[#allocation2 + $0x118] sm:$0xff] }
  0xc8   : > { %v426_v31 = vpack.c.bf16 %v408_v30, %v407_v29 }
  0xc9   : > { %474 = vmatmul.mubr.bf16.vlgmr.msra.gmra.mrb[0].mxu0 %v615_v28 }
  0xca   : > { %651 = vmatpush3.bf16.msra.mxu1 %v426_v31 }
  0xcd   : > { %653 = vmatmul.mubr.msk.bf16.vlgmr.msra.gmra.mrb[0].mxu1 %vm437_vm2, %v676_v32 }
 0x19c   : > { %v639_v33 = vpop.f32.mrb[0].mxu0 }
 0x19d   : > { %v640_v34 = vpop.f32.mrb[1].mxu0 }
 0x19e   : > { %v641_v35 = vadd.f32 %v640_v34, %v639_v33  ;;  %v642_v4 = vpop.f32.mrb[2].mxu0 }
 0x19f   : > { %v643_v36 = vpop.f32.mrb[3].mxu0 }
 0x1a0   : > { %v515_v37 = vpop.f32.mrb[0].mxu1 }
 0x1a1   : > { %v516_v38 = vadd.f32 %v641_v35, %v515_v37  ;;  %v654_v39 = vpop.f32.mrb[1].mxu1 }
 0x1a2   : > { %v518_v40 = vpop.f32.mrb[2].mxu1 }
 0x1a3   : > { %v655_v41 = vpop.f32.mrb[3].mxu1  ;;  %v528_v42 = vmul.f32 %v619_v5, %v516_v38 }
 0x1a5   : > { %v529_v43 = vsel %vm174_vm0, %v528_v42, 0.0 }
 0x1a6   : > { %530 = vadd.xlane.f32.xlu0 %v529_v43 }
 0x233   : > { %v531_v44 = vpop.xlane.xlu0 %530 }
 0x234   : > { %v533_v45 = vmul.f32 0.015625, %v531_v44 }
 0x236   : > { %v534_v46 = vsub.f32 %v516_v38, %v533_v45 }
 0x238   : > { %v535_v47 = vmul.f32 %v619_v5, %v534_v46 }
 0x23a   : > { %v536_v48 = vmul.f32 %v535_v47, %v535_v47 }
 0x23c   : > { %v537_v49 = vsel %vm174_vm0, %v536_v48, 0.0 }
 0x23d   : > { %538 = vadd.xlane.f32.xlu1 %v537_v49 }
 0x2ca   : > { %v539_v50 = vpop.xlane.xlu1 %538 }
 0x2cb   : > { %v540_v51 = vmul.f32 0.015625, %v539_v50 }
 0x2cd   : > { %v541_v52 = vadd.f32 1e-05, %v540_v51 }
 0x2cf   : > { %677 = vrsqrt.f32 %v541_v52 }
 0x2d9   : > { %v678_v55 = vpop.eup %677 }
 0x2da   : > { %v543_v56 = vmul.f32 %v678_v55, %v534_v46 }
 0x2dc   : > { %vm544_vm4 = vcmp.ge.f32.partialorder %v543_v56, 0.0  ;;  %v545_v57 = vmul.f32 0.2, %v543_v56 }
 0x2de   : > { %v546_v58 = vsel %vm544_vm4, %v543_v56, %v545_v57 }
 0x2df   : > { %v552_v59 = vsel %vm549_vm3, %v546_v58, %v516_v38 }
 0x2e0   : > { %553 = vst.msk [vmem:[%s168_s8] sm:$0xff] %vm174_vm0, %v552_v59 }
 0x2e1 PF: > { %s13_s12 = sadd.s32 1, %s685_s12  }
 0x2e2   : > { %p10_p4 = scmp.ge.s32.totalorder %s13_s12, 4  }
 0x2e4   :  { %12 = sbr.rel (!%p10_p4) target bundleno = 1 (0x1), region = 62 }

// kernel: unet_forward.44
= control target key start
LH: loop header
LB: loop body
LE: loop exit
PB: predicated region body
PF: predicated region fallthrough
CT: control target
= control target key end

     0   :  { %s62_s0 = inlined_call_operand.vmem [shape: f32[8,256], index: 0, kind: input, shape index: {}]   ;;  %s63_s1 = inlined_call_operand.vmem [shape: f32[8,256], index: 1, kind: output, shape index: {}]  }
   0x1   :  { %v8_v0 = vld [vmem:[%s62_s0] sm:$0xff]  ;;  %v9_v1 = vld [vmem:[%s62_s0 + $0x8] sm:$0xff] }
   0x2   :  { %v10_v2 = vadd.f32 %v9_v1, %v8_v0 }
   0x4   :  { %11 = vadd.xlane.f32.xlu0 %v10_v2 }
  0x91   :  { %v12_v3 = vpop.xlane.xlu0 %11 }
  0x92   :  { %v13_v4 = vmul.f32 0.00390625, %v12_v3 }
  0x94   :  { %v14_v5 = vsub.f32 %v8_v0, %v13_v4  ;;  %v15_v6 = vsub.f32 %v9_v1, %v13_v4 }
  0x96   :  { %v16_v7 = vmul.f32 %v14_v5, %v14_v5  ;;  %v17_v8 = vmul.f32 %v15_v6, %v15_v6 }
  0x98   :  { %v18_v9 = vadd.f32 %v17_v8, %v16_v7 }
  0x9a   :  { %19 = vadd.xlane.f32.xlu0 %v18_v9 }
 0x127   :  { %v20_v10 = vpop.xlane.xlu0 %19 }
 0x128   :  { %v21_v11 = vmul.f32 0.00390625, %v20_v10 }
 0x12a   :  { %v22_v12 = vadd.f32 1e-05, %v21_v11 }
 0x12c   :  { %38 = vrsqrt.f32 %v22_v12 }
 0x136   :  { %v39_v13 = vpop.eup %38 }
 0x137   :  { %v24_v14 = vmul.f32 %v39_v13, %v14_v5  ;;  %v25_v15 = vmul.f32 %v39_v13, %v15_v6 }
 0x139   :  { %vm26_vm0 = vcmp.ge.f32.partialorder %v24_v14, 0.0  ;;  %vm27_vm1 = vcmp.ge.f32.partialorder %v25_v15, 0.0  ;;  %v28_v16 = vmul.f32 0.2, %v24_v14  ;;  %v29_v17 = vmul.f32 0.2, %v25_v15 }
 0x13b   :  { %v30_v18 = vsel %vm26_vm0, %v24_v14, %v28_v16  ;;  %v31_v19 = vsel %vm27_vm1, %v25_v15, %v29_v17 }
 0x13c   :  { %32 = vst [vmem:[%s63_s1] sm:$0xff] %v30_v18  ;;  %33 = vst [vmem:[%s63_s1 + $0x8] sm:$0xff] %v31_v19 }

// kernel: unet_forward.47
= control target key start
LH: loop header
LB: loop body
LE: loop exit
PB: predicated region body
PF: predicated region fallthrough
CT: control target
= control target key end

     0   :  { %s709_s12 = smov 0   ;;  %s773_s0 = inlined_call_operand.vmem [shape: f32[2,8,326], index: 0, kind: input, shape index: {}]   ;;  %s774_s1 = inlined_call_operand.vmem [shape: bf16[4,72], index: 1, kind: input, shape index: {}]   ;;  %s775_s2 = inlined_call_operand.vmem [shape: f32[1,288], index: 2, kind: input, shape index: {}]   ;;  %s776_s3 = inlined_call_operand.vmem [shape: f32[2,4,288], index: 3, kind: output, shape index: {}]  }
   0x1 LB: > { %s615_s13 = sadd.s32 4294967295, %s676_s12   ;;  %p619_p0 = scmp.ge.s32.totalorder %s676_s12, 1  ;;  %s676_s12 = sphi %s709_s12, %s13_s12  }
   0x2   : > { %p137_p1 = scmp.lt.s32.totalorder %s676_s12, 3 }
   0x4   : > { %p138_p2 = pnand %p619_p0, %p137_p1 }
   0x5   : > { %p161_p3 = scmp.lt.s32.totalorder (!%p138_p2), %s615_s13, 1  ;;  %vm177_vm0 = vcmask (!%p138_p2), 261120   ;;  %s678_s18 = smov (!%p138_p2), 127   ;;  %v679_v3 = vmov (!%p138_p2), 0.0   ;;  %v686_v4 = vmov (!%p138_p2), 0   ;;  %vm688_vm1 = vmmov (!%p138_p2), 0  }
   0x6   : > { %141 = sbr.rel (%p138_p2) target bundleno = 730 (0x2da), region = 32  ;;  %633 = vmatprep.subr.bf16.mxu1 (!%p138_p2), %v679_v3  ;;  %s680_s19 = smov (!%p138_p2), 126   ;;  %436 = vmatprep.mubr.bf16.mxu0 (!%p138_p2), %v686_v4  ;;  %vm191_vm2 = vcmask (!%p138_p2), 1039360   ;;  %vm212_vm3 = vcmask (!%p138_p2), 1031168   ;;  %vm233_vm4 = vcmask (!%p138_p2), 900096   ;;  %vm254_vm5 = vcmask (!%p138_p2), 891904  }
   0x7   : > { %s681_s20 = smov (!%p138_p2), 110   ;;  %s682_s21 = smov (!%p138_p2), 109   ;;  %643 = vmatprep.mubr.msk.bf16.mxu1 (!%p138_p2), %vm688_vm1, %v679_v3  ;;  %vm275_vm6 = vcmask (!%p138_p2), 883712   ;;  %vm296_vm7 = vcmask (!%p138_p2), 752640   ;;  %vm317_vm8 = vcmask (!%p138_p2), 744448   ;;  %vm338_vm9 = vcmask (!%p138_p2), 736256  }
   0x8   : > { %s683_s22 = smov (!%p138_p2), 108   ;;  %s684_s23 = smov (!%p138_p2), 92   ;;  %vm394_vm10 = vcmask (!%p138_p2), 1043456   ;;  %vm390_vm11 = vcmask (!%p138_p2), 588800   ;;  %vm508_vm12 = vcmask (!%p138_p2), 257024  }
   0x9   : > { %s685_s24 = smov (!%p138_p2), 91   ;;  %s687_s25 = smov (!%p138_p2), 90  }
   0xd   : > { %s778_s13 = smov (!%p161_p3, %s615_s13), 1 }
   0xe   : > { %s647_s14 = smul.u32 24, %s778_s13 }
   0xf   : > { %s648_s30 = smul.u32 12, %s778_s13 }
  0x10   : > { %s165_s17 = scalar_lea.vmem %s773_s0, %s647_s14 }
  0x11   : > { %v180_v0 = vld [vmem:[%s165_s17 + $0x8] sm:$0xff]  ;;  %v179_v1 = vld [vmem:[%s165_s17] sm:$0xff]  ;;  %v181_v2 = vld [vmem:[%s165_s17 + $0x10] sm:$0xff]  ;;  %s170_s6 = scalar_lea.vmem %s776_s3, %s648_s30 }
  0x12   : > { %187 = vrot.lane.b32.xlu0 %v180_v0, %s678_s18  ;;  %185 = vrot.lane.b32.xlu1 %v179_v1, %s678_s18  ;;  %178 = vst.msk [vmem:[#allocation2 + $0x10] sm:$0xff] %vm177_vm0, %v181_v2 }
  0x16   : > { %189 = vrot.lane.b32.xlu0 %v181_v2, %s678_s18  ;;  %208 = vrot.lane.b32.xlu1 %v180_v0, %s680_s19 }
  0x19   : > { %v350_v16 = vld [vmem:[#allocation2 + $0x10] sm:$0xff] }
  0x1a   : > { %210 = vrot.lane.b32.xlu0 %v181_v2, %s680_s19  ;;  %229 = vrot.lane.b32.xlu1 %v180_v0, %s681_s20 }
  0x1e   : > { %231 = vrot.lane.b32.xlu0 %v181_v2, %s681_s20  ;;  %206 = vrot.lane.b32.xlu1 %v179_v1, %s680_s19 }
  0x22   : > { %227 = vrot.lane.b32.xlu0 %v179_v1, %s681_s20  ;;  %250 = vrot.lane.b32.xlu1 %v180_v0, %s682_s21 }
  0x26   : > { %252 = vrot.lane.b32.xlu0 %v181_v2, %s682_s21  ;;  %271 = vrot.lane.b32.xlu1 %v180_v0, %s683_s22 }
  0x2a   : > { %273 = vrot.lane.b32.xlu0 %v181_v2, %s683_s22  ;;  %248 = vrot.lane.b32.xlu1 %v179_v1, %s682_s21 }
  0x2e   : > { %269 = vrot.lane.b32.xlu0 %v179_v1, %s683_s22  ;;  %292 = vrot.lane.b32.xlu1 %v180_v0, %s684_s23 }
  0x32   : > { %294 = vrot.lane.b32.xlu0 %v181_v2, %s684_s23  ;;  %313 = vrot.lane.b32.xlu1 %v180_v0, %s685_s24 }
  0x36   : > { %315 = vrot.lane.b32.xlu0 %v181_v2, %s685_s24  ;;  %290 = vrot.lane.b32.xlu1 %v179_v1, %s684_s23 }
  0x3a   : > { %311 = vrot.lane.b32.xlu0 %v179_v1, %s685_s24  ;;  %332 = vrot.lane.b32.xlu1 %v179_v1, %s687_s25 }
  0x3e   : > { %334 = vrot.lane.b32.xlu0 %v180_v0, %s687_s25  ;;  %336 = vrot.lane.b32.xlu1 %v181_v2, %s687_s25 }
  0x84   : > { %v188_v5 = vpop.permute.xlu0 %187  ;;  %v186_v6 = vpop.permute.xlu1 %185 }
  0x85   : > { %v192_v7 = vsel %vm191_vm2, %v186_v6, %v188_v5 }
  0x86   : > { %v375_v12 = vpack.c.bf16 %v192_v7, %v179_v1 }
  0x88   : > { %v190_v8 = vpop.permute.xlu0 %189  ;;  %v209_v9 = vpop.permute.xlu1 %208 }
  0x89   : > { %v193_v10 = vsel %vm191_vm2, %v188_v5, %v190_v8  ;;  %199 = vst.msk [vmem:[#allocation2 + $0x28] sm:$0xff] %vm177_vm0, %v190_v8  ;;  %v347_v5 = vld [vmem:[%s774_s1] sm:$0x3] }
  0x8a   : > { %v376_v11 = vpack.c.bf16 %v193_v10, %v180_v0 }
  0x8c   : > { %v211_v13 = vpop.permute.xlu0 %210  ;;  %v230_v14 = vpop.permute.xlu1 %229  ;;  %404 = vmatprep.subr.bf16.mxu0 %v376_v11  ;;  %v485_v11 = vld [vmem:[%s775_s2] sm:$0x7] }
  0x8d   : > { %v214_v15 = vsel %vm212_vm3, %v209_v9, %v211_v13  ;;  %220 = vst.msk [vmem:[#allocation2 + $0x40] sm:$0xff] %vm177_vm0, %v211_v13  ;;  %405 = vmatpush1.bf16.msra.mxu0 %v375_v12 }
  0x90   : > { %v232_v17 = vpop.permute.xlu0 %231  ;;  %v207_v18 = vpop.permute.xlu1 %206  ;;  %v353_v19 = vld [vmem:[#allocation2 + $0x28] sm:$0xff] }
  0x91   : > { %v235_v20 = vsel %vm233_vm4, %v230_v14, %v232_v17  ;;  %241 = vst.msk [vmem:[#allocation2 + $0x58] sm:$0xff] %vm177_vm0, %v232_v17  ;;  %v213_v21 = vsel %vm212_vm3, %v207_v18, %v209_v9  ;;  %v377_v22 = vpack.c.bf16 %v353_v19, %v350_v16  ;;  %v487_v9 = vlaneseq }
  0x92   : > { %v379_v23 = vpack.c.bf16 %v235_v20, %v214_v15 }
  0x93   : > { %634 = vmatpush3.bf16.msra.mxu1 %v377_v22  ;;  %v750_v10 = vshrl.u32 %v487_v9, 7 }
  0x94   : > { %v228_v24 = vpop.permute.xlu0 %227  ;;  %v251_v25 = vpop.permute.xlu1 %250  ;;  %635 = vmatprep.subr.bf16.mxu1 %v679_v3  ;;  %406 = vmatprep.subr.bf16.mxu0 %v379_v23  ;;  %v356_v27 = vld [vmem:[#allocation2 + $0x40] sm:$0xff] }
  0x95   : > { %v234_v26 = vsel %vm233_vm4, %v228_v24, %v230_v14  ;;  %v493_v12 = vsub.s32 1, %v750_v10  ;;  %v497_v16 = vsub.s32 2, %v750_v10  ;;  %vm548_vm13 = vcmp.lt.s32.totalorder %v750_v10, 2 }
  0x96   : > { %v378_v28 = vpack.c.bf16 %v234_v26, %v213_v21 }
  0x97   : > { %v494_v14 = vrot.slane %v485_v11, %v493_v12  ;;  %v498_v23 = vrot.slane %v485_v11, %v497_v16 }
  0x98   : > { %v253_v29 = vpop.permute.xlu0 %252  ;;  %v272_v30 = vpop.permute.xlu1 %271  ;;  %v359_v31 = vld [vmem:[#allocation2 + $0x58] sm:$0xff]  ;;  %407 = vmatpush1.bf16.msra.mxu0 %v378_v28 }
  0x99   : > { %v256_v32 = vsel %vm254_vm5, %v251_v25, %v253_v29  ;;  %262 = vst.msk [vmem:[#allocation2 + $0x70] sm:$0xff] %vm177_vm0, %v253_v29  ;;  %v380_v33 = vpack.c.bf16 %v359_v31, %v356_v27 }
  0x9b   : > { %636 = vmatpush3.bf16.msra.mxu1 %v380_v33 }
  0x9c   : > { %v274_v34 = vpop.permute.xlu0 %273  ;;  %v249_v35 = vpop.permute.xlu1 %248  ;;  %637 = vmatprep.subr.bf16.mxu1 %v679_v3 }
  0x9d   : > { %v277_v36 = vsel %vm275_vm6, %v272_v30, %v274_v34  ;;  %283 = vst.msk [vmem:[#allocation2 + $0x88] sm:$0xff] %vm177_vm0, %v274_v34  ;;  %v255_v37 = vsel %vm254_vm5, %v249_v35, %v251_v25 }
  0x9e   : > { %v382_v38 = vpack.c.bf16 %v277_v36, %v256_v32 }
  0xa0   : > { %v270_v39 = vpop.permute.xlu0 %269  ;;  %v293_v40 = vpop.permute.xlu1 %292  ;;  %408 = vmatprep.subr.bf16.mxu0 %v382_v38  ;;  %v362_v42 = vld [vmem:[#allocation2 + $0x70] sm:$0xff] }
  0xa1   : > { %v276_v41 = vsel %vm275_vm6, %v270_v39, %v272_v30 }
  0xa2   : > { %v381_v43 = vpack.c.bf16 %v276_v41, %v255_v37 }
  0xa4   : > { %v295_v44 = vpop.permute.xlu0 %294  ;;  %v314_v45 = vpop.permute.xlu1 %313  ;;  %v365_v46 = vld [vmem:[#allocation2 + $0x88] sm:$0xff]  ;;  %409 = vmatpush1.bf16.msra.mxu0 %v381_v43 }
  0xa5   : > { %v298_v47 = vsel %vm296_vm7, %v293_v40, %v295_v44  ;;  %304 = vst.msk [vmem:[#allocation2 + $0xa0] sm:$0xff] %vm177_vm0, %v295_v44  ;;  %v383_v48 = vpack.c.bf16 %v365_v46, %v362_v42 }
  0xa7   : > { %638 = vmatpush3.bf16.msra.mxu1 %v383_v48 }
  0xa8   : > { %v316_v49 = vpop.permute.xlu0 %315  ;;  %v291_v50 = vpop.permute.xlu1 %290  ;;  %639 = vmatprep.subr.bf16.mxu1 %v679_v3 }
  0xa9   : > { %v319_v51 = vsel %vm317_vm8, %v314_v45, %v316_v49  ;;  %325 = vst.msk [vmem:[#allocation2 + $0xb8] sm:$0xff] %vm177_vm0, %v316_v49  ;;  %v297_v52 = vsel %vm296_vm7, %v291_v50, %v293_v40 }
  0xaa   : > { %v385_v53 = vpack.c.bf16 %v319_v51, %v298_v47 }
  0xac   : > { %v312_v54 = vpop.permute.xlu0 %311  ;;  %v333_v55 = vpop.permute.xlu1 %332  ;;  %410 = vmatprep.subr.bf16.mxu0 %v385_v53  ;;  %v368_v57 = vld [vmem:[#allocation2 + $0xa0] sm:$0xff] }
  0xad   : > { %v318_v56 = vsel %vm317_vm8, %v312_v54, %v314_v45 }
  0xae   : > { %v384_v58 = vpack.c.bf16 %v318_v56, %v297_v52 }
  0xb0   : > { %v335_v59 = vpop.permute.xlu0 %334  ;;  %v337_v60 = vpop.permute.xlu1 %336  ;;  %v371_v61 = vld [vmem:[#allocation2 + $0xb8] sm:$0xff]  ;;  %411 = vmatpush1.bf16.msra.mxu0 %v384_v58 }
  0xb1   : > { %v339_v62 = vsel %vm338_vm9, %v333_v55, %v335_v59  ;;  %v340_v63 = vsel %vm338_vm9, %v335_v59, %v337_v60  ;;  %346 = vst.msk [vmem:[#allocation2 + $0xd0] sm:$0xff] %vm177_vm0, %v337_v60  ;;  %v386_v0 = vpack.c.bf16 %v371_v61, %v368_v57 }
  0xb2   : > { %v388_v1 = vpack.c.bf16 %v340_v63, %v340_v63  ;;  %v387_v2 = vpack.c.bf16 %v339_v62, %v339_v62 }
  0xb3   : > { %640 = vmatpush3.bf16.msra.mxu1 %v386_v0 }
  0xb4   : > { %641 = vmatprep.subr.bf16.mxu1 %v679_v3  ;;  %622 = vmatprep.subr.msk.bf16.mxu0 %vm394_vm10, %v388_v1  ;;  %v396_v4 = vsel %vm394_vm10, %v387_v2, 0  ;;  %v489_v3 = vsub.s32 0, %v750_v10 }
  0xb5   : > { %413 = vmatpush1.bf16.msra.mxu0 %v396_v4 }
  0xb6   : > { %v490_v13 = vrot.slane %v485_v11, %v489_v3 }
  0xb8   : > { %v374_v6 = vld [vmem:[#allocation2 + $0xd0] sm:$0xff]  ;;  %623 = vmatmul.mubr.msk.bf16.vlgmr.msra.gmra.mrb[0].mxu0 %vm390_vm11, %v347_v5 }
  0xb9   : > { %v389_v7 = vpack.c.bf16 %v374_v6, %v374_v6 }
  0xbb   : > { %v402_v8 = vsel %vm394_vm10, %v389_v7, 0 }
  0xbc   : > { %642 = vmatpush3.bf16.msra.mxu1 %v402_v8 }
  0xbf   : > { %644 = vmatmul.mubr.msk.bf16.vlgmr.msra.gmra.mrb[0].mxu1 %vm390_vm11, %v347_v5 }
 0x18b   : > { %v438_v15 = vpop.f32.mrb[0].mxu0 }
 0x18c   : > { %v502_v17 = vmul.f32 %v490_v13, %v438_v15  ;;  %v440_v18 = vpop.f32.mrb[1].mxu0 }
 0x18d   : > { %v503_v19 = vmul.f32 %v494_v14, %v440_v18  ;;  %v442_v20 = vpop.f32.mrb[2].mxu0 }
 0x18e   : > { %v443_v21 = vpop.f32.mrb[3].mxu0  ;;  %v505_v22 = vsel %vm394_vm10, %v502_v17, 0.0 }
 0x18f   : > { %v506_v24 = vsel %vm394_vm10, %v503_v19, 0.0 }
 0x190   : > { %v507_v25 = vadd.f32 %v506_v24, %v505_v22 }
 0x192   : > { %v479_v26 = vpop.f32.mrb[0].mxu1 }
 0x193   : > { %v504_v27 = vmul.f32 %v498_v23, %v479_v26  ;;  %v645_v28 = vpop.f32.mrb[1].mxu1 }
 0x194   : > { %v482_v29 = vpop.f32.mrb[2].mxu1 }
 0x195   : > { %v646_v30 = vpop.f32.mrb[3].mxu1  ;;  %v509_v31 = vsel %vm508_vm12, %v504_v27, 0.0 }
 0x196   : > { %v510_v32 = vadd.f32 %v509_v31, %v507_v25 }
 0x198   : > { %511 = vadd.xlane.f32.xlu0 %v510_v32 }
 0x225   : > { %v512_v33 = vpop.xlane.xlu0 %511 }
 0x226   : > { %v514_v34 = vmul.f32 0.00390625, %v512_v33 }
 0x228   : > { %v515_v35 = vsub.f32 %v438_v15, %v514_v34  ;;  %v516_v36 = vsub.f32 %v440_v18, %v514_v34  ;;  %v517_v37 = vsub.f32 %v479_v26, %v514_v34 }
 0x22a   : > { %v518_v38 = vmul.f32 %v515_v35, %v490_v13  ;;  %v519_v39 = vmul.f32 %v516_v36, %v494_v14  ;;  %v520_v40 = vmul.f32 %v517_v37, %v498_v23 }
 0x22c   : > { %v521_v41 = vmul.f32 %v518_v38, %v518_v38  ;;  %v522_v42 = vmul.f32 %v519_v39, %v519_v39  ;;  %v523_v43 = vmul.f32 %v520_v40, %v520_v40 }
 0x22e   : > { %v524_v44 = vsel %vm394_vm10, %v521_v41, 0.0  ;;  %v525_v45 = vsel %vm394_vm10, %v522_v42, 0.0  ;;  %v527_v47 = vsel %vm508_vm12, %v523_v43, 0.0 }
 0x22f   : > { %v526_v46 = vadd.f32 %v525_v45, %v524_v44 }
 0x231   : > { %v528_v48 = vadd.f32 %v527_v47, %v526_v46 }
 0x233   : > { %529 = vadd.xlane.f32.xlu1 %v528_v48 }
 0x2c0   : > { %v530_v49 = vpop.xlane.xlu1 %529 }
 0x2c1   : > { %v531_v50 = vmul.f32 0.00390625, %v530_v49 }
 0x2c3   : > { %v532_v51 = vadd.f32 1e-05, %v531_v50 }
 0x2c5   : > { %668 = vrsqrt.f32 %v532_v51 }
 0x2cf   : > { %v669_v52 = vpop.eup %668 }
 0x2d0   : > { %v534_v53 = vmul.f32 %v669_v52, %v515_v35  ;;  %v535_v54 = vmul.f32 %v669_v52, %v516_v36  ;;  %v536_v55 = vmul.f32 %v669_v52, %v517_v37 }
 0x2d2   : > { %vm537_vm14 = vcmp.ge.f32.partialorder %v534_v53, 0.0  ;;  %vm538_vm15 = vcmp.ge.f32.partialorder %v535_v54, 0.0  ;;  %vm539_vm0 = vcmp.ge.f32.partialorder %v536_v55, 0.0  ;;  %v540_v56 = vmul.f32 0.2, %v534_v53 }
 0x2d3   : > { %v541_v57 = vmul.f32 0.2, %v535_v54  ;;  %v542_v58 = vmul.f32 0.2, %v536_v55 }
 0x2d4   : > { %v543_v59 = vsel %vm537_vm14, %v534_v53, %v540_v56 }
 0x2d5   : > { %v544_v60 = vsel %vm538_vm15, %v535_v54, %v541_v57  ;;  %v545_v61 = vsel %vm539_vm0, %v536_v55, %v542_v58  ;;  %v551_v62 = vsel %vm548_vm13, %v543_v59, %v438_v15 }
 0x2d6   : > { %v552_v63 = vsel %vm548_vm13, %v544_v60, %v440_v18  ;;  %v553_v0 = vsel %vm548_vm13, %v545_v61, %v479_v26 }
 0x2d7   : > { %v556_v1 = vcombine.low %v551_v62, %v552_v63  ;;  %559 = vst.msk [vmem:[%s170_s6 + $0x8] sm:$0xf] %vm508_vm12, %v553_v0 }
 0x2d9   : > { %558 = vst [vmem:[%s170_s6] sm:$0xff] %v556_v1 }
 0x2da PF: > { %s13_s12 = sadd.s32 1, %s676_s12  }
 0x2db   : > { %p10_p4 = scmp.ge.s32.totalorder %s13_s12, 4  }
 0x2dd   :  { %12 = sbr.rel (!%p10_p4) target bundleno = 1 (0x1), region = 62 }

// kernel: unet_forward.49
= control target key start
LH: loop header
LB: loop body
LE: loop exit
PB: predicated region body
PF: predicated region fallthrough
CT: control target
= control target key end

     0   :  { %s360_s12 = smov 0   ;;  %s383_s0 = inlined_call_operand.vmem [shape: f32[2,4,256], index: 0, kind: input, shape index: {}]   ;;  %s384_s1 = inlined_call_operand.vmem [shape: bf16[2,4], index: 1, kind: input, shape index: {}]   ;;  %s385_s2 = inlined_call_operand.vmem [shape: f32[2,1], index: 2, kind: input, shape index: {}]   ;;  %s386_s3 = inlined_call_operand.vmem [shape: f32[2,2,256], index: 3, kind: output, shape index: {}]  }
   0x1 LB: > { %s304_s13 = sadd.s32 4294967295, %s337_s12   ;;  %p308_p0 = scmp.ge.s32.totalorder %s337_s12, 1  ;;  %s337_s12 = sphi %s360_s12, %s13_s12  }
   0x2   : > { %p137_p1 = scmp.lt.s32.totalorder %s337_s12, 3 }
   0x4   : > { %p138_p2 = pnand %p308_p0, %p137_p1 }
   0x5   : > { %p161_p3 = scmp.lt.s32.totalorder (!%p138_p2), %s304_s13, 1  ;;  %v339_v0 = vmov (!%p138_p2), 0   ;;  %v179_v1 = vld [vmem:[%s385_s2] sm:$0x3] (!%p138_p2)  ;;  %vm189_vm0 = vcmask (!%p138_p2), 1041408   ;;  %vm185_vm1 = vcmask (!%p138_p2), 31744  }
   0x6   : > { %141 = sbr.rel (%p138_p2) target bundleno = 243 (0xf3), region = 32  ;;  %228 = vmatprep.mubr.bf16.mxu0 (!%p138_p2), %v339_v0  ;;  %329 = vset.pattern.permute.xlu0 (!%p138_p2), %v339_v0  ;;  %v172_v7 = vld [vmem:[%s384_s1] sm:$0x1] (!%p138_p2) }
   0x7   : > { %182 = vperm.xlu0 (!%p138_p2), %329, %v179_v1  }
   0xd   : > { %s388_s13 = smov (!%p161_p3, %s304_s13), 1 }
   0xe   : > { %s318_s16 = sshll.u32 %s388_s13, 3  ;;  %s319_s22 = sshll.u32 %s388_s13, 2 }
   0xf   : > { %s165_s19 = scalar_lea.vmem %s383_s0, %s318_s16  ;;  %s170_s25 = scalar_lea.vmem %s386_s3, %s319_s22 }
  0x10   : > { %v173_v2 = vld [vmem:[%s165_s19] sm:$0xff] }
  0x11   : > { %v175_v3 = vcombine.high %v173_v2, %v173_v2  ;;  %v177_v4 = vpack.c.bf16 %v173_v2, %v173_v2 }
  0x13   : > { %v178_v5 = vpack.c.bf16 %v175_v3, %v175_v3  ;;  %v191_v6 = vsel %vm189_vm0, %v177_v4, 0 }
  0x15   : > { %313 = vmatprep.subr.msk.bf16.mxu0 %vm189_vm0, %v178_v5 }
  0x16   : > { %197 = vmatpush1.bf16.msra.mxu0 %v191_v6 }
  0x19   : > { %314 = vmatmul.mubr.msk.bf16.vlgmr.msra.gmra.mrb[0].mxu0 %vm185_vm1, %v172_v7 }
  0x86   : > { %v183_v8 = vpop.permute.xlu0 %182 }
  0xec   : > { %v230_v9 = vpop.f32.mrb[0].mxu0 }
  0xed   : > { %v231_v10 = vadd.f32 %v230_v9, %v183_v8  ;;  %v232_v11 = vpop.f32.mrb[1].mxu0 }
  0xee   : > { %v233_v12 = vadd.f32 %v232_v11, %v183_v8  ;;  %v234_v13 = vpop.f32.mrb[2].mxu0 }
  0xef   : > { %v235_v14 = vpop.f32.mrb[3].mxu0 }
  0xf0   : > { %v239_v15 = vcombine.low %v231_v10, %v233_v12 }
  0xf2   : > { %315 = vst.sshfl [vmem:[%s170_s25] sm:$0x33 pattern:$0x76325410] %v239_v15 }
  0xf3 PF: > { %s13_s12 = sadd.s32 1, %s337_s12  }
  0xf4   : > { %p10_p4 = scmp.ge.s32.totalorder %s13_s12, 4  }
  0xf6   :  { %12 = sbr.rel (!%p10_p4) target bundleno = 1 (0x1), region = 62 }

// kernel: unet_forward.45
= control target key start
LH: loop header
LB: loop body
LE: loop exit
PB: predicated region body
PF: predicated region fallthrough
CT: control target
= control target key end

     0   :  { %s891_s12 = smov 0   ;;  %s1058_s0 = inlined_call_operand.vmem [shape: f32[2,16,326], index: 0, kind: input, shape index: {}]   ;;  %s1059_s1 = inlined_call_operand.vmem [shape: bf16[4,144], index: 1, kind: input, shape index: {}]   ;;  %s1060_s2 = inlined_call_operand.vmem [shape: f32[1,288], index: 2, kind: input, shape index: {}]   ;;  %s1061_s3 = inlined_call_operand.vmem [shape: f32[2,4,288], index: 3, kind: output, shape index: {}]  }
   0x1 LB: > { %s821_s13 = sadd.s32 4294967295, %s860_s12   ;;  %p825_p0 = scmp.ge.s32.totalorder %s860_s12, 1  ;;  %s860_s12 = sphi %s891_s12, %s13_s12  }
   0x2   : > { %p137_p1 = scmp.lt.s32.totalorder %s860_s12, 3 }
   0x4   : > { %p138_p2 = pnand %p825_p0, %p137_p1 }
   0x5   : > { %p161_p3 = scmp.lt.s32.totalorder (!%p138_p2), %s821_s13, 1  ;;  %v862_v0 = vmov (!%p138_p2), 0   ;;  %vm180_vm0 = vcmask (!%p138_p2), 261120   ;;  %s863_s18 = smov (!%p138_p2), 127   ;;  %vm605_vm1 = vcmask (!%p138_p2), 130048   ;;  %vm209_vm2 = vcmask (!%p138_p2), 1039360  }
   0x6   : > { %141 = sbr.rel (%p138_p2) target bundleno = 773 (0x305), region = 32  ;;  %650 = vmatprep.subr.bf16.mxu1 (!%p138_p2), %v862_v0  ;;  %s864_s19 = smov (!%p138_p2), 126   ;;  %v972_v12 = vld.sshfl [vmem:[%s1059_s1] sm:$0x33 pattern:$0x76325410] (!%p138_p2) }
   0x7   : > { %s865_s20 = smov (!%p138_p2), 110   ;;  %s866_s21 = smov (!%p138_p2), 109   ;;  %v603_v13 = vcombine.high (!%p138_p2), %v972_v12, %v972_v12  ;;  %vm250_vm3 = vcmask (!%p138_p2), 1031168   ;;  %vm291_vm4 = vcmask (!%p138_p2), 900096   ;;  %vm332_vm5 = vcmask (!%p138_p2), 891904  }
   0x8   : > { %s867_s22 = smov (!%p138_p2), 108   ;;  %s868_s23 = smov (!%p138_p2), 92   ;;  %vm373_vm6 = vcmask (!%p138_p2), 883712   ;;  %vm414_vm7 = vcmask (!%p138_p2), 752640   ;;  %vm455_vm8 = vcmask (!%p138_p2), 744448   ;;  %vm496_vm9 = vcmask (!%p138_p2), 736256  }
   0x9   : > { %s869_s24 = smov (!%p138_p2), 91   ;;  %s870_s27 = smov (!%p138_p2), 90   ;;  %829 = vmatprep.mubr.msk.bf16.mxu0 (!%p138_p2), %vm605_vm1, %v603_v13  ;;  %830 = vmatprep.mubr.msk.bf16.mxu1 (!%p138_p2), %vm605_vm1, %v603_v13  ;;  %vm710_vm10 = vcmask (!%p138_p2), 1043456   ;;  %vm714_vm11 = vcmask (!%p138_p2), 257024  }
   0xd   : > { %s1063_s13 = smov (!%p161_p3, %s821_s13), 1 }
   0xe   : > { %s833_s14 = smul.u32 48, %s1063_s13 }
   0xf   : > { %s834_s30 = smul.u32 12, %s1063_s13 }
  0x10   : > { %s165_s17 = scalar_lea.vmem %s1058_s0, %s833_s14 }
  0x11   : > { %v906_v1 = vld [vmem:[%s165_s17 + $0x20] sm:$0xff]  ;;  %v908_v2 = vld [vmem:[%s165_s17 + $0x8] sm:$0xff]  ;;  %v914_v4 = vld [vmem:[%s165_s17 + $0x10] sm:$0xff]  ;;  %s170_s6 = scalar_lea.vmem %s1061_s3, %s834_s30 }
  0x12   : > { %v910_v3 = vld [vmem:[%s165_s17 + $0x28] sm:$0xff]  ;;  %205 = vrot.lane.b32.xlu1 %v906_v1, %s863_s18  ;;  %199 = vrot.lane.b32.xlu0 %v908_v2, %s863_s18  ;;  %v916_v5 = vld [vmem:[%s165_s17 + $0x18] sm:$0xff]  ;;  %v569_v6 = vpack.c.bf16 %v906_v1, %v908_v2  ;;  %181 = vst.msk [vmem:[#allocation2 + $0x10] sm:$0xff] %vm180_vm0, %v914_v4 }
  0x13   : > { %184 = vst.msk [vmem:[#allocation2 + $0x28] sm:$0xff] %vm180_vm0, %v910_v3  ;;  %v922_v7 = vld [vmem:[%s165_s17] sm:$0xff] }
  0x14   : > { %609 = vmatprep.subr.bf16.mxu0 %v569_v6  ;;  %v568_v8 = vpack.c.bf16 %v916_v5, %v922_v7 }
  0x16   : > { %207 = vrot.lane.b32.xlu1 %v910_v3, %s863_s18  ;;  %201 = vrot.lane.b32.xlu0 %v914_v4, %s863_s18 }
  0x17   : > { %610 = vmatpush1.bf16.msra.mxu0 %v568_v8 }
  0x19   : > { %v516_v10 = vld [vmem:[#allocation2 + $0x10] sm:$0xff] }
  0x1a   : > { %v519_v9 = vld [vmem:[#allocation2 + $0x28] sm:$0xff]  ;;  %203 = vrot.lane.b32.xlu1 %v916_v5, %s863_s18  ;;  %197 = vrot.lane.b32.xlu0 %v922_v7, %s863_s18 }
  0x1b   : > { %v570_v11 = vpack.c.bf16 %v519_v9, %v516_v10 }
  0x1d   : > { %651 = vmatpush1.bf16.msra.mxu1 %v570_v11 }
  0x1e   : > { %242 = vrot.lane.b32.xlu1 %v914_v4, %s864_s19  ;;  %240 = vrot.lane.b32.xlu0 %v908_v2, %s864_s19 }
  0x1f   : > { %652 = vmatprep.subr.bf16.mxu1 %v862_v0 }
  0x22   : > { %248 = vrot.lane.b32.xlu1 %v910_v3, %s864_s19  ;;  %246 = vrot.lane.b32.xlu0 %v906_v1, %s864_s19 }
  0x26   : > { %244 = vrot.lane.b32.xlu1 %v916_v5, %s864_s19  ;;  %238 = vrot.lane.b32.xlu0 %v922_v7, %s864_s19 }
  0x2a   : > { %283 = vrot.lane.b32.xlu1 %v914_v4, %s865_s20  ;;  %281 = vrot.lane.b32.xlu0 %v908_v2, %s865_s20 }
  0x2e   : > { %289 = vrot.lane.b32.xlu1 %v910_v3, %s865_s20  ;;  %287 = vrot.lane.b32.xlu0 %v906_v1, %s865_s20 }
  0x32   : > { %285 = vrot.lane.b32.xlu1 %v916_v5, %s865_s20  ;;  %279 = vrot.lane.b32.xlu0 %v922_v7, %s865_s20 }
  0x36   : > { %324 = vrot.lane.b32.xlu1 %v914_v4, %s866_s21  ;;  %322 = vrot.lane.b32.xlu0 %v908_v2, %s866_s21 }
  0x3a   : > { %330 = vrot.lane.b32.xlu1 %v910_v3, %s866_s21  ;;  %328 = vrot.lane.b32.xlu0 %v906_v1, %s866_s21 }
  0x3e   : > { %326 = vrot.lane.b32.xlu1 %v916_v5, %s866_s21  ;;  %320 = vrot.lane.b32.xlu0 %v922_v7, %s866_s21 }
  0x42   : > { %365 = vrot.lane.b32.xlu1 %v914_v4, %s867_s22  ;;  %363 = vrot.lane.b32.xlu0 %v908_v2, %s867_s22 }
  0x46   : > { %371 = vrot.lane.b32.xlu1 %v910_v3, %s867_s22  ;;  %369 = vrot.lane.b32.xlu0 %v906_v1, %s867_s22 }
  0x4a   : > { %367 = vrot.lane.b32.xlu1 %v916_v5, %s867_s22  ;;  %361 = vrot.lane.b32.xlu0 %v922_v7, %s867_s22 }
  0x4e   : > { %406 = vrot.lane.b32.xlu1 %v914_v4, %s868_s23  ;;  %404 = vrot.lane.b32.xlu0 %v908_v2, %s868_s23 }
  0x52   : > { %412 = vrot.lane.b32.xlu1 %v910_v3, %s868_s23  ;;  %410 = vrot.lane.b32.xlu0 %v906_v1, %s868_s23 }
  0x56   : > { %408 = vrot.lane.b32.xlu1 %v916_v5, %s868_s23  ;;  %402 = vrot.lane.b32.xlu0 %v922_v7, %s868_s23 }
  0x5a   : > { %447 = vrot.lane.b32.xlu1 %v914_v4, %s869_s24  ;;  %445 = vrot.lane.b32.xlu0 %v908_v2, %s869_s24 }
  0x5e   : > { %453 = vrot.lane.b32.xlu1 %v910_v3, %s869_s24  ;;  %451 = vrot.lane.b32.xlu0 %v906_v1, %s869_s24 }
  0x62   : > { %449 = vrot.lane.b32.xlu1 %v916_v5, %s869_s24  ;;  %443 = vrot.lane.b32.xlu0 %v922_v7, %s869_s24 }
  0x66   : > { %488 = vrot.lane.b32.xlu1 %v914_v4, %s870_s27  ;;  %486 = vrot.lane.b32.xlu0 %v908_v2, %s870_s27 }
  0x6a   : > { %494 = vrot.lane.b32.xlu1 %v910_v3, %s870_s27  ;;  %492 = vrot.lane.b32.xlu0 %v906_v1, %s870_s27 }
  0x6e   : > { %490 = vrot.lane.b32.xlu1 %v916_v5, %s870_s27  ;;  %484 = vrot.lane.b32.xlu0 %v922_v7, %s870_s27 }
  0x84   : > { %v206_v14 = vpop.permute.xlu1 %205  ;;  %v200_v15 = vpop.permute.xlu0 %199 }
  0x88   : > { %v208_v16 = vpop.permute.xlu1 %207  ;;  %v202_v17 = vpop.permute.xlu0 %201 }
  0x89   : > { %v213_v18 = vsel %vm209_vm2, %v206_v14, %v208_v16  ;;  %225 = vst.msk [vmem:[#allocation2 + $0x58] sm:$0xff] %vm180_vm0, %v208_v16  ;;  %v211_v19 = vsel %vm209_vm2, %v200_v15, %v202_v17  ;;  %222 = vst.msk [vmem:[#allocation2 + $0x40] sm:$0xff] %vm180_vm0, %v202_v17 }
  0x8a   : > { %v572_v20 = vpack.c.bf16 %v213_v18, %v211_v19 }
  0x8c   : > { %v204_v21 = vpop.permute.xlu1 %203  ;;  %v198_v22 = vpop.permute.xlu0 %197  ;;  %611 = vmatprep.subr.bf16.mxu0 %v572_v20 }
  0x8d   : > { %v212_v23 = vsel %vm209_vm2, %v204_v21, %v206_v14  ;;  %v210_v24 = vsel %vm209_vm2, %v198_v22, %v200_v15 }
  0x8e   : > { %v571_v25 = vpack.c.bf16 %v212_v23, %v210_v24 }
  0x90   : > { %v243_v26 = vpop.permute.xlu1 %242  ;;  %v241_v27 = vpop.permute.xlu0 %240  ;;  %v522_v28 = vld [vmem:[#allocation2 + $0x40] sm:$0xff]  ;;  %v525_v29 = vld [vmem:[#allocation2 + $0x58] sm:$0xff]  ;;  %612 = vmatpush1.bf16.msra.mxu0 %v571_v25 }
  0x91   : > { %263 = vst.msk [vmem:[#allocation2 + $0x70] sm:$0xff] %vm180_vm0, %v243_v26  ;;  %v252_v30 = vsel %vm250_vm3, %v241_v27, %v243_v26  ;;  %v573_v31 = vpack.c.bf16 %v525_v29, %v522_v28 }
  0x93   : > { %653 = vmatpush1.bf16.msra.mxu1 %v573_v31 }
  0x94   : > { %v249_v32 = vpop.permute.xlu1 %248  ;;  %v247_v33 = vpop.permute.xlu0 %246  ;;  %654 = vmatprep.subr.bf16.mxu1 %v862_v0 }
  0x95   : > { %266 = vst.msk [vmem:[#allocation2 + $0x88] sm:$0xff] %vm180_vm0, %v249_v32  ;;  %v254_v34 = vsel %vm250_vm3, %v247_v33, %v249_v32 }
  0x96   : > { %v575_v35 = vpack.c.bf16 %v254_v34, %v252_v30 }
  0x98   : > { %v245_v36 = vpop.permute.xlu1 %244  ;;  %v239_v37 = vpop.permute.xlu0 %238  ;;  %613 = vmatprep.subr.bf16.mxu0 %v575_v35  ;;  %v528_v43 = vld [vmem:[#allocation2 + $0x70] sm:$0xff] }
  0x99   : > { %v253_v38 = vsel %vm250_vm3, %v245_v36, %v247_v33  ;;  %v251_v39 = vsel %vm250_vm3, %v239_v37, %v241_v27 }
  0x9a   : > { %v574_v40 = vpack.c.bf16 %v253_v38, %v251_v39 }
  0x9c   : > { %v284_v41 = vpop.permute.xlu1 %283  ;;  %v282_v42 = vpop.permute.xlu0 %281  ;;  %v531_v44 = vld [vmem:[#allocation2 + $0x88] sm:$0xff]  ;;  %614 = vmatpush1.bf16.msra.mxu0 %v574_v40 }
  0x9d   : > { %304 = vst.msk [vmem:[#allocation2 + $0xa0] sm:$0xff] %vm180_vm0, %v284_v41  ;;  %v293_v45 = vsel %vm291_vm4, %v282_v42, %v284_v41  ;;  %v576_v46 = vpack.c.bf16 %v531_v44, %v528_v43 }
  0x9f   : > { %655 = vmatpush1.bf16.msra.mxu1 %v576_v46 }
  0xa0   : > { %v290_v47 = vpop.permute.xlu1 %289  ;;  %v288_v48 = vpop.permute.xlu0 %287  ;;  %656 = vmatprep.subr.bf16.mxu1 %v862_v0 }
  0xa1   : > { %307 = vst.msk [vmem:[#allocation2 + $0xb8] sm:$0xff] %vm180_vm0, %v290_v47  ;;  %v295_v49 = vsel %vm291_vm4, %v288_v48, %v290_v47 }
  0xa2   : > { %v578_v50 = vpack.c.bf16 %v295_v49, %v293_v45 }
  0xa4   : > { %v286_v51 = vpop.permute.xlu1 %285  ;;  %v280_v52 = vpop.permute.xlu0 %279  ;;  %615 = vmatprep.subr.bf16.mxu0 %v578_v50  ;;  %v534_v58 = vld [vmem:[#allocation2 + $0xa0] sm:$0xff] }
  0xa5   : > { %v294_v53 = vsel %vm291_vm4, %v286_v51, %v288_v48  ;;  %v292_v54 = vsel %vm291_vm4, %v280_v52, %v282_v42 }
  0xa6   : > { %v577_v55 = vpack.c.bf16 %v294_v53, %v292_v54 }
  0xa8   : > { %v325_v56 = vpop.permute.xlu1 %324  ;;  %v323_v57 = vpop.permute.xlu0 %322  ;;  %v537_v59 = vld [vmem:[#allocation2 + $0xb8] sm:$0xff]  ;;  %616 = vmatpush1.bf16.msra.mxu0 %v577_v55 }
  0xa9   : > { %345 = vst.msk [vmem:[#allocation2 + $0xd0] sm:$0xff] %vm180_vm0, %v325_v56  ;;  %v334_v60 = vsel %vm332_vm5, %v323_v57, %v325_v56  ;;  %v579_v61 = vpack.c.bf16 %v537_v59, %v534_v58 }
  0xab   : > { %657 = vmatpush1.bf16.msra.mxu1 %v579_v61 }
  0xac   : > { %v331_v62 = vpop.permute.xlu1 %330  ;;  %v329_v63 = vpop.permute.xlu0 %328  ;;  %658 = vmatprep.subr.bf16.mxu1 %v862_v0 }
  0xad   : > { %348 = vst.msk [vmem:[#allocation2 + $0xe8] sm:$0xff] %vm180_vm0, %v331_v62  ;;  %v336_v1 = vsel %vm332_vm5, %v329_v63, %v331_v62 }
  0xae   : > { %v581_v2 = vpack.c.bf16 %v336_v1, %v334_v60 }
  0xb0   : > { %v327_v3 = vpop.permute.xlu1 %326  ;;  %v321_v4 = vpop.permute.xlu0 %320  ;;  %617 = vmatprep.subr.bf16.mxu0 %v581_v2  ;;  %v540_v10 = vld [vmem:[#allocation2 + $0xd0] sm:$0xff] }
  0xb1   : > { %v335_v5 = vsel %vm332_vm5, %v327_v3, %v329_v63  ;;  %v333_v6 = vsel %vm332_vm5, %v321_v4, %v323_v57 }
  0xb2   : > { %v580_v7 = vpack.c.bf16 %v335_v5, %v333_v6 }
  0xb4   : > { %v366_v8 = vpop.permute.xlu1 %365  ;;  %v364_v9 = vpop.permute.xlu0 %363  ;;  %v543_v11 = vld [vmem:[#allocation2 + $0xe8] sm:$0xff]  ;;  %618 = vmatpush1.bf16.msra.mxu0 %v580_v7 }
  0xb5   : > { %386 = vst.msk [vmem:[#allocation2 + $0x100] sm:$0xff] %vm180_vm0, %v366_v8  ;;  %v375_v13 = vsel %vm373_vm6, %v364_v9, %v366_v8  ;;  %v582_v14 = vpack.c.bf16 %v543_v11, %v540_v10  ;;  %v690_v11 = vld [vmem:[%s1060_s2] sm:$0x7] }
  0xb7   : > { %659 = vmatpush1.bf16.msra.mxu1 %v582_v14 }
  0xb8   : > { %v372_v15 = vpop.permute.xlu1 %371  ;;  %v370_v16 = vpop.permute.xlu0 %369  ;;  %660 = vmatprep.subr.bf16.mxu1 %v862_v0 }
  0xb9   : > { %389 = vst.msk [vmem:[#allocation2 + $0x118] sm:$0xff] %vm180_vm0, %v372_v15  ;;  %v377_v17 = vsel %vm373_vm6, %v370_v16, %v372_v15 }
  0xba   : > { %v584_v18 = vpack.c.bf16 %v377_v17, %v375_v13 }
  0xbc   : > { %v368_v19 = vpop.permute.xlu1 %367  ;;  %v362_v20 = vpop.permute.xlu0 %361  ;;  %619 = vmatprep.subr.bf16.mxu0 %v584_v18  ;;  %v546_v26 = vld [vmem:[#allocation2 + $0x100] sm:$0xff] }
  0xbd   : > { %v376_v21 = vsel %vm373_vm6, %v368_v19, %v370_v16  ;;  %v374_v22 = vsel %vm373_vm6, %v362_v20, %v364_v9 }
  0xbe   : > { %v583_v23 = vpack.c.bf16 %v376_v21, %v374_v22 }
  0xc0   : > { %v407_v24 = vpop.permute.xlu1 %406  ;;  %v405_v25 = vpop.permute.xlu0 %404  ;;  %v549_v27 = vld [vmem:[#allocation2 + $0x118] sm:$0xff]  ;;  %620 = vmatpush1.bf16.msra.mxu0 %v583_v23 }
  0xc1   : > { %427 = vst.msk [vmem:[#allocation2 + $0x130] sm:$0xff] %vm180_vm0, %v407_v24  ;;  %v416_v28 = vsel %vm414_vm7, %v405_v25, %v407_v24  ;;  %v585_v29 = vpack.c.bf16 %v549_v27, %v546_v26 }
  0xc3   : > { %661 = vmatpush1.bf16.msra.mxu1 %v585_v29 }
  0xc4   : > { %v413_v30 = vpop.permute.xlu1 %412  ;;  %v411_v31 = vpop.permute.xlu0 %410  ;;  %662 = vmatprep.subr.bf16.mxu1 %v862_v0 }
  0xc5   : > { %430 = vst.msk [vmem:[#allocation2 + $0x148] sm:$0xff] %vm180_vm0, %v413_v30  ;;  %v418_v32 = vsel %vm414_vm7, %v411_v31, %v413_v30 }
  0xc6   : > { %v587_v33 = vpack.c.bf16 %v418_v32, %v416_v28 }
  0xc8   : > { %v409_v34 = vpop.permute.xlu1 %408  ;;  %v403_v35 = vpop.permute.xlu0 %402  ;;  %621 = vmatprep.subr.bf16.mxu0 %v587_v33  ;;  %v552_v41 = vld [vmem:[#allocation2 + $0x130] sm:$0xff] }
  0xc9   : > { %v417_v36 = vsel %vm414_vm7, %v409_v34, %v411_v31  ;;  %v415_v37 = vsel %vm414_vm7, %v403_v35, %v405_v25 }
  0xca   : > { %v586_v38 = vpack.c.bf16 %v417_v36, %v415_v37 }
  0xcc   : > { %v448_v39 = vpop.permute.xlu1 %447  ;;  %v446_v40 = vpop.permute.xlu0 %445  ;;  %v555_v42 = vld [vmem:[#allocation2 + $0x148] sm:$0xff]  ;;  %622 = vmatpush1.bf16.msra.mxu0 %v586_v38 }
  0xcd   : > { %468 = vst.msk [vmem:[#allocation2 + $0x160] sm:$0xff] %vm180_vm0, %v448_v39  ;;  %v457_v43 = vsel %vm455_vm8, %v446_v40, %v448_v39  ;;  %v588_v44 = vpack.c.bf16 %v555_v42, %v552_v41 }
  0xcf   : > { %663 = vmatpush1.bf16.msra.mxu1 %v588_v44 }
  0xd0   : > { %v454_v45 = vpop.permute.xlu1 %453  ;;  %v452_v46 = vpop.permute.xlu0 %451  ;;  %664 = vmatprep.subr.bf16.mxu1 %v862_v0 }
  0xd1   : > { %471 = vst.msk [vmem:[#allocation2 + $0x178] sm:$0xff] %vm180_vm0, %v454_v45  ;;  %v459_v47 = vsel %vm455_vm8, %v452_v46, %v454_v45 }
  0xd2   : > { %v590_v48 = vpack.c.bf16 %v459_v47, %v457_v43 }
  0xd4   : > { %v450_v49 = vpop.permute.xlu1 %449  ;;  %v444_v50 = vpop.permute.xlu0 %443  ;;  %623 = vmatprep.subr.bf16.mxu0 %v590_v48  ;;  %v558_v56 = vld [vmem:[#allocation2 + $0x160] sm:$0xff] }
  0xd5   : > { %v458_v51 = vsel %vm455_vm8, %v450_v49, %v452_v46  ;;  %v456_v52 = vsel %vm455_vm8, %v444_v50, %v446_v40 }
  0xd6   : > { %v589_v53 = vpack.c.bf16 %v458_v51, %v456_v52 }
  0xd8   : > { %v489_v54 = vpop.permute.xlu1 %488  ;;  %v487_v55 = vpop.permute.xlu0 %486  ;;  %v561_v57 = vld [vmem:[#allocation2 + $0x178] sm:$0xff]  ;;  %624 = vmatpush1.bf16.msra.mxu0 %v589_v53 }
  0xd9   : > { %509 = vst.msk [vmem:[#allocation2 + $0x190] sm:$0xff] %vm180_vm0, %v489_v54  ;;  %v498_v58 = vsel %vm496_vm9, %v487_v55, %v489_v54  ;;  %v591_v59 = vpack.c.bf16 %v561_v57, %v558_v56 }
  0xdb   : > { %665 = vmatpush1.bf16.msra.mxu1 %v591_v59 }
  0xdc   : > { %v495_v60 = vpop.permute.xlu1 %494  ;;  %v493_v61 = vpop.permute.xlu0 %492  ;;  %666 = vmatprep.subr.bf16.mxu1 %v862_v0  ;;  %v692_v0 = vlaneseq }
  0xdd   : > { %512 = vst.msk [vmem:[#allocation2 + $0x1a8] sm:$0xff] %vm180_vm0, %v495_v60  ;;  %v500_v62 = vsel %vm496_vm9, %v493_v61, %v495_v60 }
  0xde   : > { %v593_v63 = vpack.c.bf16 %v500_v62, %v498_v58  ;;  %v1035_v9 = vshrl.u32 %v692_v0, 7 }
  0xe0   : > { %v491_v1 = vpop.permute.xlu1 %490  ;;  %v485_v2 = vpop.permute.xlu0 %484  ;;  %625 = vmatprep.subr.bf16.mxu0 %v593_v63  ;;  %v564_v6 = vld [vmem:[#allocation2 + $0x190] sm:$0xff]  ;;  %v694_v10 = vsub.s32 0, %v1035_v9  ;;  %v698_v13 = vsub.s32 1, %v1035_v9  ;;  %v702_v14 = vsub.s32 2, %v1035_v9  ;;  %vm754_vm12 = vcmp.lt.s32.totalorder %v1035_v9, 2 }
  0xe1   : > { %v499_v3 = vsel %vm496_vm9, %v491_v1, %v493_v61  ;;  %v497_v4 = vsel %vm496_vm9, %v485_v2, %v487_v55 }
  0xe2   : > { %v592_v5 = vpack.c.bf16 %v499_v3, %v497_v4  ;;  %v695_v15 = vrot.slane %v690_v11, %v694_v10  ;;  %v699_v16 = vrot.slane %v690_v11, %v698_v13  ;;  %v703_v18 = vrot.slane %v690_v11, %v702_v14 }
  0xe4   : > { %v567_v7 = vld [vmem:[#allocation2 + $0x1a8] sm:$0xff]  ;;  %626 = vmatpush1.bf16.msra.mxu0 %v592_v5 }
  0xe5   : > { %v594_v8 = vpack.c.bf16 %v567_v7, %v564_v6 }
  0xe7   : > { %667 = vmatpush1.bf16.msra.mxu1 %v594_v8  ;;  %642 = vmatmul.mubr.bf16.vlgmr.msra.gmra.mrb[0].mxu0 %v972_v12 }
  0xea   : > { %683 = vmatmul.mubr.bf16.vlgmr.msra.gmra.mrb[0].mxu1 %v972_v12 }
 0x1ba   : > { %v643_v17 = vpop.f32.mrb[0].mxu0 }
 0x1bb   : > { %v707_v19 = vmul.f32 %v695_v15, %v643_v17  ;;  %v645_v12 = vpop.f32.mrb[1].mxu0 }
 0x1bc   : > { %v708_v20 = vmul.f32 %v699_v16, %v645_v12  ;;  %v647_v21 = vpop.f32.mrb[2].mxu0 }
 0x1bd   : > { %v684_v22 = vpop.f32.mrb[0].mxu1  ;;  %v648_v23 = vpop.f32.mrb[3].mxu0  ;;  %v711_v24 = vsel %vm710_vm10, %v707_v19, 0.0 }
 0x1be   : > { %v709_v25 = vmul.f32 %v703_v18, %v684_v22  ;;  %v686_v26 = vpop.f32.mrb[1].mxu1  ;;  %v712_v27 = vsel %vm710_vm10, %v708_v20, 0.0 }
 0x1bf   : > { %v687_v28 = vpop.f32.mrb[2].mxu1  ;;  %v713_v29 = vadd.f32 %v712_v27, %v711_v24 }
 0x1c0   : > { %v688_v30 = vpop.f32.mrb[3].mxu1  ;;  %v715_v31 = vsel %vm714_vm11, %v709_v25, 0.0 }
 0x1c1   : > { %v716_v32 = vadd.f32 %v715_v31, %v713_v29 }
 0x1c3   : > { %717 = vadd.xlane.f32.xlu0 %v716_v32 }
 0x250   : > { %v718_v33 = vpop.xlane.xlu0 %717 }
 0x251   : > { %v720_v34 = vmul.f32 0.00390625, %v718_v33 }
 0x253   : > { %v721_v35 = vsub.f32 %v643_v17, %v720_v34  ;;  %v722_v36 = vsub.f32 %v645_v12, %v720_v34  ;;  %v723_v37 = vsub.f32 %v684_v22, %v720_v34 }
 0x255   : > { %v724_v38 = vmul.f32 %v721_v35, %v695_v15  ;;  %v725_v39 = vmul.f32 %v722_v36, %v699_v16  ;;  %v726_v40 = vmul.f32 %v723_v37, %v703_v18 }
 0x257   : > { %v727_v41 = vmul.f32 %v724_v38, %v724_v38  ;;  %v728_v42 = vmul.f32 %v725_v39, %v725_v39  ;;  %v729_v43 = vmul.f32 %v726_v40, %v726_v40 }
 0x259   : > { %v730_v44 = vsel %vm710_vm10, %v727_v41, 0.0  ;;  %v731_v45 = vsel %vm710_vm10, %v728_v42, 0.0  ;;  %v733_v47 = vsel %vm714_vm11, %v729_v43, 0.0 }
 0x25a   : > { %v732_v46 = vadd.f32 %v731_v45, %v730_v44 }
 0x25c   : > { %v734_v48 = vadd.f32 %v733_v47, %v732_v46 }
 0x25e   : > { %735 = vadd.xlane.f32.xlu1 %v734_v48 }
 0x2eb   : > { %v736_v49 = vpop.xlane.xlu1 %735 }
 0x2ec   : > { %v737_v50 = vmul.f32 0.00390625, %v736_v49 }
 0x2ee   : > { %v738_v51 = vadd.f32 1e-05, %v737_v50 }
 0x2f0   : > { %852 = vrsqrt.f32 %v738_v51 }
 0x2fa   : > { %v853_v52 = vpop.eup %852 }
 0x2fb   : > { %v740_v53 = vmul.f32 %v853_v52, %v721_v35  ;;  %v741_v54 = vmul.f32 %v853_v52, %v722_v36  ;;  %v742_v55 = vmul.f32 %v853_v52, %v723_v37 }
 0x2fd   : > { %vm743_vm13 = vcmp.ge.f32.partialorder %v740_v53, 0.0  ;;  %vm744_vm14 = vcmp.ge.f32.partialorder %v741_v54, 0.0  ;;  %vm745_vm15 = vcmp.ge.f32.partialorder %v742_v55, 0.0  ;;  %v746_v56 = vmul.f32 0.2, %v740_v53 }
 0x2fe   : > { %v747_v57 = vmul.f32 0.2, %v741_v54  ;;  %v748_v58 = vmul.f32 0.2, %v742_v55 }
 0x2ff   : > { %v749_v59 = vsel %vm743_vm13, %v740_v53, %v746_v56 }
 0x300   : > { %v750_v60 = vsel %vm744_vm14, %v741_v54, %v747_v57  ;;  %v751_v61 = vsel %vm745_vm15, %v742_v55, %v748_v58  ;;  %v757_v62 = vsel %vm754_vm12, %v749_v59, %v643_v17 }
 0x301   : > { %v758_v63 = vsel %vm754_vm12, %v750_v60, %v645_v12  ;;  %v759_v1 = vsel %vm754_vm12, %v751_v61, %v684_v22 }
 0x302   : > { %v762_v2 = vcombine.low %v757_v62, %v758_v63  ;;  %765 = vst.msk [vmem:[%s170_s6 + $0x8] sm:$0xf] %vm714_vm11, %v759_v1 }
 0x304   : > { %764 = vst [vmem:[%s170_s6] sm:$0xff] %v762_v2 }
 0x305 PF: > { %s13_s12 = sadd.s32 1, %s860_s12  }
 0x306   : > { %p10_p4 = scmp.ge.s32.totalorder %s13_s12, 4  }
 0x308   :  { %12 = sbr.rel (!%p10_p4) target bundleno = 1 (0x1), region = 62 }

</bundles_post_ra>
